<compile_context>
chip_gen: v7x
topology: tpu7x:2x2x1
jax: 0.10.0
libtpu: 0.0.40
codegen_flags: <defaults>
</compile_context>

<pallas_src>
import functools
import math

import jax
import jax.numpy as jnp
from jax.experimental import pallas as pl
from jax.experimental.pallas import tpu as pltpu

_VMEM_LIMIT_BYTES = 48 * 1024 * 1024   # headroom under v7x's 64 MiB physical VMEM


# ---------------------------------------------------------------------------
# Kernel: 3x3 conv (padding=1) with optional fused BN/ReLU prologue+epilogue,
# fused 1x1 shortcut conv, fused residual add, and optional a1 feature output.
# ---------------------------------------------------------------------------
def _conv3x3_kernel(*refs, H, W, Ho, Wo, Cin, stride,
                    fuse_bn1_relu, fuse_bn2_relu, has_shortcut,
                    has_residual, emit_act):
    it = iter(refs)
    x_ref = next(it)                        # (1, H, W, Cin)  raw input (pre-BN if fused)
    if fuse_bn1_relu:
        s1_ref = next(it)                   # (1, Cin) f32
        b1_ref = next(it)                   # (1, Cin) f32
    w_ref = next(it)                        # (9, Cin, TCout)
    if fuse_bn2_relu:
        s2_ref = next(it)                   # (1, TCout) f32
        b2_ref = next(it)                   # (1, TCout) f32
    if has_shortcut:
        wsc_ref = next(it)                  # (Cin, TCout)
    if has_residual:
        r_ref = next(it)                    # (1, Ho, Wo, TCout)
    o_ref = next(it)                        # (1, Ho, Wo, TCout)   main conv output
    if emit_act:
        act_ref = next(it)                  # (1, H, W, Cin)       a1 = relu(bn1(x))
    if has_shortcut:
        sc_ref = next(it)                   # (1, Ho, Wo, TCout)   1x1 shortcut output
    xp_ref = next(it)                       # (H+2, W+2, Cin)      padded-input VMEM scratch
    acc_ref = next(it)                      # (Ho*Wo, TCout)       f32 VMEM accumulator

    j = pl.program_id(1)

    # Build the (optionally bn1+relu1'd) zero-padded input tile in VMEM once per
    # batch element; the Cout-tile axis (j) revisits the same input block so the
    # scratch (and the resident a1 output block) are reused across it.
    @pl.when(j == 0)
    def _():
        a = x_ref[0].astype(jnp.float32)
        if fuse_bn1_relu:
            a = jnp.maximum(a * s1_ref[0] + b1_ref[0], 0.0)
        if emit_act:
            act_ref[...] = a.reshape(1, H, W, Cin).astype(act_ref.dtype)
        xp_ref[...] = jnp.zeros_like(xp_ref)
        xp_ref[1:H + 1, 1:W + 1, :] = a.astype(xp_ref.dtype)

    # Unrolled loop over the 9 filter taps: each tap is one
    # (Ho*Wo, Cin) @ (Cin, TCout) MXU matmul accumulated in the f32 VMEM scratch.
    for t in range(9):
        di, dj = divmod(t, 3)
        if stride == 1:
            patch = xp_ref[di:di + Ho, dj:dj + Wo, :]
        else:   # direct strided conv: only the needed rows/cols are read
            patch = xp_ref[pl.ds(di, Ho, stride), pl.ds(dj, Wo, stride), :]
        pm = patch.reshape(Ho * Wo, Cin)
        contrib = jnp.dot(pm, w_ref[t], preferred_element_type=jnp.float32)
        if t == 0:
            acc_ref[...] = contrib          # first tap initializes (no zero pass)
        else:
            acc_ref[...] += contrib
        if has_shortcut and t == 4:
            # 1x1 stride-s convShortcut == the (1,1) tap of the padded tile;
            # reuse the patch that is already live in vregs.
            sc = jnp.dot(pm, wsc_ref[...], preferred_element_type=jnp.float32)
            sc_ref[...] = sc.reshape(1, Ho, Wo, sc.shape[-1]).astype(sc_ref.dtype)

    out = acc_ref[...]
    if fuse_bn2_relu:
        out = jnp.maximum(out * s2_ref[...] + b2_ref[...], 0.0)
    if has_residual:
        out = out + r_ref[0].reshape(Ho * Wo, out.shape[-1]).astype(jnp.float32)
    o_ref[...] = out.reshape(1, Ho, Wo, out.shape[-1]).astype(o_ref.dtype)


# ---------------------------------------------------------------------------
# Wrapper around pallas_call
# ---------------------------------------------------------------------------
def conv3x3_fused(x, w_hwio, *, stride=1,
                  bn1_scale=None, bn1_bias=None,
                  bn2_scale=None, bn2_bias=None,
                  w_shortcut=None, residual=None,
                  emit_act=False, compute_dtype=None):
    """3x3 conv (padding=1, no bias), NHWC activations / HWIO weights.

    Optional fusions:
      * bn1_scale/bn1_bias : per-Cin f32 affine + ReLU applied to the input
                             (the bn1+relu1 prologue); with emit_act=True the
                             activated input is returned as an extra output.
      * bn2_scale/bn2_bias : per-Cout f32 affine + ReLU on the conv output.
      * w_shortcut         : (1,1,Cin,Cout) same-stride conv on the same
                             (activated) input, returned as an extra output.
      * residual           : added to the conv output before the store.
    Grid = (N, Cout-tiles); batch is "parallel" (megacore), Cout-tiles are
    "arbitrary" (the padded-input VMEM scratch is reused across them).
    Output order: (conv_out[, activated_input][, shortcut_out]).
    """
    n, h, wd, cin = x.shape
    kh, kw, wcin, cout = w_hwio.shape
    assert (kh, kw) == (3, 3) and wcin == cin
    ho = (h - 1) // stride + 1
    wo = (wd - 1) // stride + 1
    compute_dtype = jnp.dtype(compute_dtype) if compute_dtype is not None else x.dtype
    # Lane-dense Cout tiles when Cout is a multiple of 128, otherwise one tile.
    tcout = 128 if cout % 128 == 0 else cout
    n_ct = cout // tcout

    wk = w_hwio.reshape(9, cin, cout).astype(compute_dtype)

    inputs = [x]
    in_specs = [pl.BlockSpec((1, h, wd, cin), lambda b, j: (b, 0, 0, 0))]

    fuse_bn1 = bn1_scale is not None
    if fuse_bn1:
        inputs += [bn1_scale.reshape(1, cin).astype(jnp.float32),
                   bn1_bias.reshape(1, cin).astype(jnp.float32)]
        in_specs += [pl.BlockSpec((1, cin), lambda b, j: (0, 0)),
                     pl.BlockSpec((1, cin), lambda b, j: (0, 0))]

    inputs.append(wk)
    in_specs.append(pl.BlockSpec((9, cin, tcout), lambda b, j: (0, 0, j)))

    fuse_bn2 = bn2_scale is not None
    if fuse_bn2:
        inputs += [bn2_scale.reshape(1, cout).astype(jnp.float32),
                   bn2_bias.reshape(1, cout).astype(jnp.float32)]
        in_specs += [pl.BlockSpec((1, tcout), lambda b, j: (0, j)),
                     pl.BlockSpec((1, tcout), lambda b, j: (0, j))]

    has_sc = w_shortcut is not None
    if has_sc:
        inputs.append(w_shortcut.reshape(cin, cout).astype(compute_dtype))
        in_specs.append(pl.BlockSpec((cin, tcout), lambda b, j: (0, j)))

    has_res = residual is not None
    if has_res:
        assert residual.shape == (n, ho, wo, cout)
        inputs.append(residual)
        in_specs.append(pl.BlockSpec((1, ho, wo, tcout), lambda b, j: (b, 0, 0, j)))

    out_shapes = [jax.ShapeDtypeStruct((n, ho, wo, cout), x.dtype)]
    out_specs = [pl.BlockSpec((1, ho, wo, tcout), lambda b, j: (b, 0, 0, j))]
    if emit_act:
        out_shapes.append(jax.ShapeDtypeStruct((n, h, wd, cin), x.dtype))
        out_specs.append(pl.BlockSpec((1, h, wd, cin), lambda b, j: (b, 0, 0, 0)))
    if has_sc:
        out_shapes.append(jax.ShapeDtypeStruct((n, ho, wo, cout), x.dtype))
        out_specs.append(pl.BlockSpec((1, ho, wo, tcout), lambda b, j: (b, 0, 0, j)))
    multi_out = len(out_shapes) > 1

    itemsize = jnp.dtype(x.dtype).itemsize
    flops = 2 * n * ho * wo * cout * cin * (9 + (1 if has_sc else 0))
    flops += (3 * n * h * wd * cin if fuse_bn1 else 0)
    flops += (3 + int(has_res)) * n * ho * wo * cout
    bytes_accessed = (x.size * itemsize
                      + wk.size * wk.dtype.itemsize
                      + sum(s.size * itemsize for s in out_shapes)
                      + (residual.size * itemsize if has_res else 0))

    kern = functools.partial(
        _conv3x3_kernel, H=h, W=wd, Ho=ho, Wo=wo, Cin=cin, stride=stride,
        fuse_bn1_relu=fuse_bn1, fuse_bn2_relu=fuse_bn2,
        has_shortcut=has_sc, has_residual=has_res, emit_act=emit_act)

    return pl.pallas_call(
        kern,
        grid=(n, n_ct),
        in_specs=in_specs,
        out_specs=tuple(out_specs) if multi_out else out_specs[0],
        out_shape=tuple(out_shapes) if multi_out else out_shapes[0],
        scratch_shapes=[pltpu.VMEM((h + 2, wd + 2, cin), compute_dtype),
                        pltpu.VMEM((ho * wo, tcout), jnp.float32)],
        compiler_params=pltpu.CompilerParams(
            dimension_semantics=("parallel", "arbitrary"),
            vmem_limit_bytes=_VMEM_LIMIT_BYTES),
        cost_estimate=pl.CostEstimate(flops=flops, transcendentals=0,
                                      bytes_accessed=bytes_accessed),
    )(*inputs)


# ---------------------------------------------------------------------------
# OrderedBasicBlock forward (two pallas_calls total)
# ---------------------------------------------------------------------------
def ordered_basic_block_forward(x_nchw, params, stride, equal_in_out,
                                compute_dtype=None):
    """Returns (out_nchw, [a1_nchw, a2_nchw]) matching OrderedBasicBlock.forward."""
    x = jnp.transpose(x_nchw, (0, 2, 3, 1))            # NCHW -> NHWC

    def bn_affine(bnp):
        g, b, m, v = bnp
        inv = jax.lax.rsqrt(v.astype(jnp.float32) + 1e-5)
        scale = g.astype(jnp.float32) * inv
        bias = b.astype(jnp.float32) - m.astype(jnp.float32) * scale
        return scale, bias

    scale1, bias1 = bn_affine(params["bn1"])
    scale2, bias2 = bn_affine(params["bn2"])

    if equal_in_out:
        # conv1 with fused bn1+relu1 prologue (a1 emitted) and bn2+relu2 epilogue
        # (-> a2); identity shortcut.
        a2, a1 = conv3x3_fused(x, params["w1"], stride=stride,
                               bn1_scale=scale1, bn1_bias=bias1,
                               bn2_scale=scale2, bn2_bias=bias2,
                               emit_act=True, compute_dtype=compute_dtype)
        res = x
    else:
        # conv1 (+ fused bn1/relu1 prologue, bn2/relu2 epilogue) and the 1x1
        # convShortcut share one kernel and the same resident a1 tile.
        a2, a1, res = conv3x3_fused(x, params["w1"], stride=stride,
                                    bn1_scale=scale1, bn1_bias=bias1,
                                    bn2_scale=scale2, bn2_bias=bias2,
                                    w_shortcut=params["w_sc"],
                                    emit_act=True, compute_dtype=compute_dtype)

    # TODO(synk): training-mode dropout (droprate > 0) not implemented; the
    # module default droprate=0.0 makes it an identity in this forward.

    out = conv3x3_fused(a2, params["w2"], stride=1, residual=res,
                        compute_dtype=compute_dtype)   # conv2 + fused residual add

    to_nchw = lambda t: jnp.transpose(t, (0, 3, 1, 2))
    return to_nchw(out), [to_nchw(a1), to_nchw(a2)]


# ---------------------------------------------------------------------------
# Deterministic parameter init (shapes implied by the module's __init__)
# ---------------------------------------------------------------------------
def init_params(key, cin, cout, equal_in_out):
    keys = jax.random.split(key, 5)

    def bn(k, c):
        k1, k2, k3, k4 = jax.random.split(k, 4)
        gamma = jax.random.uniform(k1, (c,), jnp.float32, 0.5, 1.5)
        beta = 0.1 * jax.random.normal(k2, (c,), jnp.float32)
        mean = 0.1 * jax.random.normal(k3, (c,), jnp.float32)
        var = jax.random.uniform(k4, (c,), jnp.float32, 0.5, 1.5)
        return (gamma, beta, mean, var)

    p = {
        "bn1": bn(keys[0], cin),
        "bn2": bn(keys[1], cout),
        "w1": jax.random.normal(keys[2], (3, 3, cin, cout), jnp.float32)
              * math.sqrt(2.0 / (9 * cout)),
        "w2": jax.random.normal(keys[3], (3, 3, cout, cout), jnp.float32)
              * math.sqrt(2.0 / (9 * cout)),
    }
    if not equal_in_out:
        p["w_sc"] = jax.random.normal(keys[4], (1, 1, cin, cout), jnp.float32) \
                    * math.sqrt(2.0 / cout)
    return p


# ---------------------------------------------------------------------------
# Pure-JAX reference (correctness check)
# ---------------------------------------------------------------------------
def ref_block(x_nchw, p, stride, equal_in_out):
    x = jnp.transpose(x_nchw, (0, 2, 3, 1))

    def bn_relu_ref(v, bnp):
        g, b, m, var = bnp
        return jnp.maximum((v - m) / jnp.sqrt(var + 1e-5) * g + b, 0.0)

    def conv_ref(v, w, s, pad):
        return jax.lax.conv_general_dilated(
            v, w, (s, s), [(pad, pad), (pad, pad)],
            dimension_numbers=("NHWC", "HWIO", "NHWC"),
            precision=jax.lax.Precision.HIGHEST)

    a1 = bn_relu_ref(x, p["bn1"])
    c1 = conv_ref(a1, p["w1"], stride, 1)
    a2 = bn_relu_ref(c1, p["bn2"])
    c2 = conv_ref(a2, p["w2"], 1, 1)
    res = x if equal_in_out else conv_ref(a1, p["w_sc"], stride, 0)
    out = res + c2
    to_nchw = lambda t: jnp.transpose(t, (0, 3, 1, 2))
    return to_nchw(out), [to_nchw(a1), to_nchw(a2)]


# ---------------------------------------------------------------------------
if __name__ == "__main__":
    key = jax.random.PRNGKey(0)
    kx, kp1, kp2 = jax.random.split(key, 3)

    fwd = jax.jit(ordered_basic_block_forward, static_argnums=(2, 3))

    # Case A: equalInOut (identity shortcut), stride 1
    N, C, H, W = 2, 16, 16, 16
    x = jax.random.normal(kx, (N, C, H, W), jnp.float32)
    pA = init_params(kp1, C, C, equal_in_out=True)
    outA, featsA = fwd(x, pA, 1, True)
    jax.block_until_ready(outA)

    # Case B: channel expansion + stride-2 downsample (1x1 convShortcut branch)
    COUT = 32
    pB = init_params(kp2, C, COUT, equal_in_out=False)
    outB, featsB = fwd(x, pB, 2, False)
    jax.block_until_ready(outB)

    # Cross-check against the pure-JAX reference.
    refA, rfeatsA = ref_block(x, pA, 1, True)
    refB, rfeatsB = ref_block(x, pB, 2, False)
    pairs = ([(outA, refA), (outB, refB)]
             + list(zip(featsA, rfeatsA)) + list(zip(featsB, rfeatsB)))
    for got, exp in pairs:
        assert got.shape == exp.shape, (got.shape, exp.shape)
        err = float(jnp.max(jnp.abs(got - exp)))
        assert bool(jnp.allclose(got, exp, atol=1e-2, rtol=1e-2)), err

    print("KERNEL_OK")
</pallas_src>

<mosaic_0001>
module attributes {stable_mosaic.version = 11 : i64} {
  func.func @_conv3x3_kernel(%arg0: i32, %arg1: i32, %arg2: memref<1x16x16x16xf32, #tpu.memory_space<vmem>>, %arg3: memref<1x16xf32, #tpu.memory_space<vmem>>, %arg4: memref<1x16xf32, #tpu.memory_space<vmem>>, %arg5: memref<9x16x16xf32, #tpu.memory_space<vmem>>, %arg6: memref<1x16xf32, #tpu.memory_space<vmem>>, %arg7: memref<1x16xf32, #tpu.memory_space<vmem>>, %arg8: memref<1x16x16x16xf32, #tpu.memory_space<vmem>>, %arg9: memref<1x16x16x16xf32, #tpu.memory_space<vmem>>, %arg10: memref<18x18x16xf32, #tpu.memory_space<vmem>>, %arg11: memref<256x16xf32, #tpu.memory_space<vmem>>) attributes {dimension_semantics = [#tpu.dimension_semantics<parallel>, #tpu.dimension_semantics<arbitrary>], iteration_bounds = array<i64: 2, 1>, scalar_prefetch = 0 : i64, scratch_operands = 2 : i64, tpu.core_type = #tpu.core_type<tc>, window_params = [{transform_indices = @transform_0, window_bounds = array<i64: 1, 16, 16, 16>}, {pipeline_mode = #tpu.pipeline_mode<synchronous>, transform_indices = @transform_1, window_bounds = array<i64: 1, 16>}, {pipeline_mode = #tpu.pipeline_mode<synchronous>, transform_indices = @transform_2, window_bounds = array<i64: 1, 16>}, {transform_indices = @transform_3, window_bounds = array<i64: 9, 16, 16>}, {transform_indices = @transform_4, window_bounds = array<i64: 1, 16>}, {transform_indices = @transform_5, window_bounds = array<i64: 1, 16>}, {transform_indices = @transform_6, window_bounds = array<i64: 1, 16, 16, 16>}, {transform_indices = @transform_7, window_bounds = array<i64: 1, 16, 16, 16>}]} {
    %c0_i32 = arith.constant 0 : i32
    %0 = arith.cmpi eq, %arg1, %c0_i32 : i32
    %1 = arith.extui %0 : i1 to i32
    %c0_i32_0 = arith.constant 0 : i32
    %2 = arith.cmpi ne, %1, %c0_i32_0 : i32
    scf.if %2 {
      %c0_99 = arith.constant 0 : index
      %c0_100 = arith.constant 0 : index
      %c0_101 = arith.constant 0 : index
      %c0_102 = arith.constant 0 : index
      %84 = vector.load %arg2[%c0_99, %c0_100, %c0_101, %c0_102] : memref<1x16x16x16xf32, #tpu.memory_space<vmem>>, vector<1x16x16x16xf32>
      %85 = vector.shape_cast %84 : vector<1x16x16x16xf32> to vector<16x16x16xf32>
      %c0_103 = arith.constant 0 : index
      %c0_104 = arith.constant 0 : index
      %86 = vector.load %arg3[%c0_103, %c0_104] : memref<1x16xf32, #tpu.memory_space<vmem>>, vector<1x16xf32>
      %87 = vector.shape_cast %86 : vector<1x16xf32> to vector<16xf32>
      %88 = vector.shape_cast %87 : vector<16xf32> to vector<1x1x16xf32>
      %89 = vector.broadcast %88 : vector<1x1x16xf32> to vector<16x16x16xf32>
      %90 = arith.mulf %85, %89 : vector<16x16x16xf32>
      %c0_105 = arith.constant 0 : index
      %c0_106 = arith.constant 0 : index
      %91 = vector.load %arg4[%c0_105, %c0_106] : memref<1x16xf32, #tpu.memory_space<vmem>>, vector<1x16xf32>
      %92 = vector.shape_cast %91 : vector<1x16xf32> to vector<16xf32>
      %93 = vector.shape_cast %92 : vector<16xf32> to vector<1x1x16xf32>
      %94 = vector.broadcast %93 : vector<1x1x16xf32> to vector<16x16x16xf32>
      %95 = arith.addf %90, %94 : vector<16x16x16xf32>
      %cst_107 = arith.constant 0.000000e+00 : f32
      %96 = vector.broadcast %cst_107 : f32 to vector<16x16x16xf32>
      %97 = arith.maximumf %95, %96 : vector<16x16x16xf32>
      %98 = vector.shape_cast %97 : vector<16x16x16xf32> to vector<1x16x16x16xf32>
      %c0_108 = arith.constant 0 : index
      %c0_109 = arith.constant 0 : index
      %c0_110 = arith.constant 0 : index
      %c0_111 = arith.constant 0 : index
      %99 = vector.load %arg9[%c0_108, %c0_109, %c0_110, %c0_111] : memref<1x16x16x16xf32, #tpu.memory_space<vmem>>, vector<1x16x16x16xf32>
      tpu.vector_store %arg9[%c0_108, %c0_109, %c0_110, %c0_111], %98 {strides = array<i32>} : memref<1x16x16x16xf32, #tpu.memory_space<vmem>>, vector<1x16x16x16xf32>,
      %cst_112 = arith.constant 0.000000e+00 : f32
      %100 = vector.broadcast %cst_112 : f32 to vector<18x18x16xf32>
      %c0_113 = arith.constant 0 : index
      %c0_114 = arith.constant 0 : index
      %c0_115 = arith.constant 0 : index
      %101 = vector.load %arg10[%c0_113, %c0_114, %c0_115] : memref<18x18x16xf32, #tpu.memory_space<vmem>>, vector<18x18x16xf32>
      tpu.vector_store %arg10[%c0_113, %c0_114, %c0_115], %100 {strides = array<i32>} : memref<18x18x16xf32, #tpu.memory_space<vmem>>, vector<18x18x16xf32>,
      %c1_116 = arith.constant 1 : index
      %c1_117 = arith.constant 1 : index
      %c0_118 = arith.constant 0 : index
      %102 = vector.load %arg10[%c1_116, %c1_117, %c0_118] : memref<18x18x16xf32, #tpu.memory_space<vmem>>, vector<16x16x16xf32>
      tpu.vector_store %arg10[%c1_116, %c1_117, %c0_118], %97 {strides = array<i32>} : memref<18x18x16xf32, #tpu.memory_space<vmem>>, vector<16x16x16xf32>,
    } else {
    }
    %c0 = arith.constant 0 : index
    %c0_1 = arith.constant 0 : index
    %c0_2 = arith.constant 0 : index
    %3 = vector.load %arg10[%c0, %c0_1, %c0_2] : memref<18x18x16xf32, #tpu.memory_space<vmem>>, vector<16x16x16xf32>
    %4 = vector.shape_cast %3 : vector<16x16x16xf32> to vector<256x16xf32>
    %c0_3 = arith.constant 0 : index
    %c0_4 = arith.constant 0 : index
    %c0_5 = arith.constant 0 : index
    %5 = vector.load %arg5[%c0_3, %c0_4, %c0_5] : memref<9x16x16xf32, #tpu.memory_space<vmem>>, vector<1x16x16xf32>
    %6 = vector.shape_cast %5 : vector<1x16x16xf32> to vector<16x16xf32>
    %cst = arith.constant dense<0.000000e+00> : vector<256x16xf32>
    %7 = tpu.matmul %4, %6, %cst {dimension_numbers = #tpu.dot_dimension_numbers<[1], [0], [0], [1], [0, 0, 1, 1], [], []>} : vector<256x16xf32>, vector<16x16xf32>, vector<256x16xf32> -> vector<256x16xf32>
    %c0_6 = arith.constant 0 : index
    %c0_7 = arith.constant 0 : index
    %8 = vector.load %arg11[%c0_6, %c0_7] : memref<256x16xf32, #tpu.memory_space<vmem>>, vector<256x16xf32>
    tpu.vector_store %arg11[%c0_6, %c0_7], %7 {strides = array<i32>} : memref<256x16xf32, #tpu.memory_space<vmem>>, vector<256x16xf32>,
    %c0_8 = arith.constant 0 : index
    %c1 = arith.constant 1 : index
    %c0_9 = arith.constant 0 : index
    %9 = vector.load %arg10[%c0_8, %c1, %c0_9] : memref<18x18x16xf32, #tpu.memory_space<vmem>>, vector<16x16x16xf32>
    %10 = vector.shape_cast %9 : vector<16x16x16xf32> to vector<256x16xf32>
    %c1_10 = arith.constant 1 : index
    %c0_11 = arith.constant 0 : index
    %c0_12 = arith.constant 0 : index
    %11 = vector.load %arg5[%c1_10, %c0_11, %c0_12] : memref<9x16x16xf32, #tpu.memory_space<vmem>>, vector<1x16x16xf32>
    %12 = vector.shape_cast %11 : vector<1x16x16xf32> to vector<16x16xf32>
    %cst_13 = arith.constant dense<0.000000e+00> : vector<256x16xf32>
    %13 = tpu.matmul %10, %12, %cst_13 {dimension_numbers = #tpu.dot_dimension_numbers<[1], [0], [0], [1], [0, 0, 1, 1], [], []>} : vector<256x16xf32>, vector<16x16xf32>, vector<256x16xf32> -> vector<256x16xf32>
    %c0_14 = arith.constant 0 : index
    %c0_15 = arith.constant 0 : index
    %14 = vector.load %arg11[%c0_14, %c0_15] : memref<256x16xf32, #tpu.memory_space<vmem>>, vector<256x16xf32>
    %15 = arith.addf %14, %13 : vector<256x16xf32>
    %c0_16 = arith.constant 0 : index
    %c0_17 = arith.constant 0 : index
    %16 = vector.load %arg11[%c0_16, %c0_17] : memref<256x16xf32, #tpu.memory_space<vmem>>, vector<256x16xf32>
    tpu.vector_store %arg11[%c0_16, %c0_17], %15 {strides = array<i32>} : memref<256x16xf32, #tpu.memory_space<vmem>>, vector<256x16xf32>,
    %c0_18 = arith.constant 0 : index
    %c2 = arith.constant 2 : index
    %c0_19 = arith.constant 0 : index
    %17 = vector.load %arg10[%c0_18, %c2, %c0_19] : memref<18x18x16xf32, #tpu.memory_space<vmem>>, vector<16x16x16xf32>
    %18 = vector.shape_cast %17 : vector<16x16x16xf32> to vector<256x16xf32>
    %c2_20 = arith.constant 2 : index
    %c0_21 = arith.constant 0 : index
    %c0_22 = arith.constant 0 : index
    %19 = vector.load %arg5[%c2_20, %c0_21, %c0_22] : memref<9x16x16xf32, #tpu.memory_space<vmem>>, vector<1x16x16xf32>
    %20 = vector.shape_cast %19 : vector<1x16x16xf32> to vector<16x16xf32>
    %cst_23 = arith.constant dense<0.000000e+00> : vector<256x16xf32>
    %21 = tpu.matmul %18, %20, %cst_23 {dimension_numbers = #tpu.dot_dimension_numbers<[1], [0], [0], [1], [0, 0, 1, 1], [], []>} : vector<256x16xf32>, vector<16x16xf32>, vector<256x16xf32> -> vector<256x16xf32>
    %c0_24 = arith.constant 0 : index
    %c0_25 = arith.constant 0 : index
    %22 = vector.load %arg11[%c0_24, %c0_25] : memref<256x16xf32, #tpu.memory_space<vmem>>, vector<256x16xf32>
    %23 = arith.addf %22, %21 : vector<256x16xf32>
    %c0_26 = arith.constant 0 : index
    %c0_27 = arith.constant 0 : index
    %24 = vector.load %arg11[%c0_26, %c0_27] : memref<256x16xf32, #tpu.memory_space<vmem>>, vector<256x16xf32>
    tpu.vector_store %arg11[%c0_26, %c0_27], %23 {strides = array<i32>} : memref<256x16xf32, #tpu.memory_space<vmem>>, vector<256x16xf32>,
    %c1_28 = arith.constant 1 : index
    %c0_29 = arith.constant 0 : index
    %c0_30 = arith.constant 0 : index
    %25 = vector.load %arg10[%c1_28, %c0_29, %c0_30] : memref<18x18x16xf32, #tpu.memory_space<vmem>>, vector<16x16x16xf32>
    %26 = vector.shape_cast %25 : vector<16x16x16xf32> to vector<256x16xf32>
    %c3 = arith.constant 3 : index
    %c0_31 = arith.constant 0 : index
    %c0_32 = arith.constant 0 : index
    %27 = vector.load %arg5[%c3, %c0_31, %c0_32] : memref<9x16x16xf32, #tpu.memory_space<vmem>>, vector<1x16x16xf32>
    %28 = vector.shape_cast %27 : vector<1x16x16xf32> to vector<16x16xf32>
    %cst_33 = arith.constant dense<0.000000e+00> : vector<256x16xf32>
    %29 = tpu.matmul %26, %28, %cst_33 {dimension_numbers = #tpu.dot_dimension_numbers<[1], [0], [0], [1], [0, 0, 1, 1], [], []>} : vector<256x16xf32>, vector<16x16xf32>, vector<256x16xf32> -> vector<256x16xf32>
    %c0_34 = arith.constant 0 : index
    %c0_35 = arith.constant 0 : index
    %30 = vector.load %arg11[%c0_34, %c0_35] : memref<256x16xf32, #tpu.memory_space<vmem>>, vector<256x16xf32>
    %31 = arith.addf %30, %29 : vector<256x16xf32>
    %c0_36 = arith.constant 0 : index
    %c0_37 = arith.constant 0 : index
    %32 = vector.load %arg11[%c0_36, %c0_37] : memref<256x16xf32, #tpu.memory_space<vmem>>, vector<256x16xf32>
    tpu.vector_store %arg11[%c0_36, %c0_37], %31 {strides = array<i32>} : memref<256x16xf32, #tpu.memory_space<vmem>>, vector<256x16xf32>,
    %c1_38 = arith.constant 1 : index
    %c1_39 = arith.constant 1 : index
    %c0_40 = arith.constant 0 : index
    %33 = vector.load %arg10[%c1_38, %c1_39, %c0_40] : memref<18x18x16xf32, #tpu.memory_space<vmem>>, vector<16x16x16xf32>
    %34 = vector.shape_cast %33 : vector<16x16x16xf32> to vector<256x16xf32>
    %c4 = arith.constant 4 : index
    %c0_41 = arith.constant 0 : index
    %c0_42 = arith.constant 0 : index
    %35 = vector.load %arg5[%c4, %c0_41, %c0_42] : memref<9x16x16xf32, #tpu.memory_space<vmem>>, vector<1x16x16xf32>
    %36 = vector.shape_cast %35 : vector<1x16x16xf32> to vector<16x16xf32>
    %cst_43 = arith.constant dense<0.000000e+00> : vector<256x16xf32>
    %37 = tpu.matmul %34, %36, %cst_43 {dimension_numbers = #tpu.dot_dimension_numbers<[1], [0], [0], [1], [0, 0, 1, 1], [], []>} : vector<256x16xf32>, vector<16x16xf32>, vector<256x16xf32> -> vector<256x16xf32>
    %c0_44 = arith.constant 0 : index
    %c0_45 = arith.constant 0 : index
    %38 = vector.load %arg11[%c0_44, %c0_45] : memref<256x16xf32, #tpu.memory_space<vmem>>, vector<256x16xf32>
    %39 = arith.addf %38, %37 : vector<256x16xf32>
    %c0_46 = arith.constant 0 : index
    %c0_47 = arith.constant 0 : index
    %40 = vector.load %arg11[%c0_46, %c0_47] : memref<256x16xf32, #tpu.memory_space<vmem>>, vector<256x16xf32>
    tpu.vector_store %arg11[%c0_46, %c0_47], %39 {strides = array<i32>} : memref<256x16xf32, #tpu.memory_space<vmem>>, vector<256x16xf32>,
    %c1_48 = arith.constant 1 : index
    %c2_49 = arith.constant 2 : index
    %c0_50 = arith.constant 0 : index
    %41 = vector.load %arg10[%c1_48, %c2_49, %c0_50] : memref<18x18x16xf32, #tpu.memory_space<vmem>>, vector<16x16x16xf32>
    %42 = vector.shape_cast %41 : vector<16x16x16xf32> to vector<256x16xf32>
    %c5 = arith.constant 5 : index
    %c0_51 = arith.constant 0 : index
    %c0_52 = arith.constant 0 : index
    %43 = vector.load %arg5[%c5, %c0_51, %c0_52] : memref<9x16x16xf32, #tpu.memory_space<vmem>>, vector<1x16x16xf32>
    %44 = vector.shape_cast %43 : vector<1x16x16xf32> to vector<16x16xf32>
    %cst_53 = arith.constant dense<0.000000e+00> : vector<256x16xf32>
    %45 = tpu.matmul %42, %44, %cst_53 {dimension_numbers = #tpu.dot_dimension_numbers<[1], [0], [0], [1], [0, 0, 1, 1], [], []>} : vector<256x16xf32>, vector<16x16xf32>, vector<256x16xf32> -> vector<256x16xf32>
    %c0_54 = arith.constant 0 : index
    %c0_55 = arith.constant 0 : index
    %46 = vector.load %arg11[%c0_54, %c0_55] : memref<256x16xf32, #tpu.memory_space<vmem>>, vector<256x16xf32>
    %47 = arith.addf %46, %45 : vector<256x16xf32>
    %c0_56 = arith.constant 0 : index
    %c0_57 = arith.constant 0 : index
    %48 = vector.load %arg11[%c0_56, %c0_57] : memref<256x16xf32, #tpu.memory_space<vmem>>, vector<256x16xf32>
    tpu.vector_store %arg11[%c0_56, %c0_57], %47 {strides = array<i32>} : memref<256x16xf32, #tpu.memory_space<vmem>>, vector<256x16xf32>,
    %c2_58 = arith.constant 2 : index
    %c0_59 = arith.constant 0 : index
    %c0_60 = arith.constant 0 : index
    %49 = vector.load %arg10[%c2_58, %c0_59, %c0_60] : memref<18x18x16xf32, #tpu.memory_space<vmem>>, vector<16x16x16xf32>
    %50 = vector.shape_cast %49 : vector<16x16x16xf32> to vector<256x16xf32>
    %c6 = arith.constant 6 : index
    %c0_61 = arith.constant 0 : index
    %c0_62 = arith.constant 0 : index
    %51 = vector.load %arg5[%c6, %c0_61, %c0_62] : memref<9x16x16xf32, #tpu.memory_space<vmem>>, vector<1x16x16xf32>
    %52 = vector.shape_cast %51 : vector<1x16x16xf32> to vector<16x16xf32>
    %cst_63 = arith.constant dense<0.000000e+00> : vector<256x16xf32>
    %53 = tpu.matmul %50, %52, %cst_63 {dimension_numbers = #tpu.dot_dimension_numbers<[1], [0], [0], [1], [0, 0, 1, 1], [], []>} : vector<256x16xf32>, vector<16x16xf32>, vector<256x16xf32> -> vector<256x16xf32>
    %c0_64 = arith.constant 0 : index
    %c0_65 = arith.constant 0 : index
    %54 = vector.load %arg11[%c0_64, %c0_65] : memref<256x16xf32, #tpu.memory_space<vmem>>, vector<256x16xf32>
    %55 = arith.addf %54, %53 : vector<256x16xf32>
    %c0_66 = arith.constant 0 : index
    %c0_67 = arith.constant 0 : index
    %56 = vector.load %arg11[%c0_66, %c0_67] : memref<256x16xf32, #tpu.memory_space<vmem>>, vector<256x16xf32>
    tpu.vector_store %arg11[%c0_66, %c0_67], %55 {strides = array<i32>} : memref<256x16xf32, #tpu.memory_space<vmem>>, vector<256x16xf32>,
    %c2_68 = arith.constant 2 : index
    %c1_69 = arith.constant 1 : index
    %c0_70 = arith.constant 0 : index
    %57 = vector.load %arg10[%c2_68, %c1_69, %c0_70] : memref<18x18x16xf32, #tpu.memory_space<vmem>>, vector<16x16x16xf32>
    %58 = vector.shape_cast %57 : vector<16x16x16xf32> to vector<256x16xf32>
    %c7 = arith.constant 7 : index
    %c0_71 = arith.constant 0 : index
    %c0_72 = arith.constant 0 : index
    %59 = vector.load %arg5[%c7, %c0_71, %c0_72] : memref<9x16x16xf32, #tpu.memory_space<vmem>>, vector<1x16x16xf32>
    %60 = vector.shape_cast %59 : vector<1x16x16xf32> to vector<16x16xf32>
    %cst_73 = arith.constant dense<0.000000e+00> : vector<256x16xf32>
    %61 = tpu.matmul %58, %60, %cst_73 {dimension_numbers = #tpu.dot_dimension_numbers<[1], [0], [0], [1], [0, 0, 1, 1], [], []>} : vector<256x16xf32>, vector<16x16xf32>, vector<256x16xf32> -> vector<256x16xf32>
    %c0_74 = arith.constant 0 : index
    %c0_75 = arith.constant 0 : index
    %62 = vector.load %arg11[%c0_74, %c0_75] : memref<256x16xf32, #tpu.memory_space<vmem>>, vector<256x16xf32>
    %63 = arith.addf %62, %61 : vector<256x16xf32>
    %c0_76 = arith.constant 0 : index
    %c0_77 = arith.constant 0 : index
    %64 = vector.load %arg11[%c0_76, %c0_77] : memref<256x16xf32, #tpu.memory_space<vmem>>, vector<256x16xf32>
    tpu.vector_store %arg11[%c0_76, %c0_77], %63 {strides = array<i32>} : memref<256x16xf32, #tpu.memory_space<vmem>>, vector<256x16xf32>,
    %c2_78 = arith.constant 2 : index
    %c2_79 = arith.constant 2 : index
    %c0_80 = arith.constant 0 : index
    %65 = vector.load %arg10[%c2_78, %c2_79, %c0_80] : memref<18x18x16xf32, #tpu.memory_space<vmem>>, vector<16x16x16xf32>
    %66 = vector.shape_cast %65 : vector<16x16x16xf32> to vector<256x16xf32>
    %c8 = arith.constant 8 : index
    %c0_81 = arith.constant 0 : index
    %c0_82 = arith.constant 0 : index
    %67 = vector.load %arg5[%c8, %c0_81, %c0_82] : memref<9x16x16xf32, #tpu.memory_space<vmem>>, vector<1x16x16xf32>
    %68 = vector.shape_cast %67 : vector<1x16x16xf32> to vector<16x16xf32>
    %cst_83 = arith.constant dense<0.000000e+00> : vector<256x16xf32>
    %69 = tpu.matmul %66, %68, %cst_83 {dimension_numbers = #tpu.dot_dimension_numbers<[1], [0], [0], [1], [0, 0, 1, 1], [], []>} : vector<256x16xf32>, vector<16x16xf32>, vector<256x16xf32> -> vector<256x16xf32>
    %c0_84 = arith.constant 0 : index
    %c0_85 = arith.constant 0 : index
    %70 = vector.load %arg11[%c0_84, %c0_85] : memref<256x16xf32, #tpu.memory_space<vmem>>, vector<256x16xf32>
    %71 = arith.addf %70, %69 : vector<256x16xf32>
    %c0_86 = arith.constant 0 : index
    %c0_87 = arith.constant 0 : index
    %72 = vector.load %arg11[%c0_86, %c0_87] : memref<256x16xf32, #tpu.memory_space<vmem>>, vector<256x16xf32>
    tpu.vector_store %arg11[%c0_86, %c0_87], %71 {strides = array<i32>} : memref<256x16xf32, #tpu.memory_space<vmem>>, vector<256x16xf32>,
    %c0_88 = arith.constant 0 : index
    %c0_89 = arith.constant 0 : index
    %73 = vector.load %arg11[%c0_88, %c0_89] : memref<256x16xf32, #tpu.memory_space<vmem>>, vector<256x16xf32>
    %c0_90 = arith.constant 0 : index
    %c0_91 = arith.constant 0 : index
    %74 = vector.load %arg6[%c0_90, %c0_91] : memref<1x16xf32, #tpu.memory_space<vmem>>, vector<1x16xf32>
    %75 = vector.broadcast %74 : vector<1x16xf32> to vector<256x16xf32>
    %76 = arith.mulf %73, %75 : vector<256x16xf32>
    %c0_92 = arith.constant 0 : index
    %c0_93 = arith.constant 0 : index
    %77 = vector.load %arg7[%c0_92, %c0_93] : memref<1x16xf32, #tpu.memory_space<vmem>>, vector<1x16xf32>
    %78 = vector.broadcast %77 : vector<1x16xf32> to vector<256x16xf32>
    %79 = arith.addf %76, %78 : vector<256x16xf32>
    %cst_94 = arith.constant 0.000000e+00 : f32
    %80 = vector.broadcast %cst_94 : f32 to vector<256x16xf32>
    %81 = arith.maximumf %79, %80 : vector<256x16xf32>
    %82 = vector.shape_cast %81 : vector<256x16xf32> to vector<1x16x16x16xf32>
    %c0_95 = arith.constant 0 : index
    %c0_96 = arith.constant 0 : index
    %c0_97 = arith.constant 0 : index
    %c0_98 = arith.constant 0 : index
    %83 = vector.load %arg8[%c0_95, %c0_96, %c0_97, %c0_98] : memref<1x16x16x16xf32, #tpu.memory_space<vmem>>, vector<1x16x16x16xf32>
    tpu.vector_store %arg8[%c0_95, %c0_96, %c0_97, %c0_98], %82 {strides = array<i32>} : memref<1x16x16x16xf32, #tpu.memory_space<vmem>>, vector<1x16x16x16xf32>,
    return
  }
  func.func @transform_0(%arg0: i32, %arg1: i32) -> (i32, i32, i32, i32) {
    %c0_i32 = arith.constant 0 : i32
    %c0_i32_0 = arith.constant 0 : i32
    %c0_i32_1 = arith.constant 0 : i32
    %c0_i32_2 = arith.constant 0 : i32
    return %arg0, %c0_i32, %c0_i32_0, %c0_i32_1 : i32, i32, i32, i32
  }
  func.func @transform_1(%arg0: i32, %arg1: i32) -> (i32, i32) {
    %c0_i32 = arith.constant 0 : i32
    %c0_i32_0 = arith.constant 0 : i32
    %c0_i32_1 = arith.constant 0 : i32
    return %c0_i32, %c0_i32_0 : i32, i32
  }
  func.func @transform_2(%arg0: i32, %arg1: i32) -> (i32, i32) {
    %c0_i32 = arith.constant 0 : i32
    %c0_i32_0 = arith.constant 0 : i32
    %c0_i32_1 = arith.constant 0 : i32
    return %c0_i32, %c0_i32_0 : i32, i32
  }
  func.func @transform_3(%arg0: i32, %arg1: i32) -> (i32, i32, i32) {
    %c0_i32 = arith.constant 0 : i32
    %c0_i32_0 = arith.constant 0 : i32
    %c0_i32_1 = arith.constant 0 : i32
    return %c0_i32, %c0_i32_0, %arg1 : i32, i32, i32
  }
  func.func @transform_4(%arg0: i32, %arg1: i32) -> (i32, i32) {
    %c0_i32 = arith.constant 0 : i32
    %c0_i32_0 = arith.constant 0 : i32
    return %c0_i32, %arg1 : i32, i32
  }
  func.func @transform_5(%arg0: i32, %arg1: i32) -> (i32, i32) {
    %c0_i32 = arith.constant 0 : i32
    %c0_i32_0 = arith.constant 0 : i32
    return %c0_i32, %arg1 : i32, i32
  }
  func.func @transform_6(%arg0: i32, %arg1: i32) -> (i32, i32, i32, i32) {
    %c0_i32 = arith.constant 0 : i32
    %c0_i32_0 = arith.constant 0 : i32
    %c0_i32_1 = arith.constant 0 : i32
    return %arg0, %c0_i32, %c0_i32_0, %arg1 : i32, i32, i32, i32
  }
  func.func @transform_7(%arg0: i32, %arg1: i32) -> (i32, i32, i32, i32) {
    %c0_i32 = arith.constant 0 : i32
    %c0_i32_0 = arith.constant 0 : i32
    %c0_i32_1 = arith.constant 0 : i32
    %c0_i32_2 = arith.constant 0 : i32
    return %arg0, %c0_i32, %c0_i32_0, %c0_i32_1 : i32, i32, i32, i32
  }
}

module attributes {stable_mosaic.version = 11 : i64} {
  func.func @_conv3x3_kernel(%arg0: i32, %arg1: i32, %arg2: memref<1x16x16x16xf32, #tpu.memory_space<vmem>>, %arg3: memref<9x16x16xf32, #tpu.memory_space<vmem>>, %arg4: memref<1x16x16x16xf32, #tpu.memory_space<vmem>>, %arg5: memref<1x16x16x16xf32, #tpu.memory_space<vmem>>, %arg6: memref<18x18x16xf32, #tpu.memory_space<vmem>>, %arg7: memref<256x16xf32, #tpu.memory_space<vmem>>) attributes {dimension_semantics = [#tpu.dimension_semantics<parallel>, #tpu.dimension_semantics<arbitrary>], iteration_bounds = array<i64: 2, 1>, scalar_prefetch = 0 : i64, scratch_operands = 2 : i64, tpu.core_type = #tpu.core_type<tc>, window_params = [{transform_indices = @transform_0, window_bounds = array<i64: 1, 16, 16, 16>}, {transform_indices = @transform_1, window_bounds = array<i64: 9, 16, 16>}, {transform_indices = @transform_2, window_bounds = array<i64: 1, 16, 16, 16>}, {transform_indices = @transform_3, window_bounds = array<i64: 1, 16, 16, 16>}]} {
    %c0_i32 = arith.constant 0 : i32
    %0 = arith.cmpi eq, %arg1, %c0_i32 : i32
    %1 = arith.extui %0 : i1 to i32
    %c0_i32_0 = arith.constant 0 : i32
    %2 = arith.cmpi ne, %1, %c0_i32_0 : i32
    scf.if %2 {
      %c0_98 = arith.constant 0 : index
      %c0_99 = arith.constant 0 : index
      %c0_100 = arith.constant 0 : index
      %c0_101 = arith.constant 0 : index
      %80 = vector.load %arg2[%c0_98, %c0_99, %c0_100, %c0_101] : memref<1x16x16x16xf32, #tpu.memory_space<vmem>>, vector<1x16x16x16xf32>
      %81 = vector.shape_cast %80 : vector<1x16x16x16xf32> to vector<16x16x16xf32>
      %cst_102 = arith.constant 0.000000e+00 : f32
      %82 = vector.broadcast %cst_102 : f32 to vector<18x18x16xf32>
      %c0_103 = arith.constant 0 : index
      %c0_104 = arith.constant 0 : index
      %c0_105 = arith.constant 0 : index
      %83 = vector.load %arg6[%c0_103, %c0_104, %c0_105] : memref<18x18x16xf32, #tpu.memory_space<vmem>>, vector<18x18x16xf32>
      tpu.vector_store %arg6[%c0_103, %c0_104, %c0_105], %82 {strides = array<i32>} : memref<18x18x16xf32, #tpu.memory_space<vmem>>, vector<18x18x16xf32>,
      %c1_106 = arith.constant 1 : index
      %c1_107 = arith.constant 1 : index
      %c0_108 = arith.constant 0 : index
      %84 = vector.load %arg6[%c1_106, %c1_107, %c0_108] : memref<18x18x16xf32, #tpu.memory_space<vmem>>, vector<16x16x16xf32>
      tpu.vector_store %arg6[%c1_106, %c1_107, %c0_108], %81 {strides = array<i32>} : memref<18x18x16xf32, #tpu.memory_space<vmem>>, vector<16x16x16xf32>,
    } else {
    }
    %c0 = arith.constant 0 : index
    %c0_1 = arith.constant 0 : index
    %c0_2 = arith.constant 0 : index
    %3 = vector.load %arg6[%c0, %c0_1, %c0_2] : memref<18x18x16xf32, #tpu.memory_space<vmem>>, vector<16x16x16xf32>
    %4 = vector.shape_cast %3 : vector<16x16x16xf32> to vector<256x16xf32>
    %c0_3 = arith.constant 0 : index
    %c0_4 = arith.constant 0 : index
    %c0_5 = arith.constant 0 : index
    %5 = vector.load %arg3[%c0_3, %c0_4, %c0_5] : memref<9x16x16xf32, #tpu.memory_space<vmem>>, vector<1x16x16xf32>
    %6 = vector.shape_cast %5 : vector<1x16x16xf32> to vector<16x16xf32>
    %cst = arith.constant dense<0.000000e+00> : vector<256x16xf32>
    %7 = tpu.matmul %4, %6, %cst {dimension_numbers = #tpu.dot_dimension_numbers<[1], [0], [0], [1], [0, 0, 1, 1], [], []>} : vector<256x16xf32>, vector<16x16xf32>, vector<256x16xf32> -> vector<256x16xf32>
    %c0_6 = arith.constant 0 : index
    %c0_7 = arith.constant 0 : index
    %8 = vector.load %arg7[%c0_6, %c0_7] : memref<256x16xf32, #tpu.memory_space<vmem>>, vector<256x16xf32>
    tpu.vector_store %arg7[%c0_6, %c0_7], %7 {strides = array<i32>} : memref<256x16xf32, #tpu.memory_space<vmem>>, vector<256x16xf32>,
    %c0_8 = arith.constant 0 : index
    %c1 = arith.constant 1 : index
    %c0_9 = arith.constant 0 : index
    %9 = vector.load %arg6[%c0_8, %c1, %c0_9] : memref<18x18x16xf32, #tpu.memory_space<vmem>>, vector<16x16x16xf32>
    %10 = vector.shape_cast %9 : vector<16x16x16xf32> to vector<256x16xf32>
    %c1_10 = arith.constant 1 : index
    %c0_11 = arith.constant 0 : index
    %c0_12 = arith.constant 0 : index
    %11 = vector.load %arg3[%c1_10, %c0_11, %c0_12] : memref<9x16x16xf32, #tpu.memory_space<vmem>>, vector<1x16x16xf32>
    %12 = vector.shape_cast %11 : vector<1x16x16xf32> to vector<16x16xf32>
    %cst_13 = arith.constant dense<0.000000e+00> : vector<256x16xf32>
    %13 = tpu.matmul %10, %12, %cst_13 {dimension_numbers = #tpu.dot_dimension_numbers<[1], [0], [0], [1], [0, 0, 1, 1], [], []>} : vector<256x16xf32>, vector<16x16xf32>, vector<256x16xf32> -> vector<256x16xf32>
    %c0_14 = arith.constant 0 : index
    %c0_15 = arith.constant 0 : index
    %14 = vector.load %arg7[%c0_14, %c0_15] : memref<256x16xf32, #tpu.memory_space<vmem>>, vector<256x16xf32>
    %15 = arith.addf %14, %13 : vector<256x16xf32>
    %c0_16 = arith.constant 0 : index
    %c0_17 = arith.constant 0 : index
    %16 = vector.load %arg7[%c0_16, %c0_17] : memref<256x16xf32, #tpu.memory_space<vmem>>, vector<256x16xf32>
    tpu.vector_store %arg7[%c0_16, %c0_17], %15 {strides = array<i32>} : memref<256x16xf32, #tpu.memory_space<vmem>>, vector<256x16xf32>,
    %c0_18 = arith.constant 0 : index
    %c2 = arith.constant 2 : index
    %c0_19 = arith.constant 0 : index
    %17 = vector.load %arg6[%c0_18, %c2, %c0_19] : memref<18x18x16xf32, #tpu.memory_space<vmem>>, vector<16x16x16xf32>
    %18 = vector.shape_cast %17 : vector<16x16x16xf32> to vector<256x16xf32>
    %c2_20 = arith.constant 2 : index
    %c0_21 = arith.constant 0 : index
    %c0_22 = arith.constant 0 : index
    %19 = vector.load %arg3[%c2_20, %c0_21, %c0_22] : memref<9x16x16xf32, #tpu.memory_space<vmem>>, vector<1x16x16xf32>
    %20 = vector.shape_cast %19 : vector<1x16x16xf32> to vector<16x16xf32>
    %cst_23 = arith.constant dense<0.000000e+00> : vector<256x16xf32>
    %21 = tpu.matmul %18, %20, %cst_23 {dimension_numbers = #tpu.dot_dimension_numbers<[1], [0], [0], [1], [0, 0, 1, 1], [], []>} : vector<256x16xf32>, vector<16x16xf32>, vector<256x16xf32> -> vector<256x16xf32>
    %c0_24 = arith.constant 0 : index
    %c0_25 = arith.constant 0 : index
    %22 = vector.load %arg7[%c0_24, %c0_25] : memref<256x16xf32, #tpu.memory_space<vmem>>, vector<256x16xf32>
    %23 = arith.addf %22, %21 : vector<256x16xf32>
    %c0_26 = arith.constant 0 : index
    %c0_27 = arith.constant 0 : index
    %24 = vector.load %arg7[%c0_26, %c0_27] : memref<256x16xf32, #tpu.memory_space<vmem>>, vector<256x16xf32>
    tpu.vector_store %arg7[%c0_26, %c0_27], %23 {strides = array<i32>} : memref<256x16xf32, #tpu.memory_space<vmem>>, vector<256x16xf32>,
    %c1_28 = arith.constant 1 : index
    %c0_29 = arith.constant 0 : index
    %c0_30 = arith.constant 0 : index
    %25 = vector.load %arg6[%c1_28, %c0_29, %c0_30] : memref<18x18x16xf32, #tpu.memory_space<vmem>>, vector<16x16x16xf32>
    %26 = vector.shape_cast %25 : vector<16x16x16xf32> to vector<256x16xf32>
    %c3 = arith.constant 3 : index
    %c0_31 = arith.constant 0 : index
    %c0_32 = arith.constant 0 : index
    %27 = vector.load %arg3[%c3, %c0_31, %c0_32] : memref<9x16x16xf32, #tpu.memory_space<vmem>>, vector<1x16x16xf32>
    %28 = vector.shape_cast %27 : vector<1x16x16xf32> to vector<16x16xf32>
    %cst_33 = arith.constant dense<0.000000e+00> : vector<256x16xf32>
    %29 = tpu.matmul %26, %28, %cst_33 {dimension_numbers = #tpu.dot_dimension_numbers<[1], [0], [0], [1], [0, 0, 1, 1], [], []>} : vector<256x16xf32>, vector<16x16xf32>, vector<256x16xf32> -> vector<256x16xf32>
    %c0_34 = arith.constant 0 : index
    %c0_35 = arith.constant 0 : index
    %30 = vector.load %arg7[%c0_34, %c0_35] : memref<256x16xf32, #tpu.memory_space<vmem>>, vector<256x16xf32>
    %31 = arith.addf %30, %29 : vector<256x16xf32>
    %c0_36 = arith.constant 0 : index
    %c0_37 = arith.constant 0 : index
    %32 = vector.load %arg7[%c0_36, %c0_37] : memref<256x16xf32, #tpu.memory_space<vmem>>, vector<256x16xf32>
    tpu.vector_store %arg7[%c0_36, %c0_37], %31 {strides = array<i32>} : memref<256x16xf32, #tpu.memory_space<vmem>>, vector<256x16xf32>,
    %c1_38 = arith.constant 1 : index
    %c1_39 = arith.constant 1 : index
    %c0_40 = arith.constant 0 : index
    %33 = vector.load %arg6[%c1_38, %c1_39, %c0_40] : memref<18x18x16xf32, #tpu.memory_space<vmem>>, vector<16x16x16xf32>
    %34 = vector.shape_cast %33 : vector<16x16x16xf32> to vector<256x16xf32>
    %c4 = arith.constant 4 : index
    %c0_41 = arith.constant 0 : index
    %c0_42 = arith.constant 0 : index
    %35 = vector.load %arg3[%c4, %c0_41, %c0_42] : memref<9x16x16xf32, #tpu.memory_space<vmem>>, vector<1x16x16xf32>
    %36 = vector.shape_cast %35 : vector<1x16x16xf32> to vector<16x16xf32>
    %cst_43 = arith.constant dense<0.000000e+00> : vector<256x16xf32>
    %37 = tpu.matmul %34, %36, %cst_43 {dimension_numbers = #tpu.dot_dimension_numbers<[1], [0], [0], [1], [0, 0, 1, 1], [], []>} : vector<256x16xf32>, vector<16x16xf32>, vector<256x16xf32> -> vector<256x16xf32>
    %c0_44 = arith.constant 0 : index
    %c0_45 = arith.constant 0 : index
    %38 = vector.load %arg7[%c0_44, %c0_45] : memref<256x16xf32, #tpu.memory_space<vmem>>, vector<256x16xf32>
    %39 = arith.addf %38, %37 : vector<256x16xf32>
    %c0_46 = arith.constant 0 : index
    %c0_47 = arith.constant 0 : index
    %40 = vector.load %arg7[%c0_46, %c0_47] : memref<256x16xf32, #tpu.memory_space<vmem>>, vector<256x16xf32>
    tpu.vector_store %arg7[%c0_46, %c0_47], %39 {strides = array<i32>} : memref<256x16xf32, #tpu.memory_space<vmem>>, vector<256x16xf32>,
    %c1_48 = arith.constant 1 : index
    %c2_49 = arith.constant 2 : index
    %c0_50 = arith.constant 0 : index
    %41 = vector.load %arg6[%c1_48, %c2_49, %c0_50] : memref<18x18x16xf32, #tpu.memory_space<vmem>>, vector<16x16x16xf32>
    %42 = vector.shape_cast %41 : vector<16x16x16xf32> to vector<256x16xf32>
    %c5 = arith.constant 5 : index
    %c0_51 = arith.constant 0 : index
    %c0_52 = arith.constant 0 : index
    %43 = vector.load %arg3[%c5, %c0_51, %c0_52] : memref<9x16x16xf32, #tpu.memory_space<vmem>>, vector<1x16x16xf32>
    %44 = vector.shape_cast %43 : vector<1x16x16xf32> to vector<16x16xf32>
    %cst_53 = arith.constant dense<0.000000e+00> : vector<256x16xf32>
    %45 = tpu.matmul %42, %44, %cst_53 {dimension_numbers = #tpu.dot_dimension_numbers<[1], [0], [0], [1], [0, 0, 1, 1], [], []>} : vector<256x16xf32>, vector<16x16xf32>, vector<256x16xf32> -> vector<256x16xf32>
    %c0_54 = arith.constant 0 : index
    %c0_55 = arith.constant 0 : index
    %46 = vector.load %arg7[%c0_54, %c0_55] : memref<256x16xf32, #tpu.memory_space<vmem>>, vector<256x16xf32>
    %47 = arith.addf %46, %45 : vector<256x16xf32>
    %c0_56 = arith.constant 0 : index
    %c0_57 = arith.constant 0 : index
    %48 = vector.load %arg7[%c0_56, %c0_57] : memref<256x16xf32, #tpu.memory_space<vmem>>, vector<256x16xf32>
    tpu.vector_store %arg7[%c0_56, %c0_57], %47 {strides = array<i32>} : memref<256x16xf32, #tpu.memory_space<vmem>>, vector<256x16xf32>,
    %c2_58 = arith.constant 2 : index
    %c0_59 = arith.constant 0 : index
    %c0_60 = arith.constant 0 : index
    %49 = vector.load %arg6[%c2_58, %c0_59, %c0_60] : memref<18x18x16xf32, #tpu.memory_space<vmem>>, vector<16x16x16xf32>
    %50 = vector.shape_cast %49 : vector<16x16x16xf32> to vector<256x16xf32>
    %c6 = arith.constant 6 : index
    %c0_61 = arith.constant 0 : index
    %c0_62 = arith.constant 0 : index
    %51 = vector.load %arg3[%c6, %c0_61, %c0_62] : memref<9x16x16xf32, #tpu.memory_space<vmem>>, vector<1x16x16xf32>
    %52 = vector.shape_cast %51 : vector<1x16x16xf32> to vector<16x16xf32>
    %cst_63 = arith.constant dense<0.000000e+00> : vector<256x16xf32>
    %53 = tpu.matmul %50, %52, %cst_63 {dimension_numbers = #tpu.dot_dimension_numbers<[1], [0], [0], [1], [0, 0, 1, 1], [], []>} : vector<256x16xf32>, vector<16x16xf32>, vector<256x16xf32> -> vector<256x16xf32>
    %c0_64 = arith.constant 0 : index
    %c0_65 = arith.constant 0 : index
    %54 = vector.load %arg7[%c0_64, %c0_65] : memref<256x16xf32, #tpu.memory_space<vmem>>, vector<256x16xf32>
    %55 = arith.addf %54, %53 : vector<256x16xf32>
    %c0_66 = arith.constant 0 : index
    %c0_67 = arith.constant 0 : index
    %56 = vector.load %arg7[%c0_66, %c0_67] : memref<256x16xf32, #tpu.memory_space<vmem>>, vector<256x16xf32>
    tpu.vector_store %arg7[%c0_66, %c0_67], %55 {strides = array<i32>} : memref<256x16xf32, #tpu.memory_space<vmem>>, vector<256x16xf32>,
    %c2_68 = arith.constant 2 : index
    %c1_69 = arith.constant 1 : index
    %c0_70 = arith.constant 0 : index
    %57 = vector.load %arg6[%c2_68, %c1_69, %c0_70] : memref<18x18x16xf32, #tpu.memory_space<vmem>>, vector<16x16x16xf32>
    %58 = vector.shape_cast %57 : vector<16x16x16xf32> to vector<256x16xf32>
    %c7 = arith.constant 7 : index
    %c0_71 = arith.constant 0 : index
    %c0_72 = arith.constant 0 : index
    %59 = vector.load %arg3[%c7, %c0_71, %c0_72] : memref<9x16x16xf32, #tpu.memory_space<vmem>>, vector<1x16x16xf32>
    %60 = vector.shape_cast %59 : vector<1x16x16xf32> to vector<16x16xf32>
    %cst_73 = arith.constant dense<0.000000e+00> : vector<256x16xf32>
    %61 = tpu.matmul %58, %60, %cst_73 {dimension_numbers = #tpu.dot_dimension_numbers<[1], [0], [0], [1], [0, 0, 1, 1], [], []>} : vector<256x16xf32>, vector<16x16xf32>, vector<256x16xf32> -> vector<256x16xf32>
    %c0_74 = arith.constant 0 : index
    %c0_75 = arith.constant 0 : index
    %62 = vector.load %arg7[%c0_74, %c0_75] : memref<256x16xf32, #tpu.memory_space<vmem>>, vector<256x16xf32>
    %63 = arith.addf %62, %61 : vector<256x16xf32>
    %c0_76 = arith.constant 0 : index
    %c0_77 = arith.constant 0 : index
    %64 = vector.load %arg7[%c0_76, %c0_77] : memref<256x16xf32, #tpu.memory_space<vmem>>, vector<256x16xf32>
    tpu.vector_store %arg7[%c0_76, %c0_77], %63 {strides = array<i32>} : memref<256x16xf32, #tpu.memory_space<vmem>>, vector<256x16xf32>,
    %c2_78 = arith.constant 2 : index
    %c2_79 = arith.constant 2 : index
    %c0_80 = arith.constant 0 : index
    %65 = vector.load %arg6[%c2_78, %c2_79, %c0_80] : memref<18x18x16xf32, #tpu.memory_space<vmem>>, vector<16x16x16xf32>
    %66 = vector.shape_cast %65 : vector<16x16x16xf32> to vector<256x16xf32>
    %c8 = arith.constant 8 : index
    %c0_81 = arith.constant 0 : index
    %c0_82 = arith.constant 0 : index
    %67 = vector.load %arg3[%c8, %c0_81, %c0_82] : memref<9x16x16xf32, #tpu.memory_space<vmem>>, vector<1x16x16xf32>
    %68 = vector.shape_cast %67 : vector<1x16x16xf32> to vector<16x16xf32>
    %cst_83 = arith.constant dense<0.000000e+00> : vector<256x16xf32>
    %69 = tpu.matmul %66, %68, %cst_83 {dimension_numbers = #tpu.dot_dimension_numbers<[1], [0], [0], [1], [0, 0, 1, 1], [], []>} : vector<256x16xf32>, vector<16x16xf32>, vector<256x16xf32> -> vector<256x16xf32>
    %c0_84 = arith.constant 0 : index
    %c0_85 = arith.constant 0 : index
    %70 = vector.load %arg7[%c0_84, %c0_85] : memref<256x16xf32, #tpu.memory_space<vmem>>, vector<256x16xf32>
    %71 = arith.addf %70, %69 : vector<256x16xf32>
    %c0_86 = arith.constant 0 : index
    %c0_87 = arith.constant 0 : index
    %72 = vector.load %arg7[%c0_86, %c0_87] : memref<256x16xf32, #tpu.memory_space<vmem>>, vector<256x16xf32>
    tpu.vector_store %arg7[%c0_86, %c0_87], %71 {strides = array<i32>} : memref<256x16xf32, #tpu.memory_space<vmem>>, vector<256x16xf32>,
    %c0_88 = arith.constant 0 : index
    %c0_89 = arith.constant 0 : index
    %73 = vector.load %arg7[%c0_88, %c0_89] : memref<256x16xf32, #tpu.memory_space<vmem>>, vector<256x16xf32>
    %c0_90 = arith.constant 0 : index
    %c0_91 = arith.constant 0 : index
    %c0_92 = arith.constant 0 : index
    %c0_93 = arith.constant 0 : index
    %74 = vector.load %arg4[%c0_90, %c0_91, %c0_92, %c0_93] : memref<1x16x16x16xf32, #tpu.memory_space<vmem>>, vector<1x16x16x16xf32>
    %75 = vector.shape_cast %74 : vector<1x16x16x16xf32> to vector<16x16x16xf32>
    %76 = vector.shape_cast %75 : vector<16x16x16xf32> to vector<256x16xf32>
    %77 = arith.addf %73, %76 : vector<256x16xf32>
    %78 = vector.shape_cast %77 : vector<256x16xf32> to vector<1x16x16x16xf32>
    %c0_94 = arith.constant 0 : index
    %c0_95 = arith.constant 0 : index
    %c0_96 = arith.constant 0 : index
    %c0_97 = arith.constant 0 : index
    %79 = vector.load %arg5[%c0_94, %c0_95, %c0_96, %c0_97] : memref<1x16x16x16xf32, #tpu.memory_space<vmem>>, vector<1x16x16x16xf32>
    tpu.vector_store %arg5[%c0_94, %c0_95, %c0_96, %c0_97], %78 {strides = array<i32>} : memref<1x16x16x16xf32, #tpu.memory_space<vmem>>, vector<1x16x16x16xf32>,
    return
  }
  func.func @transform_0(%arg0: i32, %arg1: i32) -> (i32, i32, i32, i32) {
    %c0_i32 = arith.constant 0 : i32
    %c0_i32_0 = arith.constant 0 : i32
    %c0_i32_1 = arith.constant 0 : i32
    %c0_i32_2 = arith.constant 0 : i32
    return %arg0, %c0_i32, %c0_i32_0, %c0_i32_1 : i32, i32, i32, i32
  }
  func.func @transform_1(%arg0: i32, %arg1: i32) -> (i32, i32, i32) {
    %c0_i32 = arith.constant 0 : i32
    %c0_i32_0 = arith.constant 0 : i32
    %c0_i32_1 = arith.constant 0 : i32
    return %c0_i32, %c0_i32_0, %arg1 : i32, i32, i32
  }
  func.func @transform_2(%arg0: i32, %arg1: i32) -> (i32, i32, i32, i32) {
    %c0_i32 = arith.constant 0 : i32
    %c0_i32_0 = arith.constant 0 : i32
    %c0_i32_1 = arith.constant 0 : i32
    return %arg0, %c0_i32, %c0_i32_0, %arg1 : i32, i32, i32, i32
  }
  func.func @transform_3(%arg0: i32, %arg1: i32) -> (i32, i32, i32, i32) {
    %c0_i32 = arith.constant 0 : i32
    %c0_i32_0 = arith.constant 0 : i32
    %c0_i32_1 = arith.constant 0 : i32
    return %arg0, %c0_i32, %c0_i32_0, %arg1 : i32, i32, i32, i32
  }
}

</mosaic_0001>

<bundles_post_ra>
// kernel: ordered_basic_block_forward.2
= control target key start
LH: loop header
LB: loop body
LE: loop exit
PB: predicated region body
PF: predicated region fallthrough
CT: control target
= control target key end

     0   :  { %s6183_s24 = smov 0   ;;  %s6185_s25 = smov 0   ;;  %s7724_s0 = inlined_call_operand.vmem [shape: f32[2,16,16,16], index: 0, kind: input, shape index: {}]   ;;  %s7725_s1 = inlined_call_operand.vmem [shape: f32[1,16], index: 1, kind: input, shape index: {}]   ;;  %s7726_s2 = inlined_call_operand.vmem [shape: f32[1,16], index: 2, kind: input, shape index: {}]   ;;  %s7727_s3 = inlined_call_operand.vmem [shape: f32[9,16,16], index: 3, kind: input, shape index: {}]   ;;  %s7728_s4 = inlined_call_operand.vmem [shape: f32[1,16], index: 4, kind: input, shape index: {}]   ;;  %s7729_s5 = inlined_call_operand.vmem [shape: f32[1,16], index: 5, kind: input, shape index: {}]   ;;  %s7730_s6 = inlined_call_operand.vmem [shape: f32[2,16,16,16], index: 6, kind: output, shape index: {0}]   ;;  %s7731_s7 = inlined_call_operand.vmem [shape: f32[2,16,16,16], index: 7, kind: output, shape index: {1}]  }
   0x1   :  { %s6187_s26 = smov 0  }
   0x2 LB: > { %s30_s27 = sadd.s32 1, %s6136_s25  ;;  %p4961_p0 = scmp.ge.s32.totalorder %s6140_s26, 1  ;;  %s6140_s26 = sphi %s6187_s26, %s18_s26   ;;  %s6136_s25 = sphi %s6185_s25, %s7848_s25   ;;  %s6132_s24 = sphi %s6183_s24, %s7847_s24  }
   0x3   : > { %p32_p1 = scmp.ge.s32.totalorder %s30_s27, 2  ;;  %p279_p2 = scmp.lt.s32.totalorder %s6140_s26, 3 }
   0x5   : > { %s7850_s27 = smov (%p32_p1, %s30_s27), 0  ;;  %p280_p3 = pnand %p4961_p0, %p279_p2 }
   0x7   : > { %283 = sbr.rel (%p280_p3) target bundleno = 576 (0x240), region = 44 }
   0xe   : > { %v656_v0 = vld [vmem:[%s7727_s3] sm:$0xff]  ;;  %v657_v1 = vld [vmem:[%s7727_s3 + $0x8] sm:$0xff]  ;;  %p329_p4 = scmp.lt.s32.totalorder %s6132_s24, 1  ;;  %vm503_vm0 = vcmask 130048   ;;  %v5002_v3 = vld [vmem:[%s7727_s3 + $0x10] sm:$0xff]  ;;  %vm538_vm1 = vcmask 123904  }
   0xf   : > { %v6207_v2 = vpack.c.bf16 %v657_v1, %v656_v0  ;;  %v5003_v4 = vld [vmem:[%s7727_s3 + $0x18] sm:$0xff]  ;;  %v6142_v5 = vmov 0.0   ;;  %v5036_v7 = vld [vmem:[%s7727_s3 + $0x20] sm:$0xff]  ;;  %v5037_v8 = vld [vmem:[%s7727_s3 + $0x28] sm:$0xff] }
  0x10   : > { %s7852_s24 = smov (!%p329_p4, %s6132_s24), 1  ;;  %561 = vst.msk [vmem:[#allocation2 + $0xc0] sm:$0xff] %vm503_vm0, %v6142_v5  ;;  %562 = vst.msk [vmem:[#allocation2 + $0xc8] sm:$0xff] %vm503_vm0, %v6142_v5  ;;  %v6253_v6 = vpack.c.bf16 %v5003_v4, %v5002_v3  ;;  %v6063_v9 = vpack.c.bf16 %v5037_v8, %v5036_v7  ;;  %v6288_v10 = vld [vmem:[%s7725_s1] ss:$0 sm:$0xff]  ;;  %v5070_v11 = vld [vmem:[%s7727_s3 + $0x30] sm:$0xff] }
  0x11   : > { %536 = vst.msk [vmem:[#allocation2] sm:$0xff] %vm503_vm0, %v6142_v5  ;;  %537 = vst.msk [vmem:[#allocation2 + $0x8] sm:$0xff] %vm503_vm0, %v6142_v5  ;;  %6091 = vmatprep.subr.bf16.mxu1 %v6207_v2  ;;  %6056 = vmatprep.subr.bf16.mxu0 %v6207_v2  ;;  %s6283_s17 = sshll.u32 %s7852_s24, 8  ;;  %v5071_v12 = vld [vmem:[%s7727_s3 + $0x38] sm:$0xff]  ;;  %v6306_v13 = vld [vmem:[%s7726_s2] ss:$0 sm:$0xff] }
  0x12   : > { %540 = vst.msk [vmem:[#allocation2 + $0x18] sm:$0xff] %vm503_vm0, %v6142_v5  ;;  %541 = vst.msk [vmem:[#allocation2 + $0x20] sm:$0xff] %vm503_vm0, %v6142_v5  ;;  %6092 = vmatpush3.bf16.msra.mxu1 %v6207_v2  ;;  %6058 = vmatpush3.bf16.msra.mxu0 %v6207_v2  ;;  %s6301_s24 = scalar_lea.vmem %s7724_s0, %s6283_s17  ;;  %v5104_v14 = vld [vmem:[%s7727_s3 + $0x40] sm:$0xff]  ;;  %v5105_v15 = vld [vmem:[%s7727_s3 + $0x48] sm:$0xff]  ;;  %v6324_v25 = vpack.c.bf16 %v5071_v12, %v5070_v11  ;;  %s6341_s15 = scalar_lea.vmem %s7731_s7, %s6283_s17 }
  0x13   : > { %543 = vst.msk [vmem:[#allocation2 + $0x30] sm:$0xff] %vm503_vm0, %v6142_v5  ;;  %544 = vst.msk [vmem:[#allocation2 + $0x38] sm:$0xff] %vm503_vm0, %v6142_v5  ;;  %6060 = vmatprep.subr.bf16.mxu1 %v6253_v6  ;;  %6064 = vmatprep.subr.bf16.mxu0 %v6063_v9  ;;  %v375_v16 = vld [vmem:[%s6301_s24 + $0x70] sm:$0xff]  ;;  %v376_v17 = vld [vmem:[%s6301_s24 + $0x78] sm:$0xff]  ;;  %v6331_v31 = vpack.c.bf16 %v5105_v15, %v5104_v14  ;;  %s7541_s20 = scalar_lea.vmem %s7730_s6, %s6283_s17 }
  0x14   : > { %546 = vst.msk [vmem:[#allocation2 + $0x48] sm:$0xff] %vm503_vm0, %v6142_v5  ;;  %547 = vst.msk [vmem:[#allocation2 + $0x50] sm:$0xff] %vm503_vm0, %v6142_v5  ;;  %v377_v18 = vld [vmem:[%s6301_s24 + $0x80] sm:$0xff]  ;;  %v414_v19 = vmul.f32 %v6288_v10, %v375_v16  ;;  %v415_v20 = vmul.f32 %v6288_v10, %v376_v17  ;;  %v378_v22 = vld [vmem:[%s6301_s24 + $0x88] sm:$0xff] }
  0x15   : > { %549 = vst.msk [vmem:[#allocation2 + $0x60] sm:$0xff] %vm503_vm0, %v6142_v5  ;;  %550 = vst.msk [vmem:[#allocation2 + $0x68] sm:$0xff] %vm503_vm0, %v6142_v5  ;;  %v416_v21 = vmul.f32 %v6288_v10, %v377_v18  ;;  %v379_v23 = vld [vmem:[%s6301_s24 + $0x90] sm:$0xff]  ;;  %v380_v24 = vld [vmem:[%s6301_s24 + $0x98] sm:$0xff]  ;;  %v417_v26 = vmul.f32 %v6288_v10, %v378_v22 }
  0x16   : > { %552 = vst.msk [vmem:[#allocation2 + $0x78] sm:$0xff] %vm503_vm0, %v6142_v5  ;;  %553 = vst.msk [vmem:[#allocation2 + $0x80] sm:$0xff] %vm503_vm0, %v6142_v5  ;;  %v418_v27 = vmul.f32 %v6288_v10, %v379_v23  ;;  %v419_v28 = vmul.f32 %v6288_v10, %v380_v24  ;;  %v381_v29 = vld [vmem:[%s6301_s24 + $0xa0] sm:$0xff]  ;;  %v453_v32 = vadd.f32 %v6306_v13, %v414_v19  ;;  %v382_v42 = vld [vmem:[%s6301_s24 + $0xa8] sm:$0xff] }
  0x17   : > { %555 = vst.msk [vmem:[#allocation2 + $0x90] sm:$0xff] %vm503_vm0, %v6142_v5  ;;  %556 = vst.msk [vmem:[#allocation2 + $0x98] sm:$0xff] %vm503_vm0, %v6142_v5  ;;  %v361_v30 = vld [vmem:[%s6301_s24] sm:$0xff]  ;;  %v454_v33 = vadd.f32 %v6306_v13, %v415_v20  ;;  %v455_v34 = vadd.f32 %v6306_v13, %v416_v21  ;;  %v420_v37 = vmul.f32 %v6288_v10, %v381_v29  ;;  %v362_v43 = vld [vmem:[%s6301_s24 + $0x8] sm:$0xff] }
  0x18   : > { %558 = vst.msk [vmem:[#allocation2 + $0xa8] sm:$0xff] %vm503_vm0, %v6142_v5  ;;  %559 = vst.msk [vmem:[#allocation2 + $0xb0] sm:$0xff] %vm503_vm0, %v6142_v5  ;;  %v624_v35 = vld [vmem:[#allocation2] sm:$0xff]  ;;  %v625_v36 = vld [vmem:[#allocation2 + $0x8] sm:$0xff]  ;;  %v456_v38 = vadd.f32 %v6306_v13, %v417_v26  ;;  %v457_v39 = vadd.f32 %v6306_v13, %v418_v27  ;;  %v458_v40 = vadd.f32 %v6306_v13, %v419_v28  ;;  %v485_v45 = vmax.f32 %v453_v32, 0.0 }
  0x19   : > { %564 = vst.msk [vmem:[#allocation2 + $0xd8] sm:$0xff] %vm503_vm0, %v6142_v5  ;;  %565 = vst.msk [vmem:[#allocation2 + $0xe0] sm:$0xff] %vm503_vm0, %v6142_v5  ;;  %5591 = vmatprep.mubr.msk.f32.mxu0 %vm503_vm0, %v624_v35  ;;  %v400_v41 = vmul.f32 %v6288_v10, %v361_v30  ;;  %v383_v44 = vld [vmem:[%s6301_s24 + $0xb0] sm:$0xff]  ;;  %v486_v46 = vmax.f32 %v454_v33, 0.0  ;;  %v487_v47 = vmax.f32 %v455_v34, 0.0  ;;  %v459_v48 = vadd.f32 %v6306_v13, %v420_v37  ;;  %v384_v50 = vld [vmem:[%s6301_s24 + $0xb8] sm:$0xff] }
  0x1a   : > { %567 = vst.msk [vmem:[#allocation2 + $0xf0] sm:$0xff] %vm503_vm0, %v6142_v5  ;;  %568 = vst.msk [vmem:[#allocation2 + $0xf8] sm:$0xff] %vm503_vm0, %v6142_v5  ;;  %5592 = vmatmul.mubr.msk.f32.vlgmr.msra.gmra.mrb[0].mxu0 %vm503_vm0, %v625_v36  ;;  %v363_v49 = vld [vmem:[%s6301_s24 + $0x10] sm:$0xff]  ;;  %v364_v51 = vld [vmem:[%s6301_s24 + $0x18] sm:$0xff]  ;;  %v488_v52 = vmax.f32 %v456_v38, 0.0  ;;  %v489_v53 = vmax.f32 %v457_v39, 0.0  ;;  %v421_v58 = vmul.f32 %v6288_v10, %v382_v42  ;;  %v401_v59 = vmul.f32 %v6288_v10, %v362_v43 }
  0x1b   : > { %570 = vst.msk [vmem:[#allocation2 + $0x108] sm:$0xff] %vm503_vm0, %v6142_v5  ;;  %571 = vst.msk [vmem:[#allocation2 + $0x110] sm:$0xff] %vm503_vm0, %v6142_v5  ;;  %v490_v54 = vmax.f32 %v458_v40, 0.0  ;;  %6066 = vmatpush3.bf16.msra.mxu0 %v6063_v9  ;;  %v439_v55 = vadd.f32 %v6306_v13, %v400_v41  ;;  %v385_v56 = vld [vmem:[%s6301_s24 + $0xc0] sm:$0xff]  ;;  %v491_v57 = vmax.f32 %v459_v48, 0.0  ;;  %v422_v60 = vmul.f32 %v6288_v10, %v383_v44  ;;  %v386_v12 = vld [vmem:[%s6301_s24 + $0xc8] sm:$0xff] }
  0x1c   : > { %573 = vst.msk [vmem:[#allocation2 + $0x120] sm:$0xff] %vm503_vm0, %v6142_v5  ;;  %574 = vst.msk [vmem:[#allocation2 + $0x128] sm:$0xff] %vm503_vm0, %v6142_v5  ;;  %v365_v61 = vld [vmem:[%s6301_s24 + $0x20] sm:$0xff]  ;;  %6072 = vmatprep.subr.bf16.mxu0 %v6331_v31  ;;  %v402_v63 = vmul.f32 %v6288_v10, %v363_v49  ;;  %v423_v0 = vmul.f32 %v6288_v10, %v384_v50  ;;  %v403_v1 = vmul.f32 %v6288_v10, %v364_v51  ;;  %v366_v14 = vld [vmem:[%s6301_s24 + $0x28] sm:$0xff] }
  0x1d   : > { %576 = vst.msk [vmem:[#allocation2 + $0x138] sm:$0xff] %vm503_vm0, %v6142_v5  ;;  %577 = vst.msk [vmem:[#allocation2 + $0x140] sm:$0xff] %vm503_vm0, %v6142_v5  ;;  %v471_v62 = vmax.f32 %v439_v55, 0.0  ;;  %v460_v2 = vadd.f32 %v6306_v13, %v421_v58  ;;  %v440_v3 = vadd.f32 %v6306_v13, %v401_v59  ;;  %v461_v4 = vadd.f32 %v6306_v13, %v422_v60  ;;  %v387_v15 = vld [vmem:[%s6301_s24 + $0xd0] sm:$0xff]  ;;  %v388_v21 = vld [vmem:[%s6301_s24 + $0xd8] sm:$0xff] }
  0x1e   : > { %579 = vst.msk [vmem:[#allocation2 + $0x150] sm:$0xff] %vm503_vm0, %v6142_v5  ;;  %580 = vst.msk [vmem:[#allocation2 + $0x158] sm:$0xff] %vm503_vm0, %v6142_v5  ;;  %v441_v7 = vadd.f32 %v6306_v13, %v402_v63  ;;  %v462_v8 = vadd.f32 %v6306_v13, %v423_v0  ;;  %v442_v9 = vadd.f32 %v6306_v13, %v403_v1  ;;  %v367_v20 = vld [vmem:[%s6301_s24 + $0x30] sm:$0xff]  ;;  %v368_v22 = vld [vmem:[%s6301_s24 + $0x38] sm:$0xff] }
  0x1f   : > { %582 = vst.msk [vmem:[#allocation2 + $0x168] sm:$0xff] %vm503_vm0, %v6142_v5  ;;  %583 = vst.msk [vmem:[#allocation2 + $0x170] sm:$0xff] %vm503_vm0, %v6142_v5  ;;  %v404_v11 = vmul.f32 %v6288_v10, %v365_v61  ;;  %v492_v16 = vmax.f32 %v460_v2, 0.0  ;;  %v472_v17 = vmax.f32 %v440_v3, 0.0  ;;  %v493_v18 = vmax.f32 %v461_v4, 0.0  ;;  %v389_v28 = vld [vmem:[%s6301_s24 + $0xe0] sm:$0xff] }
  0x20   : > { %585 = vst.msk [vmem:[#allocation2 + $0x180] sm:$0xff] %vm503_vm0, %v6142_v5  ;;  %586 = vst.msk [vmem:[#allocation2 + $0x188] sm:$0xff] %vm503_vm0, %v6142_v5  ;;  %v473_v23 = vmax.f32 %v441_v7, 0.0  ;;  %v494_v24 = vmax.f32 %v462_v8, 0.0  ;;  %v474_v26 = vmax.f32 %v442_v9, 0.0  ;;  %v425_v30 = vmul.f32 %v6288_v10, %v386_v12  ;;  %v369_v34 = vld [vmem:[%s6301_s24 + $0x40] sm:$0xff] }
  0x21   : > { %588 = vst.msk [vmem:[#allocation2 + $0x198] sm:$0xff] %vm503_vm0, %v6142_v5  ;;  %589 = vst.msk [vmem:[#allocation2 + $0x1a0] sm:$0xff] %vm503_vm0, %v6142_v5  ;;  %v443_v27 = vadd.f32 %v6306_v13, %v404_v11  ;;  %v405_v32 = vmul.f32 %v6288_v10, %v366_v14  ;;  %v426_v33 = vmul.f32 %v6288_v10, %v387_v15  ;;  %v374_v61 = vld [vmem:[%s6301_s24 + $0x68] sm:$0xff] }
  0x22   : > { %563 = vst.msk [vmem:[#allocation2 + $0xd0] sm:$0x3] %vm538_vm1, %v6142_v5  ;;  %539 = vst.msk [vmem:[#allocation2 + $0x10] sm:$0x3] %vm538_vm1, %v6142_v5  ;;  %v406_v39 = vmul.f32 %v6288_v10, %v367_v20  ;;  %v427_v40 = vmul.f32 %v6288_v10, %v388_v21  ;;  %v407_v41 = vmul.f32 %v6288_v10, %v368_v22 }
  0x23   : > { %542 = vst.msk [vmem:[#allocation2 + $0x28] sm:$0x3] %vm538_vm1, %v6142_v5  ;;  %545 = vst.msk [vmem:[#allocation2 + $0x40] sm:$0x3] %vm538_vm1, %v6142_v5  ;;  %v475_v38 = vmax.f32 %v443_v27, 0.0  ;;  %v464_v42 = vadd.f32 %v6306_v13, %v425_v30  ;;  %v444_v43 = vadd.f32 %v6306_v13, %v405_v32  ;;  %v465_v44 = vadd.f32 %v6306_v13, %v426_v33 }
  0x24   : > { %548 = vst.msk [vmem:[#allocation2 + $0x58] sm:$0x3] %vm538_vm1, %v6142_v5  ;;  %551 = vst.msk [vmem:[#allocation2 + $0x70] sm:$0x3] %vm538_vm1, %v6142_v5  ;;  %v445_v48 = vadd.f32 %v6306_v13, %v406_v39  ;;  %v466_v49 = vadd.f32 %v6306_v13, %v427_v40  ;;  %v446_v50 = vadd.f32 %v6306_v13, %v407_v41 }
  0x25   : > { %554 = vst.msk [vmem:[#allocation2 + $0x88] sm:$0x3] %vm538_vm1, %v6142_v5  ;;  %557 = vst.msk [vmem:[#allocation2 + $0xa0] sm:$0x3] %vm538_vm1, %v6142_v5  ;;  %v408_v51 = vmul.f32 %v6288_v10, %v369_v34  ;;  %v476_v58 = vmax.f32 %v444_v43, 0.0  ;;  %v497_v59 = vmax.f32 %v465_v44, 0.0  ;;  %v413_v12 = vmul.f32 %v6288_v10, %v374_v61 }
  0x26   : > { %560 = vst.msk [vmem:[#allocation2 + $0xb8] sm:$0x3] %vm538_vm1, %v6142_v5  ;;  %566 = vst.msk [vmem:[#allocation2 + $0xe8] sm:$0x3] %vm538_vm1, %v6142_v5  ;;  %v498_v63 = vmax.f32 %v466_v49, 0.0  ;;  %v478_v0 = vmax.f32 %v446_v50, 0.0 }
  0x27   : > { %569 = vst.msk [vmem:[#allocation2 + $0x100] sm:$0x3] %vm538_vm1, %v6142_v5  ;;  %572 = vst.msk [vmem:[#allocation2 + $0x118] sm:$0x3] %vm538_vm1, %v6142_v5  ;;  %v447_v1 = vadd.f32 %v6306_v13, %v408_v51  ;;  %v392_v61 = vld [vmem:[%s6301_s24 + $0xf8] sm:$0xff] }
  0x28   : > { %575 = vst.msk [vmem:[#allocation2 + $0x130] sm:$0x3] %vm538_vm1, %v6142_v5  ;;  %578 = vst.msk [vmem:[#allocation2 + $0x148] sm:$0x3] %vm538_vm1, %v6142_v5 }
  0x29   : > { %581 = vst.msk [vmem:[#allocation2 + $0x160] sm:$0x3] %vm538_vm1, %v6142_v5  ;;  %584 = vst.msk [vmem:[#allocation2 + $0x178] sm:$0x3] %vm538_vm1, %v6142_v5  ;;  %v479_v8 = vmax.f32 %v447_v1, 0.0 }
  0x2a   : > { %587 = vst.msk [vmem:[#allocation2 + $0x190] sm:$0x3] %vm538_vm1, %v6142_v5  ;;  %590 = vst.msk [vmem:[#allocation2 + $0x1a8] sm:$0x3] %vm538_vm1, %v6142_v5  ;;  %v424_v5 = vmul.f32 %v6288_v10, %v385_v56 }
  0x2b   : > { %518 = vst.msk [vmem:[%s6341_s15 + $0x70] sm:$0xff] %vm503_vm0, %v485_v45  ;;  %606 = vst.msk [vmem:[#allocation2 + $0xc1] sm:$0xff] %vm503_vm0, %v485_v45  ;;  %v428_v45 = vmul.f32 %v6288_v10, %v389_v28 }
  0x2c   : > { %519 = vst.msk [vmem:[%s6341_s15 + $0x78] sm:$0xff] %vm503_vm0, %v486_v46  ;;  %607 = vst.msk [vmem:[#allocation2 + $0xc9] sm:$0xff] %vm503_vm0, %v486_v46  ;;  %v463_v19 = vadd.f32 %v6306_v13, %v424_v5  ;;  %v390_v46 = vld [vmem:[%s6301_s24 + $0xe8] sm:$0xff] }
  0x2d   : > { %520 = vst.msk [vmem:[%s6341_s15 + $0x80] sm:$0xff] %vm503_vm0, %v487_v47  ;;  %608 = vst.msk [vmem:[#allocation2 + $0xd9] sm:$0xff] %vm503_vm0, %v487_v47  ;;  %v370_v47 = vld [vmem:[%s6301_s24 + $0x48] sm:$0xff]  ;;  %v467_v60 = vadd.f32 %v6306_v13, %v428_v45  ;;  %v429_v3 = vmul.f32 %v6288_v10, %v390_v46 }
  0x2e   : > { %521 = vst.msk [vmem:[%s6341_s15 + $0x88] sm:$0xff] %vm503_vm0, %v488_v52  ;;  %609 = vst.msk [vmem:[#allocation2 + $0xe1] sm:$0xff] %vm503_vm0, %v488_v52  ;;  %v495_v29 = vmax.f32 %v463_v19, 0.0  ;;  %v371_v52 = vld [vmem:[%s6301_s24 + $0x50] sm:$0xff]  ;;  %v409_v4 = vmul.f32 %v6288_v10, %v370_v47 }
  0x2f   : > { %522 = vst.msk [vmem:[%s6341_s15 + $0x90] sm:$0xff] %vm503_vm0, %v489_v53  ;;  %610 = vst.msk [vmem:[#allocation2 + $0xf1] sm:$0xff] %vm503_vm0, %v489_v53  ;;  %v372_v53 = vld [vmem:[%s6301_s24 + $0x58] sm:$0xff]  ;;  %v499_v2 = vmax.f32 %v467_v60, 0.0  ;;  %v410_v5 = vmul.f32 %v6288_v10, %v371_v52  ;;  %v391_v60 = vld [vmem:[%s6301_s24 + $0xf0] sm:$0xff] }
  0x30   : > { %523 = vst.msk [vmem:[%s6341_s15 + $0x98] sm:$0xff] %vm503_vm0, %v490_v54  ;;  %611 = vst.msk [vmem:[#allocation2 + $0xf9] sm:$0xff] %vm503_vm0, %v490_v54  ;;  %v373_v54 = vld [vmem:[%s6301_s24 + $0x60] sm:$0xff]  ;;  %v411_v9 = vmul.f32 %v6288_v10, %v372_v53  ;;  %v430_v1 = vmul.f32 %v6288_v10, %v391_v60 }
  0x31   : > { %524 = vst.msk [vmem:[%s6341_s15 + $0xa0] sm:$0xff] %vm503_vm0, %v491_v57  ;;  %612 = vst.msk [vmem:[#allocation2 + $0x109] sm:$0xff] %vm503_vm0, %v491_v57  ;;  %v496_v57 = vmax.f32 %v464_v42, 0.0  ;;  %v412_v11 = vmul.f32 %v6288_v10, %v373_v54  ;;  %v1012_v53 = vld [vmem:[#allocation2 + $0x1] sm:$0xff] }
  0x32   : > { %504 = vst.msk [vmem:[%s6341_s15] sm:$0xff] %vm503_vm0, %v471_v62  ;;  %592 = vst.msk [vmem:[#allocation2 + $0x19] sm:$0xff] %vm503_vm0, %v471_v62  ;;  %v6420_v35 = vld [vmem:[#allocation2 + $0xc0] sm:$0xff]  ;;  %v450_v21 = vadd.f32 %v6306_v13, %v411_v9 }
  0x33   : > { %525 = vst.msk [vmem:[%s6341_s15 + $0xa8] sm:$0xff] %vm503_vm0, %v492_v16  ;;  %613 = vst.msk [vmem:[#allocation2 + $0x111] sm:$0xff] %vm503_vm0, %v492_v16  ;;  %v6422_v36 = vld [vmem:[#allocation2 + $0xc8] sm:$0xff]  ;;  %5615 = vmatprep.mubr.msk.f32.mxu1 %vm503_vm0, %v6420_v35  ;;  %v468_v16 = vadd.f32 %v6306_v13, %v429_v3  ;;  %v451_v22 = vadd.f32 %v6306_v13, %v412_v11 }
  0x34   : > { %505 = vst.msk [vmem:[%s6341_s15 + $0x8] sm:$0xff] %vm503_vm0, %v472_v17  ;;  %593 = vst.msk [vmem:[#allocation2 + $0x21] sm:$0xff] %vm503_vm0, %v472_v17  ;;  %v6424_v37 = vld [vmem:[#allocation2 + $0xd8] sm:$0xff]  ;;  %5616 = vmatmul.mubr.msk.f32.vlgmr.msra.gmra.mrb[0].mxu1 %vm503_vm0, %v6422_v36  ;;  %v448_v17 = vadd.f32 %v6306_v13, %v409_v4 }
  0x35   : > { %526 = vst.msk [vmem:[%s6341_s15 + $0xb0] sm:$0xff] %vm503_vm0, %v493_v18  ;;  %614 = vst.msk [vmem:[#allocation2 + $0x121] sm:$0xff] %vm503_vm0, %v493_v18  ;;  %6062 = vmatpush3.bf16.msra.mxu1 %v6253_v6  ;;  %5618 = vmatprep.mubr.msk.f32.mxu1 %vm503_vm0, %v6424_v37  ;;  %v6464_v55 = vld [vmem:[#allocation2 + $0xe0] sm:$0xff]  ;;  %v477_v6 = vmax.f32 %v445_v48, 0.0  ;;  %v449_v18 = vadd.f32 %v6306_v13, %v410_v5  ;;  %v483_v30 = vmax.f32 %v451_v22, 0.0  ;;  %v1465_v5 = vld [vmem:[#allocation2 + $0xa] sm:$0xff] }
  0x36   : > { %506 = vst.msk [vmem:[%s6341_s15 + $0x10] sm:$0xff] %vm503_vm0, %v473_v23  ;;  %594 = vst.msk [vmem:[#allocation2 + $0x31] sm:$0xff] %vm503_vm0, %v473_v23  ;;  %v6470_v62 = vld [vmem:[#allocation2 + $0xf0] sm:$0xff]  ;;  %6068 = vmatprep.subr.bf16.mxu1 %v6324_v25  ;;  %v452_v23 = vadd.f32 %v6306_v13, %v413_v12  ;;  %v480_v27 = vmax.f32 %v448_v17, 0.0 }
  0x37   : > { %527 = vst.msk [vmem:[%s6341_s15 + $0xb8] sm:$0xff] %vm503_vm0, %v494_v24  ;;  %615 = vst.msk [vmem:[#allocation2 + $0x129] sm:$0xff] %vm503_vm0, %v494_v24  ;;  %v6506_v14 = vld [vmem:[#allocation2 + $0xf8] sm:$0xff]  ;;  %v481_v28 = vmax.f32 %v449_v18, 0.0 }
  0x38   : > { %507 = vst.msk [vmem:[%s6341_s15 + $0x18] sm:$0xff] %vm503_vm0, %v474_v26  ;;  %595 = vst.msk [vmem:[#allocation2 + $0x39] sm:$0xff] %vm503_vm0, %v474_v26  ;;  %5619 = vmatmul.mubr.msk.f32.gmra.mrb[2].mxu1 %vm503_vm0, %v6464_v55  ;;  %v6518_v19 = vld [vmem:[#allocation2 + $0x108] sm:$0xff]  ;;  %v500_v26 = vmax.f32 %v468_v16, 0.0  ;;  %v484_v32 = vmax.f32 %v452_v23, 0.0 }
  0x39   : > { %528 = vst.msk [vmem:[%s6341_s15 + $0xc0] sm:$0xff] %vm503_vm0, %v495_v29  ;;  %616 = vst.msk [vmem:[#allocation2 + $0x139] sm:$0xff] %vm503_vm0, %v495_v29  ;;  %v6466_v56 = vld [vmem:[#allocation2 + $0x18] sm:$0xff]  ;;  %5621 = vmatprep.mubr.msk.f32.mxu1 %vm503_vm0, %v6470_v62  ;;  %v482_v29 = vmax.f32 %v450_v21, 0.0 }
  0x3a   : > { %508 = vst.msk [vmem:[%s6341_s15 + $0x20] sm:$0xff] %vm503_vm0, %v475_v38  ;;  %596 = vst.msk [vmem:[#allocation2 + $0x49] sm:$0xff] %vm503_vm0, %v475_v38  ;;  %5594 = vmatprep.mubr.msk.f32.mxu0 %vm503_vm0, %v6466_v56  ;;  %v6536_v33 = vld [vmem:[#allocation2 + $0x110] sm:$0xff]  ;;  %v6647_v3 = vld [vmem:[#allocation2 + $0x19] sm:$0xff] }
  0x3b   : > { %529 = vst.msk [vmem:[%s6341_s15 + $0xc8] sm:$0xff] %vm503_vm0, %v496_v57  ;;  %617 = vst.msk [vmem:[#allocation2 + $0x141] sm:$0xff] %vm503_vm0, %v496_v57  ;;  %v6490_v7 = vld [vmem:[#allocation2 + $0x20] sm:$0xff] }
  0x3c   : > { %509 = vst.msk [vmem:[%s6341_s15 + $0x28] sm:$0xff] %vm503_vm0, %v476_v58  ;;  %597 = vst.msk [vmem:[#allocation2 + $0x51] sm:$0xff] %vm503_vm0, %v476_v58  ;;  %5595 = vmatmul.mubr.msk.f32.gmra.mrb[2].mxu0 %vm503_vm0, %v6490_v7  ;;  %5622 = vmatmul.mubr.msk.f32.gmra.mrb[4].mxu1 %vm503_vm0, %v6506_v14  ;;  %v6549_v34 = vld [vmem:[#allocation2 + $0x120] sm:$0xff]  ;;  %v5138_v58 = vld [vmem:[%s7727_s3 + $0x50] sm:$0xff] }
  0x3d   : > { %530 = vst.msk [vmem:[%s6341_s15 + $0xd0] sm:$0xff] %vm503_vm0, %v497_v59  ;;  %618 = vst.msk [vmem:[#allocation2 + $0x151] sm:$0xff] %vm503_vm0, %v497_v59  ;;  %v6510_v15 = vld [vmem:[#allocation2 + $0x30] sm:$0xff]  ;;  %5624 = vmatprep.mubr.msk.f32.mxu1 %vm503_vm0, %v6518_v19  ;;  %v1464_v57 = vld [vmem:[#allocation2 + $0x2] sm:$0xff] }
  0x3e   : > { %510 = vst.msk [vmem:[%s6341_s15 + $0x30] sm:$0xff] %vm503_vm0, %v477_v6  ;;  %598 = vst.msk [vmem:[#allocation2 + $0x61] sm:$0xff] %vm503_vm0, %v477_v6  ;;  %5597 = vmatprep.mubr.msk.f32.mxu0 %vm503_vm0, %v6510_v15  ;;  %v6570_v40 = vld [vmem:[#allocation2 + $0x128] sm:$0xff]  ;;  %v5139_v59 = vld [vmem:[%s7727_s3 + $0x58] sm:$0xff] }
  0x3f   : > { %531 = vst.msk [vmem:[%s6341_s15 + $0xd8] sm:$0xff] %vm503_vm0, %v498_v63  ;;  %619 = vst.msk [vmem:[#allocation2 + $0x159] sm:$0xff] %vm503_vm0, %v498_v63  ;;  %v6522_v20 = vld [vmem:[#allocation2 + $0x38] sm:$0xff]  ;;  %v1013_v6 = vld [vmem:[#allocation2 + $0x9] sm:$0xff]  ;;  %v6650_v4 = vpack.c.bf16 %v5139_v59, %v5138_v58 }
  0x40   : > { %511 = vst.msk [vmem:[%s6341_s15 + $0x38] sm:$0xff] %vm503_vm0, %v478_v0  ;;  %599 = vst.msk [vmem:[#allocation2 + $0x69] sm:$0xff] %vm503_vm0, %v478_v0  ;;  %5598 = vmatmul.mubr.msk.f32.gmra.mrb[4].mxu0 %vm503_vm0, %v6522_v20  ;;  %5625 = vmatmul.mubr.msk.f32.gmra.mrb[6].mxu1 %vm503_vm0, %v6536_v33  ;;  %v6574_v41 = vld [vmem:[#allocation2 + $0x138] sm:$0xff]  ;;  %v5172_v63 = vld [vmem:[%s7727_s3 + $0x60] sm:$0xff] }
  0x41   : > { %532 = vst.msk [vmem:[%s6341_s15 + $0xe0] sm:$0xff] %vm503_vm0, %v499_v2  ;;  %620 = vst.msk [vmem:[#allocation2 + $0x169] sm:$0xff] %vm503_vm0, %v499_v2  ;;  %v6530_v24 = vld [vmem:[#allocation2 + $0x48] sm:$0xff]  ;;  %5627 = vmatprep.mubr.msk.f32.mxu1 %vm503_vm0, %v6549_v34  ;;  %v431_v2 = vmul.f32 %v6288_v10, %v392_v61  ;;  %v6655_v11 = vld [vmem:[#allocation2 + $0x1a] sm:$0xff] }
  0x42   : > { %512 = vst.msk [vmem:[%s6341_s15 + $0x40] sm:$0xff] %vm503_vm0, %v479_v8  ;;  %600 = vst.msk [vmem:[#allocation2 + $0x79] sm:$0xff] %vm503_vm0, %v479_v8  ;;  %5600 = vmatprep.mubr.msk.f32.mxu0 %vm503_vm0, %v6530_v24  ;;  %v6586_v44 = vld [vmem:[#allocation2 + $0x140] sm:$0xff]  ;;  %v5173_v0 = vld [vmem:[%s7727_s3 + $0x68] sm:$0xff]  ;;  %v469_v8 = vadd.f32 %v6306_v13, %v430_v1 }
  0x43   : > { %533 = vst.msk [vmem:[%s6341_s15 + $0xe8] sm:$0xff] %vm503_vm0, %v500_v26  ;;  %621 = vst.msk [vmem:[#allocation2 + $0x171] sm:$0xff] %vm503_vm0, %v500_v26  ;;  %v6553_v38 = vld [vmem:[#allocation2 + $0x50] sm:$0xff]  ;;  %v470_v9 = vadd.f32 %v6306_v13, %v431_v2  ;;  %v6657_v12 = vpack.c.bf16 %v5173_v0, %v5172_v63  ;;  %v6662_v10 = vld [vmem:[#allocation2 + $0x21] sm:$0xff] }
  0x44   : > { %513 = vst.msk [vmem:[%s6341_s15 + $0x48] sm:$0xff] %vm503_vm0, %v480_v27  ;;  %601 = vst.msk [vmem:[#allocation2 + $0x81] sm:$0xff] %vm503_vm0, %v480_v27  ;;  %5601 = vmatmul.mubr.msk.f32.gmra.mrb[6].mxu0 %vm503_vm0, %v6553_v38  ;;  %5628 = vmatmul.mubr.msk.f32.gmra.mrb[8].mxu1 %vm503_vm0, %v6570_v40  ;;  %v6590_v45 = vld [vmem:[#allocation2 + $0x150] sm:$0xff]  ;;  %v501_v16 = vmax.f32 %v469_v8, 0.0  ;;  %v6671_v13 = vld [vmem:[#allocation2 + $0x22] sm:$0xff] }
  0x45   : > { %514 = vst.msk [vmem:[%s6341_s15 + $0x50] sm:$0xff] %vm503_vm0, %v481_v28  ;;  %602 = vst.msk [vmem:[#allocation2 + $0x91] sm:$0xff] %vm503_vm0, %v481_v28  ;;  %v6564_v39 = vld [vmem:[#allocation2 + $0x60] sm:$0xff]  ;;  %5630 = vmatprep.mubr.msk.f32.mxu1 %vm503_vm0, %v6574_v41  ;;  %v502_v17 = vmax.f32 %v470_v9, 0.0  ;;  %v6664_v18 = vld [vmem:[#allocation2 + $0x31] sm:$0xff] }
  0x46   : > { %515 = vst.msk [vmem:[%s6341_s15 + $0x58] sm:$0xff] %vm503_vm0, %v482_v29  ;;  %603 = vst.msk [vmem:[#allocation2 + $0x99] sm:$0xff] %vm503_vm0, %v482_v29  ;;  %5603 = vmatprep.mubr.msk.f32.mxu0 %vm503_vm0, %v6564_v39  ;;  %v6602_v48 = vld [vmem:[#allocation2 + $0x158] sm:$0xff]  ;;  %v6688_v21 = vld [vmem:[#allocation2 + $0x49] sm:$0xff] }
  0x47   : > { %516 = vst.msk [vmem:[%s6341_s15 + $0x60] sm:$0xff] %vm503_vm0, %v483_v30  ;;  %604 = vst.msk [vmem:[#allocation2 + $0xa9] sm:$0xff] %vm503_vm0, %v483_v30  ;;  %v6578_v42 = vld [vmem:[#allocation2 + $0x68] sm:$0xff]  ;;  %v6694_v22 = vld [vmem:[#allocation2 + $0x3a] sm:$0xff] }
  0x48   : > { %517 = vst.msk [vmem:[%s6341_s15 + $0x68] sm:$0xff] %vm503_vm0, %v484_v32  ;;  %605 = vst.msk [vmem:[#allocation2 + $0xb1] sm:$0xff] %vm503_vm0, %v484_v32  ;;  %5604 = vmatmul.mubr.msk.f32.gmra.mrb[8].mxu0 %vm503_vm0, %v6578_v42  ;;  %5631 = vmatmul.mubr.msk.f32.gmra.mrb[10].mxu1 %vm503_vm0, %v6586_v44  ;;  %v6606_v49 = vld [vmem:[#allocation2 + $0x168] sm:$0xff]  ;;  %v6702_v26 = vld [vmem:[#allocation2 + $0x51] sm:$0xff] }
  0x49   : > { %v6580_v43 = vld [vmem:[#allocation2 + $0x78] sm:$0xff]  ;;  %5633 = vmatprep.mubr.msk.f32.mxu1 %vm503_vm0, %v6590_v45  ;;  %7781 = vst [vmem:[#allocation4_spill] sm:$0xff] %v6606_v49  ;;  %7783 = vst [vmem:[#allocation6_spill] sm:$0xff] %v6655_v11  ;;  %v6698_v23 = vld [vmem:[#allocation2 + $0x4a] sm:$0xff] }
  0x4a   : > { %5606 = vmatprep.mubr.msk.f32.mxu0 %vm503_vm0, %v6580_v43  ;;  %v6618_v52 = vld [vmem:[#allocation2 + $0x170] sm:$0xff]  ;;  %7784 = vst [vmem:[#allocation7_spill] sm:$0xff] %v6671_v13  ;;  %534 = vst.msk [vmem:[%s6341_s15 + $0xf0] sm:$0xff] %vm503_vm0, %v501_v16  ;;  %v6704_v27 = vld [vmem:[#allocation2 + $0x61] sm:$0xff] }
  0x4b   : > { %v6594_v46 = vld [vmem:[#allocation2 + $0x80] sm:$0xff]  ;;  %7782 = vst [vmem:[#allocation5_spill] sm:$0xff] %v6618_v52  ;;  %622 = vst.msk [vmem:[#allocation2 + $0x181] sm:$0xff] %vm503_vm0, %v501_v16  ;;  %v6710_v28 = vld [vmem:[#allocation2 + $0x52] sm:$0xff] }
  0x4c   : > { %v6596_v47 = vld [vmem:[#allocation2 + $0x90] sm:$0xff]  ;;  %5607 = vmatmul.mubr.msk.f32.gmra.mrb[10].mxu0 %vm503_vm0, %v6594_v46  ;;  %5634 = vmatmul.mubr.msk.f32.gmra.mrb[12].mxu1 %vm503_vm0, %v6602_v48  ;;  %535 = vst.msk [vmem:[%s6341_s15 + $0xf8] sm:$0xff] %vm503_vm0, %v502_v17  ;;  %623 = vst.msk [vmem:[#allocation2 + $0x189] sm:$0xff] %vm503_vm0, %v502_v17  ;;  %v6714_v29 = vld [vmem:[#allocation2 + $0x62] sm:$0xff] }
  0x4d   : > { %5609 = vmatprep.mubr.msk.f32.mxu0 %vm503_vm0, %v6596_v47  ;;  %v6610_v50 = vld [vmem:[#allocation2 + $0x98] sm:$0xff]  ;;  %5636 = vmatprep.mubr.msk.f32.mxu1 %vm503_vm0, %v6606_v49  ;;  %7786 = vst [vmem:[#allocation9_spill] sm:$0xff] %v6694_v22  ;;  %7787 = vst [vmem:[#allocation10_spill] sm:$0xff] %v6698_v23  ;;  %v6718_v30 = vld [vmem:[#allocation2 + $0x69] sm:$0xff] }
  0x4e   : > { %v6612_v51 = vld [vmem:[#allocation2 + $0xa8] sm:$0xff]  ;;  %7788 = vst [vmem:[#allocation11_spill] sm:$0xff] %v6710_v28  ;;  %7789 = vst [vmem:[#allocation12_spill] sm:$0xff] %v6714_v29  ;;  %v6720_v32 = vld [vmem:[#allocation2 + $0x79] sm:$0xff] }
  0x4f   : > { %v6624_v54 = vld [vmem:[#allocation2 + $0xb0] sm:$0xff]  ;;  %v6734_v58 = vld [vmem:[#allocation2 + $0x81] sm:$0xff]  ;;  %v6784_v17 = vld [vmem:[#allocation2 + $0xd9] sm:$0xff] }
  0x50   : > { %5610 = vmatmul.mubr.msk.f32.gmra.mrb[12].mxu0 %vm503_vm0, %v6610_v50  ;;  %5637 = vmatmul.mubr.msk.f32.gmra.mrb[14].mxu1 %vm503_vm0, %v6618_v52  ;;  %v6736_v59 = vld [vmem:[#allocation2 + $0x91] sm:$0xff]  ;;  %v6742_v60 = vld [vmem:[#allocation2 + $0x82] sm:$0xff]  ;;  %v6758_v0 = vld [vmem:[#allocation2 + $0x9a] sm:$0xff] }
  0x51   : > { %5612 = vmatprep.mubr.msk.f32.mxu0 %vm503_vm0, %v6612_v51  ;;  %5643 = vmatprep.mubr.msk.f32.mxu1 %vm503_vm0, %v1012_v53  ;;  %v6726_v53 = vld [vmem:[#allocation2 + $0x6a] sm:$0xff]  ;;  %7792 = vst [vmem:[#allocation15_spill] sm:$0xff] %v6742_v60  ;;  %v6746_v61 = vld [vmem:[#allocation2 + $0x92] sm:$0xff]  ;;  %7794 = vst [vmem:[#allocation17_spill] sm:$0xff] %v6758_v0 }
  0x52   : > { %7790 = vst [vmem:[#allocation13_spill] sm:$0xff] %v6726_v53  ;;  %7793 = vst [vmem:[#allocation16_spill] sm:$0xff] %v6746_v61  ;;  %v6752_v63 = vld [vmem:[#allocation2 + $0xa9] sm:$0xff]  ;;  %v6766_v2 = vld [vmem:[#allocation2 + $0xb1] sm:$0xff] }
  0x53   : > { %v6762_v1 = vld [vmem:[#allocation2 + $0xaa] sm:$0xff]  ;;  %v6774_v8 = vld [vmem:[#allocation2 + $0xb2] sm:$0xff]  ;;  %v6778_v9 = vld [vmem:[#allocation2 + $0xc2] sm:$0xff] }
  0x54   : > { %5613 = vmatmul.mubr.msk.f32.gmra.mrb[14].mxu0 %vm503_vm0, %v6624_v54  ;;  %5644 = vmatmul.mubr.msk.f32.vlgmr.msra.gmra.mrb[16].mxu1 %vm503_vm0, %v1013_v6  ;;  %v6750_v6 = vld [vmem:[#allocation2 + $0x99] sm:$0xff]  ;;  %7795 = vst [vmem:[#allocation18_spill] sm:$0xff] %v6762_v1  ;;  %7796 = vst [vmem:[#allocation19_spill] sm:$0xff] %v6774_v8  ;;  %v6782_v16 = vld [vmem:[#allocation2 + $0xc9] sm:$0xff] }
  0x55   : > { %5695 = vmatprep.mubr.msk.f32.mxu0 %vm503_vm0, %v1464_v57  ;;  %6070 = vmatpush3.bf16.msra.mxu1 %v6324_v25  ;;  %v6681_v25 = vld [vmem:[#allocation2 + $0x32] sm:$0xff]  ;;  %v6730_v57 = vld [vmem:[#allocation2 + $0x7a] sm:$0xff]  ;;  %7797 = vst [vmem:[#allocation20_spill] sm:$0xff] %v6778_v9  ;;  %v6880_v52 = vld [vmem:[#allocation2 + $0x169] sm:$0xff] }
  0x56   : > { %5646 = vmatprep.mubr.msk.f32.mxu1 %vm503_vm0, %v6647_v3  ;;  %6076 = vmatprep.subr.bf16.mxu1 %v6650_v4  ;;  %7785 = vst [vmem:[#allocation8_spill] sm:$0xff] %v6681_v25  ;;  %7791 = vst [vmem:[#allocation14_spill] sm:$0xff] %v6730_v57  ;;  %v6894_v49 = vld [vmem:[#allocation2 + $0x171] sm:$0xff] }
  0x57   : > { %7811 = vst [vmem:[#allocation34_spill] sm:$0xff] %v6880_v52 }
  0x58   : > { %5696 = vmatmul.mubr.msk.f32.vlgmr.msra.gmra.mrb[16].mxu0 %vm503_vm0, %v1465_v5  ;;  %5647 = vmatmul.mubr.msk.f32.gmra.mrb[18].mxu1 %vm503_vm0, %v6662_v10  ;;  %v6768_v5 = vld [vmem:[#allocation2 + $0xc1] sm:$0xff] }
  0x59   : > { %6074 = vmatpush3.bf16.msra.mxu0 %v6331_v31  ;;  %5698 = vmatprep.mubr.msk.f32.mxu0 %vm503_vm0, %v6655_v11  ;;  %v6686_v31 = vld [vmem:[#allocation2 + $0x39] sm:$0xff] }
  0x5a   : > { %6080 = vmatprep.subr.bf16.mxu0 %v6657_v12  ;;  %5649 = vmatprep.mubr.msk.f32.mxu1 %vm503_vm0, %v6664_v18  ;;  %v6878_v11 = vld [vmem:[#allocation2 + $0x159] sm:$0xff] }
  0x5b   : > { %7810 = vst [vmem:[#allocation33_spill] sm:$0xff] %v6878_v11 }
  0x5c   : > { %5699 = vmatmul.mubr.msk.f32.gmra.mrb[18].mxu0 %vm503_vm0, %v6671_v13  ;;  %5650 = vmatmul.mubr.msk.f32.gmra.mrb[20].mxu1 %vm503_vm0, %v6686_v31  ;;  %v6864_v13 = vld [vmem:[#allocation2 + $0x151] sm:$0xff] }
  0x5d   : > { %5701 = vmatprep.mubr.msk.f32.mxu0 %vm503_vm0, %v6681_v25  ;;  %5652 = vmatprep.mubr.msk.f32.mxu1 %vm503_vm0, %v6688_v21  ;;  %v6862_v25 = vld [vmem:[#allocation2 + $0x141] sm:$0xff] }
  0x60   : > { %5702 = vmatmul.mubr.msk.f32.gmra.mrb[20].mxu0 %vm503_vm0, %v6694_v22  ;;  %5653 = vmatmul.mubr.msk.f32.gmra.mrb[22].mxu1 %vm503_vm0, %v6702_v26  ;;  %v6848_v22 = vld [vmem:[#allocation2 + $0x139] sm:$0xff] }
  0x61   : > { %5704 = vmatprep.mubr.msk.f32.mxu0 %vm503_vm0, %v6698_v23  ;;  %5655 = vmatprep.mubr.msk.f32.mxu1 %vm503_vm0, %v6704_v27  ;;  %v6846_v23 = vld [vmem:[#allocation2 + $0x129] sm:$0xff] }
  0x64   : > { %5705 = vmatmul.mubr.msk.f32.gmra.mrb[22].mxu0 %vm503_vm0, %v6710_v28  ;;  %5656 = vmatmul.mubr.msk.f32.gmra.mrb[24].mxu1 %vm503_vm0, %v6718_v30  ;;  %v6832_v28 = vld [vmem:[#allocation2 + $0x121] sm:$0xff] }
  0x65   : > { %5707 = vmatprep.mubr.msk.f32.mxu0 %vm503_vm0, %v6714_v29  ;;  %5658 = vmatprep.mubr.msk.f32.mxu1 %vm503_vm0, %v6720_v32  ;;  %v6830_v29 = vld [vmem:[#allocation2 + $0x111] sm:$0xff] }
  0x68   : > { %5708 = vmatmul.mubr.msk.f32.gmra.mrb[24].mxu0 %vm503_vm0, %v6726_v53  ;;  %5659 = vmatmul.mubr.msk.f32.gmra.mrb[26].mxu1 %vm503_vm0, %v6734_v58  ;;  %v6816_v53 = vld [vmem:[#allocation2 + $0x109] sm:$0xff] }
  0x69   : > { %5710 = vmatprep.mubr.msk.f32.mxu0 %vm503_vm0, %v6730_v57  ;;  %5661 = vmatprep.mubr.msk.f32.mxu1 %vm503_vm0, %v6736_v59  ;;  %v6814_v57 = vld [vmem:[#allocation2 + $0xf9] sm:$0xff] }
  0x6c   : > { %5711 = vmatmul.mubr.msk.f32.gmra.mrb[26].mxu0 %vm503_vm0, %v6742_v60  ;;  %5662 = vmatmul.mubr.msk.f32.gmra.mrb[28].mxu1 %vm503_vm0, %v6750_v6  ;;  %v6800_v60 = vld [vmem:[#allocation2 + $0xf1] sm:$0xff] }
  0x6d   : > { %5713 = vmatprep.mubr.msk.f32.mxu0 %vm503_vm0, %v6746_v61  ;;  %5664 = vmatprep.mubr.msk.f32.mxu1 %vm503_vm0, %v6752_v63  ;;  %v6798_v61 = vld [vmem:[#allocation2 + $0xe1] sm:$0xff] }
  0x70   : > { %5714 = vmatmul.mubr.msk.f32.gmra.mrb[28].mxu0 %vm503_vm0, %v6758_v0  ;;  %5665 = vmatmul.mubr.msk.f32.gmra.mrb[30].mxu1 %vm503_vm0, %v6766_v2  ;;  %v6794_v0 = vld [vmem:[#allocation2 + $0xda] sm:$0xff] }
  0x71   : > { %5716 = vmatprep.mubr.msk.f32.mxu0 %vm503_vm0, %v6762_v1  ;;  %5667 = vmatprep.mubr.msk.f32.mxu1 %vm503_vm0, %v6768_v5  ;;  %v6790_v1 = vld [vmem:[#allocation2 + $0xca] sm:$0xff]  ;;  %7799 = vst [vmem:[#allocation22_spill] sm:$0xff] %v6794_v0 }
  0x72   : > { %7798 = vst [vmem:[#allocation21_spill] sm:$0xff] %v6790_v1 }
  0x74   : > { %5717 = vmatmul.mubr.msk.f32.gmra.mrb[30].mxu0 %vm503_vm0, %v6774_v8  ;;  %5668 = vmatmul.mubr.msk.f32.gmra.mrb[32].mxu1 %vm503_vm0, %v6782_v16  ;;  %v6810_v8 = vld [vmem:[#allocation2 + $0xf2] sm:$0xff] }
  0x75   : > { %5719 = vmatprep.mubr.msk.f32.mxu0 %vm503_vm0, %v6778_v9  ;;  %5670 = vmatprep.mubr.msk.f32.mxu1 %vm503_vm0, %v6784_v17  ;;  %v6806_v9 = vld [vmem:[#allocation2 + $0xe2] sm:$0xff]  ;;  %7801 = vst [vmem:[#allocation24_spill] sm:$0xff] %v6810_v8 }
  0x76   : > { %7800 = vst [vmem:[#allocation23_spill] sm:$0xff] %v6806_v9 }
  0x78   : > { %5720 = vmatmul.mubr.msk.f32.gmra.mrb[32].mxu0 %vm503_vm0, %v6790_v1  ;;  %5671 = vmatmul.mubr.msk.f32.gmra.mrb[34].mxu1 %vm503_vm0, %v6798_v61  ;;  %v6826_v1 = vld [vmem:[#allocation2 + $0x10a] sm:$0xff] }
  0x79   : > { %5722 = vmatprep.mubr.msk.f32.mxu0 %vm503_vm0, %v6794_v0  ;;  %5673 = vmatprep.mubr.msk.f32.mxu1 %vm503_vm0, %v6800_v60  ;;  %v6822_v0 = vld [vmem:[#allocation2 + $0xfa] sm:$0xff]  ;;  %7803 = vst [vmem:[#allocation26_spill] sm:$0xff] %v6826_v1 }
  0x7a   : > { %7802 = vst [vmem:[#allocation25_spill] sm:$0xff] %v6822_v0 }
  0x7c   : > { %5723 = vmatmul.mubr.msk.f32.gmra.mrb[34].mxu0 %vm503_vm0, %v6806_v9  ;;  %5674 = vmatmul.mubr.msk.f32.gmra.mrb[36].mxu1 %vm503_vm0, %v6814_v57  ;;  %v6842_v9 = vld [vmem:[#allocation2 + $0x122] sm:$0xff] }
  0x7d   : > { %5725 = vmatprep.mubr.msk.f32.mxu0 %vm503_vm0, %v6810_v8  ;;  %5676 = vmatprep.mubr.msk.f32.mxu1 %vm503_vm0, %v6816_v53  ;;  %v6838_v8 = vld [vmem:[#allocation2 + $0x112] sm:$0xff]  ;;  %7805 = vst [vmem:[#allocation28_spill] sm:$0xff] %v6842_v9 }
  0x7e   : > { %7804 = vst [vmem:[#allocation27_spill] sm:$0xff] %v6838_v8 }
  0x80   : > { %5726 = vmatmul.mubr.msk.f32.gmra.mrb[36].mxu0 %vm503_vm0, %v6822_v0  ;;  %5677 = vmatmul.mubr.msk.f32.gmra.mrb[38].mxu1 %vm503_vm0, %v6830_v29  ;;  %v6858_v0 = vld [vmem:[#allocation2 + $0x13a] sm:$0xff] }
  0x81   : > { %5728 = vmatprep.mubr.msk.f32.mxu0 %vm503_vm0, %v6826_v1  ;;  %5679 = vmatprep.mubr.msk.f32.mxu1 %vm503_vm0, %v6832_v28  ;;  %v6854_v1 = vld [vmem:[#allocation2 + $0x12a] sm:$0xff]  ;;  %7807 = vst [vmem:[#allocation30_spill] sm:$0xff] %v6858_v0 }
  0x82   : > { %7806 = vst [vmem:[#allocation29_spill] sm:$0xff] %v6854_v1 }
  0x84   : > { %5729 = vmatmul.mubr.msk.f32.gmra.mrb[38].mxu0 %vm503_vm0, %v6838_v8  ;;  %5680 = vmatmul.mubr.msk.f32.gmra.mrb[40].mxu1 %vm503_vm0, %v6846_v23  ;;  %v6874_v8 = vld [vmem:[#allocation2 + $0x152] sm:$0xff] }
  0x85   : > { %5731 = vmatprep.mubr.msk.f32.mxu0 %vm503_vm0, %v6842_v9  ;;  %5682 = vmatprep.mubr.msk.f32.mxu1 %vm503_vm0, %v6848_v22  ;;  %v6870_v9 = vld [vmem:[#allocation2 + $0x142] sm:$0xff]  ;;  %7809 = vst [vmem:[#allocation32_spill] sm:$0xff] %v6874_v8 }
  0x86   : > { %7808 = vst [vmem:[#allocation31_spill] sm:$0xff] %v6870_v9 }
  0x88   : > { %5732 = vmatmul.mubr.msk.f32.gmra.mrb[40].mxu0 %vm503_vm0, %v6854_v1  ;;  %5683 = vmatmul.mubr.msk.f32.gmra.mrb[42].mxu1 %vm503_vm0, %v6862_v25  ;;  %v6890_v1 = vld [vmem:[#allocation2 + $0x16a] sm:$0xff] }
  0x89   : > { %5734 = vmatprep.mubr.msk.f32.mxu0 %vm503_vm0, %v6858_v0  ;;  %5685 = vmatprep.mubr.msk.f32.mxu1 %vm503_vm0, %v6864_v13  ;;  %v6886_v0 = vld [vmem:[#allocation2 + $0x15a] sm:$0xff]  ;;  %7813 = vst [vmem:[#allocation36_spill] sm:$0xff] %v6890_v1 }
  0x8a   : > { %7812 = vst [vmem:[#allocation35_spill] sm:$0xff] %v6886_v0 }
  0x8c   : > { %5735 = vmatmul.mubr.msk.f32.gmra.mrb[42].mxu0 %vm503_vm0, %v6870_v9  ;;  %5686 = vmatmul.mubr.msk.f32.gmra.mrb[44].mxu1 %vm503_vm0, %v6878_v11  ;;  %v6900_v9 = vld [vmem:[#allocation2 + $0x172] sm:$0xff] }
  0x8d   : > { %5737 = vmatprep.mubr.msk.f32.mxu0 %vm503_vm0, %v6874_v8  ;;  %5688 = vmatprep.mubr.msk.f32.mxu1 %vm503_vm0, %v6880_v52  ;;  %v5206_v8 = vld [vmem:[%s7727_s3 + $0x70] sm:$0xff]  ;;  %v5207_v11 = vld [vmem:[%s7727_s3 + $0x78] sm:$0xff] }
  0x8e   : > { %v6920_v52 = vpack.c.bf16 %v5207_v11, %v5206_v8  ;;  %v7833_v11 = vld [vmem:[#allocation21_spill] sm:$0xff] }
  0x8f   : > { %v3296_v8 = vld [vmem:[#allocation2 + $0x138] sm:$0xff] }
  0x90   : > { %5738 = vmatmul.mubr.msk.f32.gmra.mrb[44].mxu0 %vm503_vm0, %v6886_v0  ;;  %5689 = vmatmul.mubr.msk.f32.gmra.mrb[46].mxu1 %vm503_vm0, %v6894_v49  ;;  %v5241_v0 = vld [vmem:[%s7727_s3 + $0x88] sm:$0xff] }
  0x91   : > { %5740 = vmatprep.mubr.msk.f32.mxu0 %vm503_vm0, %v6890_v1  ;;  %5747 = vmatprep.mubr.msk.f32.mxu1 %vm503_vm0, %v6466_v56  ;;  %v5240_v1 = vld [vmem:[%s7727_s3 + $0x80] sm:$0xff] }
  0x92   : > { %v6926_v56 = vpack.c.bf16 %v5241_v0, %v5240_v1  ;;  %v3295_v0 = vld [vmem:[#allocation2 + $0x128] sm:$0xff] }
  0x93   : > { %v7839_v1 = vld [vmem:[#allocation27_spill] sm:$0xff] }
  0x94   : > { %5741 = vmatmul.mubr.msk.f32.gmra.mrb[46].mxu0 %vm503_vm0, %v6900_v9  ;;  %5748 = vmatmul.mubr.msk.f32.vlgmr.msra.gmra.mrb[48].mxu1 %vm503_vm0, %v6490_v7  ;;  %v7046_v7 = vld [vmem:[#allocation2 + $0x181] sm:$0xff] }
  0x95   : > { %5799 = vmatprep.mubr.msk.f32.mxu0 %vm503_vm0, %v6647_v3  ;;  %6078 = vmatpush3.bf16.msra.mxu1 %v6650_v4  ;;  %v7831_v3 = vld [vmem:[#allocation19_spill] sm:$0xff]  ;;  %v7832_v4 = vld [vmem:[#allocation20_spill] sm:$0xff] }
  0x96   : > { %5750 = vmatprep.mubr.msk.f32.mxu1 %vm503_vm0, %v6510_v15  ;;  %6084 = vmatprep.subr.bf16.mxu1 %v6920_v52 }
  0x98   : > { %5800 = vmatmul.mubr.msk.f32.vlgmr.msra.gmra.mrb[48].mxu0 %vm503_vm0, %v6662_v10  ;;  %5751 = vmatmul.mubr.msk.f32.gmra.mrb[50].mxu1 %vm503_vm0, %v6522_v20  ;;  %v3291_v10 = vld [vmem:[#allocation2 + $0xf8] sm:$0xff] }
  0x99   : > { %6082 = vmatpush3.bf16.msra.mxu0 %v6657_v12  ;;  %5802 = vmatprep.mubr.msk.f32.mxu0 %vm503_vm0, %v6664_v18  ;;  %v3290_v12 = vld [vmem:[#allocation2 + $0xf0] sm:$0xff] }
  0x9a   : > { %6088 = vmatprep.subr.bf16.mxu0 %v6926_v56  ;;  %5753 = vmatprep.mubr.msk.f32.mxu1 %vm503_vm0, %v6530_v24 }
  0x9c   : > { %5803 = vmatmul.mubr.msk.f32.gmra.mrb[50].mxu0 %vm503_vm0, %v6686_v31  ;;  %5754 = vmatmul.mubr.msk.f32.gmra.mrb[52].mxu1 %vm503_vm0, %v6553_v38 }
  0x9d   : > { %5805 = vmatprep.mubr.msk.f32.mxu0 %vm503_vm0, %v6688_v21  ;;  %5756 = vmatprep.mubr.msk.f32.mxu1 %vm503_vm0, %v6564_v39 }
  0xa0   : > { %5806 = vmatmul.mubr.msk.f32.gmra.mrb[52].mxu0 %vm503_vm0, %v6702_v26  ;;  %5757 = vmatmul.mubr.msk.f32.gmra.mrb[54].mxu1 %vm503_vm0, %v6578_v42 }
  0xa1   : > { %5808 = vmatprep.mubr.msk.f32.mxu0 %vm503_vm0, %v6704_v27  ;;  %5759 = vmatprep.mubr.msk.f32.mxu1 %vm503_vm0, %v6580_v43 }
  0xa4   : > { %5809 = vmatmul.mubr.msk.f32.gmra.mrb[54].mxu0 %vm503_vm0, %v6718_v30  ;;  %5760 = vmatmul.mubr.msk.f32.gmra.mrb[56].mxu1 %vm503_vm0, %v6594_v46 }
  0xa5   : > { %5811 = vmatprep.mubr.msk.f32.mxu0 %vm503_vm0, %v6720_v32  ;;  %5762 = vmatprep.mubr.msk.f32.mxu1 %vm503_vm0, %v6596_v47 }
  0xa8   : > { %5812 = vmatmul.mubr.msk.f32.gmra.mrb[56].mxu0 %vm503_vm0, %v6734_v58  ;;  %5763 = vmatmul.mubr.msk.f32.gmra.mrb[58].mxu1 %vm503_vm0, %v6610_v50 }
  0xa9   : > { %5814 = vmatprep.mubr.msk.f32.mxu0 %vm503_vm0, %v6736_v59  ;;  %5765 = vmatprep.mubr.msk.f32.mxu1 %vm503_vm0, %v6612_v51 }
  0xac   : > { %5815 = vmatmul.mubr.msk.f32.gmra.mrb[58].mxu0 %vm503_vm0, %v6750_v6  ;;  %5766 = vmatmul.mubr.msk.f32.gmra.mrb[60].mxu1 %vm503_vm0, %v6624_v54 }
  0xad   : > { %5817 = vmatprep.mubr.msk.f32.mxu0 %vm503_vm0, %v6752_v63  ;;  %5768 = vmatprep.mubr.msk.f32.mxu1 %vm503_vm0, %v6420_v35  ;;  %v7814_v35 = vld [vmem:[#allocation4_spill] sm:$0xff] }
  0xb0   : > { %5818 = vmatmul.mubr.msk.f32.gmra.mrb[60].mxu0 %vm503_vm0, %v6766_v2  ;;  %5769 = vmatmul.mubr.msk.f32.gmra.mrb[62].mxu1 %vm503_vm0, %v6422_v36  ;;  %v7038_v36 = vld [vmem:[#allocation2 + $0x180] sm:$0xff] }
  0xb1   : > { %5820 = vmatprep.mubr.msk.f32.mxu0 %vm503_vm0, %v6768_v5  ;;  %5771 = vmatprep.mubr.msk.f32.mxu1 %vm503_vm0, %v6424_v37  ;;  %v7815_v37 = vld [vmem:[#allocation33_spill] sm:$0xff] }
  0xb4   : > { %5821 = vmatmul.mubr.msk.f32.gmra.mrb[62].mxu0 %vm503_vm0, %v6782_v16  ;;  %5772 = vmatmul.mubr.msk.f32.gmra.mrb[64].mxu1 %vm503_vm0, %v6464_v55  ;;  %v7816_v55 = vld [vmem:[#allocation34_spill] sm:$0xff] }
  0xb5   : > { %5823 = vmatprep.mubr.msk.f32.mxu0 %vm503_vm0, %v6784_v17  ;;  %5774 = vmatprep.mubr.msk.f32.mxu1 %vm503_vm0, %v6470_v62  ;;  %v7817_v62 = vld [vmem:[#allocation5_spill] sm:$0xff] }
  0xb8   : > { %5824 = vmatmul.mubr.msk.f32.gmra.mrb[64].mxu0 %vm503_vm0, %v6798_v61  ;;  %5775 = vmatmul.mubr.msk.f32.gmra.mrb[66].mxu1 %vm503_vm0, %v6506_v14  ;;  %v7050_v14 = vld [vmem:[#allocation2 + $0x188] sm:$0xff] }
  0xb9   : > { %5826 = vmatprep.mubr.msk.f32.mxu0 %vm503_vm0, %v6800_v60  ;;  %5777 = vmatprep.mubr.msk.f32.mxu1 %vm503_vm0, %v6518_v19  ;;  %v7056_v19 = vld [vmem:[#allocation2 + $0x189] sm:$0xff] }
  0xbc   : > { %5827 = vmatmul.mubr.msk.f32.gmra.mrb[66].mxu0 %vm503_vm0, %v6814_v57  ;;  %5778 = vmatmul.mubr.msk.f32.gmra.mrb[68].mxu1 %vm503_vm0, %v6536_v33  ;;  %v7818_v33 = vld [vmem:[#allocation6_spill] sm:$0xff] }
  0xbd   : > { %5829 = vmatprep.mubr.msk.f32.mxu0 %vm503_vm0, %v6816_v53  ;;  %5780 = vmatprep.mubr.msk.f32.mxu1 %vm503_vm0, %v6549_v34  ;;  %v7819_v34 = vld [vmem:[#allocation7_spill] sm:$0xff]  ;;  %v7838_v53 = vld [vmem:[#allocation26_spill] sm:$0xff] }
  0xc0   : > { %5830 = vmatmul.mubr.msk.f32.gmra.mrb[68].mxu0 %vm503_vm0, %v6830_v29  ;;  %5781 = vmatmul.mubr.msk.f32.gmra.mrb[70].mxu1 %vm503_vm0, %v6570_v40  ;;  %v7820_v40 = vld [vmem:[#allocation8_spill] sm:$0xff]  ;;  %v3294_v29 = vld [vmem:[#allocation2 + $0x120] sm:$0xff] }
  0xc1   : > { %5832 = vmatprep.mubr.msk.f32.mxu0 %vm503_vm0, %v6832_v28  ;;  %5783 = vmatprep.mubr.msk.f32.mxu1 %vm503_vm0, %v6574_v41  ;;  %v7821_v41 = vld [vmem:[#allocation9_spill] sm:$0xff] }
  0xc2   : > { %v7837_v28 = vld [vmem:[#allocation25_spill] sm:$0xff] }
  0xc4   : > { %5833 = vmatmul.mubr.msk.f32.gmra.mrb[70].mxu0 %vm503_vm0, %v6846_v23  ;;  %5784 = vmatmul.mubr.msk.f32.gmra.mrb[72].mxu1 %vm503_vm0, %v6586_v44  ;;  %v3293_v23 = vld [vmem:[#allocation2 + $0x110] sm:$0xff] }
  0xc5   : > { %5835 = vmatprep.mubr.msk.f32.mxu0 %vm503_vm0, %v6848_v22  ;;  %5786 = vmatprep.mubr.msk.f32.mxu1 %vm503_vm0, %v6590_v45  ;;  %v7836_v22 = vld [vmem:[#allocation24_spill] sm:$0xff] }
  0xc8   : > { %5836 = vmatmul.mubr.msk.f32.gmra.mrb[72].mxu0 %vm503_vm0, %v6862_v25  ;;  %5787 = vmatmul.mubr.msk.f32.gmra.mrb[74].mxu1 %vm503_vm0, %v6602_v48  ;;  %v3292_v25 = vld [vmem:[#allocation2 + $0x108] sm:$0xff] }
  0xc9   : > { %5838 = vmatprep.mubr.msk.f32.mxu0 %vm503_vm0, %v6864_v13  ;;  %5789 = vmatprep.mubr.msk.f32.mxu1 %vm503_vm0, %v7814_v35  ;;  %v7835_v13 = vld [vmem:[#allocation23_spill] sm:$0xff] }
  0xcc   : > { %5839 = vmatmul.mubr.msk.f32.gmra.mrb[74].mxu0 %vm503_vm0, %v7815_v37  ;;  %5790 = vmatmul.mubr.msk.f32.gmra.mrb[76].mxu1 %vm503_vm0, %v7817_v62  ;;  %v7840_v37 = vld [vmem:[#allocation28_spill] sm:$0xff] }
  0xcd   : > { %5841 = vmatprep.mubr.msk.f32.mxu0 %vm503_vm0, %v7816_v55  ;;  %5792 = vmatprep.mubr.msk.f32.mxu1 %vm503_vm0, %v7038_v36 }
  0xd0   : > { %5842 = vmatmul.mubr.msk.f32.gmra.mrb[76].mxu0 %vm503_vm0, %v6894_v49  ;;  %5793 = vmatmul.mubr.msk.f32.gmra.mrb[78].mxu1 %vm503_vm0, %v7050_v14  ;;  %v7823_v49 = vld [vmem:[#allocation11_spill] sm:$0xff] }
  0xd1   : > { %5844 = vmatprep.mubr.msk.f32.mxu0 %vm503_vm0, %v7046_v7  ;;  %5851 = vmatprep.mubr.msk.f32.mxu1 %vm503_vm0, %v7818_v33  ;;  %v7841_v33 = vld [vmem:[#allocation29_spill] sm:$0xff] }
  0xd4   : > { %5845 = vmatmul.mubr.msk.f32.gmra.mrb[78].mxu0 %vm503_vm0, %v7056_v19  ;;  %5852 = vmatmul.mubr.msk.f32.vlgmr.msra.gmra.mrb[80].mxu1 %vm503_vm0, %v7819_v34  ;;  %v7842_v34 = vld [vmem:[#allocation30_spill] sm:$0xff] }
  0xd5   : > { %5903 = vmatprep.mubr.msk.f32.mxu0 %vm503_vm0, %v6510_v15  ;;  %6086 = vmatpush3.bf16.msra.mxu1 %v6920_v52  ;;  %v7822_v15 = vld [vmem:[#allocation10_spill] sm:$0xff] }
  0xd6   : > { %5854 = vmatprep.mubr.msk.f32.mxu1 %vm503_vm0, %v7820_v40  ;;  %v7826_v52 = vld [vmem:[#allocation14_spill] sm:$0xff] }
  0xd8   : > { %5904 = vmatmul.mubr.msk.f32.vlgmr.msra.gmra.mrb[80].mxu0 %vm503_vm0, %v6522_v20  ;;  %5855 = vmatmul.mubr.msk.f32.gmra.mrb[82].mxu1 %vm503_vm0, %v7821_v41  ;;  %v7824_v20 = vld [vmem:[#allocation12_spill] sm:$0xff] }
  0xd9   : > { %6090 = vmatpush3.bf16.msra.mxu0 %v6926_v56  ;;  %5906 = vmatprep.mubr.msk.f32.mxu0 %vm503_vm0, %v6530_v24  ;;  %v7825_v24 = vld [vmem:[#allocation13_spill] sm:$0xff] }
  0xda   : > { %5857 = vmatprep.mubr.msk.f32.mxu1 %vm503_vm0, %v7822_v15 }
  0xdc   : > { %5907 = vmatmul.mubr.msk.f32.gmra.mrb[82].mxu0 %vm503_vm0, %v6553_v38  ;;  %5858 = vmatmul.mubr.msk.f32.gmra.mrb[84].mxu1 %vm503_vm0, %v7823_v49  ;;  %v7827_v38 = vld [vmem:[#allocation15_spill] sm:$0xff] }
  0xdd   : > { %5909 = vmatprep.mubr.msk.f32.mxu0 %vm503_vm0, %v6564_v39  ;;  %5860 = vmatprep.mubr.msk.f32.mxu1 %vm503_vm0, %v7824_v20  ;;  %v7828_v39 = vld [vmem:[#allocation16_spill] sm:$0xff] }
  0xe0   : > { %5910 = vmatmul.mubr.msk.f32.gmra.mrb[84].mxu0 %vm503_vm0, %v6578_v42  ;;  %5861 = vmatmul.mubr.msk.f32.gmra.mrb[86].mxu1 %vm503_vm0, %v7825_v24  ;;  %v7829_v42 = vld [vmem:[#allocation17_spill] sm:$0xff] }
  0xe1   : > { %5912 = vmatprep.mubr.msk.f32.mxu0 %vm503_vm0, %v6580_v43  ;;  %5863 = vmatprep.mubr.msk.f32.mxu1 %vm503_vm0, %v7826_v52  ;;  %v3286_v43 = vld [vmem:[#allocation2 + $0xc0] sm:$0xff] }
  0xe4   : > { %5913 = vmatmul.mubr.msk.f32.gmra.mrb[86].mxu0 %vm503_vm0, %v6594_v46  ;;  %5864 = vmatmul.mubr.msk.f32.gmra.mrb[88].mxu1 %vm503_vm0, %v7827_v38  ;;  %v7830_v46 = vld [vmem:[#allocation18_spill] sm:$0xff] }
  0xe5   : > { %5915 = vmatprep.mubr.msk.f32.mxu0 %vm503_vm0, %v6596_v47  ;;  %5866 = vmatprep.mubr.msk.f32.mxu1 %vm503_vm0, %v7828_v39  ;;  %v3287_v47 = vld [vmem:[#allocation2 + $0xc8] sm:$0xff] }
  0xe8   : > { %5916 = vmatmul.mubr.msk.f32.gmra.mrb[88].mxu0 %vm503_vm0, %v6610_v50  ;;  %5867 = vmatmul.mubr.msk.f32.gmra.mrb[90].mxu1 %vm503_vm0, %v7829_v42  ;;  %v3288_v50 = vld [vmem:[#allocation2 + $0xd8] sm:$0xff] }
  0xe9   : > { %5918 = vmatprep.mubr.msk.f32.mxu0 %vm503_vm0, %v6612_v51  ;;  %5869 = vmatprep.mubr.msk.f32.mxu1 %vm503_vm0, %v7830_v46  ;;  %v3289_v51 = vld [vmem:[#allocation2 + $0xe0] sm:$0xff] }
  0xec   : > { %5919 = vmatmul.mubr.msk.f32.gmra.mrb[90].mxu0 %vm503_vm0, %v6624_v54  ;;  %5870 = vmatmul.mubr.msk.f32.gmra.mrb[92].mxu1 %vm503_vm0, %v7831_v3  ;;  %v7834_v54 = vld [vmem:[#allocation22_spill] sm:$0xff] }
  0xed   : > { %5921 = vmatprep.mubr.msk.f32.mxu0 %vm503_vm0, %v3286_v43  ;;  %5872 = vmatprep.mubr.msk.f32.mxu1 %vm503_vm0, %v7832_v4  ;;  %v5593_v56 = vpop.f32.mrb[0].mxu0  ;;  %v7843_v43 = vld [vmem:[#allocation31_spill] sm:$0xff] }
  0xee   : > { %981 = vst.msk [vmem:[#allocation3 + $0x8] sm:$0xff] %vm503_vm0, %v5593_v56  ;;  %v821_v55 = vpop.f32.mrb[1].mxu0 }
  0xef   : > { %980 = vst.msk [vmem:[#allocation3] sm:$0xff] %vm503_vm0, %v821_v55 }
  0xf0   : > { %5922 = vmatmul.mubr.msk.f32.gmra.mrb[92].mxu0 %vm503_vm0, %v3287_v47  ;;  %5873 = vmatmul.mubr.msk.f32.gmra.mrb[94].mxu1 %vm503_vm0, %v7833_v11  ;;  %v7844_v47 = vld [vmem:[#allocation32_spill] sm:$0xff] }
  0xf1   : > { %5924 = vmatprep.mubr.msk.f32.mxu0 %vm503_vm0, %v3288_v50  ;;  %5875 = vmatprep.mubr.msk.f32.mxu1 %vm503_vm0, %v7834_v54 }
  0xf4   : > { %5925 = vmatmul.mubr.msk.f32.gmra.mrb[94].mxu0 %vm503_vm0, %v3289_v51  ;;  %5876 = vmatmul.mubr.msk.f32.gmra.mrb[96].mxu1 %vm503_vm0, %v7835_v13  ;;  %v7181_v13 = vld [vmem:[#allocation2 + $0x18a] sm:$0xff] }
  0xf5   : > { %5927 = vmatprep.mubr.msk.f32.mxu0 %vm503_vm0, %v3290_v12  ;;  %5878 = vmatprep.mubr.msk.f32.mxu1 %vm503_vm0, %v7836_v22  ;;  %v7169_v12 = vld [vmem:[#allocation2 + $0x182] sm:$0xff] }
  0xf8   : > { %5928 = vmatmul.mubr.msk.f32.gmra.mrb[96].mxu0 %vm503_vm0, %v3291_v10  ;;  %5879 = vmatmul.mubr.msk.f32.gmra.mrb[98].mxu1 %vm503_vm0, %v7837_v28  ;;  %v3304_v10 = vld [vmem:[#allocation2 + $0x198] sm:$0xff] }
  0xf9   : > { %5930 = vmatprep.mubr.msk.f32.mxu0 %vm503_vm0, %v3292_v25  ;;  %5881 = vmatprep.mubr.msk.f32.mxu1 %vm503_vm0, %v7838_v53 }
  0xfc   : > { %5931 = vmatmul.mubr.msk.f32.gmra.mrb[98].mxu0 %vm503_vm0, %v3293_v23  ;;  %5882 = vmatmul.mubr.msk.f32.gmra.mrb[100].mxu1 %vm503_vm0, %v7839_v1  ;;  %v1368_v1 = vld [vmem:[#allocation3] sm:$0xff] }
  0xfd   : > { %5933 = vmatprep.mubr.msk.f32.mxu0 %vm503_vm0, %v3294_v29  ;;  %5884 = vmatprep.mubr.msk.f32.mxu1 %vm503_vm0, %v7840_v37 }
 0x100   : > { %5934 = vmatmul.mubr.msk.f32.gmra.mrb[100].mxu0 %vm503_vm0, %v3295_v0  ;;  %5885 = vmatmul.mubr.msk.f32.gmra.mrb[102].mxu1 %vm503_vm0, %v7841_v33 }
 0x101   : > { %5936 = vmatprep.mubr.msk.f32.mxu0 %vm503_vm0, %v3296_v8  ;;  %5887 = vmatprep.mubr.msk.f32.mxu1 %vm503_vm0, %v7842_v34 }
 0x104   : > { %5937 = vmatmul.mubr.msk.f32.gmra.mrb[102].mxu0 %vm503_vm0, %v6586_v44  ;;  %5888 = vmatmul.mubr.msk.f32.gmra.mrb[104].mxu1 %vm503_vm0, %v7843_v43  ;;  %v7845_v44 = vld [vmem:[#allocation35_spill] sm:$0xff] }
 0x105   : > { %5939 = vmatprep.mubr.msk.f32.mxu0 %vm503_vm0, %v6590_v45  ;;  %5890 = vmatprep.mubr.msk.f32.mxu1 %vm503_vm0, %v7844_v47  ;;  %v7846_v45 = vld [vmem:[#allocation36_spill] sm:$0xff]  ;;  %v4193_v47 = vld [vmem:[#allocation2 + $0xe2] sm:$0xff] }
 0x107   : > { %v5617_v50 = vpop.f32.mrb[0].mxu1 }
 0x108   : > { %5940 = vmatmul.mubr.msk.f32.gmra.mrb[104].mxu0 %vm503_vm0, %v6602_v48  ;;  %997 = vst.msk [vmem:[#allocation3 + $0x88] sm:$0xff] %vm503_vm0, %v5617_v50  ;;  %v901_v51 = vpop.f32.mrb[1].mxu1  ;;  %5891 = vmatmul.mubr.msk.f32.gmra.mrb[106].mxu1 %vm503_vm0, %v7845_v44 }
 0x109   : > { %5942 = vmatprep.mubr.msk.f32.mxu0 %vm503_vm0, %v7814_v35  ;;  %996 = vst.msk [vmem:[#allocation3 + $0x80] sm:$0xff] %vm503_vm0, %v901_v51  ;;  %5893 = vmatprep.mubr.msk.f32.mxu1 %vm503_vm0, %v7846_v45 }
 0x10b   : > { %v5620_v48 = vpop.f32.mrb[2].mxu1 }
 0x10c   : > { %5943 = vmatmul.mubr.msk.f32.gmra.mrb[106].mxu0 %vm503_vm0, %v7817_v62  ;;  %999 = vst.msk [vmem:[#allocation3 + $0x98] sm:$0xff] %vm503_vm0, %v5620_v48  ;;  %v911_v35 = vpop.f32.mrb[3].mxu1  ;;  %5894 = vmatmul.mubr.msk.f32.gmra.mrb[108].mxu1 %vm503_vm0, %v6900_v9  ;;  %v3305_v9 = vld [vmem:[#allocation2 + $0x1a0] sm:$0xff] }
 0x10d   : > { %5945 = vmatprep.mubr.msk.f32.mxu0 %vm503_vm0, %v7038_v36  ;;  %998 = vst.msk [vmem:[#allocation3 + $0x90] sm:$0xff] %vm503_vm0, %v911_v35  ;;  %5896 = vmatprep.mubr.msk.f32.mxu1 %vm503_vm0, %v7169_v12 }
 0x10f   : > { %v5596_v54 = vpop.f32.mrb[2].mxu0  ;;  %v5623_v36 = vpop.f32.mrb[4].mxu1 }
 0x110   : > { %983 = vst.msk [vmem:[#allocation3 + $0x18] sm:$0xff] %vm503_vm0, %v5596_v54  ;;  %v831_v62 = vpop.f32.mrb[3].mxu0  ;;  %5946 = vmatmul.mubr.msk.f32.gmra.mrb[108].mxu0 %vm503_vm0, %v7050_v14  ;;  %1001 = vst.msk [vmem:[#allocation3 + $0xa8] sm:$0xff] %vm503_vm0, %v5623_v36  ;;  %v921_v25 = vpop.f32.mrb[5].mxu1  ;;  %5897 = vmatmul.mubr.msk.f32.gmra.mrb[110].mxu1 %vm503_vm0, %v7181_v13  ;;  %v3744_v54 = vld [vmem:[#allocation2 + $0x109] sm:$0xff] }
 0x111   : > { %982 = vst.msk [vmem:[#allocation3 + $0x10] sm:$0xff] %vm503_vm0, %v831_v62  ;;  %5948 = vmatprep.mubr.msk.f32.mxu0 %vm503_vm0, %v3304_v10  ;;  %1000 = vst.msk [vmem:[#allocation3 + $0xa0] sm:$0xff] %vm503_vm0, %v921_v25  ;;  %5955 = vmatprep.mubr.msk.f32.mxu1 %vm503_vm0, %v6664_v18 }
 0x113   : > { %v5599_v22 = vpop.f32.mrb[4].mxu0  ;;  %v5626_v14 = vpop.f32.mrb[6].mxu1 }
 0x114   : > { %985 = vst.msk [vmem:[#allocation3 + $0x28] sm:$0xff] %vm503_vm0, %v5599_v22  ;;  %v841_v23 = vpop.f32.mrb[5].mxu0  ;;  %5949 = vmatmul.mubr.msk.f32.gmra.mrb[110].mxu0 %vm503_vm0, %v3305_v9  ;;  %1003 = vst.msk [vmem:[#allocation3 + $0xb8] sm:$0xff] %vm503_vm0, %v5626_v14  ;;  %v931_v28 = vpop.f32.mrb[7].mxu1  ;;  %5956 = vmatmul.mubr.msk.f32.vlgmr.msra.gmra.mrb[112].mxu1 %vm503_vm0, %v6686_v31  ;;  %v4195_v9 = vld [vmem:[#allocation2 + $0xfa] sm:$0xff] }
 0x115   : > { %984 = vst.msk [vmem:[#allocation3 + $0x20] sm:$0xff] %vm503_vm0, %v841_v23  ;;  %6007 = vmatprep.mubr.msk.f32.mxu0 %vm503_vm0, %v7820_v40  ;;  %1002 = vst.msk [vmem:[#allocation3 + $0xb0] sm:$0xff] %vm503_vm0, %v931_v28  ;;  %5958 = vmatprep.mubr.msk.f32.mxu1 %vm503_vm0, %v6688_v21  ;;  %v4196_v23 = vld [vmem:[#allocation2 + $0x10a] sm:$0xff] }
 0x117   : > { %v5602_v29 = vpop.f32.mrb[6].mxu0  ;;  %v5629_v40 = vpop.f32.mrb[8].mxu1 }
 0x118   : > { %987 = vst.msk [vmem:[#allocation3 + $0x38] sm:$0xff] %vm503_vm0, %v5602_v29  ;;  %v851_v18 = vpop.f32.mrb[7].mxu0  ;;  %6008 = vmatmul.mubr.msk.f32.vlgmr.msra.gmra.mrb[112].mxu0 %vm503_vm0, %v7821_v41  ;;  %1005 = vst.msk [vmem:[#allocation3 + $0xc8] sm:$0xff] %vm503_vm0, %v5629_v40  ;;  %v941_v31 = vpop.f32.mrb[9].mxu1  ;;  %5959 = vmatmul.mubr.msk.f32.gmra.mrb[114].mxu1 %vm503_vm0, %v6702_v26  ;;  %v1370_v55 = vld [vmem:[#allocation3 + $0x10] sm:$0xff]  ;;  %v3745_v29 = vld [vmem:[#allocation2 + $0x111] sm:$0xff] }
 0x119   : > { %986 = vst.msk [vmem:[#allocation3 + $0x30] sm:$0xff] %vm503_vm0, %v851_v18  ;;  %6010 = vmatprep.mubr.msk.f32.mxu0 %vm503_vm0, %v7822_v15  ;;  %1004 = vst.msk [vmem:[#allocation3 + $0xc0] sm:$0xff] %vm503_vm0, %v941_v31  ;;  %5961 = vmatprep.mubr.msk.f32.mxu1 %vm503_vm0, %v6704_v27 }
 0x11b   : > { %v5605_v53 = vpop.f32.mrb[8].mxu0  ;;  %v5632_v41 = vpop.f32.mrb[10].mxu1  ;;  %v1373_v43 = vld [vmem:[#allocation3 + $0x28] sm:$0xff] }
 0x11c   : > { %989 = vst.msk [vmem:[#allocation3 + $0x48] sm:$0xff] %vm503_vm0, %v5605_v53  ;;  %v861_v21 = vpop.f32.mrb[9].mxu0  ;;  %6011 = vmatmul.mubr.msk.f32.gmra.mrb[114].mxu0 %vm503_vm0, %v7823_v49  ;;  %1007 = vst.msk [vmem:[#allocation3 + $0xd8] sm:$0xff] %vm503_vm0, %v5632_v41  ;;  %v951_v26 = vpop.f32.mrb[11].mxu1  ;;  %5962 = vmatmul.mubr.msk.f32.gmra.mrb[116].mxu1 %vm503_vm0, %v6718_v30  ;;  %v1372_v51 = vld [vmem:[#allocation3 + $0x20] sm:$0xff]  ;;  %v3746_v53 = vld [vmem:[#allocation2 + $0x121] sm:$0xff] }
 0x11d   : > { %988 = vst.msk [vmem:[#allocation3 + $0x40] sm:$0xff] %vm503_vm0, %v861_v21  ;;  %6013 = vmatprep.mubr.msk.f32.mxu0 %vm503_vm0, %v7824_v20  ;;  %1006 = vst.msk [vmem:[#allocation3 + $0xd0] sm:$0xff] %vm503_vm0, %v951_v26  ;;  %5964 = vmatprep.mubr.msk.f32.mxu1 %vm503_vm0, %v6720_v32 }
 0x11f   : > { %v5608_v15 = vpop.f32.mrb[10].mxu0  ;;  %v5635_v49 = vpop.f32.mrb[12].mxu1 }
 0x120   : > { %991 = vst.msk [vmem:[#allocation3 + $0x58] sm:$0xff] %vm503_vm0, %v5608_v15  ;;  %v871_v27 = vpop.f32.mrb[11].mxu0  ;;  %6014 = vmatmul.mubr.msk.f32.gmra.mrb[116].mxu0 %vm503_vm0, %v7825_v24  ;;  %1009 = vst.msk [vmem:[#allocation3 + $0xe8] sm:$0xff] %vm503_vm0, %v5635_v49  ;;  %v961_v30 = vpop.f32.mrb[13].mxu1  ;;  %5965 = vmatmul.mubr.msk.f32.gmra.mrb[118].mxu1 %vm503_vm0, %v6734_v58  ;;  %v1374_v22 = vld [vmem:[#allocation3 + $0x30] sm:$0xff]  ;;  %v4197_v15 = vld [vmem:[#allocation2 + $0x112] sm:$0xff] }
 0x121   : > { %990 = vst.msk [vmem:[#allocation3 + $0x50] sm:$0xff] %vm503_vm0, %v871_v27  ;;  %6016 = vmatprep.mubr.msk.f32.mxu0 %vm503_vm0, %v7826_v52  ;;  %1008 = vst.msk [vmem:[#allocation3 + $0xe0] sm:$0xff] %vm503_vm0, %v961_v30  ;;  %5967 = vmatprep.mubr.msk.f32.mxu1 %vm503_vm0, %v6736_v59 }
 0x123   : > { %v5611_v20 = vpop.f32.mrb[12].mxu0  ;;  %v5638_v24 = vpop.f32.mrb[14].mxu1  ;;  %v1377_v26 = vld [vmem:[#allocation3 + $0x48] sm:$0xff] }
 0x124   : > { %993 = vst.msk [vmem:[#allocation3 + $0x68] sm:$0xff] %vm503_vm0, %v5611_v20  ;;  %v881_v32 = vpop.f32.mrb[13].mxu0  ;;  %6017 = vmatmul.mubr.msk.f32.gmra.mrb[118].mxu0 %vm503_vm0, %v7827_v38  ;;  %1011 = vst.msk [vmem:[#allocation3 + $0xf8] sm:$0xff] %vm503_vm0, %v5638_v24  ;;  %v971_v58 = vpop.f32.mrb[15].mxu1  ;;  %5968 = vmatmul.mubr.msk.f32.gmra.mrb[120].mxu1 %vm503_vm0, %v6750_v6  ;;  %v1376_v30 = vld [vmem:[#allocation3 + $0x40] sm:$0xff]  ;;  %v4198_v20 = vld [vmem:[#allocation2 + $0x122] sm:$0xff] }
 0x125   : > { %992 = vst.msk [vmem:[#allocation3 + $0x60] sm:$0xff] %vm503_vm0, %v881_v32  ;;  %6019 = vmatprep.mubr.msk.f32.mxu0 %vm503_vm0, %v7828_v39  ;;  %1010 = vst.msk [vmem:[#allocation3 + $0xf0] sm:$0xff] %vm503_vm0, %v971_v58  ;;  %5970 = vmatprep.mubr.msk.f32.mxu1 %vm503_vm0, %v6752_v63  ;;  %v1369_v39 = vld [vmem:[#allocation3 + $0x8] sm:$0xff]  ;;  %v3747_v58 = vld [vmem:[#allocation2 + $0x129] sm:$0xff] }
 0x127   : > { %v5614_v52 = vpop.f32.mrb[14].mxu0  ;;  %v5645_v38 = vpop.f32.mrb[16].mxu1 }
 0x128   : > { %995 = vst.msk [vmem:[#allocation3 + $0x78] sm:$0xff] %vm503_vm0, %v5614_v52  ;;  %v891_v59 = vpop.f32.mrb[15].mxu0  ;;  %6020 = vmatmul.mubr.msk.f32.gmra.mrb[120].mxu0 %vm503_vm0, %v7829_v42  ;;  %v1401_v6 = vadd.f32 %v5645_v38, %v1369_v39  ;;  %v1209_v0 = vpop.f32.mrb[17].mxu1  ;;  %5971 = vmatmul.mubr.msk.f32.gmra.mrb[122].mxu1 %vm503_vm0, %v6766_v2  ;;  %v3748_v39 = vld [vmem:[#allocation2 + $0x139] sm:$0xff] }
 0x129   : > { %994 = vst.msk [vmem:[#allocation3 + $0x70] sm:$0xff] %vm503_vm0, %v891_v59  ;;  %6022 = vmatprep.mubr.msk.f32.mxu0 %vm503_vm0, %v7830_v46  ;;  %v1400_v63 = vadd.f32 %v1368_v1, %v1209_v0  ;;  %5973 = vmatprep.mubr.msk.f32.mxu1 %vm503_vm0, %v6768_v5  ;;  %v1371_v46 = vld [vmem:[#allocation3 + $0x18] sm:$0xff]  ;;  %v4192_v5 = vld [vmem:[#allocation2 + $0xda] sm:$0xff] }
 0x12a   : > { %1433 = vst.msk [vmem:[#allocation3 + $0x8] sm:$0xff] %vm503_vm0, %v1401_v6 }
 0x12b   : > { %v5697_v8 = vpop.f32.mrb[16].mxu0  ;;  %1432 = vst.msk [vmem:[#allocation3] sm:$0xff] %vm503_vm0, %v1400_v63  ;;  %v5648_v42 = vpop.f32.mrb[18].mxu1  ;;  %v1379_v63 = vld [vmem:[#allocation3 + $0x58] sm:$0xff] }
 0x12c   : > { %v1661_v56 = vpop.f32.mrb[17].mxu0  ;;  %6023 = vmatmul.mubr.msk.f32.gmra.mrb[122].mxu0 %vm503_vm0, %v7831_v3  ;;  %v1403_v37 = vadd.f32 %v5648_v42, %v1371_v46  ;;  %v1219_v2 = vpop.f32.mrb[19].mxu1  ;;  %5974 = vmatmul.mubr.msk.f32.gmra.mrb[124].mxu1 %vm503_vm0, %v6782_v16  ;;  %v1378_v46 = vld [vmem:[#allocation3 + $0x50] sm:$0xff] }
 0x12d   : > { %6025 = vmatprep.mubr.msk.f32.mxu0 %vm503_vm0, %v7832_v4  ;;  %v1402_v33 = vadd.f32 %v1370_v55, %v1219_v2  ;;  %5976 = vmatprep.mubr.msk.f32.mxu1 %vm503_vm0, %v6784_v17  ;;  %v4194_v17 = vld [vmem:[#allocation2 + $0xf2] sm:$0xff] }
 0x12e   : > { %1435 = vst.msk [vmem:[#allocation3 + $0x18] sm:$0xff] %vm503_vm0, %v1403_v37  ;;  %v4200_v37 = vld [vmem:[#allocation2 + $0x13a] sm:$0xff] }
 0x12f   : > { %v5700_v34 = vpop.f32.mrb[18].mxu0  ;;  %1434 = vst.msk [vmem:[#allocation3 + $0x10] sm:$0xff] %vm503_vm0, %v1402_v33  ;;  %v5651_v4 = vpop.f32.mrb[20].mxu1 }
 0x130   : > { %v1671_v3 = vpop.f32.mrb[19].mxu0  ;;  %6026 = vmatmul.mubr.msk.f32.gmra.mrb[124].mxu0 %vm503_vm0, %v7833_v11  ;;  %v1405_v16 = vadd.f32 %v5651_v4, %v1373_v43  ;;  %v1229_v50 = vpop.f32.mrb[21].mxu1  ;;  %5977 = vmatmul.mubr.msk.f32.gmra.mrb[126].mxu1 %vm503_vm0, %v6798_v61  ;;  %v1375_v61 = vld [vmem:[#allocation3 + $0x38] sm:$0xff]  ;;  %v3750_v4 = vld [vmem:[#allocation2 + $0x151] sm:$0xff] }
 0x131   : > { %6028 = vmatprep.mubr.msk.f32.mxu0 %vm503_vm0, %v4192_v5  ;;  %v1404_v44 = vadd.f32 %v1372_v51, %v1229_v50  ;;  %v1821_v45 = vld [vmem:[#allocation3 + $0x8] sm:$0xff]  ;;  %5979 = vmatprep.mubr.msk.f32.mxu1 %vm503_vm0, %v6800_v60  ;;  %v3749_v5 = vld [vmem:[#allocation2 + $0x141] sm:$0xff] }
 0x132   : > { %1437 = vst.msk [vmem:[#allocation3 + $0x28] sm:$0xff] %vm503_vm0, %v1405_v16  ;;  %v1853_v48 = vadd.f32 %v5697_v8, %v1821_v45  ;;  %v1820_v35 = vld [vmem:[#allocation3] sm:$0xff]  ;;  %v1381_v50 = vld [vmem:[#allocation3 + $0x68] sm:$0xff]  ;;  %v4201_v51 = vld [vmem:[#allocation2 + $0x142] sm:$0xff] }
 0x133   : > { %v5703_v11 = vpop.f32.mrb[20].mxu0  ;;  %1436 = vst.msk [vmem:[#allocation3 + $0x20] sm:$0xff] %vm503_vm0, %v1404_v44  ;;  %v1852_v62 = vadd.f32 %v1820_v35, %v1661_v56  ;;  %v5654_v36 = vpop.f32.mrb[22].mxu1  ;;  %v4199_v8 = vld [vmem:[#allocation2 + $0x12a] sm:$0xff] }
 0x134   : > { %v1681_v10 = vpop.f32.mrb[21].mxu0  ;;  %6029 = vmatmul.mubr.msk.f32.gmra.mrb[126].mxu0 %vm503_vm0, %v4193_v47  ;;  %1885 = vst.msk [vmem:[#allocation3 + $0x8] sm:$0xff] %vm503_vm0, %v1853_v48  ;;  %v1407_v60 = vadd.f32 %v5654_v36, %v1375_v61  ;;  %v1239_v25 = vpop.f32.mrb[23].mxu1  ;;  %5980 = vmatmul.mubr.msk.f32.gmra.mrb[128].mxu1 %vm503_vm0, %v6814_v57  ;;  %v1380_v45 = vld [vmem:[#allocation3 + $0x60] sm:$0xff] }
 0x135   : > { %6031 = vmatprep.mubr.msk.f32.mxu0 %vm503_vm0, %v4194_v17  ;;  %1884 = vst.msk [vmem:[#allocation3] sm:$0xff] %vm503_vm0, %v1852_v62  ;;  %v1406_v14 = vadd.f32 %v1374_v22, %v1239_v25  ;;  %v1823_v28 = vld [vmem:[#allocation3 + $0x18] sm:$0xff]  ;;  %5982 = vmatprep.mubr.msk.f32.mxu1 %vm503_vm0, %v3744_v54  ;;  %v3751_v54 = vld [vmem:[#allocation2 + $0x159] sm:$0xff] }
 0x136   : > { %1439 = vst.msk [vmem:[#allocation3 + $0x38] sm:$0xff] %vm503_vm0, %v1407_v60  ;;  %v1855_v40 = vadd.f32 %v5700_v34, %v1823_v28  ;;  %v1822_v31 = vld [vmem:[#allocation3 + $0x10] sm:$0xff]  ;;  %v3752_v61 = vld [vmem:[#allocation2 + $0x169] sm:$0xff] }
 0x137   : > { %v5706_v18 = vpop.f32.mrb[22].mxu0  ;;  %1438 = vst.msk [vmem:[#allocation3 + $0x30] sm:$0xff] %vm503_vm0, %v1406_v14  ;;  %v1854_v57 = vadd.f32 %v1822_v31, %v1671_v3  ;;  %v5657_v41 = vpop.f32.mrb[24].mxu1  ;;  %v1383_v22 = vld [vmem:[#allocation3 + $0x78] sm:$0xff] }
 0x138   : > { %v1691_v21 = vpop.f32.mrb[23].mxu0  ;;  %6032 = vmatmul.mubr.msk.f32.gmra.mrb[128].mxu0 %vm503_vm0, %v4195_v9  ;;  %1887 = vst.msk [vmem:[#allocation3 + $0x18] sm:$0xff] %vm503_vm0, %v1855_v40  ;;  %v1409_v27 = vadd.f32 %v5657_v41, %v1377_v26  ;;  %v1249_v49 = vpop.f32.mrb[25].mxu1  ;;  %5983 = vmatmul.mubr.msk.f32.gmra.mrb[130].mxu1 %vm503_vm0, %v3745_v29  ;;  %v1382_v29 = vld [vmem:[#allocation3 + $0x70] sm:$0xff] }
 0x139   : > { %6034 = vmatprep.mubr.msk.f32.mxu0 %vm503_vm0, %v4196_v23  ;;  %1886 = vst.msk [vmem:[#allocation3 + $0x10] sm:$0xff] %vm503_vm0, %v1854_v57  ;;  %v1408_v32 = vadd.f32 %v1376_v30, %v1249_v49  ;;  %v1825_v24 = vld [vmem:[#allocation3 + $0x28] sm:$0xff]  ;;  %5985 = vmatprep.mubr.msk.f32.mxu1 %vm503_vm0, %v3746_v53 }
 0x13a   : > { %1441 = vst.msk [vmem:[#allocation3 + $0x48] sm:$0xff] %vm503_vm0, %v1409_v27  ;;  %v1857_v59 = vadd.f32 %v5703_v11, %v1825_v24  ;;  %v1824_v38 = vld [vmem:[#allocation3 + $0x20] sm:$0xff]  ;;  %v4203_v23 = vld [vmem:[#allocation2 + $0x15a] sm:$0xff] }
 0x13b   : > { %v5709_v52 = vpop.f32.mrb[24].mxu0  ;;  %1440 = vst.msk [vmem:[#allocation3 + $0x40] sm:$0xff] %vm503_vm0, %v1408_v32  ;;  %v1856_v0 = vadd.f32 %v1824_v38, %v1681_v10  ;;  %v5660_v1 = vpop.f32.mrb[26].mxu1  ;;  %v4202_v11 = vld [vmem:[#allocation2 + $0x152] sm:$0xff] }
 0x13c   : > { %v1701_v6 = vpop.f32.mrb[25].mxu0  ;;  %6035 = vmatmul.mubr.msk.f32.gmra.mrb[130].mxu0 %vm503_vm0, %v4197_v15  ;;  %1889 = vst.msk [vmem:[#allocation3 + $0x28] sm:$0xff] %vm503_vm0, %v1857_v59  ;;  %v1411_v56 = vadd.f32 %v5660_v1, %v1379_v63  ;;  %v1259_v42 = vpop.f32.mrb[27].mxu1  ;;  %5986 = vmatmul.mubr.msk.f32.gmra.mrb[132].mxu1 %vm503_vm0, %v3747_v58  ;;  %v3753_v53 = vld [vmem:[#allocation2 + $0x171] sm:$0xff] }
 0x13d   : > { %6037 = vmatprep.mubr.msk.f32.mxu0 %vm503_vm0, %v4198_v20  ;;  %1888 = vst.msk [vmem:[#allocation3 + $0x20] sm:$0xff] %vm503_vm0, %v1856_v0  ;;  %v1410_v2 = vadd.f32 %v1378_v46, %v1259_v42  ;;  %v1827_v55 = vld [vmem:[#allocation3 + $0x38] sm:$0xff]  ;;  %5988 = vmatprep.mubr.msk.f32.mxu1 %vm503_vm0, %v3748_v39  ;;  %v1385_v49 = vld [vmem:[#allocation3 + $0x88] sm:$0xff]  ;;  %v1384_v24 = vld [vmem:[#allocation3 + $0x80] sm:$0xff] }
 0x13e   : > { %1443 = vst.msk [vmem:[#allocation3 + $0x58] sm:$0xff] %vm503_vm0, %v1411_v56  ;;  %v1859_v34 = vadd.f32 %v5706_v18, %v1827_v55  ;;  %v1826_v3 = vld [vmem:[#allocation3 + $0x30] sm:$0xff]  ;;  %v4204_v18 = vld [vmem:[#allocation2 + $0x16a] sm:$0xff]  ;;  %v4205_v30 = vld [vmem:[#allocation2 + $0x172] sm:$0xff] }
 0x13f   : > { %v5712_v33 = vpop.f32.mrb[26].mxu0  ;;  %1442 = vst.msk [vmem:[#allocation3 + $0x50] sm:$0xff] %vm503_vm0, %v1410_v2  ;;  %v1858_v47 = vadd.f32 %v1826_v3, %v1691_v21  ;;  %v5663_v16 = vpop.f32.mrb[28].mxu1  ;;  %v1386_v42 = vld [vmem:[#allocation3 + $0x90] sm:$0xff] }
 0x140   : > { %v1711_v43 = vpop.f32.mrb[27].mxu0  ;;  %6038 = vmatmul.mubr.msk.f32.gmra.mrb[132].mxu0 %vm503_vm0, %v4199_v8  ;;  %1891 = vst.msk [vmem:[#allocation3 + $0x38] sm:$0xff] %vm503_vm0, %v1859_v34  ;;  %v1413_v17 = vadd.f32 %v5663_v16, %v1381_v50  ;;  %v1269_v44 = vpop.f32.mrb[29].mxu1  ;;  %5989 = vmatmul.mubr.msk.f32.gmra.mrb[134].mxu1 %vm503_vm0, %v3749_v5  ;;  %v1387_v8 = vld [vmem:[#allocation3 + $0x98] sm:$0xff]  ;;  %v4208_v46 = vld [vmem:[#allocation2 + $0x19a] sm:$0xff]  ;;  %v1388_v50 = vld [vmem:[#allocation3 + $0xa0] sm:$0xff] }
 0x141   : > { %6040 = vmatprep.mubr.msk.f32.mxu0 %vm503_vm0, %v4200_v37  ;;  %1890 = vst.msk [vmem:[#allocation3 + $0x30] sm:$0xff] %vm503_vm0, %v1858_v47  ;;  %v1412_v48 = vadd.f32 %v1380_v45, %v1269_v44  ;;  %v1829_v35 = vld [vmem:[#allocation3 + $0x48] sm:$0xff]  ;;  %5991 = vmatprep.mubr.msk.f32.mxu1 %vm503_vm0, %v3750_v4  ;;  %v3757_v55 = vld [vmem:[#allocation2 + $0x1a1] sm:$0xff] }
 0x142   : > { %1445 = vst.msk [vmem:[#allocation3 + $0x68] sm:$0xff] %vm503_vm0, %v1413_v17  ;;  %v1861_v62 = vadd.f32 %v5709_v52, %v1829_v35  ;;  %v1828_v36 = vld [vmem:[#allocation3 + $0x40] sm:$0xff]  ;;  %v1389_v4 = vld [vmem:[#allocation3 + $0xa8] sm:$0xff] }
 0x143   : > { %v5715_v10 = vpop.f32.mrb[28].mxu0  ;;  %1444 = vst.msk [vmem:[#allocation3 + $0x60] sm:$0xff] %vm503_vm0, %v1412_v48  ;;  %v1860_v60 = vadd.f32 %v1828_v36, %v1701_v6  ;;  %v5666_v25 = vpop.f32.mrb[30].mxu1  ;;  %v3756_v6 = vld [vmem:[#allocation2 + $0x199] sm:$0xff] }
 0x144   : > { %v1721_v9 = vpop.f32.mrb[29].mxu0  ;;  %6041 = vmatmul.mubr.msk.f32.gmra.mrb[134].mxu0 %vm503_vm0, %v4201_v51  ;;  %1893 = vst.msk [vmem:[#allocation3 + $0x48] sm:$0xff] %vm503_vm0, %v1861_v62  ;;  %v1415_v14 = vadd.f32 %v5666_v25, %v1383_v22  ;;  %v1279_v28 = vpop.f32.mrb[31].mxu1  ;;  %5992 = vmatmul.mubr.msk.f32.gmra.mrb[136].mxu1 %vm503_vm0, %v3751_v54  ;;  %v1391_v54 = vld [vmem:[#allocation3 + $0xb8] sm:$0xff]  ;;  %v1390_v36 = vld [vmem:[#allocation3 + $0xb0] sm:$0xff] }
 0x145   : > { %6043 = vmatprep.mubr.msk.f32.mxu0 %vm503_vm0, %v4202_v11  ;;  %1892 = vst.msk [vmem:[#allocation3 + $0x40] sm:$0xff] %vm503_vm0, %v1860_v60  ;;  %v1414_v40 = vadd.f32 %v1382_v29, %v1279_v28  ;;  %v1831_v31 = vld [vmem:[#allocation3 + $0x58] sm:$0xff]  ;;  %5994 = vmatprep.mubr.msk.f32.mxu1 %vm503_vm0, %v3752_v61  ;;  %v1393_v29 = vld [vmem:[#allocation3 + $0xc8] sm:$0xff] }
 0x146   : > { %1447 = vst.msk [vmem:[#allocation3 + $0x78] sm:$0xff] %vm503_vm0, %v1415_v14  ;;  %v1863_v57 = vadd.f32 %v5712_v33, %v1831_v31  ;;  %v1830_v41 = vld [vmem:[#allocation3 + $0x50] sm:$0xff]  ;;  %v1392_v31 = vld [vmem:[#allocation3 + $0xc0] sm:$0xff] }
 0x147   : > { %v5718_v21 = vpop.f32.mrb[30].mxu0  ;;  %1446 = vst.msk [vmem:[#allocation3 + $0x70] sm:$0xff] %vm503_vm0, %v1414_v40  ;;  %v1862_v15 = vadd.f32 %v1830_v41, %v1711_v43  ;;  %v5669_v27 = vpop.f32.mrb[32].mxu1  ;;  %v4209_v43 = vld [vmem:[#allocation2 + $0x1a2] sm:$0xff] }
 0x148   : > { %v1731_v26 = vpop.f32.mrb[31].mxu0  ;;  %6044 = vmatmul.mubr.msk.f32.gmra.mrb[136].mxu0 %vm503_vm0, %v4203_v23  ;;  %1895 = vst.msk [vmem:[#allocation3 + $0x58] sm:$0xff] %vm503_vm0, %v1863_v57  ;;  %v1417_v20 = vadd.f32 %v5669_v27, %v1385_v49  ;;  %v1289_v32 = vpop.f32.mrb[33].mxu1  ;;  %5995 = vmatmul.mubr.msk.f32.gmra.mrb[138].mxu1 %vm503_vm0, %v3753_v53 }
 0x149   : > { %6046 = vmatprep.mubr.msk.f32.mxu0 %vm503_vm0, %v4204_v18  ;;  %1894 = vst.msk [vmem:[#allocation3 + $0x50] sm:$0xff] %vm503_vm0, %v1862_v15  ;;  %v1416_v58 = vadd.f32 %v1384_v24, %v1289_v32  ;;  %v1833_v52 = vld [vmem:[#allocation3 + $0x68] sm:$0xff]  ;;  %5997 = vmatprep.mubr.msk.f32.mxu1 %vm503_vm0, %v7046_v7  ;;  %v1394_v24 = vld [vmem:[#allocation3 + $0xd0] sm:$0xff] }
 0x14a   : > { %1449 = vst.msk [vmem:[#allocation3 + $0x88] sm:$0xff] %vm503_vm0, %v1417_v20  ;;  %v1865_v38 = vadd.f32 %v5715_v10, %v1833_v52  ;;  %v1832_v39 = vld [vmem:[#allocation3 + $0x60] sm:$0xff] }
 0x14b   : > { %v5721_v59 = vpop.f32.mrb[32].mxu0  ;;  %1448 = vst.msk [vmem:[#allocation3 + $0x80] sm:$0xff] %vm503_vm0, %v1416_v58  ;;  %v1864_v1 = vadd.f32 %v1832_v39, %v1721_v9  ;;  %v5672_v63 = vpop.f32.mrb[34].mxu1 }
 0x14c   : > { %v1741_v0 = vpop.f32.mrb[33].mxu0  ;;  %6047 = vmatmul.mubr.msk.f32.gmra.mrb[138].mxu0 %vm503_vm0, %v4205_v30  ;;  %1897 = vst.msk [vmem:[#allocation3 + $0x68] sm:$0xff] %vm503_vm0, %v1865_v38  ;;  %v1419_v7 = vadd.f32 %v5672_v63, %v1387_v8  ;;  %v1299_v56 = vpop.f32.mrb[35].mxu1  ;;  %5998 = vmatmul.mubr.msk.f32.gmra.mrb[140].mxu1 %vm503_vm0, %v7056_v19  ;;  %v1395_v30 = vld [vmem:[#allocation3 + $0xd8] sm:$0xff]  ;;  %v1397_v63 = vld [vmem:[#allocation3 + $0xe8] sm:$0xff] }
 0x14d   : > { %6049 = vmatprep.mubr.msk.f32.mxu0 %vm503_vm0, %v7169_v12  ;;  %1896 = vst.msk [vmem:[#allocation3 + $0x60] sm:$0xff] %vm503_vm0, %v1864_v1  ;;  %v1418_v37 = vadd.f32 %v1386_v42, %v1299_v56  ;;  %v1835_v2 = vld [vmem:[#allocation3 + $0x78] sm:$0xff]  ;;  %6000 = vmatprep.mubr.msk.f32.mxu1 %vm503_vm0, %v3756_v6  ;;  %v1396_v56 = vld [vmem:[#allocation3 + $0xe0] sm:$0xff] }
 0x14e   : > { %1451 = vst.msk [vmem:[#allocation3 + $0x98] sm:$0xff] %vm503_vm0, %v1419_v7  ;;  %v1867_v12 = vadd.f32 %v5718_v21, %v1835_v2  ;;  %v1834_v33 = vld [vmem:[#allocation3 + $0x70] sm:$0xff] }
 0x14f   : > { %v5724_v5 = vpop.f32.mrb[34].mxu0  ;;  %1450 = vst.msk [vmem:[#allocation3 + $0x90] sm:$0xff] %vm503_vm0, %v1418_v37  ;;  %v1866_v19 = vadd.f32 %v1834_v33, %v1731_v26  ;;  %v5675_v3 = vpop.f32.mrb[36].mxu1 }
 0x150   : > { %v1751_v34 = vpop.f32.mrb[35].mxu0  ;;  %6050 = vmatmul.mubr.msk.f32.gmra.mrb[140].mxu0 %vm503_vm0, %v7181_v13  ;;  %1899 = vst.msk [vmem:[#allocation3 + $0x78] sm:$0xff] %vm503_vm0, %v1867_v12  ;;  %v1421_v47 = vadd.f32 %v5675_v3, %v1389_v4  ;;  %v1309_v16 = vpop.f32.mrb[37].mxu1  ;;  %6001 = vmatmul.mubr.msk.f32.gmra.mrb[142].mxu1 %vm503_vm0, %v3757_v55  ;;  %v1398_v4 = vld [vmem:[#allocation3 + $0xf0] sm:$0xff] }
 0x151   : > { %6052 = vmatprep.mubr.msk.f32.mxu0 %vm503_vm0, %v4208_v46  ;;  %1898 = vst.msk [vmem:[#allocation3 + $0x70] sm:$0xff] %vm503_vm0, %v1866_v19  ;;  %v1420_v51 = vadd.f32 %v1388_v50, %v1309_v16  ;;  %v1837_v17 = vld [vmem:[#allocation3 + $0x88] sm:$0xff] }
 0x152   : > { %1453 = vst.msk [vmem:[#allocation3 + $0xa8] sm:$0xff] %vm503_vm0, %v1421_v47  ;;  %v1869_v44 = vadd.f32 %v5721_v59, %v1837_v17  ;;  %v1836_v45 = vld [vmem:[#allocation3 + $0x80] sm:$0xff] }
 0x153   : > { %v5727_v13 = vpop.f32.mrb[36].mxu0  ;;  %1452 = vst.msk [vmem:[#allocation3 + $0xa0] sm:$0xff] %vm503_vm0, %v1420_v51  ;;  %v1868_v48 = vadd.f32 %v1836_v45, %v1741_v0  ;;  %v5678_v35 = vpop.f32.mrb[38].mxu1  ;;  %v2274_v45 = vld [vmem:[#allocation3 + $0x8] sm:$0xff] }
 0x154   : > { %v1761_v11 = vpop.f32.mrb[37].mxu0  ;;  %6053 = vmatmul.mubr.msk.f32.gmra.mrb[142].mxu0 %vm503_vm0, %v4209_v43  ;;  %1901 = vst.msk [vmem:[#allocation3 + $0x88] sm:$0xff] %vm503_vm0, %v1869_v44  ;;  %v1423_v10 = vadd.f32 %v5678_v35, %v1391_v54  ;;  %v1319_v62 = vpop.f32.mrb[39].mxu1  ;;  %v2273_v35 = vld [vmem:[#allocation3] sm:$0xff] }
 0x155   : > { %1900 = vst.msk [vmem:[#allocation3 + $0x80] sm:$0xff] %vm503_vm0, %v1868_v48  ;;  %v1422_v61 = vadd.f32 %v1390_v36, %v1319_v62  ;;  %v1839_v9 = vld [vmem:[#allocation3 + $0x98] sm:$0xff] }
 0x156   : > { %1455 = vst.msk [vmem:[#allocation3 + $0xb8] sm:$0xff] %vm503_vm0, %v1423_v10  ;;  %v1871_v25 = vadd.f32 %v5724_v5, %v1839_v9  ;;  %v1838_v22 = vld [vmem:[#allocation3 + $0x90] sm:$0xff] }
 0x157   : > { %v5730_v60 = vpop.f32.mrb[38].mxu0  ;;  %1454 = vst.msk [vmem:[#allocation3 + $0xb0] sm:$0xff] %vm503_vm0, %v1422_v61  ;;  %v1870_v14 = vadd.f32 %v1838_v22, %v1751_v34  ;;  %v5681_v28 = vpop.f32.mrb[40].mxu1  ;;  %v1399_v34 = vld [vmem:[#allocation3 + $0xf8] sm:$0xff] }
 0x158   : > { %v1771_v23 = vpop.f32.mrb[39].mxu0  ;;  %1903 = vst.msk [vmem:[#allocation3 + $0x98] sm:$0xff] %vm503_vm0, %v1871_v25  ;;  %v1425_v18 = vadd.f32 %v5681_v28, %v1393_v29  ;;  %v1329_v40 = vpop.f32.mrb[41].mxu1  ;;  %v2276_v22 = vld [vmem:[#allocation3 + $0x18] sm:$0xff]  ;;  %v2275_v28 = vld [vmem:[#allocation3 + $0x10] sm:$0xff] }
 0x159   : > { %1902 = vst.msk [vmem:[#allocation3 + $0x90] sm:$0xff] %vm503_vm0, %v1870_v14  ;;  %v1424_v53 = vadd.f32 %v1392_v31, %v1329_v40  ;;  %v1841_v21 = vld [vmem:[#allocation3 + $0xa8] sm:$0xff] }
 0x15a   : > { %1457 = vst.msk [vmem:[#allocation3 + $0xc8] sm:$0xff] %vm503_vm0, %v1425_v18  ;;  %v1873_v41 = vadd.f32 %v5727_v13, %v1841_v21  ;;  %v1840_v26 = vld [vmem:[#allocation3 + $0xa0] sm:$0xff] }
 0x15b   : > { %v5733_v57 = vpop.f32.mrb[40].mxu0  ;;  %1456 = vst.msk [vmem:[#allocation3 + $0xc0] sm:$0xff] %vm503_vm0, %v1424_v53  ;;  %v1872_v27 = vadd.f32 %v1840_v26, %v1761_v11  ;;  %v5684_v49 = vpop.f32.mrb[42].mxu1  ;;  %v2278_v26 = vld [vmem:[#allocation3 + $0x28] sm:$0xff] }
 0x15c   : > { %v1781_v15 = vpop.f32.mrb[41].mxu0  ;;  %1905 = vst.msk [vmem:[#allocation3 + $0xa8] sm:$0xff] %vm503_vm0, %v1873_v41  ;;  %v1427_v20 = vadd.f32 %v5684_v49, %v1395_v30  ;;  %v1339_v32 = vpop.f32.mrb[43].mxu1  ;;  %v2277_v49 = vld [vmem:[#allocation3 + $0x20] sm:$0xff] }
 0x15d   : > { %1904 = vst.msk [vmem:[#allocation3 + $0xa0] sm:$0xff] %vm503_vm0, %v1872_v27  ;;  %v1426_v58 = vadd.f32 %v1394_v24, %v1339_v32  ;;  %v1843_v52 = vld [vmem:[#allocation3 + $0xb8] sm:$0xff] }
 0x15e   : > { %1459 = vst.msk [vmem:[#allocation3 + $0xd8] sm:$0xff] %vm503_vm0, %v1427_v20  ;;  %v1875_v38 = vadd.f32 %v5730_v60, %v1843_v52  ;;  %v1842_v39 = vld [vmem:[#allocation3 + $0xb0] sm:$0xff] }
 0x15f   : > { %v5736_v59 = vpop.f32.mrb[42].mxu0  ;;  %1458 = vst.msk [vmem:[#allocation3 + $0xd0] sm:$0xff] %vm503_vm0, %v1426_v58  ;;  %v1874_v0 = vadd.f32 %v1842_v39, %v1771_v23  ;;  %v5687_v1 = vpop.f32.mrb[44].mxu1  ;;  %v2280_v39 = vld [vmem:[#allocation3 + $0x38] sm:$0xff] }
 0x160   : > { %v1791_v6 = vpop.f32.mrb[43].mxu0  ;;  %1907 = vst.msk [vmem:[#allocation3 + $0xb8] sm:$0xff] %vm503_vm0, %v1875_v38  ;;  %v1429_v8 = vadd.f32 %v5687_v1, %v1397_v63  ;;  %v1349_v7 = vpop.f32.mrb[45].mxu1  ;;  %v2279_v1 = vld [vmem:[#allocation3 + $0x30] sm:$0xff] }
 0x161   : > { %1906 = vst.msk [vmem:[#allocation3 + $0xb0] sm:$0xff] %vm503_vm0, %v1874_v0  ;;  %v1428_v42 = vadd.f32 %v1396_v56, %v1349_v7  ;;  %v1845_v46 = vld [vmem:[#allocation3 + $0xc8] sm:$0xff] }
 0x162   : > { %1461 = vst.msk [vmem:[#allocation3 + $0xe8] sm:$0xff] %vm503_vm0, %v1429_v8  ;;  %v1877_v2 = vadd.f32 %v5733_v57, %v1845_v46  ;;  %v1844_v55 = vld [vmem:[#allocation3 + $0xc0] sm:$0xff] }
 0x163   : > { %v5739_v37 = vpop.f32.mrb[44].mxu0  ;;  %1460 = vst.msk [vmem:[#allocation3 + $0xe0] sm:$0xff] %vm503_vm0, %v1428_v42  ;;  %v1876_v12 = vadd.f32 %v1844_v55, %v1781_v15  ;;  %v5690_v33 = vpop.f32.mrb[46].mxu1  ;;  %v2282_v55 = vld [vmem:[#allocation3 + $0x48] sm:$0xff] }
 0x164   : > { %v1801_v5 = vpop.f32.mrb[45].mxu0  ;;  %1909 = vst.msk [vmem:[#allocation3 + $0xc8] sm:$0xff] %vm503_vm0, %v1877_v2  ;;  %v1431_v19 = vadd.f32 %v5690_v33, %v1399_v34  ;;  %v1359_v3 = vpop.f32.mrb[47].mxu1  ;;  %v2281_v33 = vld [vmem:[#allocation3 + $0x40] sm:$0xff] }
 0x165   : > { %1908 = vst.msk [vmem:[#allocation3 + $0xc0] sm:$0xff] %vm503_vm0, %v1876_v12  ;;  %v1430_v43 = vadd.f32 %v1398_v4, %v1359_v3  ;;  %v1847_v47 = vld [vmem:[#allocation3 + $0xd8] sm:$0xff] }
 0x166   : > { %1463 = vst.msk [vmem:[#allocation3 + $0xf8] sm:$0xff] %vm503_vm0, %v1431_v19  ;;  %v1879_v50 = vadd.f32 %v5736_v59, %v1847_v47  ;;  %v1846_v51 = vld [vmem:[#allocation3 + $0xd0] sm:$0xff] }
 0x167   : > { %v5742_v16 = vpop.f32.mrb[46].mxu0  ;;  %1462 = vst.msk [vmem:[#allocation3 + $0xf0] sm:$0xff] %vm503_vm0, %v1430_v43  ;;  %v1878_v13 = vadd.f32 %v1846_v51, %v1791_v6  ;;  %v5749_v44 = vpop.f32.mrb[48].mxu1  ;;  %v2284_v51 = vld [vmem:[#allocation3 + $0x58] sm:$0xff] }
 0x168   : > { %v1811_v17 = vpop.f32.mrb[47].mxu0  ;;  %1911 = vst.msk [vmem:[#allocation3 + $0xd8] sm:$0xff] %vm503_vm0, %v1879_v50  ;;  %v2306_v11 = vadd.f32 %v5749_v44, %v2274_v45  ;;  %v2114_v48 = vpop.f32.mrb[49].mxu1  ;;  %v2283_v44 = vld [vmem:[#allocation3 + $0x50] sm:$0xff] }
 0x169   : > { %1910 = vst.msk [vmem:[#allocation3 + $0xd0] sm:$0xff] %vm503_vm0, %v1878_v13  ;;  %v1849_v54 = vld [vmem:[#allocation3 + $0xe8] sm:$0xff]  ;;  %v2305_v10 = vadd.f32 %v2273_v35, %v2114_v48 }
 0x16a   : > { %2338 = vst.msk [vmem:[#allocation3 + $0x8] sm:$0xff] %vm503_vm0, %v2306_v11  ;;  %v1881_v36 = vadd.f32 %v5739_v37, %v1849_v54  ;;  %v1848_v61 = vld [vmem:[#allocation3 + $0xe0] sm:$0xff] }
 0x16b   : > { %v5801_v62 = vpop.f32.mrb[48].mxu0  ;;  %2337 = vst.msk [vmem:[#allocation3] sm:$0xff] %vm503_vm0, %v2305_v10  ;;  %v1880_v60 = vadd.f32 %v1848_v61, %v1801_v5  ;;  %v5752_v25 = vpop.f32.mrb[50].mxu1  ;;  %v2286_v61 = vld [vmem:[#allocation3 + $0x68] sm:$0xff] }
 0x16c   : > { %v2566_v9 = vpop.f32.mrb[49].mxu0  ;;  %1913 = vst.msk [vmem:[#allocation3 + $0xe8] sm:$0xff] %vm503_vm0, %v1881_v36  ;;  %v2308_v23 = vadd.f32 %v5752_v25, %v2276_v22  ;;  %v2124_v14 = vpop.f32.mrb[51].mxu1  ;;  %v2285_v25 = vld [vmem:[#allocation3 + $0x60] sm:$0xff] }
 0x16d   : > { %1912 = vst.msk [vmem:[#allocation3 + $0xe0] sm:$0xff] %vm503_vm0, %v1880_v60  ;;  %v1851_v29 = vld [vmem:[#allocation3 + $0xf8] sm:$0xff]  ;;  %v2307_v18 = vadd.f32 %v2275_v28, %v2124_v14 }
 0x16e   : > { %2340 = vst.msk [vmem:[#allocation3 + $0x18] sm:$0xff] %vm503_vm0, %v2308_v23  ;;  %v1883_v31 = vadd.f32 %v5742_v16, %v1851_v29  ;;  %v1850_v53 = vld [vmem:[#allocation3 + $0xf0] sm:$0xff] }
 0x16f   : > { %v5804_v40 = vpop.f32.mrb[50].mxu0  ;;  %2339 = vst.msk [vmem:[#allocation3 + $0x10] sm:$0xff] %vm503_vm0, %v2307_v18  ;;  %v1882_v57 = vadd.f32 %v1850_v53, %v1811_v17  ;;  %v5755_v41 = vpop.f32.mrb[52].mxu1  ;;  %v2288_v53 = vld [vmem:[#allocation3 + $0x78] sm:$0xff] }
 0x170   : > { %v2576_v21 = vpop.f32.mrb[51].mxu0  ;;  %1915 = vst.msk [vmem:[#allocation3 + $0xf8] sm:$0xff] %vm503_vm0, %v1883_v31  ;;  %v2310_v15 = vadd.f32 %v5755_v41, %v2278_v26  ;;  %v2134_v27 = vpop.f32.mrb[53].mxu1  ;;  %v2287_v41 = vld [vmem:[#allocation3 + $0x70] sm:$0xff] }
 0x171   : > { %1914 = vst.msk [vmem:[#allocation3 + $0xf0] sm:$0xff] %vm503_vm0, %v1882_v57  ;;  %v2309_v30 = vadd.f32 %v2277_v49, %v2134_v27  ;;  %v2726_v20 = vld [vmem:[#allocation3 + $0x8] sm:$0xff] }
 0x172   : > { %2342 = vst.msk [vmem:[#allocation3 + $0x28] sm:$0xff] %vm503_vm0, %v2310_v15  ;;  %v2758_v24 = vadd.f32 %v5801_v62, %v2726_v20  ;;  %v2725_v58 = vld [vmem:[#allocation3] sm:$0xff] }
 0x173   : > { %v5807_v32 = vpop.f32.mrb[52].mxu0  ;;  %2341 = vst.msk [vmem:[#allocation3 + $0x20] sm:$0xff] %vm503_vm0, %v2309_v30  ;;  %v2757_v59 = vadd.f32 %v2725_v58, %v2566_v9  ;;  %v5758_v38 = vpop.f32.mrb[54].mxu1  ;;  %v2290_v58 = vld [vmem:[#allocation3 + $0x88] sm:$0xff] }
 0x174   : > { %v2586_v52 = vpop.f32.mrb[53].mxu0  ;;  %2790 = vst.msk [vmem:[#allocation3 + $0x8] sm:$0xff] %vm503_vm0, %v2758_v24  ;;  %v2312_v6 = vadd.f32 %v5758_v38, %v2280_v39  ;;  %v2144_v0 = vpop.f32.mrb[55].mxu1  ;;  %v2289_v38 = vld [vmem:[#allocation3 + $0x80] sm:$0xff] }
 0x175   : > { %2789 = vst.msk [vmem:[#allocation3] sm:$0xff] %vm503_vm0, %v2757_v59  ;;  %v2311_v63 = vadd.f32 %v2279_v1, %v2144_v0  ;;  %v2728_v8 = vld [vmem:[#allocation3 + $0x18] sm:$0xff] }
 0x176   : > { %2344 = vst.msk [vmem:[#allocation3 + $0x38] sm:$0xff] %vm503_vm0, %v2312_v6  ;;  %v2760_v56 = vadd.f32 %v5804_v40, %v2728_v8  ;;  %v2727_v42 = vld [vmem:[#allocation3 + $0x10] sm:$0xff] }
 0x177   : > { %v5810_v7 = vpop.f32.mrb[54].mxu0  ;;  %2343 = vst.msk [vmem:[#allocation3 + $0x30] sm:$0xff] %vm503_vm0, %v2311_v63  ;;  %v2759_v37 = vadd.f32 %v2727_v42, %v2576_v21  ;;  %v5761_v2 = vpop.f32.mrb[56].mxu1  ;;  %v2292_v42 = vld [vmem:[#allocation3 + $0x98] sm:$0xff] }
 0x178   : > { %v2596_v46 = vpop.f32.mrb[55].mxu0  ;;  %2792 = vst.msk [vmem:[#allocation3 + $0x18] sm:$0xff] %vm503_vm0, %v2760_v56  ;;  %v2314_v5 = vadd.f32 %v5761_v2, %v2282_v55  ;;  %v2154_v12 = vpop.f32.mrb[57].mxu1  ;;  %v2291_v2 = vld [vmem:[#allocation3 + $0x90] sm:$0xff] }
 0x179   : > { %2791 = vst.msk [vmem:[#allocation3 + $0x10] sm:$0xff] %vm503_vm0, %v2759_v37  ;;  %v2313_v34 = vadd.f32 %v2281_v33, %v2154_v12  ;;  %v2730_v19 = vld [vmem:[#allocation3 + $0x28] sm:$0xff] }
 0x17a   : > { %2346 = vst.msk [vmem:[#allocation3 + $0x48] sm:$0xff] %vm503_vm0, %v2314_v5  ;;  %v2762_v4 = vadd.f32 %v5807_v32, %v2730_v19  ;;  %v2729_v43 = vld [vmem:[#allocation3 + $0x20] sm:$0xff] }
 0x17b   : > { %v5813_v3 = vpop.f32.mrb[56].mxu0  ;;  %2345 = vst.msk [vmem:[#allocation3 + $0x40] sm:$0xff] %vm503_vm0, %v2313_v34  ;;  %v2761_v16 = vadd.f32 %v2729_v43, %v2586_v52  ;;  %v5764_v50 = vpop.f32.mrb[58].mxu1  ;;  %v2294_v43 = vld [vmem:[#allocation3 + $0xa8] sm:$0xff] }
 0x17c   : > { %v2606_v47 = vpop.f32.mrb[57].mxu0  ;;  %2794 = vst.msk [vmem:[#allocation3 + $0x28] sm:$0xff] %vm503_vm0, %v2762_v4  ;;  %v2316_v17 = vadd.f32 %v5764_v50, %v2284_v51  ;;  %v2164_v13 = vpop.f32.mrb[59].mxu1  ;;  %v2293_v50 = vld [vmem:[#allocation3 + $0xa0] sm:$0xff] }
 0x17d   : > { %2793 = vst.msk [vmem:[#allocation3 + $0x20] sm:$0xff] %vm503_vm0, %v2761_v16  ;;  %v2315_v45 = vadd.f32 %v2283_v44, %v2164_v13  ;;  %v2732_v11 = vld [vmem:[#allocation3 + $0x38] sm:$0xff] }
 0x17e   : > { %2348 = vst.msk [vmem:[#allocation3 + $0x58] sm:$0xff] %vm503_vm0, %v2316_v17  ;;  %v2764_v35 = vadd.f32 %v5810_v7, %v2732_v11  ;;  %v2731_v54 = vld [vmem:[#allocation3 + $0x30] sm:$0xff] }
 0x17f   : > { %v5816_v48 = vpop.f32.mrb[58].mxu0  ;;  %2347 = vst.msk [vmem:[#allocation3 + $0x50] sm:$0xff] %vm503_vm0, %v2315_v45  ;;  %v2763_v62 = vadd.f32 %v2731_v54, %v2596_v46  ;;  %v5767_v36 = vpop.f32.mrb[60].mxu1  ;;  %v2296_v54 = vld [vmem:[#allocation3 + $0xb8] sm:$0xff] }
 0x180   : > { %v2616_v10 = vpop.f32.mrb[59].mxu0  ;;  %2796 = vst.msk [vmem:[#allocation3 + $0x38] sm:$0xff] %vm503_vm0, %v2764_v35  ;;  %v2318_v9 = vadd.f32 %v5767_v36, %v2286_v61  ;;  %v2174_v60 = vpop.f32.mrb[61].mxu1  ;;  %v2295_v36 = vld [vmem:[#allocation3 + $0xb0] sm:$0xff] }
 0x181   : > { %2795 = vst.msk [vmem:[#allocation3 + $0x30] sm:$0xff] %vm503_vm0, %v2763_v62  ;;  %v2317_v22 = vadd.f32 %v2285_v25, %v2174_v60  ;;  %v2734_v23 = vld [vmem:[#allocation3 + $0x48] sm:$0xff] }
 0x182   : > { %2350 = vst.msk [vmem:[#allocation3 + $0x68] sm:$0xff] %vm503_vm0, %v2318_v9  ;;  %v2766_v28 = vadd.f32 %v5813_v3, %v2734_v23  ;;  %v2733_v29 = vld [vmem:[#allocation3 + $0x40] sm:$0xff] }
 0x183   : > { %v5819_v14 = vpop.f32.mrb[60].mxu0  ;;  %2349 = vst.msk [vmem:[#allocation3 + $0x60] sm:$0xff] %vm503_vm0, %v2317_v22  ;;  %v2765_v40 = vadd.f32 %v2733_v29, %v2606_v47  ;;  %v5770_v31 = vpop.f32.mrb[62].mxu1  ;;  %v2298_v29 = vld [vmem:[#allocation3 + $0xc8] sm:$0xff] }
 0x184   : > { %v2626_v18 = vpop.f32.mrb[61].mxu0  ;;  %2798 = vst.msk [vmem:[#allocation3 + $0x48] sm:$0xff] %vm503_vm0, %v2766_v28  ;;  %v2320_v21 = vadd.f32 %v5770_v31, %v2288_v53  ;;  %v2184_v57 = vpop.f32.mrb[63].mxu1  ;;  %v2297_v31 = vld [vmem:[#allocation3 + $0xc0] sm:$0xff] }
 0x185   : > { %2797 = vst.msk [vmem:[#allocation3 + $0x40] sm:$0xff] %vm503_vm0, %v2765_v40  ;;  %v2319_v26 = vadd.f32 %v2287_v41, %v2184_v57  ;;  %v2736_v15 = vld [vmem:[#allocation3 + $0x58] sm:$0xff] }
 0x186   : > { %2352 = vst.msk [vmem:[#allocation3 + $0x78] sm:$0xff] %vm503_vm0, %v2320_v21  ;;  %v2768_v49 = vadd.f32 %v5816_v48, %v2736_v15  ;;  %v2735_v30 = vld [vmem:[#allocation3 + $0x50] sm:$0xff] }
 0x187   : > { %v5822_v27 = vpop.f32.mrb[62].mxu0  ;;  %2351 = vst.msk [vmem:[#allocation3 + $0x70] sm:$0xff] %vm503_vm0, %v2319_v26  ;;  %v2767_v32 = vadd.f32 %v2735_v30, %v2616_v10  ;;  %v5773_v24 = vpop.f32.mrb[64].mxu1  ;;  %v2300_v30 = vld [vmem:[#allocation3 + $0xd8] sm:$0xff] }
 0x188   : > { %v2636_v20 = vpop.f32.mrb[63].mxu0  ;;  %2800 = vst.msk [vmem:[#allocation3 + $0x58] sm:$0xff] %vm503_vm0, %v2768_v49  ;;  %v2322_v52 = vadd.f32 %v5773_v24, %v2290_v58  ;;  %v2194_v59 = vpop.f32.mrb[65].mxu1  ;;  %v2299_v24 = vld [vmem:[#allocation3 + $0xd0] sm:$0xff] }
 0x189   : > { %2799 = vst.msk [vmem:[#allocation3 + $0x50] sm:$0xff] %vm503_vm0, %v2767_v32  ;;  %v2321_v39 = vadd.f32 %v2289_v38, %v2194_v59  ;;  %v2738_v6 = vld [vmem:[#allocation3 + $0x68] sm:$0xff] }
 0x18a   : > { %2354 = vst.msk [vmem:[#allocation3 + $0x88] sm:$0xff] %vm503_vm0, %v2322_v52  ;;  %v2770_v1 = vadd.f32 %v5819_v14, %v2738_v6  ;;  %v2737_v63 = vld [vmem:[#allocation3 + $0x60] sm:$0xff] }
 0x18b   : > { %v5825_v0 = vpop.f32.mrb[64].mxu0  ;;  %2353 = vst.msk [vmem:[#allocation3 + $0x80] sm:$0xff] %vm503_vm0, %v2321_v39  ;;  %v2769_v7 = vadd.f32 %v2737_v63, %v2626_v18  ;;  %v5776_v56 = vpop.f32.mrb[66].mxu1  ;;  %v2302_v63 = vld [vmem:[#allocation3 + $0xe8] sm:$0xff] }
 0x18c   : > { %v2646_v8 = vpop.f32.mrb[65].mxu0  ;;  %2802 = vst.msk [vmem:[#allocation3 + $0x68] sm:$0xff] %vm503_vm0, %v2770_v1  ;;  %v2324_v46 = vadd.f32 %v5776_v56, %v2292_v42  ;;  %v2204_v37 = vpop.f32.mrb[67].mxu1  ;;  %v2301_v56 = vld [vmem:[#allocation3 + $0xe0] sm:$0xff] }
 0x18d   : > { %2801 = vst.msk [vmem:[#allocation3 + $0x60] sm:$0xff] %vm503_vm0, %v2769_v7  ;;  %v2323_v55 = vadd.f32 %v2291_v2, %v2204_v37  ;;  %v2740_v5 = vld [vmem:[#allocation3 + $0x78] sm:$0xff] }
 0x18e   : > { %2356 = vst.msk [vmem:[#allocation3 + $0x98] sm:$0xff] %vm503_vm0, %v2324_v46  ;;  %v2772_v33 = vadd.f32 %v5822_v27, %v2740_v5  ;;  %v2739_v34 = vld [vmem:[#allocation3 + $0x70] sm:$0xff] }
 0x18f   : > { %v5828_v12 = vpop.f32.mrb[66].mxu0  ;;  %2355 = vst.msk [vmem:[#allocation3 + $0x90] sm:$0xff] %vm503_vm0, %v2323_v55  ;;  %v2771_v3 = vadd.f32 %v2739_v34, %v2636_v20  ;;  %v5779_v4 = vpop.f32.mrb[68].mxu1  ;;  %v2304_v34 = vld [vmem:[#allocation3 + $0xf8] sm:$0xff] }
 0x190   : > { %v2656_v19 = vpop.f32.mrb[67].mxu0  ;;  %2804 = vst.msk [vmem:[#allocation3 + $0x78] sm:$0xff] %vm503_vm0, %v2772_v33  ;;  %v2326_v47 = vadd.f32 %v5779_v4, %v2294_v43  ;;  %v2214_v16 = vpop.f32.mrb[69].mxu1  ;;  %v2303_v4 = vld [vmem:[#allocation3 + $0xf0] sm:$0xff] }
 0x191   : > { %2803 = vst.msk [vmem:[#allocation3 + $0x70] sm:$0xff] %vm503_vm0, %v2771_v3  ;;  %v2325_v51 = vadd.f32 %v2293_v50, %v2214_v16  ;;  %v2742_v17 = vld [vmem:[#allocation3 + $0x88] sm:$0xff] }
 0x192   : > { %2358 = vst.msk [vmem:[#allocation3 + $0xa8] sm:$0xff] %vm503_vm0, %v2326_v47  ;;  %v2774_v44 = vadd.f32 %v5825_v0, %v2742_v17  ;;  %v2741_v45 = vld [vmem:[#allocation3 + $0x80] sm:$0xff] }
 0x193   : > { %v5831_v13 = vpop.f32.mrb[68].mxu0  ;;  %2357 = vst.msk [vmem:[#allocation3 + $0xa0] sm:$0xff] %vm503_vm0, %v2325_v51  ;;  %v2773_v48 = vadd.f32 %v2741_v45, %v2646_v8  ;;  %v5782_v35 = vpop.f32.mrb[70].mxu1  ;;  %v3178_v45 = vld [vmem:[#allocation3 + $0x8] sm:$0xff] }
 0x194   : > { %v2666_v11 = vpop.f32.mrb[69].mxu0  ;;  %2806 = vst.msk [vmem:[#allocation3 + $0x88] sm:$0xff] %vm503_vm0, %v2774_v44  ;;  %v2328_v10 = vadd.f32 %v5782_v35, %v2296_v54  ;;  %v2224_v62 = vpop.f32.mrb[71].mxu1  ;;  %v3177_v35 = vld [vmem:[#allocation3] sm:$0xff] }
 0x195   : > { %2805 = vst.msk [vmem:[#allocation3 + $0x80] sm:$0xff] %vm503_vm0, %v2773_v48  ;;  %v2327_v61 = vadd.f32 %v2295_v36, %v2224_v62  ;;  %v2744_v9 = vld [vmem:[#allocation3 + $0x98] sm:$0xff] }
 0x196   : > { %2360 = vst.msk [vmem:[#allocation3 + $0xb8] sm:$0xff] %vm503_vm0, %v2328_v10  ;;  %v2776_v25 = vadd.f32 %v5828_v12, %v2744_v9  ;;  %v2743_v22 = vld [vmem:[#allocation3 + $0x90] sm:$0xff] }
 0x197   : > { %v5834_v60 = vpop.f32.mrb[70].mxu0  ;;  %2359 = vst.msk [vmem:[#allocation3 + $0xb0] sm:$0xff] %vm503_vm0, %v2327_v61  ;;  %v2775_v14 = vadd.f32 %v2743_v22, %v2656_v19  ;;  %v5785_v28 = vpop.f32.mrb[72].mxu1  ;;  %v3180_v22 = vld [vmem:[#allocation3 + $0x18] sm:$0xff] }
 0x198   : > { %v2676_v23 = vpop.f32.mrb[71].mxu0  ;;  %2808 = vst.msk [vmem:[#allocation3 + $0x98] sm:$0xff] %vm503_vm0, %v2776_v25  ;;  %v2330_v18 = vadd.f32 %v5785_v28, %v2298_v29  ;;  %v2234_v40 = vpop.f32.mrb[73].mxu1  ;;  %v3179_v28 = vld [vmem:[#allocation3 + $0x10] sm:$0xff] }
 0x199   : > { %2807 = vst.msk [vmem:[#allocation3 + $0x90] sm:$0xff] %vm503_vm0, %v2775_v14  ;;  %v2329_v53 = vadd.f32 %v2297_v31, %v2234_v40  ;;  %v2746_v21 = vld [vmem:[#allocation3 + $0xa8] sm:$0xff] }
 0x19a   : > { %2362 = vst.msk [vmem:[#allocation3 + $0xc8] sm:$0xff] %vm503_vm0, %v2330_v18  ;;  %v2778_v41 = vadd.f32 %v5831_v13, %v2746_v21  ;;  %v2745_v26 = vld [vmem:[#allocation3 + $0xa0] sm:$0xff] }
 0x19b   : > { %v5837_v57 = vpop.f32.mrb[72].mxu0  ;;  %2361 = vst.msk [vmem:[#allocation3 + $0xc0] sm:$0xff] %vm503_vm0, %v2329_v53  ;;  %v2777_v27 = vadd.f32 %v2745_v26, %v2666_v11  ;;  %v5788_v49 = vpop.f32.mrb[74].mxu1  ;;  %v3182_v26 = vld [vmem:[#allocation3 + $0x28] sm:$0xff] }
 0x19c   : > { %v2686_v15 = vpop.f32.mrb[73].mxu0  ;;  %2810 = vst.msk [vmem:[#allocation3 + $0xa8] sm:$0xff] %vm503_vm0, %v2778_v41  ;;  %v2332_v20 = vadd.f32 %v5788_v49, %v2300_v30  ;;  %v2244_v32 = vpop.f32.mrb[75].mxu1  ;;  %v3181_v49 = vld [vmem:[#allocation3 + $0x20] sm:$0xff] }
 0x19d   : > { %2809 = vst.msk [vmem:[#allocation3 + $0xa0] sm:$0xff] %vm503_vm0, %v2777_v27  ;;  %v2331_v58 = vadd.f32 %v2299_v24, %v2244_v32  ;;  %v2748_v52 = vld [vmem:[#allocation3 + $0xb8] sm:$0xff] }
 0x19e   : > { %2364 = vst.msk [vmem:[#allocation3 + $0xd8] sm:$0xff] %vm503_vm0, %v2332_v20  ;;  %v2780_v38 = vadd.f32 %v5834_v60, %v2748_v52  ;;  %v2747_v39 = vld [vmem:[#allocation3 + $0xb0] sm:$0xff] }
 0x19f   : > { %v5840_v59 = vpop.f32.mrb[74].mxu0  ;;  %2363 = vst.msk [vmem:[#allocation3 + $0xd0] sm:$0xff] %vm503_vm0, %v2331_v58  ;;  %v2779_v0 = vadd.f32 %v2747_v39, %v2676_v23  ;;  %v5791_v1 = vpop.f32.mrb[76].mxu1  ;;  %v3184_v39 = vld [vmem:[#allocation3 + $0x38] sm:$0xff] }
 0x1a0   : > { %v2696_v6 = vpop.f32.mrb[75].mxu0  ;;  %2812 = vst.msk [vmem:[#allocation3 + $0xb8] sm:$0xff] %vm503_vm0, %v2780_v38  ;;  %v2334_v8 = vadd.f32 %v5791_v1, %v2302_v63  ;;  %v2254_v7 = vpop.f32.mrb[77].mxu1  ;;  %v3183_v1 = vld [vmem:[#allocation3 + $0x30] sm:$0xff] }
 0x1a1   : > { %2811 = vst.msk [vmem:[#allocation3 + $0xb0] sm:$0xff] %vm503_vm0, %v2779_v0  ;;  %v2333_v42 = vadd.f32 %v2301_v56, %v2254_v7  ;;  %v2750_v46 = vld [vmem:[#allocation3 + $0xc8] sm:$0xff] }
 0x1a2   : > { %2366 = vst.msk [vmem:[#allocation3 + $0xe8] sm:$0xff] %vm503_vm0, %v2334_v8  ;;  %v2782_v2 = vadd.f32 %v5837_v57, %v2750_v46  ;;  %v2749_v55 = vld [vmem:[#allocation3 + $0xc0] sm:$0xff] }
 0x1a3   : > { %v5843_v37 = vpop.f32.mrb[76].mxu0  ;;  %2365 = vst.msk [vmem:[#allocation3 + $0xe0] sm:$0xff] %vm503_vm0, %v2333_v42  ;;  %v2781_v12 = vadd.f32 %v2749_v55, %v2686_v15  ;;  %v5794_v33 = vpop.f32.mrb[78].mxu1  ;;  %v3186_v55 = vld [vmem:[#allocation3 + $0x48] sm:$0xff] }
 0x1a4   : > { %v2706_v5 = vpop.f32.mrb[77].mxu0  ;;  %2814 = vst.msk [vmem:[#allocation3 + $0xc8] sm:$0xff] %vm503_vm0, %v2782_v2  ;;  %v2336_v19 = vadd.f32 %v5794_v33, %v2304_v34  ;;  %v2264_v3 = vpop.f32.mrb[79].mxu1  ;;  %v3185_v33 = vld [vmem:[#allocation3 + $0x40] sm:$0xff] }
 0x1a5   : > { %2813 = vst.msk [vmem:[#allocation3 + $0xc0] sm:$0xff] %vm503_vm0, %v2781_v12  ;;  %v2335_v43 = vadd.f32 %v2303_v4, %v2264_v3  ;;  %v2752_v47 = vld [vmem:[#allocation3 + $0xd8] sm:$0xff] }
 0x1a6   : > { %2368 = vst.msk [vmem:[#allocation3 + $0xf8] sm:$0xff] %vm503_vm0, %v2336_v19  ;;  %v2784_v50 = vadd.f32 %v5840_v59, %v2752_v47  ;;  %v2751_v51 = vld [vmem:[#allocation3 + $0xd0] sm:$0xff] }
 0x1a7   : > { %v5846_v16 = vpop.f32.mrb[78].mxu0  ;;  %2367 = vst.msk [vmem:[#allocation3 + $0xf0] sm:$0xff] %vm503_vm0, %v2335_v43  ;;  %v2783_v13 = vadd.f32 %v2751_v51, %v2696_v6  ;;  %v5853_v44 = vpop.f32.mrb[80].mxu1  ;;  %v3188_v51 = vld [vmem:[#allocation3 + $0x58] sm:$0xff] }
 0x1a8   : > { %v2716_v17 = vpop.f32.mrb[79].mxu0  ;;  %2816 = vst.msk [vmem:[#allocation3 + $0xd8] sm:$0xff] %vm503_vm0, %v2784_v50  ;;  %v3210_v11 = vadd.f32 %v5853_v44, %v3178_v45  ;;  %v3018_v48 = vpop.f32.mrb[81].mxu1  ;;  %v3187_v44 = vld [vmem:[#allocation3 + $0x50] sm:$0xff] }
 0x1a9   : > { %2815 = vst.msk [vmem:[#allocation3 + $0xd0] sm:$0xff] %vm503_vm0, %v2783_v13  ;;  %v2754_v54 = vld [vmem:[#allocation3 + $0xe8] sm:$0xff]  ;;  %v3209_v10 = vadd.f32 %v3177_v35, %v3018_v48 }
 0x1aa   : > { %3242 = vst.msk [vmem:[#allocation3 + $0x8] sm:$0xff] %vm503_vm0, %v3210_v11  ;;  %v2786_v36 = vadd.f32 %v5843_v37, %v2754_v54  ;;  %v2753_v61 = vld [vmem:[#allocation3 + $0xe0] sm:$0xff] }
 0x1ab   : > { %v5905_v62 = vpop.f32.mrb[80].mxu0  ;;  %3241 = vst.msk [vmem:[#allocation3] sm:$0xff] %vm503_vm0, %v3209_v10  ;;  %v2785_v60 = vadd.f32 %v2753_v61, %v2706_v5  ;;  %v5856_v25 = vpop.f32.mrb[82].mxu1  ;;  %v3190_v61 = vld [vmem:[#allocation3 + $0x68] sm:$0xff] }
 0x1ac   : > { %v3471_v9 = vpop.f32.mrb[81].mxu0  ;;  %2818 = vst.msk [vmem:[#allocation3 + $0xe8] sm:$0xff] %vm503_vm0, %v2786_v36  ;;  %v3212_v23 = vadd.f32 %v5856_v25, %v3180_v22  ;;  %v3028_v14 = vpop.f32.mrb[83].mxu1  ;;  %v3189_v25 = vld [vmem:[#allocation3 + $0x60] sm:$0xff] }
 0x1ad   : > { %2817 = vst.msk [vmem:[#allocation3 + $0xe0] sm:$0xff] %vm503_vm0, %v2785_v60  ;;  %v2756_v29 = vld [vmem:[#allocation3 + $0xf8] sm:$0xff]  ;;  %v3211_v18 = vadd.f32 %v3179_v28, %v3028_v14 }
 0x1ae   : > { %3244 = vst.msk [vmem:[#allocation3 + $0x18] sm:$0xff] %vm503_vm0, %v3212_v23  ;;  %v2788_v31 = vadd.f32 %v5846_v16, %v2756_v29  ;;  %v2755_v53 = vld [vmem:[#allocation3 + $0xf0] sm:$0xff] }
 0x1af   : > { %v5908_v40 = vpop.f32.mrb[82].mxu0  ;;  %3243 = vst.msk [vmem:[#allocation3 + $0x10] sm:$0xff] %vm503_vm0, %v3211_v18  ;;  %v2787_v57 = vadd.f32 %v2755_v53, %v2716_v17  ;;  %v5859_v41 = vpop.f32.mrb[84].mxu1  ;;  %v3192_v53 = vld [vmem:[#allocation3 + $0x78] sm:$0xff] }
 0x1b0   : > { %v3481_v21 = vpop.f32.mrb[83].mxu0  ;;  %2820 = vst.msk [vmem:[#allocation3 + $0xf8] sm:$0xff] %vm503_vm0, %v2788_v31  ;;  %v3214_v15 = vadd.f32 %v5859_v41, %v3182_v26  ;;  %v3038_v27 = vpop.f32.mrb[85].mxu1  ;;  %v3191_v41 = vld [vmem:[#allocation3 + $0x70] sm:$0xff] }
 0x1b1   : > { %2819 = vst.msk [vmem:[#allocation3 + $0xf0] sm:$0xff] %vm503_vm0, %v2787_v57  ;;  %v3213_v30 = vadd.f32 %v3181_v49, %v3038_v27  ;;  %v3631_v20 = vld [vmem:[#allocation3 + $0x8] sm:$0xff] }
 0x1b2   : > { %3246 = vst.msk [vmem:[#allocation3 + $0x28] sm:$0xff] %vm503_vm0, %v3214_v15  ;;  %v3663_v24 = vadd.f32 %v5905_v62, %v3631_v20  ;;  %v3630_v58 = vld [vmem:[#allocation3] sm:$0xff] }
 0x1b3   : > { %v5911_v32 = vpop.f32.mrb[84].mxu0  ;;  %3245 = vst.msk [vmem:[#allocation3 + $0x20] sm:$0xff] %vm503_vm0, %v3213_v30  ;;  %v3662_v59 = vadd.f32 %v3630_v58, %v3471_v9  ;;  %v5862_v38 = vpop.f32.mrb[86].mxu1  ;;  %v3194_v58 = vld [vmem:[#allocation3 + $0x88] sm:$0xff] }
 0x1b4   : > { %v3491_v52 = vpop.f32.mrb[85].mxu0  ;;  %3695 = vst.msk [vmem:[#allocation3 + $0x8] sm:$0xff] %vm503_vm0, %v3663_v24  ;;  %v3216_v6 = vadd.f32 %v5862_v38, %v3184_v39  ;;  %v3048_v0 = vpop.f32.mrb[87].mxu1  ;;  %v3193_v38 = vld [vmem:[#allocation3 + $0x80] sm:$0xff] }
 0x1b5   : > { %3694 = vst.msk [vmem:[#allocation3] sm:$0xff] %vm503_vm0, %v3662_v59  ;;  %v3215_v63 = vadd.f32 %v3183_v1, %v3048_v0  ;;  %v3633_v8 = vld [vmem:[#allocation3 + $0x18] sm:$0xff] }
 0x1b6   : > { %3248 = vst.msk [vmem:[#allocation3 + $0x38] sm:$0xff] %vm503_vm0, %v3216_v6  ;;  %v3665_v56 = vadd.f32 %v5908_v40, %v3633_v8  ;;  %v3632_v42 = vld [vmem:[#allocation3 + $0x10] sm:$0xff] }
 0x1b7   : > { %v5914_v7 = vpop.f32.mrb[86].mxu0  ;;  %3247 = vst.msk [vmem:[#allocation3 + $0x30] sm:$0xff] %vm503_vm0, %v3215_v63  ;;  %v3664_v37 = vadd.f32 %v3632_v42, %v3481_v21  ;;  %v5865_v2 = vpop.f32.mrb[88].mxu1  ;;  %v3196_v42 = vld [vmem:[#allocation3 + $0x98] sm:$0xff] }
 0x1b8   : > { %v3501_v46 = vpop.f32.mrb[87].mxu0  ;;  %3697 = vst.msk [vmem:[#allocation3 + $0x18] sm:$0xff] %vm503_vm0, %v3665_v56  ;;  %v3218_v5 = vadd.f32 %v5865_v2, %v3186_v55  ;;  %v3058_v12 = vpop.f32.mrb[89].mxu1  ;;  %v3195_v2 = vld [vmem:[#allocation3 + $0x90] sm:$0xff] }
 0x1b9   : > { %3696 = vst.msk [vmem:[#allocation3 + $0x10] sm:$0xff] %vm503_vm0, %v3664_v37  ;;  %v3217_v34 = vadd.f32 %v3185_v33, %v3058_v12  ;;  %v3635_v19 = vld [vmem:[#allocation3 + $0x28] sm:$0xff] }
 0x1ba   : > { %3250 = vst.msk [vmem:[#allocation3 + $0x48] sm:$0xff] %vm503_vm0, %v3218_v5  ;;  %v3667_v4 = vadd.f32 %v5911_v32, %v3635_v19  ;;  %v3634_v43 = vld [vmem:[#allocation3 + $0x20] sm:$0xff] }
 0x1bb   : > { %v5917_v3 = vpop.f32.mrb[88].mxu0  ;;  %3249 = vst.msk [vmem:[#allocation3 + $0x40] sm:$0xff] %vm503_vm0, %v3217_v34  ;;  %v3666_v16 = vadd.f32 %v3634_v43, %v3491_v52  ;;  %v5868_v50 = vpop.f32.mrb[90].mxu1  ;;  %v3198_v43 = vld [vmem:[#allocation3 + $0xa8] sm:$0xff] }
 0x1bc   : > { %v3511_v47 = vpop.f32.mrb[89].mxu0  ;;  %3699 = vst.msk [vmem:[#allocation3 + $0x28] sm:$0xff] %vm503_vm0, %v3667_v4  ;;  %v3220_v17 = vadd.f32 %v5868_v50, %v3188_v51  ;;  %v3068_v13 = vpop.f32.mrb[91].mxu1  ;;  %v3197_v50 = vld [vmem:[#allocation3 + $0xa0] sm:$0xff] }
 0x1bd   : > { %3698 = vst.msk [vmem:[#allocation3 + $0x20] sm:$0xff] %vm503_vm0, %v3666_v16  ;;  %v3219_v45 = vadd.f32 %v3187_v44, %v3068_v13  ;;  %v3637_v11 = vld [vmem:[#allocation3 + $0x38] sm:$0xff] }
 0x1be   : > { %3252 = vst.msk [vmem:[#allocation3 + $0x58] sm:$0xff] %vm503_vm0, %v3220_v17  ;;  %v3669_v35 = vadd.f32 %v5914_v7, %v3637_v11  ;;  %v3636_v54 = vld [vmem:[#allocation3 + $0x30] sm:$0xff] }
 0x1bf   : > { %v5920_v48 = vpop.f32.mrb[90].mxu0  ;;  %3251 = vst.msk [vmem:[#allocation3 + $0x50] sm:$0xff] %vm503_vm0, %v3219_v45  ;;  %v3668_v62 = vadd.f32 %v3636_v54, %v3501_v46  ;;  %v5871_v36 = vpop.f32.mrb[92].mxu1  ;;  %v3200_v54 = vld [vmem:[#allocation3 + $0xb8] sm:$0xff] }
 0x1c0   : > { %v3521_v10 = vpop.f32.mrb[91].mxu0  ;;  %3701 = vst.msk [vmem:[#allocation3 + $0x38] sm:$0xff] %vm503_vm0, %v3669_v35  ;;  %v3222_v9 = vadd.f32 %v5871_v36, %v3190_v61  ;;  %v3078_v60 = vpop.f32.mrb[93].mxu1  ;;  %v3199_v36 = vld [vmem:[#allocation3 + $0xb0] sm:$0xff] }
 0x1c1   : > { %3700 = vst.msk [vmem:[#allocation3 + $0x30] sm:$0xff] %vm503_vm0, %v3668_v62  ;;  %v3221_v22 = vadd.f32 %v3189_v25, %v3078_v60  ;;  %v3639_v23 = vld [vmem:[#allocation3 + $0x48] sm:$0xff] }
 0x1c2   : > { %3254 = vst.msk [vmem:[#allocation3 + $0x68] sm:$0xff] %vm503_vm0, %v3222_v9  ;;  %v3671_v28 = vadd.f32 %v5917_v3, %v3639_v23  ;;  %v3638_v29 = vld [vmem:[#allocation3 + $0x40] sm:$0xff] }
 0x1c3   : > { %v5923_v14 = vpop.f32.mrb[92].mxu0  ;;  %3253 = vst.msk [vmem:[#allocation3 + $0x60] sm:$0xff] %vm503_vm0, %v3221_v22  ;;  %v3670_v40 = vadd.f32 %v3638_v29, %v3511_v47  ;;  %v5874_v31 = vpop.f32.mrb[94].mxu1  ;;  %v3202_v29 = vld [vmem:[#allocation3 + $0xc8] sm:$0xff] }
 0x1c4   : > { %v3531_v18 = vpop.f32.mrb[93].mxu0  ;;  %3703 = vst.msk [vmem:[#allocation3 + $0x48] sm:$0xff] %vm503_vm0, %v3671_v28  ;;  %v3224_v21 = vadd.f32 %v5874_v31, %v3192_v53  ;;  %v3088_v57 = vpop.f32.mrb[95].mxu1  ;;  %v3201_v31 = vld [vmem:[#allocation3 + $0xc0] sm:$0xff] }
 0x1c5   : > { %3702 = vst.msk [vmem:[#allocation3 + $0x40] sm:$0xff] %vm503_vm0, %v3670_v40  ;;  %v3223_v26 = vadd.f32 %v3191_v41, %v3088_v57  ;;  %v3641_v15 = vld [vmem:[#allocation3 + $0x58] sm:$0xff] }
 0x1c6   : > { %3256 = vst.msk [vmem:[#allocation3 + $0x78] sm:$0xff] %vm503_vm0, %v3224_v21  ;;  %v3673_v49 = vadd.f32 %v5920_v48, %v3641_v15  ;;  %v3640_v30 = vld [vmem:[#allocation3 + $0x50] sm:$0xff] }
 0x1c7   : > { %v5926_v27 = vpop.f32.mrb[94].mxu0  ;;  %3255 = vst.msk [vmem:[#allocation3 + $0x70] sm:$0xff] %vm503_vm0, %v3223_v26  ;;  %v3672_v32 = vadd.f32 %v3640_v30, %v3521_v10  ;;  %v5877_v24 = vpop.f32.mrb[96].mxu1  ;;  %v3204_v30 = vld [vmem:[#allocation3 + $0xd8] sm:$0xff] }
 0x1c8   : > { %v3541_v20 = vpop.f32.mrb[95].mxu0  ;;  %3705 = vst.msk [vmem:[#allocation3 + $0x58] sm:$0xff] %vm503_vm0, %v3673_v49  ;;  %v3226_v52 = vadd.f32 %v5877_v24, %v3194_v58  ;;  %v3098_v59 = vpop.f32.mrb[97].mxu1  ;;  %v3203_v24 = vld [vmem:[#allocation3 + $0xd0] sm:$0xff] }
 0x1c9   : > { %3704 = vst.msk [vmem:[#allocation3 + $0x50] sm:$0xff] %vm503_vm0, %v3672_v32  ;;  %v3225_v39 = vadd.f32 %v3193_v38, %v3098_v59  ;;  %v3643_v6 = vld [vmem:[#allocation3 + $0x68] sm:$0xff] }
 0x1ca   : > { %3258 = vst.msk [vmem:[#allocation3 + $0x88] sm:$0xff] %vm503_vm0, %v3226_v52  ;;  %v3675_v1 = vadd.f32 %v5923_v14, %v3643_v6  ;;  %v3642_v63 = vld [vmem:[#allocation3 + $0x60] sm:$0xff] }
 0x1cb   : > { %v5929_v0 = vpop.f32.mrb[96].mxu0  ;;  %3257 = vst.msk [vmem:[#allocation3 + $0x80] sm:$0xff] %vm503_vm0, %v3225_v39  ;;  %v3674_v7 = vadd.f32 %v3642_v63, %v3531_v18  ;;  %v5880_v56 = vpop.f32.mrb[98].mxu1  ;;  %v3206_v63 = vld [vmem:[#allocation3 + $0xe8] sm:$0xff] }
 0x1cc   : > { %v3551_v8 = vpop.f32.mrb[97].mxu0  ;;  %3707 = vst.msk [vmem:[#allocation3 + $0x68] sm:$0xff] %vm503_vm0, %v3675_v1  ;;  %v3228_v46 = vadd.f32 %v5880_v56, %v3196_v42  ;;  %v3108_v37 = vpop.f32.mrb[99].mxu1  ;;  %v3205_v56 = vld [vmem:[#allocation3 + $0xe0] sm:$0xff] }
 0x1cd   : > { %3706 = vst.msk [vmem:[#allocation3 + $0x60] sm:$0xff] %vm503_vm0, %v3674_v7  ;;  %v3227_v55 = vadd.f32 %v3195_v2, %v3108_v37  ;;  %v3645_v5 = vld [vmem:[#allocation3 + $0x78] sm:$0xff] }
 0x1ce   : > { %3260 = vst.msk [vmem:[#allocation3 + $0x98] sm:$0xff] %vm503_vm0, %v3228_v46  ;;  %v3677_v33 = vadd.f32 %v5926_v27, %v3645_v5  ;;  %v3644_v34 = vld [vmem:[#allocation3 + $0x70] sm:$0xff] }
 0x1cf   : > { %v5932_v12 = vpop.f32.mrb[98].mxu0  ;;  %3259 = vst.msk [vmem:[#allocation3 + $0x90] sm:$0xff] %vm503_vm0, %v3227_v55  ;;  %v3676_v3 = vadd.f32 %v3644_v34, %v3541_v20  ;;  %v5883_v4 = vpop.f32.mrb[100].mxu1  ;;  %v3208_v34 = vld [vmem:[#allocation3 + $0xf8] sm:$0xff] }
 0x1d0   : > { %v3561_v19 = vpop.f32.mrb[99].mxu0  ;;  %3709 = vst.msk [vmem:[#allocation3 + $0x78] sm:$0xff] %vm503_vm0, %v3677_v33  ;;  %v3230_v47 = vadd.f32 %v5883_v4, %v3198_v43  ;;  %v3118_v16 = vpop.f32.mrb[101].mxu1  ;;  %v3207_v4 = vld [vmem:[#allocation3 + $0xf0] sm:$0xff] }
 0x1d1   : > { %3708 = vst.msk [vmem:[#allocation3 + $0x70] sm:$0xff] %vm503_vm0, %v3676_v3  ;;  %v3229_v51 = vadd.f32 %v3197_v50, %v3118_v16  ;;  %v3647_v17 = vld [vmem:[#allocation3 + $0x88] sm:$0xff] }
 0x1d2   : > { %3262 = vst.msk [vmem:[#allocation3 + $0xa8] sm:$0xff] %vm503_vm0, %v3230_v47  ;;  %v3679_v44 = vadd.f32 %v5929_v0, %v3647_v17  ;;  %v3646_v45 = vld [vmem:[#allocation3 + $0x80] sm:$0xff] }
 0x1d3   : > { %v5935_v13 = vpop.f32.mrb[100].mxu0  ;;  %3261 = vst.msk [vmem:[#allocation3 + $0xa0] sm:$0xff] %vm503_vm0, %v3229_v51  ;;  %v3678_v48 = vadd.f32 %v3646_v45, %v3551_v8  ;;  %v5886_v35 = vpop.f32.mrb[102].mxu1  ;;  %v4083_v45 = vld [vmem:[#allocation3 + $0x8] sm:$0xff] }
 0x1d4   : > { %v3571_v11 = vpop.f32.mrb[101].mxu0  ;;  %3711 = vst.msk [vmem:[#allocation3 + $0x88] sm:$0xff] %vm503_vm0, %v3679_v44  ;;  %v3232_v10 = vadd.f32 %v5886_v35, %v3200_v54  ;;  %v3128_v62 = vpop.f32.mrb[103].mxu1  ;;  %v4082_v35 = vld [vmem:[#allocation3] sm:$0xff] }
 0x1d5   : > { %3710 = vst.msk [vmem:[#allocation3 + $0x80] sm:$0xff] %vm503_vm0, %v3678_v48  ;;  %v3231_v61 = vadd.f32 %v3199_v36, %v3128_v62  ;;  %v3649_v9 = vld [vmem:[#allocation3 + $0x98] sm:$0xff] }
 0x1d6   : > { %3264 = vst.msk [vmem:[#allocation3 + $0xb8] sm:$0xff] %vm503_vm0, %v3232_v10  ;;  %v3681_v25 = vadd.f32 %v5932_v12, %v3649_v9  ;;  %v3648_v22 = vld [vmem:[#allocation3 + $0x90] sm:$0xff] }
 0x1d7   : > { %v5938_v60 = vpop.f32.mrb[102].mxu0  ;;  %3263 = vst.msk [vmem:[#allocation3 + $0xb0] sm:$0xff] %vm503_vm0, %v3231_v61  ;;  %v3680_v14 = vadd.f32 %v3648_v22, %v3561_v19  ;;  %v5889_v28 = vpop.f32.mrb[104].mxu1  ;;  %v4085_v22 = vld [vmem:[#allocation3 + $0x18] sm:$0xff] }
 0x1d8   : > { %v3581_v23 = vpop.f32.mrb[103].mxu0  ;;  %3713 = vst.msk [vmem:[#allocation3 + $0x98] sm:$0xff] %vm503_vm0, %v3681_v25  ;;  %v3234_v18 = vadd.f32 %v5889_v28, %v3202_v29  ;;  %v3138_v40 = vpop.f32.mrb[105].mxu1  ;;  %v4084_v28 = vld [vmem:[#allocation3 + $0x10] sm:$0xff] }
 0x1d9   : > { %3712 = vst.msk [vmem:[#allocation3 + $0x90] sm:$0xff] %vm503_vm0, %v3680_v14  ;;  %v3233_v53 = vadd.f32 %v3201_v31, %v3138_v40  ;;  %v3651_v21 = vld [vmem:[#allocation3 + $0xa8] sm:$0xff] }
 0x1da   : > { %3266 = vst.msk [vmem:[#allocation3 + $0xc8] sm:$0xff] %vm503_vm0, %v3234_v18  ;;  %v3683_v41 = vadd.f32 %v5935_v13, %v3651_v21  ;;  %v3650_v26 = vld [vmem:[#allocation3 + $0xa0] sm:$0xff] }
 0x1db   : > { %v5941_v57 = vpop.f32.mrb[104].mxu0  ;;  %3265 = vst.msk [vmem:[#allocation3 + $0xc0] sm:$0xff] %vm503_vm0, %v3233_v53  ;;  %v3682_v27 = vadd.f32 %v3650_v26, %v3571_v11  ;;  %v5892_v49 = vpop.f32.mrb[106].mxu1  ;;  %v4087_v26 = vld [vmem:[#allocation3 + $0x28] sm:$0xff] }
 0x1dc   : > { %v3591_v15 = vpop.f32.mrb[105].mxu0  ;;  %3715 = vst.msk [vmem:[#allocation3 + $0xa8] sm:$0xff] %vm503_vm0, %v3683_v41  ;;  %v3236_v20 = vadd.f32 %v5892_v49, %v3204_v30  ;;  %v3148_v32 = vpop.f32.mrb[107].mxu1  ;;  %v4086_v49 = vld [vmem:[#allocation3 + $0x20] sm:$0xff] }
 0x1dd   : > { %3714 = vst.msk [vmem:[#allocation3 + $0xa0] sm:$0xff] %vm503_vm0, %v3682_v27  ;;  %v3235_v58 = vadd.f32 %v3203_v24, %v3148_v32  ;;  %v3653_v52 = vld [vmem:[#allocation3 + $0xb8] sm:$0xff] }
 0x1de   : > { %3268 = vst.msk [vmem:[#allocation3 + $0xd8] sm:$0xff] %vm503_vm0, %v3236_v20  ;;  %v3685_v38 = vadd.f32 %v5938_v60, %v3653_v52  ;;  %v3652_v39 = vld [vmem:[#allocation3 + $0xb0] sm:$0xff] }
 0x1df   : > { %v5944_v59 = vpop.f32.mrb[106].mxu0  ;;  %3267 = vst.msk [vmem:[#allocation3 + $0xd0] sm:$0xff] %vm503_vm0, %v3235_v58  ;;  %v3684_v0 = vadd.f32 %v3652_v39, %v3581_v23  ;;  %v5895_v1 = vpop.f32.mrb[108].mxu1  ;;  %v4089_v39 = vld [vmem:[#allocation3 + $0x38] sm:$0xff] }
 0x1e0   : > { %v3601_v6 = vpop.f32.mrb[107].mxu0  ;;  %3717 = vst.msk [vmem:[#allocation3 + $0xb8] sm:$0xff] %vm503_vm0, %v3685_v38  ;;  %v3238_v8 = vadd.f32 %v5895_v1, %v3206_v63  ;;  %v3158_v7 = vpop.f32.mrb[109].mxu1  ;;  %v4088_v1 = vld [vmem:[#allocation3 + $0x30] sm:$0xff] }
 0x1e1   : > { %3716 = vst.msk [vmem:[#allocation3 + $0xb0] sm:$0xff] %vm503_vm0, %v3684_v0  ;;  %v3237_v42 = vadd.f32 %v3205_v56, %v3158_v7  ;;  %v3655_v46 = vld [vmem:[#allocation3 + $0xc8] sm:$0xff] }
 0x1e2   : > { %3270 = vst.msk [vmem:[#allocation3 + $0xe8] sm:$0xff] %vm503_vm0, %v3238_v8  ;;  %v3687_v2 = vadd.f32 %v5941_v57, %v3655_v46  ;;  %v3654_v55 = vld [vmem:[#allocation3 + $0xc0] sm:$0xff] }
 0x1e3   : > { %v5947_v37 = vpop.f32.mrb[108].mxu0  ;;  %3269 = vst.msk [vmem:[#allocation3 + $0xe0] sm:$0xff] %vm503_vm0, %v3237_v42  ;;  %v3686_v12 = vadd.f32 %v3654_v55, %v3591_v15  ;;  %v5898_v33 = vpop.f32.mrb[110].mxu1  ;;  %v4091_v55 = vld [vmem:[#allocation3 + $0x48] sm:$0xff] }
 0x1e4   : > { %v3611_v5 = vpop.f32.mrb[109].mxu0  ;;  %3719 = vst.msk [vmem:[#allocation3 + $0xc8] sm:$0xff] %vm503_vm0, %v3687_v2  ;;  %v3240_v19 = vadd.f32 %v5898_v33, %v3208_v34  ;;  %v3168_v3 = vpop.f32.mrb[111].mxu1  ;;  %v4090_v33 = vld [vmem:[#allocation3 + $0x40] sm:$0xff]  ;;  %v7521_v34 = vld [vmem:[%s7728_s4] ss:$0 sm:$0xff] }
 0x1e5   : > { %3718 = vst.msk [vmem:[#allocation3 + $0xc0] sm:$0xff] %vm503_vm0, %v3686_v12  ;;  %v3239_v43 = vadd.f32 %v3207_v4, %v3168_v3  ;;  %v3657_v47 = vld [vmem:[#allocation3 + $0xd8] sm:$0xff] }
 0x1e6   : > { %3272 = vst.msk [vmem:[#allocation3 + $0xf8] sm:$0xff] %vm503_vm0, %v3240_v19  ;;  %v3689_v50 = vadd.f32 %v5944_v59, %v3657_v47  ;;  %v3656_v51 = vld [vmem:[#allocation3 + $0xd0] sm:$0xff] }
 0x1e7   : > { %v5950_v16 = vpop.f32.mrb[110].mxu0  ;;  %3271 = vst.msk [vmem:[#allocation3 + $0xf0] sm:$0xff] %vm503_vm0, %v3239_v43  ;;  %v3688_v13 = vadd.f32 %v3656_v51, %v3601_v6  ;;  %v5957_v44 = vpop.f32.mrb[112].mxu1  ;;  %v7528_v51 = vld [vmem:[%s7729_s5] ss:$0 sm:$0xff] }
 0x1e8   : > { %v3621_v17 = vpop.f32.mrb[111].mxu0  ;;  %3721 = vst.msk [vmem:[#allocation3 + $0xd8] sm:$0xff] %vm503_vm0, %v3689_v50  ;;  %v4115_v11 = vadd.f32 %v5957_v44, %v4083_v45  ;;  %v3923_v48 = vpop.f32.mrb[113].mxu1  ;;  %v4093_v44 = vld [vmem:[#allocation3 + $0x58] sm:$0xff] }
 0x1e9   : > { %3720 = vst.msk [vmem:[#allocation3 + $0xd0] sm:$0xff] %vm503_vm0, %v3688_v13  ;;  %v3659_v54 = vld [vmem:[#allocation3 + $0xe8] sm:$0xff]  ;;  %v4114_v10 = vadd.f32 %v4082_v35, %v3923_v48 }
 0x1ea   : > { %4147 = vst.msk [vmem:[#allocation3 + $0x8] sm:$0xff] %vm503_vm0, %v4115_v11  ;;  %v3691_v36 = vadd.f32 %v5947_v37, %v3659_v54  ;;  %v3658_v61 = vld [vmem:[#allocation3 + $0xe0] sm:$0xff]  ;;  %v4092_v54 = vld [vmem:[#allocation3 + $0x50] sm:$0xff] }
 0x1eb   : > { %v6009_v62 = vpop.f32.mrb[112].mxu0  ;;  %4146 = vst.msk [vmem:[#allocation3] sm:$0xff] %vm503_vm0, %v4114_v10  ;;  %v3690_v60 = vadd.f32 %v3658_v61, %v3611_v5  ;;  %v5960_v25 = vpop.f32.mrb[114].mxu1 }
 0x1ec   : > { %v4375_v9 = vpop.f32.mrb[113].mxu0  ;;  %3723 = vst.msk [vmem:[#allocation3 + $0xe8] sm:$0xff] %vm503_vm0, %v3691_v36  ;;  %v4117_v23 = vadd.f32 %v5960_v25, %v4085_v22  ;;  %v3933_v14 = vpop.f32.mrb[115].mxu1 }
 0x1ed   : > { %3722 = vst.msk [vmem:[#allocation3 + $0xe0] sm:$0xff] %vm503_vm0, %v3690_v60  ;;  %v3661_v29 = vld [vmem:[#allocation3 + $0xf8] sm:$0xff]  ;;  %v4116_v18 = vadd.f32 %v4084_v28, %v3933_v14 }
 0x1ee   : > { %4149 = vst.msk [vmem:[#allocation3 + $0x18] sm:$0xff] %vm503_vm0, %v4117_v23  ;;  %v3693_v31 = vadd.f32 %v5950_v16, %v3661_v29  ;;  %v3660_v53 = vld [vmem:[#allocation3 + $0xf0] sm:$0xff] }
 0x1ef   : > { %v6012_v40 = vpop.f32.mrb[114].mxu0  ;;  %4148 = vst.msk [vmem:[#allocation3 + $0x10] sm:$0xff] %vm503_vm0, %v4116_v18  ;;  %v3692_v57 = vadd.f32 %v3660_v53, %v3621_v17  ;;  %v5963_v41 = vpop.f32.mrb[116].mxu1  ;;  %v4095_v18 = vld [vmem:[#allocation3 + $0x68] sm:$0xff] }
 0x1f0   : > { %v4385_v21 = vpop.f32.mrb[115].mxu0  ;;  %3725 = vst.msk [vmem:[#allocation3 + $0xf8] sm:$0xff] %vm503_vm0, %v3693_v31  ;;  %v4119_v15 = vadd.f32 %v5963_v41, %v4087_v26  ;;  %v3943_v27 = vpop.f32.mrb[117].mxu1  ;;  %v4094_v41 = vld [vmem:[#allocation3 + $0x60] sm:$0xff] }
 0x1f1   : > { %3724 = vst.msk [vmem:[#allocation3 + $0xf0] sm:$0xff] %vm503_vm0, %v3692_v57  ;;  %v4118_v30 = vadd.f32 %v4086_v49, %v3943_v27  ;;  %v4535_v20 = vld [vmem:[#allocation3 + $0x8] sm:$0xff] }
 0x1f2   : > { %4151 = vst.msk [vmem:[#allocation3 + $0x28] sm:$0xff] %vm503_vm0, %v4119_v15  ;;  %v4567_v24 = vadd.f32 %v6009_v62, %v4535_v20  ;;  %v4534_v58 = vld [vmem:[#allocation3] sm:$0xff] }
 0x1f3   : > { %v6015_v32 = vpop.f32.mrb[116].mxu0  ;;  %4150 = vst.msk [vmem:[#allocation3 + $0x20] sm:$0xff] %vm503_vm0, %v4118_v30  ;;  %v4566_v59 = vadd.f32 %v4534_v58, %v4375_v9  ;;  %v5966_v38 = vpop.f32.mrb[118].mxu1 }
 0x1f4   : > { %v4395_v52 = vpop.f32.mrb[117].mxu0  ;;  %4599 = vst.msk [vmem:[#allocation3 + $0x8] sm:$0xff] %vm503_vm0, %v4567_v24  ;;  %v4121_v6 = vadd.f32 %v5966_v38, %v4089_v39  ;;  %v3953_v0 = vpop.f32.mrb[119].mxu1 }
 0x1f5   : > { %4598 = vst.msk [vmem:[#allocation3] sm:$0xff] %vm503_vm0, %v4566_v59  ;;  %v4120_v63 = vadd.f32 %v4088_v1, %v3953_v0  ;;  %v4537_v8 = vld [vmem:[#allocation3 + $0x18] sm:$0xff] }
 0x1f6   : > { %4153 = vst.msk [vmem:[#allocation3 + $0x38] sm:$0xff] %vm503_vm0, %v4121_v6  ;;  %v4569_v56 = vadd.f32 %v6012_v40, %v4537_v8  ;;  %v4536_v42 = vld [vmem:[#allocation3 + $0x10] sm:$0xff]  ;;  %v4097_v6 = vld [vmem:[#allocation3 + $0x78] sm:$0xff] }
 0x1f7   : > { %v6018_v7 = vpop.f32.mrb[118].mxu0  ;;  %4152 = vst.msk [vmem:[#allocation3 + $0x30] sm:$0xff] %vm503_vm0, %v4120_v63  ;;  %v4568_v37 = vadd.f32 %v4536_v42, %v4385_v21  ;;  %v5969_v2 = vpop.f32.mrb[120].mxu1 }
 0x1f8   : > { %v4405_v46 = vpop.f32.mrb[119].mxu0  ;;  %4601 = vst.msk [vmem:[#allocation3 + $0x18] sm:$0xff] %vm503_vm0, %v4569_v56  ;;  %v4123_v5 = vadd.f32 %v5969_v2, %v4091_v55  ;;  %v3963_v12 = vpop.f32.mrb[121].mxu1  ;;  %v4096_v56 = vld [vmem:[#allocation3 + $0x70] sm:$0xff] }
 0x1f9   : > { %4600 = vst.msk [vmem:[#allocation3 + $0x10] sm:$0xff] %vm503_vm0, %v4568_v37  ;;  %v4122_v19 = vadd.f32 %v4090_v33, %v3963_v12  ;;  %v4539_v3 = vld [vmem:[#allocation3 + $0x28] sm:$0xff] }
 0x1fa   : > { %4155 = vst.msk [vmem:[#allocation3 + $0x48] sm:$0xff] %vm503_vm0, %v4123_v5  ;;  %v4571_v43 = vadd.f32 %v6015_v32, %v4539_v3  ;;  %v4538_v47 = vld [vmem:[#allocation3 + $0x20] sm:$0xff] }
 0x1fb   : > { %v6021_v4 = vpop.f32.mrb[120].mxu0  ;;  %v4631_v50 = vld [vmem:[#allocation3 + $0x8] sm:$0xff]  ;;  %4154 = vst.msk [vmem:[#allocation3 + $0x40] sm:$0xff] %vm503_vm0, %v4122_v19  ;;  %v4570_v17 = vadd.f32 %v4538_v47, %v4395_v52  ;;  %v5972_v13 = vpop.f32.mrb[122].mxu1 }
 0x1fc   : > { %v4415_v16 = vpop.f32.mrb[121].mxu0  ;;  %v4670_v45 = vmul.f32 %v7521_v34, %v4631_v50  ;;  %v4630_v11 = vld [vmem:[#allocation3] sm:$0xff]  ;;  %4603 = vst.msk [vmem:[#allocation3 + $0x28] sm:$0xff] %vm503_vm0, %v4571_v43  ;;  %v4125_v48 = vadd.f32 %v5972_v13, %v4093_v44  ;;  %v3973_v35 = vpop.f32.mrb[123].mxu1 }
 0x1fd   : > { %v4669_v10 = vmul.f32 %v7521_v34, %v4630_v11  ;;  %4602 = vst.msk [vmem:[#allocation3 + $0x20] sm:$0xff] %vm503_vm0, %v4570_v17  ;;  %v4124_v62 = vadd.f32 %v4092_v54, %v3973_v35  ;;  %v4541_v36 = vld [vmem:[#allocation3 + $0x38] sm:$0xff]  ;;  %v4098_v11 = vld [vmem:[#allocation3 + $0x80] sm:$0xff] }
 0x1fe   : > { %v4709_v9 = vadd.f32 %v7528_v51, %v4670_v45  ;;  %4157 = vst.msk [vmem:[#allocation3 + $0x58] sm:$0xff] %vm503_vm0, %v4125_v48  ;;  %v4573_v60 = vadd.f32 %v6018_v7, %v4541_v36  ;;  %v4540_v25 = vld [vmem:[#allocation3 + $0x30] sm:$0xff] }
 0x1ff   : > { %v6024_v61 = vpop.f32.mrb[122].mxu0  ;;  %v4708_v23 = vadd.f32 %v7528_v51, %v4669_v10  ;;  %v4633_v14 = vld [vmem:[#allocation3 + $0x18] sm:$0xff]  ;;  %4156 = vst.msk [vmem:[#allocation3 + $0x50] sm:$0xff] %vm503_vm0, %v4124_v62  ;;  %v4572_v28 = vadd.f32 %v4540_v25, %v4405_v46  ;;  %v5975_v29 = vpop.f32.mrb[124].mxu1 }
 0x200   : > { %v4425_v22 = vpop.f32.mrb[123].mxu0  ;;  %v4741_v40 = vmax.f32 %v4709_v9, 0.0  ;;  %v4672_v31 = vmul.f32 %v7521_v34, %v4633_v14  ;;  %v4632_v53 = vld [vmem:[#allocation3 + $0x10] sm:$0xff]  ;;  %4605 = vst.msk [vmem:[#allocation3 + $0x38] sm:$0xff] %vm503_vm0, %v4573_v60  ;;  %v4127_v21 = vadd.f32 %v5975_v29, %v4095_v18  ;;  %v3983_v57 = vpop.f32.mrb[125].mxu1 }
 0x201   : > { %v4740_v26 = vmax.f32 %v4708_v23, 0.0  ;;  %v4671_v15 = vmul.f32 %v7521_v34, %v4632_v53  ;;  %4604 = vst.msk [vmem:[#allocation3 + $0x30] sm:$0xff] %vm503_vm0, %v4572_v28  ;;  %v4126_v27 = vadd.f32 %v4094_v41, %v3983_v57  ;;  %v4543_v49 = vld [vmem:[#allocation3 + $0x48] sm:$0xff]  ;;  %v4101_v28 = vld [vmem:[#allocation3 + $0x98] sm:$0xff] }
 0x202   : > { %4773 = vst.msk [vmem:[%s7541_s20 + $0x8] sm:$0xff] %vm503_vm0, %v4741_v40  ;;  %v4711_v20 = vadd.f32 %v7528_v51, %v4672_v31  ;;  %4159 = vst.msk [vmem:[#allocation3 + $0x68] sm:$0xff] %vm503_vm0, %v4127_v21  ;;  %v4575_v32 = vadd.f32 %v6021_v4, %v4543_v49  ;;  %v4542_v24 = vld [vmem:[#allocation3 + $0x40] sm:$0xff]  ;;  %v4100_v21 = vld [vmem:[#allocation3 + $0x90] sm:$0xff] }
 0x203   : > { %v6027_v30 = vpop.f32.mrb[124].mxu0  ;;  %4772 = vst.msk [vmem:[%s7541_s20] sm:$0xff] %vm503_vm0, %v4740_v26  ;;  %v4710_v52 = vadd.f32 %v7528_v51, %v4671_v15  ;;  %v4635_v59 = vld [vmem:[#allocation3 + $0x28] sm:$0xff]  ;;  %4158 = vst.msk [vmem:[#allocation3 + $0x60] sm:$0xff] %vm503_vm0, %v4126_v27  ;;  %v4574_v38 = vadd.f32 %v4542_v24, %v4415_v16  ;;  %v5978_v39 = vpop.f32.mrb[126].mxu1 }
 0x204   : > { %v4435_v58 = vpop.f32.mrb[125].mxu0  ;;  %v4743_v0 = vmax.f32 %v4711_v20, 0.0  ;;  %v4674_v1 = vmul.f32 %v7521_v34, %v4635_v59  ;;  %v4634_v63 = vld [vmem:[#allocation3 + $0x20] sm:$0xff]  ;;  %4607 = vst.msk [vmem:[#allocation3 + $0x48] sm:$0xff] %vm503_vm0, %v4575_v32  ;;  %v4129_v8 = vadd.f32 %v5978_v39, %v4097_v6  ;;  %v3993_v7 = vpop.f32.mrb[127].mxu1  ;;  %v4099_v16 = vld [vmem:[#allocation3 + $0x88] sm:$0xff] }
 0x205   : > { %v4742_v42 = vmax.f32 %v4710_v52, 0.0  ;;  %v4673_v46 = vmul.f32 %v7521_v34, %v4634_v63  ;;  %4606 = vst.msk [vmem:[#allocation3 + $0x40] sm:$0xff] %vm503_vm0, %v4574_v38  ;;  %v4128_v37 = vadd.f32 %v4096_v56, %v3993_v7  ;;  %v4545_v2 = vld [vmem:[#allocation3 + $0x58] sm:$0xff]  ;;  %v4103_v38 = vld [vmem:[#allocation3 + $0xa8] sm:$0xff] }
 0x206   : > { %4775 = vst.msk [vmem:[%s7541_s20 + $0x18] sm:$0xff] %vm503_vm0, %v4743_v0  ;;  %v4713_v5 = vadd.f32 %v7528_v51, %v4674_v1  ;;  %4161 = vst.msk [vmem:[#allocation3 + $0x78] sm:$0xff] %vm503_vm0, %v4129_v8  ;;  %v4577_v12 = vadd.f32 %v6024_v61, %v4545_v2  ;;  %v4544_v33 = vld [vmem:[#allocation3 + $0x50] sm:$0xff]  ;;  %v4102_v8 = vld [vmem:[#allocation3 + $0xa0] sm:$0xff] }
 0x207   : > { %v6030_v55 = vpop.f32.mrb[126].mxu0  ;;  %4774 = vst.msk [vmem:[%s7541_s20 + $0x10] sm:$0xff] %vm503_vm0, %v4742_v42  ;;  %v4712_v3 = vadd.f32 %v7528_v51, %v4673_v46  ;;  %v4637_v4 = vld [vmem:[#allocation3 + $0x38] sm:$0xff]  ;;  %4160 = vst.msk [vmem:[#allocation3 + $0x70] sm:$0xff] %vm503_vm0, %v4128_v37  ;;  %v4576_v43 = vadd.f32 %v4544_v33, %v4425_v22  ;;  %v5981_v47 = vpop.f32.mrb[128].mxu1 }
 0x208   : > { %v4445_v19 = vpop.f32.mrb[127].mxu0  ;;  %v4745_v50 = vmax.f32 %v4713_v5, 0.0  ;;  %v4676_v17 = vmul.f32 %v7521_v34, %v4637_v4  ;;  %v4636_v13 = vld [vmem:[#allocation3 + $0x30] sm:$0xff]  ;;  %4609 = vst.msk [vmem:[#allocation3 + $0x58] sm:$0xff] %vm503_vm0, %v4577_v12  ;;  %v4131_v44 = vadd.f32 %v5981_v47, %v4099_v16  ;;  %v4003_v45 = vpop.f32.mrb[129].mxu1 }
 0x209   : > { %v4744_v48 = vmax.f32 %v4712_v3, 0.0  ;;  %v4675_v35 = vmul.f32 %v7521_v34, %v4636_v13  ;;  %4608 = vst.msk [vmem:[#allocation3 + $0x50] sm:$0xff] %vm503_vm0, %v4576_v43  ;;  %v4130_v54 = vadd.f32 %v4098_v11, %v4003_v45  ;;  %v4547_v10 = vld [vmem:[#allocation3 + $0x68] sm:$0xff]  ;;  %v4105_v43 = vld [vmem:[#allocation3 + $0xb8] sm:$0xff] }
 0x20a   : > { %4777 = vst.msk [vmem:[%s7541_s20 + $0x28] sm:$0xff] %vm503_vm0, %v4745_v50  ;;  %v4715_v36 = vadd.f32 %v7528_v51, %v4676_v17  ;;  %4163 = vst.msk [vmem:[#allocation3 + $0x88] sm:$0xff] %vm503_vm0, %v4131_v44  ;;  %v4579_v61 = vadd.f32 %v6027_v30, %v4547_v10  ;;  %v4546_v9 = vld [vmem:[#allocation3 + $0x60] sm:$0xff]  ;;  %v4104_v44 = vld [vmem:[#allocation3 + $0xb0] sm:$0xff] }
 0x20b   : > { %v6033_v62 = vpop.f32.mrb[128].mxu0  ;;  %4776 = vst.msk [vmem:[%s7541_s20 + $0x20] sm:$0xff] %vm503_vm0, %v4744_v48  ;;  %v4714_v25 = vadd.f32 %v7528_v51, %v4675_v35  ;;  %v4639_v22 = vld [vmem:[#allocation3 + $0x48] sm:$0xff]  ;;  %4162 = vst.msk [vmem:[#allocation3 + $0x80] sm:$0xff] %vm503_vm0, %v4130_v54  ;;  %v4578_v23 = vadd.f32 %v4546_v9, %v4435_v58  ;;  %v5984_v14 = vpop.f32.mrb[130].mxu1 }
 0x20c   : > { %v4455_v60 = vpop.f32.mrb[129].mxu0  ;;  %v4747_v29 = vmax.f32 %v4715_v36, 0.0  ;;  %v4678_v18 = vmul.f32 %v7521_v34, %v4639_v22  ;;  %v4638_v40 = vld [vmem:[#allocation3 + $0x40] sm:$0xff]  ;;  %4611 = vst.msk [vmem:[#allocation3 + $0x68] sm:$0xff] %vm503_vm0, %v4579_v61  ;;  %v4133_v31 = vadd.f32 %v5984_v14, %v4101_v28  ;;  %v4013_v53 = vpop.f32.mrb[131].mxu1 }
 0x20d   : > { %v4746_v57 = vmax.f32 %v4714_v25, 0.0  ;;  %v4677_v41 = vmul.f32 %v7521_v34, %v4638_v40  ;;  %4610 = vst.msk [vmem:[#allocation3 + $0x60] sm:$0xff] %vm503_vm0, %v4578_v23  ;;  %v4132_v26 = vadd.f32 %v4100_v21, %v4013_v53  ;;  %v4549_v15 = vld [vmem:[#allocation3 + $0x78] sm:$0xff]  ;;  %v4107_v23 = vld [vmem:[#allocation3 + $0xc8] sm:$0xff] }
 0x20e   : > { %4779 = vst.msk [vmem:[%s7541_s20 + $0x38] sm:$0xff] %vm503_vm0, %v4747_v29  ;;  %v4717_v49 = vadd.f32 %v7528_v51, %v4678_v18  ;;  %4165 = vst.msk [vmem:[#allocation3 + $0x98] sm:$0xff] %vm503_vm0, %v4133_v31  ;;  %v4581_v30 = vadd.f32 %v6030_v55, %v4549_v15  ;;  %v4548_v20 = vld [vmem:[#allocation3 + $0x70] sm:$0xff]  ;;  %v4106_v31 = vld [vmem:[#allocation3 + $0xc0] sm:$0xff] }
 0x20f   : > { %v6036_v27 = vpop.f32.mrb[130].mxu0  ;;  %4778 = vst.msk [vmem:[%s7541_s20 + $0x30] sm:$0xff] %vm503_vm0, %v4746_v57  ;;  %v4716_v24 = vadd.f32 %v7528_v51, %v4677_v41  ;;  %v4641_v58 = vld [vmem:[#allocation3 + $0x58] sm:$0xff]  ;;  %4164 = vst.msk [vmem:[#allocation3 + $0x90] sm:$0xff] %vm503_vm0, %v4132_v26  ;;  %v4580_v52 = vadd.f32 %v4548_v20, %v4445_v19  ;;  %v5987_v59 = vpop.f32.mrb[132].mxu1 }
 0x210   : > { %v4465_v32 = vpop.f32.mrb[131].mxu0  ;;  %v4749_v39 = vmax.f32 %v4717_v49, 0.0  ;;  %v4680_v6 = vmul.f32 %v7521_v34, %v4641_v58  ;;  %v4640_v0 = vld [vmem:[#allocation3 + $0x50] sm:$0xff]  ;;  %4613 = vst.msk [vmem:[#allocation3 + $0x78] sm:$0xff] %vm503_vm0, %v4581_v30  ;;  %v4135_v1 = vadd.f32 %v5987_v59, %v4103_v38  ;;  %v4023_v63 = vpop.f32.mrb[133].mxu1 }
 0x211   : > { %v4748_v7 = vmax.f32 %v4716_v24, 0.0  ;;  %v4679_v56 = vmul.f32 %v7521_v34, %v4640_v0  ;;  %4612 = vst.msk [vmem:[#allocation3 + $0x70] sm:$0xff] %vm503_vm0, %v4580_v52  ;;  %v4134_v42 = vadd.f32 %v4102_v8, %v4023_v63  ;;  %v4551_v46 = vld [vmem:[#allocation3 + $0x88] sm:$0xff]  ;;  %v4109_v52 = vld [vmem:[#allocation3 + $0xd8] sm:$0xff] }
 0x212   : > { %4781 = vst.msk [vmem:[%s7541_s20 + $0x48] sm:$0xff] %vm503_vm0, %v4749_v39  ;;  %v4719_v2 = vadd.f32 %v7528_v51, %v4680_v6  ;;  %4167 = vst.msk [vmem:[#allocation3 + $0xa8] sm:$0xff] %vm503_vm0, %v4135_v1  ;;  %v4583_v55 = vadd.f32 %v6033_v62, %v4551_v46  ;;  %v4550_v5 = vld [vmem:[#allocation3 + $0x80] sm:$0xff]  ;;  %v4108_v1 = vld [vmem:[#allocation3 + $0xd0] sm:$0xff] }
 0x213   : > { %v6039_v37 = vpop.f32.mrb[132].mxu0  ;;  %4780 = vst.msk [vmem:[%s7541_s20 + $0x40] sm:$0xff] %vm503_vm0, %v4748_v7  ;;  %v4718_v33 = vadd.f32 %v7528_v51, %v4679_v56  ;;  %v4643_v19 = vld [vmem:[#allocation3 + $0x68] sm:$0xff]  ;;  %4166 = vst.msk [vmem:[#allocation3 + $0xa0] sm:$0xff] %vm503_vm0, %v4134_v42  ;;  %v4582_v3 = vadd.f32 %v4550_v5, %v4455_v60  ;;  %v5990_v4 = vpop.f32.mrb[134].mxu1 }
 0x214   : > { %v4475_v12 = vpop.f32.mrb[133].mxu0  ;;  %v4751_v47 = vmax.f32 %v4719_v2, 0.0  ;;  %v4682_v16 = vmul.f32 %v7521_v34, %v4643_v19  ;;  %v4642_v50 = vld [vmem:[#allocation3 + $0x60] sm:$0xff]  ;;  %4615 = vst.msk [vmem:[#allocation3 + $0x88] sm:$0xff] %vm503_vm0, %v4583_v55  ;;  %v4137_v17 = vadd.f32 %v5990_v4, %v4105_v43  ;;  %v4033_v13 = vpop.f32.mrb[135].mxu1 }
 0x215   : > { %v4750_v45 = vmax.f32 %v4718_v33, 0.0  ;;  %v4681_v11 = vmul.f32 %v7521_v34, %v4642_v50  ;;  %4614 = vst.msk [vmem:[#allocation3 + $0x80] sm:$0xff] %vm503_vm0, %v4582_v3  ;;  %v4136_v48 = vadd.f32 %v4104_v44, %v4033_v13  ;;  %v4553_v35 = vld [vmem:[#allocation3 + $0x98] sm:$0xff]  ;;  %v4111_v3 = vld [vmem:[#allocation3 + $0xe8] sm:$0xff] }
 0x216   : > { %4783 = vst.msk [vmem:[%s7541_s20 + $0x58] sm:$0xff] %vm503_vm0, %v4751_v47  ;;  %v4721_v10 = vadd.f32 %v7528_v51, %v4682_v16  ;;  %4169 = vst.msk [vmem:[#allocation3 + $0xb8] sm:$0xff] %vm503_vm0, %v4137_v17  ;;  %v4585_v62 = vadd.f32 %v6036_v27, %v4553_v35  ;;  %v4552_v36 = vld [vmem:[#allocation3 + $0x90] sm:$0xff]  ;;  %v4110_v17 = vld [vmem:[#allocation3 + $0xe0] sm:$0xff] }
 0x217   : > { %v6042_v54 = vpop.f32.mrb[134].mxu0  ;;  %4782 = vst.msk [vmem:[%s7541_s20 + $0x50] sm:$0xff] %vm503_vm0, %v4750_v45  ;;  %v4720_v9 = vadd.f32 %v7528_v51, %v4681_v11  ;;  %v4645_v60 = vld [vmem:[#allocation3 + $0x78] sm:$0xff]  ;;  %4168 = vst.msk [vmem:[#allocation3 + $0xb0] sm:$0xff] %vm503_vm0, %v4136_v48  ;;  %v4584_v25 = vadd.f32 %v4552_v36, %v4465_v32  ;;  %v5993_v22 = vpop.f32.mrb[136].mxu1 }
 0x218   : > { %v4485_v61 = vpop.f32.mrb[135].mxu0  ;;  %v4753_v14 = vmax.f32 %v4721_v10, 0.0  ;;  %v4684_v28 = vmul.f32 %v7521_v34, %v4645_v60  ;;  %v4644_v29 = vld [vmem:[#allocation3 + $0x70] sm:$0xff]  ;;  %4617 = vst.msk [vmem:[#allocation3 + $0x98] sm:$0xff] %vm503_vm0, %v4585_v62  ;;  %v4139_v18 = vadd.f32 %v5993_v22, %v4107_v23  ;;  %v4043_v40 = vpop.f32.mrb[137].mxu1 }
 0x219   : > { %v4752_v53 = vmax.f32 %v4720_v9, 0.0  ;;  %v4683_v21 = vmul.f32 %v7521_v34, %v4644_v29  ;;  %4616 = vst.msk [vmem:[#allocation3 + $0x90] sm:$0xff] %vm503_vm0, %v4584_v25  ;;  %v4138_v57 = vadd.f32 %v4106_v31, %v4043_v40  ;;  %v4555_v41 = vld [vmem:[#allocation3 + $0xa8] sm:$0xff]  ;;  %v4113_v25 = vld [vmem:[#allocation3 + $0xf8] sm:$0xff] }
 0x21a   : > { %4785 = vst.msk [vmem:[%s7541_s20 + $0x68] sm:$0xff] %vm503_vm0, %v4753_v14  ;;  %v4723_v15 = vadd.f32 %v7528_v51, %v4684_v28  ;;  %4171 = vst.msk [vmem:[#allocation3 + $0xc8] sm:$0xff] %vm503_vm0, %v4139_v18  ;;  %v4587_v27 = vadd.f32 %v6039_v37, %v4555_v41  ;;  %v4554_v49 = vld [vmem:[#allocation3 + $0xa0] sm:$0xff]  ;;  %v4112_v18 = vld [vmem:[#allocation3 + $0xf0] sm:$0xff] }
 0x21b   : > { %v6045_v26 = vpop.f32.mrb[136].mxu0  ;;  %4784 = vst.msk [vmem:[%s7541_s20 + $0x60] sm:$0xff] %vm503_vm0, %v4752_v53  ;;  %v4722_v20 = vadd.f32 %v7528_v51, %v4683_v21  ;;  %v4647_v32 = vld [vmem:[#allocation3 + $0x88] sm:$0xff]  ;;  %4170 = vst.msk [vmem:[#allocation3 + $0xc0] sm:$0xff] %vm503_vm0, %v4138_v57  ;;  %v4586_v24 = vadd.f32 %v4554_v49, %v4475_v12  ;;  %v5996_v58 = vpop.f32.mrb[138].mxu1 }
 0x21c   : > { %v4495_v30 = vpop.f32.mrb[137].mxu0  ;;  %v4755_v59 = vmax.f32 %v4723_v15, 0.0  ;;  %v4686_v38 = vmul.f32 %v7521_v34, %v4647_v32  ;;  %v4646_v39 = vld [vmem:[#allocation3 + $0x80] sm:$0xff]  ;;  %4619 = vst.msk [vmem:[#allocation3 + $0xa8] sm:$0xff] %vm503_vm0, %v4587_v27  ;;  %v4141_v6 = vadd.f32 %v5996_v58, %v4109_v52  ;;  %v4053_v0 = vpop.f32.mrb[139].mxu1 }
 0x21d   : > { %v4754_v63 = vmax.f32 %v4722_v20, 0.0  ;;  %v4685_v8 = vmul.f32 %v7521_v34, %v4646_v39  ;;  %4618 = vst.msk [vmem:[#allocation3 + $0xa0] sm:$0xff] %vm503_vm0, %v4586_v24  ;;  %v4140_v7 = vadd.f32 %v4108_v1, %v4053_v0  ;;  %v4557_v56 = vld [vmem:[#allocation3 + $0xb8] sm:$0xff] }
 0x21e   : > { %4787 = vst.msk [vmem:[%s7541_s20 + $0x78] sm:$0xff] %vm503_vm0, %v4755_v59  ;;  %v4725_v46 = vadd.f32 %v7528_v51, %v4686_v38  ;;  %4173 = vst.msk [vmem:[#allocation3 + $0xd8] sm:$0xff] %vm503_vm0, %v4141_v6  ;;  %v4589_v37 = vadd.f32 %v6042_v54, %v4557_v56  ;;  %v4556_v2 = vld [vmem:[#allocation3 + $0xb0] sm:$0xff] }
 0x21f   : > { %v6048_v42 = vpop.f32.mrb[138].mxu0  ;;  %4786 = vst.msk [vmem:[%s7541_s20 + $0x70] sm:$0xff] %vm503_vm0, %v4754_v63  ;;  %v4724_v5 = vadd.f32 %v7528_v51, %v4685_v8  ;;  %v4649_v12 = vld [vmem:[#allocation3 + $0x98] sm:$0xff]  ;;  %4172 = vst.msk [vmem:[#allocation3 + $0xd0] sm:$0xff] %vm503_vm0, %v4140_v7  ;;  %v4588_v33 = vadd.f32 %v4556_v2, %v4485_v61  ;;  %v5999_v19 = vpop.f32.mrb[140].mxu1 }
 0x220   : > { %v4505_v55 = vpop.f32.mrb[139].mxu0  ;;  %v4757_v4 = vmax.f32 %v4725_v46, 0.0  ;;  %v4688_v43 = vmul.f32 %v7521_v34, %v4649_v12  ;;  %v4648_v47 = vld [vmem:[#allocation3 + $0x90] sm:$0xff]  ;;  %4621 = vst.msk [vmem:[#allocation3 + $0xb8] sm:$0xff] %vm503_vm0, %v4589_v37  ;;  %v4143_v16 = vadd.f32 %v5999_v19, %v4111_v3  ;;  %v4063_v50 = vpop.f32.mrb[141].mxu1 }
 0x221   : > { %v4756_v13 = vmax.f32 %v4724_v5, 0.0  ;;  %v4687_v44 = vmul.f32 %v7521_v34, %v4648_v47  ;;  %4620 = vst.msk [vmem:[#allocation3 + $0xb0] sm:$0xff] %vm503_vm0, %v4588_v33  ;;  %v4142_v45 = vadd.f32 %v4110_v17, %v4063_v50  ;;  %v4559_v11 = vld [vmem:[#allocation3 + $0xc8] sm:$0xff] }
 0x222   : > { %4789 = vst.msk [vmem:[%s7541_s20 + $0x88] sm:$0xff] %vm503_vm0, %v4757_v4  ;;  %v4727_v35 = vadd.f32 %v7528_v51, %v4688_v43  ;;  %4175 = vst.msk [vmem:[#allocation3 + $0xe8] sm:$0xff] %vm503_vm0, %v4143_v16  ;;  %v4591_v54 = vadd.f32 %v6045_v26, %v4559_v11  ;;  %v4558_v10 = vld [vmem:[#allocation3 + $0xc0] sm:$0xff] }
 0x223   : > { %v6051_v48 = vpop.f32.mrb[140].mxu0  ;;  %4788 = vst.msk [vmem:[%s7541_s20 + $0x80] sm:$0xff] %vm503_vm0, %v4756_v13  ;;  %v4726_v36 = vadd.f32 %v7528_v51, %v4687_v44  ;;  %v4651_v61 = vld [vmem:[#allocation3 + $0xa8] sm:$0xff]  ;;  %4174 = vst.msk [vmem:[#allocation3 + $0xe0] sm:$0xff] %vm503_vm0, %v4142_v45  ;;  %v4590_v9 = vadd.f32 %v4558_v10, %v4495_v30  ;;  %v6002_v60 = vpop.f32.mrb[142].mxu1 }
 0x224   : > { %v4515_v62 = vpop.f32.mrb[141].mxu0  ;;  %v4759_v22 = vmax.f32 %v4727_v35, 0.0  ;;  %v4690_v23 = vmul.f32 %v7521_v34, %v4651_v61  ;;  %v4650_v14 = vld [vmem:[#allocation3 + $0xa0] sm:$0xff]  ;;  %4623 = vst.msk [vmem:[#allocation3 + $0xc8] sm:$0xff] %vm503_vm0, %v4591_v54  ;;  %v4145_v28 = vadd.f32 %v6002_v60, %v4113_v25  ;;  %v4073_v29 = vpop.f32.mrb[143].mxu1 }
 0x225   : > { %v4758_v40 = vmax.f32 %v4726_v36, 0.0  ;;  %v4689_v31 = vmul.f32 %v7521_v34, %v4650_v14  ;;  %4622 = vst.msk [vmem:[#allocation3 + $0xc0] sm:$0xff] %vm503_vm0, %v4590_v9  ;;  %v4144_v53 = vadd.f32 %v4112_v18, %v4073_v29  ;;  %v4561_v21 = vld [vmem:[#allocation3 + $0xd8] sm:$0xff] }
 0x226   : > { %4791 = vst.msk [vmem:[%s7541_s20 + $0x98] sm:$0xff] %vm503_vm0, %v4759_v22  ;;  %v4729_v41 = vadd.f32 %v7528_v51, %v4690_v23  ;;  %4177 = vst.msk [vmem:[#allocation3 + $0xf8] sm:$0xff] %vm503_vm0, %v4145_v28  ;;  %v4593_v26 = vadd.f32 %v6048_v42, %v4561_v21  ;;  %v4560_v15 = vld [vmem:[#allocation3 + $0xd0] sm:$0xff] }
 0x227   : > { %v6054_v57 = vpop.f32.mrb[142].mxu0  ;;  %4790 = vst.msk [vmem:[%s7541_s20 + $0x90] sm:$0xff] %vm503_vm0, %v4758_v40  ;;  %v4728_v49 = vadd.f32 %v7528_v51, %v4689_v31  ;;  %v4653_v30 = vld [vmem:[#allocation3 + $0xb8] sm:$0xff]  ;;  %4176 = vst.msk [vmem:[#allocation3 + $0xf0] sm:$0xff] %vm503_vm0, %v4144_v53  ;;  %v4592_v20 = vadd.f32 %v4560_v15, %v4505_v55 }
 0x228   : > { %v4525_v27 = vpop.f32.mrb[143].mxu0  ;;  %v4761_v32 = vmax.f32 %v4729_v41, 0.0  ;;  %v4692_v24 = vmul.f32 %v7521_v34, %v4653_v30  ;;  %v4652_v58 = vld [vmem:[#allocation3 + $0xb0] sm:$0xff]  ;;  %4625 = vst.msk [vmem:[#allocation3 + $0xd8] sm:$0xff] %vm503_vm0, %v4593_v26 }
 0x229   : > { %v4760_v52 = vmax.f32 %v4728_v49, 0.0  ;;  %v4691_v59 = vmul.f32 %v7521_v34, %v4652_v58  ;;  %4624 = vst.msk [vmem:[#allocation3 + $0xd0] sm:$0xff] %vm503_vm0, %v4592_v20  ;;  %v4563_v38 = vld [vmem:[#allocation3 + $0xe8] sm:$0xff] }
 0x22a   : > { %4793 = vst.msk [vmem:[%s7541_s20 + $0xa8] sm:$0xff] %vm503_vm0, %v4761_v32  ;;  %v4731_v39 = vadd.f32 %v7528_v51, %v4692_v24  ;;  %v4595_v6 = vadd.f32 %v6051_v48, %v4563_v38  ;;  %v4562_v0 = vld [vmem:[#allocation3 + $0xe0] sm:$0xff] }
 0x22b   : > { %4792 = vst.msk [vmem:[%s7541_s20 + $0xa0] sm:$0xff] %vm503_vm0, %v4760_v52  ;;  %v4730_v1 = vadd.f32 %v7528_v51, %v4691_v59  ;;  %v4655_v63 = vld [vmem:[#allocation3 + $0xc8] sm:$0xff]  ;;  %v4594_v8 = vadd.f32 %v4562_v0, %v4515_v62 }
 0x22c   : > { %v4763_v7 = vmax.f32 %v4731_v39, 0.0  ;;  %v4694_v56 = vmul.f32 %v7521_v34, %v4655_v63  ;;  %v4654_v42 = vld [vmem:[#allocation3 + $0xc0] sm:$0xff]  ;;  %4627 = vst.msk [vmem:[#allocation3 + $0xe8] sm:$0xff] %vm503_vm0, %v4595_v6 }
 0x22d   : > { %v4762_v46 = vmax.f32 %v4730_v1, 0.0  ;;  %v4693_v37 = vmul.f32 %v7521_v34, %v4654_v42  ;;  %4626 = vst.msk [vmem:[#allocation3 + $0xe0] sm:$0xff] %vm503_vm0, %v4594_v8  ;;  %v4565_v2 = vld [vmem:[#allocation3 + $0xf8] sm:$0xff] }
 0x22e   : > { %4795 = vst.msk [vmem:[%s7541_s20 + $0xb8] sm:$0xff] %vm503_vm0, %v4763_v7  ;;  %v4733_v55 = vadd.f32 %v7528_v51, %v4694_v56  ;;  %v4597_v5 = vadd.f32 %v6054_v57, %v4565_v2  ;;  %v4564_v12 = vld [vmem:[#allocation3 + $0xf0] sm:$0xff] }
 0x22f   : > { %4794 = vst.msk [vmem:[%s7541_s20 + $0xb0] sm:$0xff] %vm503_vm0, %v4762_v46  ;;  %v4732_v33 = vadd.f32 %v7528_v51, %v4693_v37  ;;  %v4657_v19 = vld [vmem:[#allocation3 + $0xd8] sm:$0xff]  ;;  %v4596_v3 = vadd.f32 %v4564_v12, %v4525_v27 }
 0x230   : > { %v4765_v4 = vmax.f32 %v4733_v55, 0.0  ;;  %v4696_v43 = vmul.f32 %v7521_v34, %v4657_v19  ;;  %v4656_v47 = vld [vmem:[#allocation3 + $0xd0] sm:$0xff]  ;;  %4629 = vst.msk [vmem:[#allocation3 + $0xf8] sm:$0xff] %vm503_vm0, %v4597_v5 }
 0x231   : > { %v4764_v16 = vmax.f32 %v4732_v33, 0.0  ;;  %v4695_v50 = vmul.f32 %v7521_v34, %v4656_v47  ;;  %4628 = vst.msk [vmem:[#allocation3 + $0xf0] sm:$0xff] %vm503_vm0, %v4596_v3 }
 0x232   : > { %4797 = vst.msk [vmem:[%s7541_s20 + $0xc8] sm:$0xff] %vm503_vm0, %v4765_v4  ;;  %v4735_v17 = vadd.f32 %v7528_v51, %v4696_v43 }
 0x233   : > { %4796 = vst.msk [vmem:[%s7541_s20 + $0xc0] sm:$0xff] %vm503_vm0, %v4764_v16  ;;  %v4734_v13 = vadd.f32 %v7528_v51, %v4695_v50  ;;  %v4659_v44 = vld [vmem:[#allocation3 + $0xe8] sm:$0xff] }
 0x234   : > { %v4767_v45 = vmax.f32 %v4735_v17, 0.0  ;;  %v4698_v11 = vmul.f32 %v7521_v34, %v4659_v44  ;;  %v4658_v48 = vld [vmem:[#allocation3 + $0xe0] sm:$0xff] }
 0x235   : > { %v4766_v35 = vmax.f32 %v4734_v13, 0.0  ;;  %v4697_v54 = vmul.f32 %v7521_v34, %v4658_v48 }
 0x236   : > { %4799 = vst.msk [vmem:[%s7541_s20 + $0xd8] sm:$0xff] %vm503_vm0, %v4767_v45  ;;  %v4737_v10 = vadd.f32 %v7528_v51, %v4698_v11 }
 0x237   : > { %4798 = vst.msk [vmem:[%s7541_s20 + $0xd0] sm:$0xff] %vm503_vm0, %v4766_v35  ;;  %v4736_v62 = vadd.f32 %v7528_v51, %v4697_v54  ;;  %v4661_v36 = vld [vmem:[#allocation3 + $0xf8] sm:$0xff] }
 0x238   : > { %v4769_v61 = vmax.f32 %v4737_v10, 0.0  ;;  %v4700_v9 = vmul.f32 %v7521_v34, %v4661_v36  ;;  %v4660_v60 = vld [vmem:[#allocation3 + $0xf0] sm:$0xff] }
 0x239   : > { %v4768_v25 = vmax.f32 %v4736_v62, 0.0  ;;  %v4699_v22 = vmul.f32 %v7521_v34, %v4660_v60 }
 0x23a   : > { %4801 = vst.msk [vmem:[%s7541_s20 + $0xe8] sm:$0xff] %vm503_vm0, %v4769_v61  ;;  %v4739_v23 = vadd.f32 %v7528_v51, %v4700_v9 }
 0x23b   : > { %4800 = vst.msk [vmem:[%s7541_s20 + $0xe0] sm:$0xff] %vm503_vm0, %v4768_v25  ;;  %v4738_v14 = vadd.f32 %v7528_v51, %v4699_v22 }
 0x23c   : > { %v4771_v28 = vmax.f32 %v4739_v23, 0.0 }
 0x23d   : > { %v4770_v29 = vmax.f32 %v4738_v14, 0.0 }
 0x23e   : > { %4803 = vst.msk [vmem:[%s7541_s20 + $0xf8] sm:$0xff] %vm503_vm0, %v4771_v28 }
 0x23f   : > { %4802 = vst.msk [vmem:[%s7541_s20 + $0xf0] sm:$0xff] %vm503_vm0, %v4770_v29 }
 0x240 PF: > { %s18_s26 = sadd.s32 1, %s6140_s26   ;;  %s7847_s24 = smov %s6136_s25 }
 0x241   : > { %p15_p5 = scmp.ge.s32.totalorder %s18_s26, 4   ;;  %s7848_s25 = smov %s7850_s27 }
 0x243   :  { %17 = sbr.rel (!%p15_p5) target bundleno = 2 (0x2), region = 110 }

// kernel: ordered_basic_block_forward.3
= control target key start
LH: loop header
LB: loop body
LE: loop exit
PB: predicated region body
PF: predicated region fallthrough
CT: control target
= control target key end

     0   :  { %s5812_s12 = smov 0   ;;  %s5814_s13 = smov 0   ;;  %s7283_s0 = inlined_call_operand.vmem [shape: f32[2,16,16,16], index: 0, kind: input, shape index: {}]   ;;  %s7284_s1 = inlined_call_operand.vmem [shape: f32[9,16,16], index: 1, kind: input, shape index: {}]   ;;  %s7285_s2 = inlined_call_operand.vmem [shape: f32[2,16,16,16], index: 2, kind: input, shape index: {}]   ;;  %s7286_s3 = inlined_call_operand.vmem [shape: f32[2,16,16,16], index: 3, kind: output, shape index: {}]  }
   0x1   :  { %s5816_s14 = smov 0  }
   0x2 LB: > { %s25_s15 = sadd.s32 1, %s5785_s13  ;;  %p4614_p0 = scmp.ge.s32.totalorder %s5789_s14, 1  ;;  %s5789_s14 = sphi %s5816_s14, %s13_s14   ;;  %s5785_s13 = sphi %s5814_s13, %s7406_s13   ;;  %s5781_s12 = sphi %s5812_s12, %s7405_s12  }
   0x3   : > { %p27_p1 = scmp.ge.s32.totalorder %s25_s15, 2  ;;  %p175_p2 = scmp.lt.s32.totalorder %s5789_s14, 3 }
   0x5   : > { %s7408_s15 = smov (%p27_p1, %s25_s15), 0  ;;  %p176_p3 = pnand %p4614_p0, %p175_p2 }
   0x7   : > { %179 = sbr.rel (%p176_p3) target bundleno = 571 (0x23b), region = 32 }
   0xe   : > { %v396_v0 = vld [vmem:[%s7284_s1] sm:$0xff]  ;;  %v397_v1 = vld [vmem:[%s7284_s1 + $0x8] sm:$0xff]  ;;  %p214_p4 = scmp.lt.s32.totalorder %s5781_s12, 1  ;;  %vm275_vm0 = vcmask 130048   ;;  %v4653_v2 = vld [vmem:[%s7284_s1 + $0x10] sm:$0xff]  ;;  %v5791_v4 = vmov 0.0  }
   0xf   : > { %v5842_v3 = vpack.c.bf16 %v397_v1, %v396_v0  ;;  %301 = vst.msk [vmem:[#allocation2 + $0xc0] sm:$0xff] %vm275_vm0, %v5791_v4  ;;  %302 = vst.msk [vmem:[#allocation2 + $0xc8] sm:$0xff] %vm275_vm0, %v5791_v4  ;;  %v4654_v5 = vld [vmem:[%s7284_s1 + $0x18] sm:$0xff]  ;;  %vm278_vm1 = vcmask 123904   ;;  %v4687_v6 = vld [vmem:[%s7284_s1 + $0x20] sm:$0xff] }
  0x10   : > { %276 = vst.msk [vmem:[#allocation2] sm:$0xff] %vm275_vm0, %v5791_v4  ;;  %277 = vst.msk [vmem:[#allocation2 + $0x8] sm:$0xff] %vm275_vm0, %v5791_v4  ;;  %v4688_v7 = vld [vmem:[%s7284_s1 + $0x28] sm:$0xff]  ;;  %s7410_s12 = smov (!%p214_p4, %s5781_s12), 1  ;;  %v5892_v8 = vpack.c.bf16 %v4654_v5, %v4653_v2  ;;  %v4755_v10 = vld [vmem:[%s7284_s1 + $0x40] sm:$0xff] }
  0x11   : > { %280 = vst.msk [vmem:[#allocation2 + $0x18] sm:$0xff] %vm275_vm0, %v5791_v4  ;;  %281 = vst.msk [vmem:[#allocation2 + $0x20] sm:$0xff] %vm275_vm0, %v5791_v4  ;;  %v5712_v9 = vpack.c.bf16 %v4688_v7, %v4687_v6  ;;  %5740 = vmatprep.subr.bf16.mxu1 %v5842_v3  ;;  %5705 = vmatprep.subr.bf16.mxu0 %v5842_v3  ;;  %s5915_s28 = sshll.u32 %s7410_s12, 8  ;;  %v4756_v11 = vld [vmem:[%s7284_s1 + $0x48] sm:$0xff]  ;;  %v4721_v25 = vld [vmem:[%s7284_s1 + $0x30] sm:$0xff] }
  0x12   : > { %283 = vst.msk [vmem:[#allocation2 + $0x30] sm:$0xff] %vm275_vm0, %v5791_v4  ;;  %284 = vst.msk [vmem:[#allocation2 + $0x38] sm:$0xff] %vm275_vm0, %v5791_v4  ;;  %5741 = vmatpush3.bf16.msra.mxu1 %v5842_v3  ;;  %5707 = vmatpush3.bf16.msra.mxu0 %v5842_v3  ;;  %s5922_s4 = scalar_lea.vmem %s7283_s0, %s5915_s28  ;;  %v5944_v21 = vpack.c.bf16 %v4756_v11, %v4755_v10  ;;  %v4722_v26 = vld [vmem:[%s7284_s1 + $0x38] sm:$0xff]  ;;  %s7054_s8 = scalar_lea.vmem %s7285_s2, %s5915_s28 }
  0x13   : > { %286 = vst.msk [vmem:[#allocation2 + $0x48] sm:$0xff] %vm275_vm0, %v5791_v4  ;;  %287 = vst.msk [vmem:[#allocation2 + $0x50] sm:$0xff] %vm275_vm0, %v5791_v4  ;;  %5709 = vmatprep.subr.bf16.mxu1 %v5892_v8  ;;  %5713 = vmatprep.subr.bf16.mxu0 %v5712_v9  ;;  %v257_v12 = vld [vmem:[%s5922_s4 + $0x70] sm:$0xff]  ;;  %v258_v13 = vld [vmem:[%s5922_s4 + $0x78] sm:$0xff]  ;;  %v5992_v42 = vpack.c.bf16 %v4722_v26, %v4721_v25  ;;  %s7073_s11 = scalar_lea.vmem %s7286_s3, %s5915_s28 }
  0x14   : > { %289 = vst.msk [vmem:[#allocation2 + $0x60] sm:$0xff] %vm275_vm0, %v5791_v4  ;;  %290 = vst.msk [vmem:[#allocation2 + $0x68] sm:$0xff] %vm275_vm0, %v5791_v4  ;;  %v259_v14 = vld [vmem:[%s5922_s4 + $0x80] sm:$0xff]  ;;  %v260_v15 = vld [vmem:[%s5922_s4 + $0x88] sm:$0xff] }
  0x15   : > { %292 = vst.msk [vmem:[#allocation2 + $0x78] sm:$0xff] %vm275_vm0, %v5791_v4  ;;  %293 = vst.msk [vmem:[#allocation2 + $0x80] sm:$0xff] %vm275_vm0, %v5791_v4  ;;  %v261_v16 = vld [vmem:[%s5922_s4 + $0x90] sm:$0xff]  ;;  %v262_v17 = vld [vmem:[%s5922_s4 + $0x98] sm:$0xff] }
  0x16   : > { %295 = vst.msk [vmem:[#allocation2 + $0x90] sm:$0xff] %vm275_vm0, %v5791_v4  ;;  %296 = vst.msk [vmem:[#allocation2 + $0x98] sm:$0xff] %vm275_vm0, %v5791_v4  ;;  %v263_v20 = vld [vmem:[%s5922_s4 + $0xa0] sm:$0xff]  ;;  %v264_v23 = vld [vmem:[%s5922_s4 + $0xa8] sm:$0xff] }
  0x17   : > { %298 = vst.msk [vmem:[#allocation2 + $0xa8] sm:$0xff] %vm275_vm0, %v5791_v4  ;;  %299 = vst.msk [vmem:[#allocation2 + $0xb0] sm:$0xff] %vm275_vm0, %v5791_v4  ;;  %v364_v18 = vld [vmem:[#allocation2] sm:$0xff]  ;;  %v365_v19 = vld [vmem:[#allocation2 + $0x8] sm:$0xff] }
  0x18   : > { %304 = vst.msk [vmem:[#allocation2 + $0xd8] sm:$0xff] %vm275_vm0, %v5791_v4  ;;  %305 = vst.msk [vmem:[#allocation2 + $0xe0] sm:$0xff] %vm275_vm0, %v5791_v4  ;;  %5240 = vmatprep.mubr.msk.f32.mxu0 %vm275_vm0, %v364_v18  ;;  %v243_v22 = vld [vmem:[%s5922_s4] sm:$0xff]  ;;  %v244_v24 = vld [vmem:[%s5922_s4 + $0x8] sm:$0xff] }
  0x19   : > { %307 = vst.msk [vmem:[#allocation2 + $0xf0] sm:$0xff] %vm275_vm0, %v5791_v4  ;;  %308 = vst.msk [vmem:[#allocation2 + $0xf8] sm:$0xff] %vm275_vm0, %v5791_v4  ;;  %5241 = vmatmul.mubr.msk.f32.vlgmr.msra.gmra.mrb[0].mxu0 %vm275_vm0, %v365_v19  ;;  %v265_v27 = vld [vmem:[%s5922_s4 + $0xb0] sm:$0xff]  ;;  %v266_v29 = vld [vmem:[%s5922_s4 + $0xb8] sm:$0xff] }
  0x1a   : > { %310 = vst.msk [vmem:[#allocation2 + $0x108] sm:$0xff] %vm275_vm0, %v5791_v4  ;;  %311 = vst.msk [vmem:[#allocation2 + $0x110] sm:$0xff] %vm275_vm0, %v5791_v4  ;;  %v245_v28 = vld [vmem:[%s5922_s4 + $0x10] sm:$0xff]  ;;  %5715 = vmatpush3.bf16.msra.mxu0 %v5712_v9  ;;  %v246_v30 = vld [vmem:[%s5922_s4 + $0x18] sm:$0xff] }
  0x1b   : > { %313 = vst.msk [vmem:[#allocation2 + $0x120] sm:$0xff] %vm275_vm0, %v5791_v4  ;;  %314 = vst.msk [vmem:[#allocation2 + $0x128] sm:$0xff] %vm275_vm0, %v5791_v4  ;;  %v267_v31 = vld [vmem:[%s5922_s4 + $0xc0] sm:$0xff]  ;;  %v268_v33 = vld [vmem:[%s5922_s4 + $0xc8] sm:$0xff]  ;;  %5721 = vmatprep.subr.bf16.mxu0 %v5944_v21 }
  0x1c   : > { %316 = vst.msk [vmem:[#allocation2 + $0x138] sm:$0xff] %vm275_vm0, %v5791_v4  ;;  %317 = vst.msk [vmem:[#allocation2 + $0x140] sm:$0xff] %vm275_vm0, %v5791_v4  ;;  %v247_v32 = vld [vmem:[%s5922_s4 + $0x20] sm:$0xff]  ;;  %v248_v34 = vld [vmem:[%s5922_s4 + $0x28] sm:$0xff] }
  0x1d   : > { %319 = vst.msk [vmem:[#allocation2 + $0x150] sm:$0xff] %vm275_vm0, %v5791_v4  ;;  %320 = vst.msk [vmem:[#allocation2 + $0x158] sm:$0xff] %vm275_vm0, %v5791_v4  ;;  %v269_v35 = vld [vmem:[%s5922_s4 + $0xd0] sm:$0xff]  ;;  %v270_v37 = vld [vmem:[%s5922_s4 + $0xd8] sm:$0xff] }
  0x1e   : > { %322 = vst.msk [vmem:[#allocation2 + $0x168] sm:$0xff] %vm275_vm0, %v5791_v4  ;;  %323 = vst.msk [vmem:[#allocation2 + $0x170] sm:$0xff] %vm275_vm0, %v5791_v4  ;;  %v249_v36 = vld [vmem:[%s5922_s4 + $0x30] sm:$0xff]  ;;  %v250_v38 = vld [vmem:[%s5922_s4 + $0x38] sm:$0xff] }
  0x1f   : > { %325 = vst.msk [vmem:[#allocation2 + $0x180] sm:$0xff] %vm275_vm0, %v5791_v4  ;;  %326 = vst.msk [vmem:[#allocation2 + $0x188] sm:$0xff] %vm275_vm0, %v5791_v4  ;;  %v271_v43 = vld [vmem:[%s5922_s4 + $0xe0] sm:$0xff]  ;;  %v272_v54 = vld [vmem:[%s5922_s4 + $0xe8] sm:$0xff] }
  0x20   : > { %328 = vst.msk [vmem:[#allocation2 + $0x198] sm:$0xff] %vm275_vm0, %v5791_v4  ;;  %329 = vst.msk [vmem:[#allocation2 + $0x1a0] sm:$0xff] %vm275_vm0, %v5791_v4  ;;  %v251_v44 = vld [vmem:[%s5922_s4 + $0x40] sm:$0xff]  ;;  %v252_v55 = vld [vmem:[%s5922_s4 + $0x48] sm:$0xff] }
  0x21   : > { %303 = vst.msk [vmem:[#allocation2 + $0xd0] sm:$0x3] %vm278_vm1, %v5791_v4  ;;  %279 = vst.msk [vmem:[#allocation2 + $0x10] sm:$0x3] %vm278_vm1, %v5791_v4  ;;  %v253_v56 = vld [vmem:[%s5922_s4 + $0x50] sm:$0xff]  ;;  %v254_v57 = vld [vmem:[%s5922_s4 + $0x58] sm:$0xff] }
  0x22   : > { %282 = vst.msk [vmem:[#allocation2 + $0x28] sm:$0x3] %vm278_vm1, %v5791_v4  ;;  %285 = vst.msk [vmem:[#allocation2 + $0x40] sm:$0x3] %vm278_vm1, %v5791_v4  ;;  %v255_v61 = vld [vmem:[%s5922_s4 + $0x60] sm:$0xff]  ;;  %v256_v62 = vld [vmem:[%s5922_s4 + $0x68] sm:$0xff] }
  0x23   : > { %288 = vst.msk [vmem:[#allocation2 + $0x58] sm:$0x3] %vm278_vm1, %v5791_v4  ;;  %291 = vst.msk [vmem:[#allocation2 + $0x70] sm:$0x3] %vm278_vm1, %v5791_v4  ;;  %v4823_v19 = vld [vmem:[%s7284_s1 + $0x60] sm:$0xff] }
  0x24   : > { %294 = vst.msk [vmem:[#allocation2 + $0x88] sm:$0x3] %vm278_vm1, %v5791_v4  ;;  %297 = vst.msk [vmem:[#allocation2 + $0xa0] sm:$0x3] %vm278_vm1, %v5791_v4 }
  0x25   : > { %300 = vst.msk [vmem:[#allocation2 + $0xb8] sm:$0x3] %vm278_vm1, %v5791_v4  ;;  %306 = vst.msk [vmem:[#allocation2 + $0xe8] sm:$0x3] %vm278_vm1, %v5791_v4 }
  0x26   : > { %309 = vst.msk [vmem:[#allocation2 + $0x100] sm:$0x3] %vm278_vm1, %v5791_v4  ;;  %312 = vst.msk [vmem:[#allocation2 + $0x118] sm:$0x3] %vm278_vm1, %v5791_v4 }
  0x27   : > { %315 = vst.msk [vmem:[#allocation2 + $0x130] sm:$0x3] %vm278_vm1, %v5791_v4  ;;  %318 = vst.msk [vmem:[#allocation2 + $0x148] sm:$0x3] %vm278_vm1, %v5791_v4 }
  0x28   : > { %321 = vst.msk [vmem:[#allocation2 + $0x160] sm:$0x3] %vm278_vm1, %v5791_v4  ;;  %324 = vst.msk [vmem:[#allocation2 + $0x178] sm:$0x3] %vm278_vm1, %v5791_v4  ;;  %v1205_v18 = vld [vmem:[#allocation2 + $0xa] sm:$0xff] }
  0x29   : > { %327 = vst.msk [vmem:[#allocation2 + $0x190] sm:$0x3] %vm278_vm1, %v5791_v4  ;;  %330 = vst.msk [vmem:[#allocation2 + $0x1a8] sm:$0x3] %vm278_vm1, %v5791_v4 }
  0x2a   : > { %346 = vst.msk [vmem:[#allocation2 + $0xc1] sm:$0xff] %vm275_vm0, %v257_v12  ;;  %347 = vst.msk [vmem:[#allocation2 + $0xc9] sm:$0xff] %vm275_vm0, %v258_v13 }
  0x2b   : > { %348 = vst.msk [vmem:[#allocation2 + $0xd9] sm:$0xff] %vm275_vm0, %v259_v14  ;;  %349 = vst.msk [vmem:[#allocation2 + $0xe1] sm:$0xff] %vm275_vm0, %v260_v15  ;;  %v1204_v14 = vld [vmem:[#allocation2 + $0x2] sm:$0xff] }
  0x2c   : > { %350 = vst.msk [vmem:[#allocation2 + $0xf1] sm:$0xff] %vm275_vm0, %v261_v16  ;;  %351 = vst.msk [vmem:[#allocation2 + $0xf9] sm:$0xff] %vm275_vm0, %v262_v17  ;;  %v752_v15 = vld [vmem:[#allocation2 + $0x1] sm:$0xff]  ;;  %v4789_v16 = vld [vmem:[%s7284_s1 + $0x50] sm:$0xff] }
  0x2d   : > { %352 = vst.msk [vmem:[#allocation2 + $0x109] sm:$0xff] %vm275_vm0, %v263_v20  ;;  %332 = vst.msk [vmem:[#allocation2 + $0x19] sm:$0xff] %vm275_vm0, %v243_v22  ;;  %v4790_v17 = vld [vmem:[%s7284_s1 + $0x58] sm:$0xff]  ;;  %v4824_v20 = vld [vmem:[%s7284_s1 + $0x68] sm:$0xff] }
  0x2e   : > { %353 = vst.msk [vmem:[#allocation2 + $0x111] sm:$0xff] %vm275_vm0, %v264_v23  ;;  %333 = vst.msk [vmem:[#allocation2 + $0x21] sm:$0xff] %vm275_vm0, %v244_v24  ;;  %v753_v22 = vld [vmem:[#allocation2 + $0x9] sm:$0xff]  ;;  %v6142_v24 = vpack.c.bf16 %v4790_v17, %v4789_v16  ;;  %v6147_v26 = vpack.c.bf16 %v4824_v20, %v4823_v19 }
  0x2f   : > { %354 = vst.msk [vmem:[#allocation2 + $0x121] sm:$0xff] %vm275_vm0, %v265_v27  ;;  %334 = vst.msk [vmem:[#allocation2 + $0x31] sm:$0xff] %vm275_vm0, %v245_v28  ;;  %v273_v28 = vld [vmem:[%s5922_s4 + $0xf0] sm:$0xff] }
  0x30   : > { %355 = vst.msk [vmem:[#allocation2 + $0x129] sm:$0xff] %vm275_vm0, %v266_v29  ;;  %335 = vst.msk [vmem:[#allocation2 + $0x39] sm:$0xff] %vm275_vm0, %v246_v30  ;;  %v274_v29 = vld [vmem:[%s5922_s4 + $0xf8] sm:$0xff] }
  0x31   : > { %356 = vst.msk [vmem:[#allocation2 + $0x139] sm:$0xff] %vm275_vm0, %v267_v31  ;;  %336 = vst.msk [vmem:[#allocation2 + $0x49] sm:$0xff] %vm275_vm0, %v247_v32  ;;  %v5983_v39 = vld [vmem:[#allocation2 + $0xc0] sm:$0xff]  ;;  %v5985_v40 = vld [vmem:[#allocation2 + $0xc8] sm:$0xff] }
  0x32   : > { %357 = vst.msk [vmem:[#allocation2 + $0x141] sm:$0xff] %vm275_vm0, %v268_v33  ;;  %337 = vst.msk [vmem:[#allocation2 + $0x51] sm:$0xff] %vm275_vm0, %v248_v34  ;;  %v5987_v41 = vld [vmem:[#allocation2 + $0xd8] sm:$0xff]  ;;  %5264 = vmatprep.mubr.msk.f32.mxu1 %vm275_vm0, %v5983_v39  ;;  %v6003_v45 = vld [vmem:[#allocation2 + $0xe0] sm:$0xff] }
  0x33   : > { %358 = vst.msk [vmem:[#allocation2 + $0x151] sm:$0xff] %vm275_vm0, %v269_v35  ;;  %338 = vst.msk [vmem:[#allocation2 + $0x61] sm:$0xff] %vm275_vm0, %v249_v36  ;;  %5265 = vmatmul.mubr.msk.f32.vlgmr.msra.gmra.mrb[0].mxu1 %vm275_vm0, %v5985_v40  ;;  %v6011_v48 = vld [vmem:[#allocation2 + $0xf0] sm:$0xff]  ;;  %v6028_v51 = vld [vmem:[#allocation2 + $0xf8] sm:$0xff] }
  0x34   : > { %359 = vst.msk [vmem:[#allocation2 + $0x159] sm:$0xff] %vm275_vm0, %v270_v37  ;;  %339 = vst.msk [vmem:[#allocation2 + $0x69] sm:$0xff] %vm275_vm0, %v250_v38  ;;  %5711 = vmatpush3.bf16.msra.mxu1 %v5892_v8  ;;  %5267 = vmatprep.mubr.msk.f32.mxu1 %vm275_vm0, %v5987_v41  ;;  %v6005_v46 = vld [vmem:[#allocation2 + $0x18] sm:$0xff]  ;;  %v6032_v53 = vld [vmem:[#allocation2 + $0x108] sm:$0xff] }
  0x35   : > { %v6007_v47 = vld [vmem:[#allocation2 + $0x20] sm:$0xff]  ;;  %360 = vst.msk [vmem:[#allocation2 + $0x169] sm:$0xff] %vm275_vm0, %v271_v43  ;;  %340 = vst.msk [vmem:[#allocation2 + $0x79] sm:$0xff] %vm275_vm0, %v251_v44  ;;  %5243 = vmatprep.mubr.msk.f32.mxu0 %vm275_vm0, %v6005_v46  ;;  %5717 = vmatprep.subr.bf16.mxu1 %v5992_v42  ;;  %v6044_v58 = vld [vmem:[#allocation2 + $0x110] sm:$0xff] }
  0x36   : > { %v6015_v49 = vld [vmem:[#allocation2 + $0x30] sm:$0xff]  ;;  %5244 = vmatmul.mubr.msk.f32.gmra.mrb[2].mxu0 %vm275_vm0, %v6007_v47  ;;  %361 = vst.msk [vmem:[#allocation2 + $0x171] sm:$0xff] %vm275_vm0, %v272_v54  ;;  %341 = vst.msk [vmem:[#allocation2 + $0x81] sm:$0xff] %vm275_vm0, %v252_v55  ;;  %v6058_v63 = vld [vmem:[#allocation2 + $0x120] sm:$0xff] }
  0x37   : > { %5268 = vmatmul.mubr.msk.f32.gmra.mrb[2].mxu1 %vm275_vm0, %v6003_v45  ;;  %5246 = vmatprep.mubr.msk.f32.mxu0 %vm275_vm0, %v6015_v49  ;;  %v6024_v50 = vld [vmem:[#allocation2 + $0x38] sm:$0xff]  ;;  %342 = vst.msk [vmem:[#allocation2 + $0x91] sm:$0xff] %vm275_vm0, %v253_v56  ;;  %343 = vst.msk [vmem:[#allocation2 + $0x99] sm:$0xff] %vm275_vm0, %v254_v57  ;;  %v6072_v1 = vld [vmem:[#allocation2 + $0x128] sm:$0xff] }
  0x38   : > { %5270 = vmatprep.mubr.msk.f32.mxu1 %vm275_vm0, %v6011_v48  ;;  %v6030_v52 = vld [vmem:[#allocation2 + $0x48] sm:$0xff]  ;;  %344 = vst.msk [vmem:[#allocation2 + $0xa9] sm:$0xff] %vm275_vm0, %v255_v61  ;;  %345 = vst.msk [vmem:[#allocation2 + $0xb1] sm:$0xff] %vm275_vm0, %v256_v62  ;;  %v6076_v3 = vld [vmem:[#allocation2 + $0x138] sm:$0xff] }
  0x39   : > { %v6048_v59 = vld [vmem:[#allocation2 + $0x50] sm:$0xff]  ;;  %v6088_v5 = vld [vmem:[#allocation2 + $0x140] sm:$0xff]  ;;  %362 = vst.msk [vmem:[#allocation2 + $0x181] sm:$0xff] %vm275_vm0, %v273_v28  ;;  %363 = vst.msk [vmem:[#allocation2 + $0x189] sm:$0xff] %vm275_vm0, %v274_v29 }
  0x3a   : > { %5247 = vmatmul.mubr.msk.f32.gmra.mrb[4].mxu0 %vm275_vm0, %v6024_v50  ;;  %v6054_v60 = vld [vmem:[#allocation2 + $0x60] sm:$0xff]  ;;  %v6092_v7 = vld [vmem:[#allocation2 + $0x150] sm:$0xff] }
  0x3b   : > { %5271 = vmatmul.mubr.msk.f32.gmra.mrb[4].mxu1 %vm275_vm0, %v6028_v51  ;;  %5249 = vmatprep.mubr.msk.f32.mxu0 %vm275_vm0, %v6030_v52  ;;  %v6068_v0 = vld [vmem:[#allocation2 + $0x68] sm:$0xff]  ;;  %v6104_v9 = vld [vmem:[#allocation2 + $0x158] sm:$0xff] }
  0x3c   : > { %5273 = vmatprep.mubr.msk.f32.mxu1 %vm275_vm0, %v6032_v53  ;;  %v6074_v2 = vld [vmem:[#allocation2 + $0x78] sm:$0xff]  ;;  %v6108_v11 = vld [vmem:[#allocation2 + $0x168] sm:$0xff] }
  0x3d   : > { %v6084_v4 = vld [vmem:[#allocation2 + $0x80] sm:$0xff]  ;;  %7337 = vst [vmem:[#allocation4_spill] sm:$0xff] %v6108_v11  ;;  %v6120_v13 = vld [vmem:[#allocation2 + $0x170] sm:$0xff] }
  0x3e   : > { %5250 = vmatmul.mubr.msk.f32.gmra.mrb[6].mxu0 %vm275_vm0, %v6048_v59  ;;  %v6090_v6 = vld [vmem:[#allocation2 + $0x90] sm:$0xff]  ;;  %v6100_v8 = vld [vmem:[#allocation2 + $0x98] sm:$0xff]  ;;  %7338 = vst [vmem:[#allocation5_spill] sm:$0xff] %v6120_v13  ;;  %v6151_v27 = vld [vmem:[#allocation2 + $0x22] sm:$0xff] }
  0x3f   : > { %5274 = vmatmul.mubr.msk.f32.gmra.mrb[6].mxu1 %vm275_vm0, %v6044_v58  ;;  %5252 = vmatprep.mubr.msk.f32.mxu0 %vm275_vm0, %v6054_v60  ;;  %v6106_v10 = vld [vmem:[#allocation2 + $0xa8] sm:$0xff]  ;;  %v6116_v12 = vld [vmem:[#allocation2 + $0xb0] sm:$0xff]  ;;  %v6140_v23 = vld [vmem:[#allocation2 + $0x19] sm:$0xff]  ;;  %7340 = vst [vmem:[#allocation7_spill] sm:$0xff] %v6151_v27 }
  0x40   : > { %5276 = vmatprep.mubr.msk.f32.mxu1 %vm275_vm0, %v6058_v63  ;;  %v6145_v25 = vld [vmem:[#allocation2 + $0x1a] sm:$0xff]  ;;  %v6160_v31 = vld [vmem:[#allocation2 + $0x32] sm:$0xff]  ;;  %v6182_v34 = vld [vmem:[#allocation2 + $0x4a] sm:$0xff] }
  0x41   : > { %7339 = vst [vmem:[#allocation6_spill] sm:$0xff] %v6145_v25  ;;  %v6158_v30 = vld [vmem:[#allocation2 + $0x21] sm:$0xff]  ;;  %7341 = vst [vmem:[#allocation8_spill] sm:$0xff] %v6160_v31  ;;  %v6164_v32 = vld [vmem:[#allocation2 + $0x31] sm:$0xff] }
  0x42   : > { %5253 = vmatmul.mubr.msk.f32.gmra.mrb[8].mxu0 %vm275_vm0, %v6068_v0  ;;  %v6180_v33 = vld [vmem:[#allocation2 + $0x39] sm:$0xff]  ;;  %7343 = vst [vmem:[#allocation10_spill] sm:$0xff] %v6182_v34  ;;  %v6184_v35 = vld [vmem:[#allocation2 + $0x49] sm:$0xff]  ;;  %v6196_v37 = vld [vmem:[#allocation2 + $0x51] sm:$0xff] }
  0x43   : > { %5277 = vmatmul.mubr.msk.f32.gmra.mrb[8].mxu1 %vm275_vm0, %v6072_v1  ;;  %5255 = vmatprep.mubr.msk.f32.mxu0 %vm275_vm0, %v6074_v2  ;;  %v6192_v36 = vld [vmem:[#allocation2 + $0x52] sm:$0xff]  ;;  %v6198_v38 = vld [vmem:[#allocation2 + $0x62] sm:$0xff]  ;;  %v6208_v43 = vld [vmem:[#allocation2 + $0x6a] sm:$0xff] }
  0x44   : > { %5279 = vmatprep.mubr.msk.f32.mxu1 %vm275_vm0, %v6076_v3  ;;  %7344 = vst [vmem:[#allocation11_spill] sm:$0xff] %v6192_v36  ;;  %7345 = vst [vmem:[#allocation12_spill] sm:$0xff] %v6198_v38  ;;  %v6212_v44 = vld [vmem:[#allocation2 + $0x69] sm:$0xff]  ;;  %v6214_v54 = vld [vmem:[#allocation2 + $0x7a] sm:$0xff] }
  0x45   : > { %7346 = vst [vmem:[#allocation13_spill] sm:$0xff] %v6208_v43  ;;  %7347 = vst [vmem:[#allocation14_spill] sm:$0xff] %v6214_v54  ;;  %v6216_v55 = vld [vmem:[#allocation2 + $0x79] sm:$0xff]  ;;  %v6224_v56 = vld [vmem:[#allocation2 + $0x82] sm:$0xff] }
  0x46   : > { %5256 = vmatmul.mubr.msk.f32.gmra.mrb[10].mxu0 %vm275_vm0, %v6084_v4  ;;  %7348 = vst [vmem:[#allocation15_spill] sm:$0xff] %v6224_v56  ;;  %v6228_v57 = vld [vmem:[#allocation2 + $0x81] sm:$0xff]  ;;  %v6230_v61 = vld [vmem:[#allocation2 + $0x92] sm:$0xff]  ;;  %v6246_v16 = vld [vmem:[#allocation2 + $0xaa] sm:$0xff] }
  0x47   : > { %5280 = vmatmul.mubr.msk.f32.gmra.mrb[10].mxu1 %vm275_vm0, %v6088_v5  ;;  %5258 = vmatprep.mubr.msk.f32.mxu0 %vm275_vm0, %v6090_v6  ;;  %7349 = vst [vmem:[#allocation16_spill] sm:$0xff] %v6230_v61  ;;  %v6232_v62 = vld [vmem:[#allocation2 + $0x91] sm:$0xff]  ;;  %7351 = vst [vmem:[#allocation18_spill] sm:$0xff] %v6246_v16  ;;  %v6248_v17 = vld [vmem:[#allocation2 + $0xa9] sm:$0xff] }
  0x48   : > { %5282 = vmatprep.mubr.msk.f32.mxu1 %vm275_vm0, %v6092_v7  ;;  %v6260_v19 = vld [vmem:[#allocation2 + $0xb1] sm:$0xff]  ;;  %v6262_v20 = vld [vmem:[#allocation2 + $0xc2] sm:$0xff] }
  0x49   : > { %7353 = vst [vmem:[#allocation20_spill] sm:$0xff] %v6262_v20  ;;  %v6272_v28 = vld [vmem:[#allocation2 + $0xca] sm:$0xff] }
  0x4a   : > { %5259 = vmatmul.mubr.msk.f32.gmra.mrb[12].mxu0 %vm275_vm0, %v6100_v8  ;;  %7354 = vst [vmem:[#allocation21_spill] sm:$0xff] %v6272_v28  ;;  %v6276_v29 = vld [vmem:[#allocation2 + $0xc9] sm:$0xff] }
  0x4b   : > { %5283 = vmatmul.mubr.msk.f32.gmra.mrb[12].mxu1 %vm275_vm0, %v6104_v9  ;;  %5261 = vmatprep.mubr.msk.f32.mxu0 %vm275_vm0, %v6106_v10 }
  0x4c   : > { %5285 = vmatprep.mubr.msk.f32.mxu1 %vm275_vm0, %v6108_v11  ;;  %v4858_v11 = vld [vmem:[%s7284_s1 + $0x78] sm:$0xff] }
  0x4e   : > { %5262 = vmatmul.mubr.msk.f32.gmra.mrb[14].mxu0 %vm275_vm0, %v6116_v12 }
  0x4f   : > { %5286 = vmatmul.mubr.msk.f32.gmra.mrb[14].mxu1 %vm275_vm0, %v6120_v13  ;;  %5344 = vmatprep.mubr.msk.f32.mxu0 %vm275_vm0, %v1204_v14  ;;  %v6240_v14 = vld [vmem:[#allocation2 + $0x9a] sm:$0xff]  ;;  %v6376_v13 = vld [vmem:[#allocation2 + $0x169] sm:$0xff] }
  0x50   : > { %5292 = vmatprep.mubr.msk.f32.mxu1 %vm275_vm0, %v752_v15  ;;  %7350 = vst [vmem:[#allocation17_spill] sm:$0xff] %v6240_v14  ;;  %v6244_v15 = vld [vmem:[#allocation2 + $0x99] sm:$0xff]  ;;  %7368 = vst [vmem:[#allocation35_spill] sm:$0xff] %v6376_v13 }
  0x52   : > { %5345 = vmatmul.mubr.msk.f32.vlgmr.msra.gmra.mrb[16].mxu0 %vm275_vm0, %v1205_v18  ;;  %v6256_v18 = vld [vmem:[#allocation2 + $0xb2] sm:$0xff] }
  0x53   : > { %5293 = vmatmul.mubr.msk.f32.vlgmr.msra.gmra.mrb[16].mxu1 %vm275_vm0, %v753_v22  ;;  %5723 = vmatpush3.bf16.msra.mxu0 %v5944_v21  ;;  %v6176_v21 = vld [vmem:[#allocation2 + $0x3a] sm:$0xff]  ;;  %7352 = vst [vmem:[#allocation19_spill] sm:$0xff] %v6256_v18 }
  0x54   : > { %5719 = vmatpush3.bf16.msra.mxu1 %v5992_v42  ;;  %5295 = vmatprep.mubr.msk.f32.mxu1 %vm275_vm0, %v6140_v23  ;;  %7342 = vst [vmem:[#allocation9_spill] sm:$0xff] %v6176_v21  ;;  %v6200_v42 = vld [vmem:[#allocation2 + $0x61] sm:$0xff] }
  0x55   : > { %5347 = vmatprep.mubr.msk.f32.mxu0 %vm275_vm0, %v6145_v25  ;;  %5725 = vmatprep.subr.bf16.mxu1 %v6142_v24  ;;  %v6264_v22 = vld [vmem:[#allocation2 + $0xc1] sm:$0xff]  ;;  %v6374_v25 = vld [vmem:[#allocation2 + $0x16a] sm:$0xff] }
  0x56   : > { %5348 = vmatmul.mubr.msk.f32.gmra.mrb[18].mxu0 %vm275_vm0, %v6151_v27  ;;  %5729 = vmatprep.subr.bf16.mxu0 %v6147_v26  ;;  %v6360_v27 = vld [vmem:[#allocation2 + $0x151] sm:$0xff]  ;;  %7367 = vst [vmem:[#allocation34_spill] sm:$0xff] %v6374_v25 }
  0x57   : > { %5296 = vmatmul.mubr.msk.f32.gmra.mrb[18].mxu1 %vm275_vm0, %v6158_v30  ;;  %5350 = vmatprep.mubr.msk.f32.mxu0 %vm275_vm0, %v6160_v31  ;;  %v6358_v31 = vld [vmem:[#allocation2 + $0x152] sm:$0xff] }
  0x58   : > { %5298 = vmatprep.mubr.msk.f32.mxu1 %vm275_vm0, %v6164_v32  ;;  %7365 = vst [vmem:[#allocation32_spill] sm:$0xff] %v6358_v31 }
  0x5a   : > { %5351 = vmatmul.mubr.msk.f32.gmra.mrb[20].mxu0 %vm275_vm0, %v6176_v21  ;;  %v6344_v21 = vld [vmem:[#allocation2 + $0x139] sm:$0xff] }
  0x5b   : > { %5299 = vmatmul.mubr.msk.f32.gmra.mrb[20].mxu1 %vm275_vm0, %v6180_v33  ;;  %5353 = vmatprep.mubr.msk.f32.mxu0 %vm275_vm0, %v6182_v34  ;;  %v6342_v34 = vld [vmem:[#allocation2 + $0x13a] sm:$0xff] }
  0x5c   : > { %5301 = vmatprep.mubr.msk.f32.mxu1 %vm275_vm0, %v6184_v35  ;;  %7363 = vst [vmem:[#allocation30_spill] sm:$0xff] %v6342_v34 }
  0x5e   : > { %5354 = vmatmul.mubr.msk.f32.gmra.mrb[22].mxu0 %vm275_vm0, %v6192_v36  ;;  %v6328_v36 = vld [vmem:[#allocation2 + $0x121] sm:$0xff] }
  0x5f   : > { %5302 = vmatmul.mubr.msk.f32.gmra.mrb[22].mxu1 %vm275_vm0, %v6196_v37  ;;  %5356 = vmatprep.mubr.msk.f32.mxu0 %vm275_vm0, %v6198_v38  ;;  %v6326_v38 = vld [vmem:[#allocation2 + $0x122] sm:$0xff] }
  0x60   : > { %5304 = vmatprep.mubr.msk.f32.mxu1 %vm275_vm0, %v6200_v42  ;;  %7361 = vst [vmem:[#allocation28_spill] sm:$0xff] %v6326_v38 }
  0x62   : > { %5357 = vmatmul.mubr.msk.f32.gmra.mrb[24].mxu0 %vm275_vm0, %v6208_v43  ;;  %v6312_v43 = vld [vmem:[#allocation2 + $0x109] sm:$0xff] }
  0x63   : > { %5305 = vmatmul.mubr.msk.f32.gmra.mrb[24].mxu1 %vm275_vm0, %v6212_v44  ;;  %5359 = vmatprep.mubr.msk.f32.mxu0 %vm275_vm0, %v6214_v54  ;;  %v6310_v54 = vld [vmem:[#allocation2 + $0x10a] sm:$0xff] }
  0x64   : > { %5307 = vmatprep.mubr.msk.f32.mxu1 %vm275_vm0, %v6216_v55  ;;  %7359 = vst [vmem:[#allocation26_spill] sm:$0xff] %v6310_v54 }
  0x66   : > { %5360 = vmatmul.mubr.msk.f32.gmra.mrb[26].mxu0 %vm275_vm0, %v6224_v56  ;;  %v6296_v56 = vld [vmem:[#allocation2 + $0xf1] sm:$0xff] }
  0x67   : > { %5308 = vmatmul.mubr.msk.f32.gmra.mrb[26].mxu1 %vm275_vm0, %v6228_v57  ;;  %5362 = vmatprep.mubr.msk.f32.mxu0 %vm275_vm0, %v6230_v61  ;;  %v6294_v61 = vld [vmem:[#allocation2 + $0xf2] sm:$0xff] }
  0x68   : > { %5310 = vmatprep.mubr.msk.f32.mxu1 %vm275_vm0, %v6232_v62  ;;  %7357 = vst [vmem:[#allocation24_spill] sm:$0xff] %v6294_v61 }
  0x6a   : > { %5363 = vmatmul.mubr.msk.f32.gmra.mrb[28].mxu0 %vm275_vm0, %v6240_v14  ;;  %v6280_v14 = vld [vmem:[#allocation2 + $0xd9] sm:$0xff] }
  0x6b   : > { %5311 = vmatmul.mubr.msk.f32.gmra.mrb[28].mxu1 %vm275_vm0, %v6244_v15  ;;  %5365 = vmatprep.mubr.msk.f32.mxu0 %vm275_vm0, %v6246_v16  ;;  %v6278_v16 = vld [vmem:[#allocation2 + $0xda] sm:$0xff] }
  0x6c   : > { %5313 = vmatprep.mubr.msk.f32.mxu1 %vm275_vm0, %v6248_v17  ;;  %7355 = vst [vmem:[#allocation22_spill] sm:$0xff] %v6278_v16 }
  0x6e   : > { %5366 = vmatmul.mubr.msk.f32.gmra.mrb[30].mxu0 %vm275_vm0, %v6256_v18  ;;  %v6292_v18 = vld [vmem:[#allocation2 + $0xe1] sm:$0xff] }
  0x6f   : > { %5314 = vmatmul.mubr.msk.f32.gmra.mrb[30].mxu1 %vm275_vm0, %v6260_v19  ;;  %5368 = vmatprep.mubr.msk.f32.mxu0 %vm275_vm0, %v6262_v20  ;;  %v6288_v20 = vld [vmem:[#allocation2 + $0xe2] sm:$0xff] }
  0x70   : > { %5316 = vmatprep.mubr.msk.f32.mxu1 %vm275_vm0, %v6264_v22  ;;  %7356 = vst [vmem:[#allocation23_spill] sm:$0xff] %v6288_v20 }
  0x72   : > { %5369 = vmatmul.mubr.msk.f32.gmra.mrb[32].mxu0 %vm275_vm0, %v6272_v28  ;;  %v6308_v28 = vld [vmem:[#allocation2 + $0xf9] sm:$0xff] }
  0x73   : > { %5317 = vmatmul.mubr.msk.f32.gmra.mrb[32].mxu1 %vm275_vm0, %v6276_v29  ;;  %5371 = vmatprep.mubr.msk.f32.mxu0 %vm275_vm0, %v6278_v16  ;;  %v6304_v16 = vld [vmem:[#allocation2 + $0xfa] sm:$0xff] }
  0x74   : > { %5319 = vmatprep.mubr.msk.f32.mxu1 %vm275_vm0, %v6280_v14  ;;  %7358 = vst [vmem:[#allocation25_spill] sm:$0xff] %v6304_v16 }
  0x76   : > { %5372 = vmatmul.mubr.msk.f32.gmra.mrb[34].mxu0 %vm275_vm0, %v6288_v20  ;;  %v6324_v20 = vld [vmem:[#allocation2 + $0x111] sm:$0xff] }
  0x77   : > { %5320 = vmatmul.mubr.msk.f32.gmra.mrb[34].mxu1 %vm275_vm0, %v6292_v18  ;;  %5374 = vmatprep.mubr.msk.f32.mxu0 %vm275_vm0, %v6294_v61  ;;  %v6320_v61 = vld [vmem:[#allocation2 + $0x112] sm:$0xff] }
  0x78   : > { %5322 = vmatprep.mubr.msk.f32.mxu1 %vm275_vm0, %v6296_v56  ;;  %7360 = vst [vmem:[#allocation27_spill] sm:$0xff] %v6320_v61 }
  0x7a   : > { %5375 = vmatmul.mubr.msk.f32.gmra.mrb[36].mxu0 %vm275_vm0, %v6304_v16  ;;  %v6340_v16 = vld [vmem:[#allocation2 + $0x129] sm:$0xff] }
  0x7b   : > { %5323 = vmatmul.mubr.msk.f32.gmra.mrb[36].mxu1 %vm275_vm0, %v6308_v28  ;;  %5377 = vmatprep.mubr.msk.f32.mxu0 %vm275_vm0, %v6310_v54  ;;  %v6336_v54 = vld [vmem:[#allocation2 + $0x12a] sm:$0xff] }
  0x7c   : > { %5325 = vmatprep.mubr.msk.f32.mxu1 %vm275_vm0, %v6312_v43  ;;  %7362 = vst [vmem:[#allocation29_spill] sm:$0xff] %v6336_v54 }
  0x7e   : > { %5378 = vmatmul.mubr.msk.f32.gmra.mrb[38].mxu0 %vm275_vm0, %v6320_v61  ;;  %v6356_v61 = vld [vmem:[#allocation2 + $0x141] sm:$0xff] }
  0x7f   : > { %5326 = vmatmul.mubr.msk.f32.gmra.mrb[38].mxu1 %vm275_vm0, %v6324_v20  ;;  %5380 = vmatprep.mubr.msk.f32.mxu0 %vm275_vm0, %v6326_v38  ;;  %v6352_v38 = vld [vmem:[#allocation2 + $0x142] sm:$0xff] }
  0x80   : > { %5328 = vmatprep.mubr.msk.f32.mxu1 %vm275_vm0, %v6328_v36  ;;  %7364 = vst [vmem:[#allocation31_spill] sm:$0xff] %v6352_v38 }
  0x82   : > { %5381 = vmatmul.mubr.msk.f32.gmra.mrb[40].mxu0 %vm275_vm0, %v6336_v54  ;;  %v6372_v54 = vld [vmem:[#allocation2 + $0x159] sm:$0xff] }
  0x83   : > { %5329 = vmatmul.mubr.msk.f32.gmra.mrb[40].mxu1 %vm275_vm0, %v6340_v16  ;;  %5383 = vmatprep.mubr.msk.f32.mxu0 %vm275_vm0, %v6342_v34  ;;  %v6368_v34 = vld [vmem:[#allocation2 + $0x15a] sm:$0xff] }
  0x84   : > { %5331 = vmatprep.mubr.msk.f32.mxu1 %vm275_vm0, %v6344_v21  ;;  %7366 = vst [vmem:[#allocation33_spill] sm:$0xff] %v6368_v34 }
  0x86   : > { %5384 = vmatmul.mubr.msk.f32.gmra.mrb[42].mxu0 %vm275_vm0, %v6352_v38  ;;  %v6388_v38 = vld [vmem:[#allocation2 + $0x171] sm:$0xff] }
  0x87   : > { %5332 = vmatmul.mubr.msk.f32.gmra.mrb[42].mxu1 %vm275_vm0, %v6356_v61  ;;  %5386 = vmatprep.mubr.msk.f32.mxu0 %vm275_vm0, %v6358_v31  ;;  %v6384_v31 = vld [vmem:[#allocation2 + $0x172] sm:$0xff]  ;;  %7370 = vst [vmem:[#allocation37_spill] sm:$0xff] %v6388_v38 }
  0x88   : > { %5334 = vmatprep.mubr.msk.f32.mxu1 %vm275_vm0, %v6360_v27  ;;  %7369 = vst [vmem:[#allocation36_spill] sm:$0xff] %v6384_v31 }
  0x8a   : > { %5387 = vmatmul.mubr.msk.f32.gmra.mrb[44].mxu0 %vm275_vm0, %v6368_v34  ;;  %v4857_v34 = vld [vmem:[%s7284_s1 + $0x70] sm:$0xff] }
  0x8b   : > { %5335 = vmatmul.mubr.msk.f32.gmra.mrb[44].mxu1 %vm275_vm0, %v6372_v54  ;;  %5389 = vmatprep.mubr.msk.f32.mxu0 %vm275_vm0, %v6374_v25  ;;  %v4891_v25 = vld [vmem:[%s7284_s1 + $0x80] sm:$0xff] }
  0x8c   : > { %5337 = vmatprep.mubr.msk.f32.mxu1 %vm275_vm0, %v6376_v13  ;;  %v6410_v13 = vpack.c.bf16 %v4858_v11, %v4857_v34  ;;  %v6532_v11 = vld [vmem:[#allocation2 + $0x180] sm:$0xff] }
  0x8d   : > { %v7391_v34 = vld [vmem:[#allocation22_spill] sm:$0xff] }
  0x8e   : > { %5390 = vmatmul.mubr.msk.f32.gmra.mrb[46].mxu0 %vm275_vm0, %v6384_v31  ;;  %v4892_v31 = vld [vmem:[%s7284_s1 + $0x88] sm:$0xff] }
  0x8f   : > { %5338 = vmatmul.mubr.msk.f32.gmra.mrb[46].mxu1 %vm275_vm0, %v6388_v38  ;;  %5448 = vmatprep.mubr.msk.f32.mxu0 %vm275_vm0, %v6140_v23  ;;  %v6414_v38 = vpack.c.bf16 %v4892_v31, %v4891_v25  ;;  %v7373_v23 = vld [vmem:[#allocation37_spill] sm:$0xff]  ;;  %v6540_v25 = vld [vmem:[#allocation2 + $0x189] sm:$0xff] }
  0x90   : > { %5396 = vmatprep.mubr.msk.f32.mxu1 %vm275_vm0, %v6005_v46  ;;  %v7372_v46 = vld [vmem:[#allocation4_spill] sm:$0xff] }
  0x91   : > { %v7377_v31 = vld [vmem:[#allocation8_spill] sm:$0xff] }
  0x92   : > { %5449 = vmatmul.mubr.msk.f32.vlgmr.msra.gmra.mrb[48].mxu0 %vm275_vm0, %v6158_v30  ;;  %v7376_v30 = vld [vmem:[#allocation7_spill] sm:$0xff] }
  0x93   : > { %5397 = vmatmul.mubr.msk.f32.vlgmr.msra.gmra.mrb[48].mxu1 %vm275_vm0, %v6007_v47  ;;  %5731 = vmatpush3.bf16.msra.mxu0 %v6147_v26  ;;  %v6530_v47 = vld [vmem:[#allocation2 + $0x181] sm:$0xff] }
  0x94   : > { %5727 = vmatpush3.bf16.msra.mxu1 %v6142_v24  ;;  %5399 = vmatprep.mubr.msk.f32.mxu1 %vm275_vm0, %v6015_v49  ;;  %v7374_v24 = vld [vmem:[#allocation5_spill] sm:$0xff]  ;;  %v6544_v26 = vld [vmem:[#allocation2 + $0x188] sm:$0xff] }
  0x95   : > { %5451 = vmatprep.mubr.msk.f32.mxu0 %vm275_vm0, %v6164_v32  ;;  %5733 = vmatprep.subr.bf16.mxu1 %v6410_v13 }
  0x96   : > { %5452 = vmatmul.mubr.msk.f32.gmra.mrb[50].mxu0 %vm275_vm0, %v6180_v33  ;;  %5737 = vmatprep.subr.bf16.mxu0 %v6414_v38 }
  0x97   : > { %5400 = vmatmul.mubr.msk.f32.gmra.mrb[50].mxu1 %vm275_vm0, %v6024_v50  ;;  %5454 = vmatprep.mubr.msk.f32.mxu0 %vm275_vm0, %v6184_v35 }
  0x98   : > { %5402 = vmatprep.mubr.msk.f32.mxu1 %vm275_vm0, %v6030_v52 }
  0x9a   : > { %5455 = vmatmul.mubr.msk.f32.gmra.mrb[52].mxu0 %vm275_vm0, %v6196_v37 }
  0x9b   : > { %5403 = vmatmul.mubr.msk.f32.gmra.mrb[52].mxu1 %vm275_vm0, %v6048_v59  ;;  %5457 = vmatprep.mubr.msk.f32.mxu0 %vm275_vm0, %v6200_v42 }
  0x9c   : > { %5405 = vmatprep.mubr.msk.f32.mxu1 %vm275_vm0, %v6054_v60 }
  0x9e   : > { %5458 = vmatmul.mubr.msk.f32.gmra.mrb[54].mxu0 %vm275_vm0, %v6212_v44 }
  0x9f   : > { %5406 = vmatmul.mubr.msk.f32.gmra.mrb[54].mxu1 %vm275_vm0, %v6068_v0  ;;  %5460 = vmatprep.mubr.msk.f32.mxu0 %vm275_vm0, %v6216_v55 }
  0xa0   : > { %5408 = vmatprep.mubr.msk.f32.mxu1 %vm275_vm0, %v6074_v2 }
  0xa2   : > { %5461 = vmatmul.mubr.msk.f32.gmra.mrb[56].mxu0 %vm275_vm0, %v6228_v57 }
  0xa3   : > { %5409 = vmatmul.mubr.msk.f32.gmra.mrb[56].mxu1 %vm275_vm0, %v6084_v4  ;;  %5463 = vmatprep.mubr.msk.f32.mxu0 %vm275_vm0, %v6232_v62 }
  0xa4   : > { %5411 = vmatprep.mubr.msk.f32.mxu1 %vm275_vm0, %v6090_v6 }
  0xa6   : > { %5464 = vmatmul.mubr.msk.f32.gmra.mrb[58].mxu0 %vm275_vm0, %v6244_v15 }
  0xa7   : > { %5412 = vmatmul.mubr.msk.f32.gmra.mrb[58].mxu1 %vm275_vm0, %v6100_v8  ;;  %5466 = vmatprep.mubr.msk.f32.mxu0 %vm275_vm0, %v6248_v17 }
  0xa8   : > { %5414 = vmatprep.mubr.msk.f32.mxu1 %vm275_vm0, %v6106_v10 }
  0xaa   : > { %5467 = vmatmul.mubr.msk.f32.gmra.mrb[60].mxu0 %vm275_vm0, %v6260_v19 }
  0xab   : > { %5415 = vmatmul.mubr.msk.f32.gmra.mrb[60].mxu1 %vm275_vm0, %v6116_v12  ;;  %5469 = vmatprep.mubr.msk.f32.mxu0 %vm275_vm0, %v6264_v22 }
  0xac   : > { %5417 = vmatprep.mubr.msk.f32.mxu1 %vm275_vm0, %v5983_v39  ;;  %v7371_v39 = vld [vmem:[#allocation35_spill] sm:$0xff] }
  0xae   : > { %5470 = vmatmul.mubr.msk.f32.gmra.mrb[62].mxu0 %vm275_vm0, %v6276_v29 }
  0xaf   : > { %5418 = vmatmul.mubr.msk.f32.gmra.mrb[62].mxu1 %vm275_vm0, %v5985_v40  ;;  %5472 = vmatprep.mubr.msk.f32.mxu0 %vm275_vm0, %v6280_v14 }
  0xb0   : > { %5420 = vmatprep.mubr.msk.f32.mxu1 %vm275_vm0, %v5987_v41 }
  0xb2   : > { %5473 = vmatmul.mubr.msk.f32.gmra.mrb[64].mxu0 %vm275_vm0, %v6292_v18 }
  0xb3   : > { %5421 = vmatmul.mubr.msk.f32.gmra.mrb[64].mxu1 %vm275_vm0, %v6003_v45  ;;  %5475 = vmatprep.mubr.msk.f32.mxu0 %vm275_vm0, %v6296_v56 }
  0xb4   : > { %5423 = vmatprep.mubr.msk.f32.mxu1 %vm275_vm0, %v6011_v48 }
  0xb6   : > { %5476 = vmatmul.mubr.msk.f32.gmra.mrb[66].mxu0 %vm275_vm0, %v6308_v28 }
  0xb7   : > { %5424 = vmatmul.mubr.msk.f32.gmra.mrb[66].mxu1 %vm275_vm0, %v6028_v51  ;;  %5478 = vmatprep.mubr.msk.f32.mxu0 %vm275_vm0, %v6312_v43 }
  0xb8   : > { %5426 = vmatprep.mubr.msk.f32.mxu1 %vm275_vm0, %v6032_v53 }
  0xba   : > { %5479 = vmatmul.mubr.msk.f32.gmra.mrb[68].mxu0 %vm275_vm0, %v6324_v20 }
  0xbb   : > { %5427 = vmatmul.mubr.msk.f32.gmra.mrb[68].mxu1 %vm275_vm0, %v6044_v58  ;;  %5481 = vmatprep.mubr.msk.f32.mxu0 %vm275_vm0, %v6328_v36 }
  0xbc   : > { %5429 = vmatprep.mubr.msk.f32.mxu1 %vm275_vm0, %v6058_v63 }
  0xbe   : > { %5482 = vmatmul.mubr.msk.f32.gmra.mrb[70].mxu0 %vm275_vm0, %v6340_v16  ;;  %v6671_v16 = vld [vmem:[#allocation2 + $0x182] sm:$0xff] }
  0xbf   : > { %5430 = vmatmul.mubr.msk.f32.gmra.mrb[70].mxu1 %vm275_vm0, %v6072_v1  ;;  %5484 = vmatprep.mubr.msk.f32.mxu0 %vm275_vm0, %v6344_v21  ;;  %v7387_v21 = vld [vmem:[#allocation18_spill] sm:$0xff] }
  0xc0   : > { %5432 = vmatprep.mubr.msk.f32.mxu1 %vm275_vm0, %v6076_v3 }
  0xc2   : > { %5485 = vmatmul.mubr.msk.f32.gmra.mrb[72].mxu0 %vm275_vm0, %v6356_v61  ;;  %v3044_v61 = vld [vmem:[#allocation2 + $0x198] sm:$0xff] }
  0xc3   : > { %5433 = vmatmul.mubr.msk.f32.gmra.mrb[72].mxu1 %vm275_vm0, %v6088_v5  ;;  %5487 = vmatprep.mubr.msk.f32.mxu0 %vm275_vm0, %v6360_v27  ;;  %v7375_v27 = vld [vmem:[#allocation6_spill] sm:$0xff] }
  0xc4   : > { %5435 = vmatprep.mubr.msk.f32.mxu1 %vm275_vm0, %v6092_v7 }
  0xc6   : > { %5488 = vmatmul.mubr.msk.f32.gmra.mrb[74].mxu0 %vm275_vm0, %v6372_v54  ;;  %v7402_v54 = vld [vmem:[#allocation33_spill] sm:$0xff] }
  0xc7   : > { %5436 = vmatmul.mubr.msk.f32.gmra.mrb[74].mxu1 %vm275_vm0, %v6104_v9  ;;  %5490 = vmatprep.mubr.msk.f32.mxu0 %vm275_vm0, %v7371_v39 }
  0xc8   : > { %5438 = vmatprep.mubr.msk.f32.mxu1 %vm275_vm0, %v7372_v46 }
  0xca   : > { %5491 = vmatmul.mubr.msk.f32.gmra.mrb[76].mxu0 %vm275_vm0, %v7373_v23 }
  0xcb   : > { %5439 = vmatmul.mubr.msk.f32.gmra.mrb[76].mxu1 %vm275_vm0, %v7374_v24  ;;  %5493 = vmatprep.mubr.msk.f32.mxu0 %vm275_vm0, %v6530_v47 }
  0xcc   : > { %5441 = vmatprep.mubr.msk.f32.mxu1 %vm275_vm0, %v6532_v11 }
  0xce   : > { %5494 = vmatmul.mubr.msk.f32.gmra.mrb[78].mxu0 %vm275_vm0, %v6540_v25 }
  0xcf   : > { %5442 = vmatmul.mubr.msk.f32.gmra.mrb[78].mxu1 %vm275_vm0, %v6544_v26  ;;  %5552 = vmatprep.mubr.msk.f32.mxu0 %vm275_vm0, %v6015_v49  ;;  %v7378_v49 = vld [vmem:[#allocation9_spill] sm:$0xff] }
  0xd0   : > { %5500 = vmatprep.mubr.msk.f32.mxu1 %vm275_vm0, %v7375_v27  ;;  %v6684_v27 = vld [vmem:[#allocation2 + $0x18a] sm:$0xff] }
  0xd2   : > { %5553 = vmatmul.mubr.msk.f32.vlgmr.msra.gmra.mrb[80].mxu0 %vm275_vm0, %v6024_v50  ;;  %v7379_v50 = vld [vmem:[#allocation10_spill] sm:$0xff] }
  0xd3   : > { %5501 = vmatmul.mubr.msk.f32.vlgmr.msra.gmra.mrb[80].mxu1 %vm275_vm0, %v7376_v30  ;;  %5739 = vmatpush3.bf16.msra.mxu0 %v6414_v38 }
  0xd4   : > { %5735 = vmatpush3.bf16.msra.mxu1 %v6410_v13  ;;  %5503 = vmatprep.mubr.msk.f32.mxu1 %vm275_vm0, %v7377_v31  ;;  %v7380_v13 = vld [vmem:[#allocation11_spill] sm:$0xff] }
  0xd5   : > { %5555 = vmatprep.mubr.msk.f32.mxu0 %vm275_vm0, %v6030_v52  ;;  %v7381_v52 = vld [vmem:[#allocation12_spill] sm:$0xff] }
  0xd6   : > { %5556 = vmatmul.mubr.msk.f32.gmra.mrb[82].mxu0 %vm275_vm0, %v6048_v59  ;;  %v7382_v59 = vld [vmem:[#allocation13_spill] sm:$0xff] }
  0xd7   : > { %5504 = vmatmul.mubr.msk.f32.gmra.mrb[82].mxu1 %vm275_vm0, %v7378_v49  ;;  %5558 = vmatprep.mubr.msk.f32.mxu0 %vm275_vm0, %v6054_v60  ;;  %v7383_v60 = vld [vmem:[#allocation14_spill] sm:$0xff] }
  0xd8   : > { %5506 = vmatprep.mubr.msk.f32.mxu1 %vm275_vm0, %v7379_v50 }
  0xda   : > { %5559 = vmatmul.mubr.msk.f32.gmra.mrb[84].mxu0 %vm275_vm0, %v6068_v0  ;;  %v7384_v0 = vld [vmem:[#allocation15_spill] sm:$0xff] }
  0xdb   : > { %5507 = vmatmul.mubr.msk.f32.gmra.mrb[84].mxu1 %vm275_vm0, %v7380_v13  ;;  %5561 = vmatprep.mubr.msk.f32.mxu0 %vm275_vm0, %v6074_v2  ;;  %v7385_v2 = vld [vmem:[#allocation16_spill] sm:$0xff] }
  0xdc   : > { %5509 = vmatprep.mubr.msk.f32.mxu1 %vm275_vm0, %v7381_v52 }
  0xde   : > { %5562 = vmatmul.mubr.msk.f32.gmra.mrb[86].mxu0 %vm275_vm0, %v6084_v4  ;;  %v3026_v4 = vld [vmem:[#allocation2 + $0xc0] sm:$0xff] }
  0xdf   : > { %5510 = vmatmul.mubr.msk.f32.gmra.mrb[86].mxu1 %vm275_vm0, %v7382_v59  ;;  %5564 = vmatprep.mubr.msk.f32.mxu0 %vm275_vm0, %v6090_v6  ;;  %v7386_v6 = vld [vmem:[#allocation17_spill] sm:$0xff] }
  0xe0   : > { %5512 = vmatprep.mubr.msk.f32.mxu1 %vm275_vm0, %v7383_v60 }
  0xe2   : > { %5565 = vmatmul.mubr.msk.f32.gmra.mrb[88].mxu0 %vm275_vm0, %v6100_v8  ;;  %v7388_v8 = vld [vmem:[#allocation19_spill] sm:$0xff] }
  0xe3   : > { %5513 = vmatmul.mubr.msk.f32.gmra.mrb[88].mxu1 %vm275_vm0, %v7384_v0  ;;  %5567 = vmatprep.mubr.msk.f32.mxu0 %vm275_vm0, %v6106_v10  ;;  %v7389_v10 = vld [vmem:[#allocation20_spill] sm:$0xff] }
  0xe4   : > { %5515 = vmatprep.mubr.msk.f32.mxu1 %vm275_vm0, %v7385_v2 }
  0xe6   : > { %5568 = vmatmul.mubr.msk.f32.gmra.mrb[90].mxu0 %vm275_vm0, %v6116_v12  ;;  %v7390_v12 = vld [vmem:[#allocation21_spill] sm:$0xff] }
  0xe7   : > { %5516 = vmatmul.mubr.msk.f32.gmra.mrb[90].mxu1 %vm275_vm0, %v7386_v6  ;;  %5570 = vmatprep.mubr.msk.f32.mxu0 %vm275_vm0, %v3026_v4 }
  0xe8   : > { %5518 = vmatprep.mubr.msk.f32.mxu1 %vm275_vm0, %v7387_v21 }
  0xea   : > { %5571 = vmatmul.mubr.msk.f32.gmra.mrb[92].mxu0 %vm275_vm0, %v5985_v40  ;;  %v7392_v40 = vld [vmem:[#allocation23_spill] sm:$0xff] }
  0xeb   : > { %5519 = vmatmul.mubr.msk.f32.gmra.mrb[92].mxu1 %vm275_vm0, %v7388_v8  ;;  %5573 = vmatprep.mubr.msk.f32.mxu0 %vm275_vm0, %v5987_v41  ;;  %v7393_v41 = vld [vmem:[#allocation24_spill] sm:$0xff] }
  0xec   : > { %5521 = vmatprep.mubr.msk.f32.mxu1 %vm275_vm0, %v7389_v10 }
  0xee   : > { %5574 = vmatmul.mubr.msk.f32.gmra.mrb[94].mxu0 %vm275_vm0, %v6003_v45  ;;  %v7394_v45 = vld [vmem:[#allocation25_spill] sm:$0xff] }
  0xef   : > { %5522 = vmatmul.mubr.msk.f32.gmra.mrb[94].mxu1 %vm275_vm0, %v7390_v12  ;;  %5576 = vmatprep.mubr.msk.f32.mxu0 %vm275_vm0, %v6011_v48  ;;  %v7395_v48 = vld [vmem:[#allocation26_spill] sm:$0xff] }
  0xf0   : > { %5524 = vmatprep.mubr.msk.f32.mxu1 %vm275_vm0, %v7391_v34 }
  0xf2   : > { %5577 = vmatmul.mubr.msk.f32.gmra.mrb[96].mxu0 %vm275_vm0, %v6028_v51  ;;  %v7396_v51 = vld [vmem:[#allocation27_spill] sm:$0xff] }
  0xf3   : > { %5525 = vmatmul.mubr.msk.f32.gmra.mrb[96].mxu1 %vm275_vm0, %v7392_v40  ;;  %5579 = vmatprep.mubr.msk.f32.mxu0 %vm275_vm0, %v6032_v53  ;;  %v7397_v53 = vld [vmem:[#allocation28_spill] sm:$0xff] }
  0xf4   : > { %5527 = vmatprep.mubr.msk.f32.mxu1 %vm275_vm0, %v7393_v41 }
  0xf6   : > { %5580 = vmatmul.mubr.msk.f32.gmra.mrb[98].mxu0 %vm275_vm0, %v6044_v58  ;;  %v7398_v58 = vld [vmem:[#allocation29_spill] sm:$0xff] }
  0xf7   : > { %5528 = vmatmul.mubr.msk.f32.gmra.mrb[98].mxu1 %vm275_vm0, %v7394_v45  ;;  %5582 = vmatprep.mubr.msk.f32.mxu0 %vm275_vm0, %v6058_v63  ;;  %v7399_v63 = vld [vmem:[#allocation30_spill] sm:$0xff] }
  0xf8   : > { %5530 = vmatprep.mubr.msk.f32.mxu1 %vm275_vm0, %v7395_v48 }
  0xfa   : > { %5583 = vmatmul.mubr.msk.f32.gmra.mrb[100].mxu0 %vm275_vm0, %v6072_v1  ;;  %v5242_v1 = vpop.f32.mrb[0].mxu0 }
  0xfb   : > { %5531 = vmatmul.mubr.msk.f32.gmra.mrb[100].mxu1 %vm275_vm0, %v7396_v51  ;;  %5585 = vmatprep.mubr.msk.f32.mxu0 %vm275_vm0, %v6076_v3  ;;  %721 = vst.msk [vmem:[#allocation3 + $0x8] sm:$0xff] %vm275_vm0, %v5242_v1  ;;  %v561_v36 = vpop.f32.mrb[1].mxu0  ;;  %v7400_v3 = vld [vmem:[#allocation31_spill] sm:$0xff] }
  0xfc   : > { %5533 = vmatprep.mubr.msk.f32.mxu1 %vm275_vm0, %v7397_v53  ;;  %720 = vst.msk [vmem:[#allocation3] sm:$0xff] %vm275_vm0, %v561_v36 }
  0xfe   : > { %5586 = vmatmul.mubr.msk.f32.gmra.mrb[102].mxu0 %vm275_vm0, %v6088_v5  ;;  %v7401_v5 = vld [vmem:[#allocation32_spill] sm:$0xff] }
  0xff   : > { %5534 = vmatmul.mubr.msk.f32.gmra.mrb[102].mxu1 %vm275_vm0, %v7398_v58  ;;  %5588 = vmatprep.mubr.msk.f32.mxu0 %vm275_vm0, %v6092_v7 }
 0x100   : > { %5536 = vmatprep.mubr.msk.f32.mxu1 %vm275_vm0, %v7399_v63 }
 0x102   : > { %5589 = vmatmul.mubr.msk.f32.gmra.mrb[104].mxu0 %vm275_vm0, %v6104_v9  ;;  %v7403_v9 = vld [vmem:[#allocation34_spill] sm:$0xff]  ;;  %v1109_v51 = vld [vmem:[#allocation3 + $0x8] sm:$0xff] }
 0x103   : > { %5537 = vmatmul.mubr.msk.f32.gmra.mrb[104].mxu1 %vm275_vm0, %v7400_v3  ;;  %5591 = vmatprep.mubr.msk.f32.mxu0 %vm275_vm0, %v7372_v46 }
 0x104   : > { %5539 = vmatprep.mubr.msk.f32.mxu1 %vm275_vm0, %v7401_v5 }
 0x106   : > { %v5266_v7 = vpop.f32.mrb[0].mxu1  ;;  %5592 = vmatmul.mubr.msk.f32.gmra.mrb[106].mxu0 %vm275_vm0, %v7374_v24  ;;  %v3045_v24 = vld [vmem:[#allocation2 + $0x1a0] sm:$0xff] }
 0x107   : > { %737 = vst.msk [vmem:[#allocation3 + $0x88] sm:$0xff] %vm275_vm0, %v5266_v7  ;;  %v641_v38 = vpop.f32.mrb[1].mxu1  ;;  %5540 = vmatmul.mubr.msk.f32.gmra.mrb[106].mxu1 %vm275_vm0, %v7402_v54  ;;  %5594 = vmatprep.mubr.msk.f32.mxu0 %vm275_vm0, %v6532_v11  ;;  %v7404_v11 = vld [vmem:[#allocation36_spill] sm:$0xff] }
 0x108   : > { %736 = vst.msk [vmem:[#allocation3 + $0x80] sm:$0xff] %vm275_vm0, %v641_v38  ;;  %5542 = vmatprep.mubr.msk.f32.mxu1 %vm275_vm0, %v7403_v9  ;;  %v3934_v7 = vld [vmem:[#allocation2 + $0xf2] sm:$0xff] }
 0x109   : > { %v5245_v20 = vpop.f32.mrb[2].mxu0 }
 0x10a   : > { %v5269_v39 = vpop.f32.mrb[2].mxu1  ;;  %723 = vst.msk [vmem:[#allocation3 + $0x18] sm:$0xff] %vm275_vm0, %v5245_v20  ;;  %v571_v46 = vpop.f32.mrb[3].mxu0  ;;  %5595 = vmatmul.mubr.msk.f32.gmra.mrb[108].mxu0 %vm275_vm0, %v6544_v26 }
 0x10b   : > { %739 = vst.msk [vmem:[#allocation3 + $0x98] sm:$0xff] %vm275_vm0, %v5269_v39  ;;  %v651_v23 = vpop.f32.mrb[3].mxu1  ;;  %5543 = vmatmul.mubr.msk.f32.gmra.mrb[108].mxu1 %vm275_vm0, %v7404_v11  ;;  %722 = vst.msk [vmem:[#allocation3 + $0x10] sm:$0xff] %vm275_vm0, %v571_v46  ;;  %5597 = vmatprep.mubr.msk.f32.mxu0 %vm275_vm0, %v3044_v61 }
 0x10c   : > { %738 = vst.msk [vmem:[#allocation3 + $0x90] sm:$0xff] %vm275_vm0, %v651_v23  ;;  %5545 = vmatprep.mubr.msk.f32.mxu1 %vm275_vm0, %v6671_v16  ;;  %v3936_v23 = vld [vmem:[#allocation2 + $0x10a] sm:$0xff] }
 0x10d   : > { %v5248_v30 = vpop.f32.mrb[4].mxu0 }
 0x10e   : > { %v5272_v26 = vpop.f32.mrb[4].mxu1  ;;  %725 = vst.msk [vmem:[#allocation3 + $0x28] sm:$0xff] %vm275_vm0, %v5248_v30  ;;  %v581_v4 = vpop.f32.mrb[5].mxu0  ;;  %5598 = vmatmul.mubr.msk.f32.gmra.mrb[110].mxu0 %vm275_vm0, %v3045_v24 }
 0x10f   : > { %741 = vst.msk [vmem:[#allocation3 + $0xa8] sm:$0xff] %vm275_vm0, %v5272_v26  ;;  %v661_v34 = vpop.f32.mrb[5].mxu1  ;;  %5546 = vmatmul.mubr.msk.f32.gmra.mrb[110].mxu1 %vm275_vm0, %v6684_v27  ;;  %724 = vst.msk [vmem:[#allocation3 + $0x20] sm:$0xff] %vm275_vm0, %v581_v4  ;;  %5656 = vmatprep.mubr.msk.f32.mxu0 %vm275_vm0, %v7377_v31 }
 0x110   : > { %740 = vst.msk [vmem:[#allocation3 + $0xa0] sm:$0xff] %vm275_vm0, %v661_v34  ;;  %5604 = vmatprep.mubr.msk.f32.mxu1 %vm275_vm0, %v6164_v32 }
 0x111   : > { %v5251_v40 = vpop.f32.mrb[6].mxu0  ;;  %v1111_v1 = vld [vmem:[#allocation3 + $0x18] sm:$0xff] }
 0x112   : > { %v5275_v41 = vpop.f32.mrb[6].mxu1  ;;  %727 = vst.msk [vmem:[#allocation3 + $0x38] sm:$0xff] %vm275_vm0, %v5251_v40  ;;  %v591_v45 = vpop.f32.mrb[7].mxu0  ;;  %5657 = vmatmul.mubr.msk.f32.vlgmr.msra.gmra.mrb[112].mxu0 %vm275_vm0, %v7378_v49  ;;  %v1110_v5 = vld [vmem:[#allocation3 + $0x10] sm:$0xff] }
 0x113   : > { %743 = vst.msk [vmem:[#allocation3 + $0xb8] sm:$0xff] %vm275_vm0, %v5275_v41  ;;  %v671_v48 = vpop.f32.mrb[7].mxu1  ;;  %5605 = vmatmul.mubr.msk.f32.vlgmr.msra.gmra.mrb[112].mxu1 %vm275_vm0, %v6180_v33  ;;  %726 = vst.msk [vmem:[#allocation3 + $0x30] sm:$0xff] %vm275_vm0, %v591_v45  ;;  %5659 = vmatprep.mubr.msk.f32.mxu0 %vm275_vm0, %v7379_v50  ;;  %v3937_v45 = vld [vmem:[#allocation2 + $0x112] sm:$0xff] }
 0x114   : > { %742 = vst.msk [vmem:[#allocation3 + $0xb0] sm:$0xff] %vm275_vm0, %v671_v48  ;;  %5607 = vmatprep.mubr.msk.f32.mxu1 %vm275_vm0, %v6184_v35 }
 0x115   : > { %v5254_v32 = vpop.f32.mrb[8].mxu0  ;;  %v1113_v54 = vld [vmem:[#allocation3 + $0x28] sm:$0xff] }
 0x116   : > { %v5278_v31 = vpop.f32.mrb[8].mxu1  ;;  %729 = vst.msk [vmem:[#allocation3 + $0x48] sm:$0xff] %vm275_vm0, %v5254_v32  ;;  %v601_v49 = vpop.f32.mrb[9].mxu0  ;;  %5660 = vmatmul.mubr.msk.f32.gmra.mrb[114].mxu0 %vm275_vm0, %v7380_v13  ;;  %v1112_v20 = vld [vmem:[#allocation3 + $0x20] sm:$0xff] }
 0x117   : > { %745 = vst.msk [vmem:[#allocation3 + $0xc8] sm:$0xff] %vm275_vm0, %v5278_v31  ;;  %v681_v33 = vpop.f32.mrb[9].mxu1  ;;  %5608 = vmatmul.mubr.msk.f32.gmra.mrb[114].mxu1 %vm275_vm0, %v6196_v37  ;;  %728 = vst.msk [vmem:[#allocation3 + $0x40] sm:$0xff] %vm275_vm0, %v601_v49  ;;  %5662 = vmatprep.mubr.msk.f32.mxu0 %vm275_vm0, %v7381_v52  ;;  %v3485_v31 = vld [vmem:[#allocation2 + $0x111] sm:$0xff]  ;;  %v3938_v49 = vld [vmem:[#allocation2 + $0x122] sm:$0xff] }
 0x118   : > { %744 = vst.msk [vmem:[#allocation3 + $0xc0] sm:$0xff] %vm275_vm0, %v681_v33  ;;  %5610 = vmatprep.mubr.msk.f32.mxu1 %vm275_vm0, %v6200_v42 }
 0x119   : > { %v5257_v35 = vpop.f32.mrb[10].mxu0 }
 0x11a   : > { %v5281_v50 = vpop.f32.mrb[10].mxu1  ;;  %731 = vst.msk [vmem:[#allocation3 + $0x58] sm:$0xff] %vm275_vm0, %v5257_v35  ;;  %v611_v13 = vpop.f32.mrb[11].mxu0  ;;  %5663 = vmatmul.mubr.msk.f32.gmra.mrb[116].mxu0 %vm275_vm0, %v7382_v59  ;;  %v1114_v41 = vld [vmem:[#allocation3 + $0x30] sm:$0xff] }
 0x11b   : > { %747 = vst.msk [vmem:[#allocation3 + $0xd8] sm:$0xff] %vm275_vm0, %v5281_v50  ;;  %v691_v37 = vpop.f32.mrb[11].mxu1  ;;  %5611 = vmatmul.mubr.msk.f32.gmra.mrb[116].mxu1 %vm275_vm0, %v6212_v44  ;;  %730 = vst.msk [vmem:[#allocation3 + $0x50] sm:$0xff] %vm275_vm0, %v611_v13  ;;  %5665 = vmatprep.mubr.msk.f32.mxu0 %vm275_vm0, %v7383_v60  ;;  %v3486_v50 = vld [vmem:[#allocation2 + $0x121] sm:$0xff] }
 0x11c   : > { %746 = vst.msk [vmem:[#allocation3 + $0xd0] sm:$0xff] %vm275_vm0, %v691_v37  ;;  %5613 = vmatprep.mubr.msk.f32.mxu1 %vm275_vm0, %v6216_v55 }
 0x11d   : > { %v5260_v42 = vpop.f32.mrb[12].mxu0 }
 0x11e   : > { %v5284_v52 = vpop.f32.mrb[12].mxu1  ;;  %733 = vst.msk [vmem:[#allocation3 + $0x68] sm:$0xff] %vm275_vm0, %v5260_v42  ;;  %v621_v59 = vpop.f32.mrb[13].mxu0  ;;  %5666 = vmatmul.mubr.msk.f32.gmra.mrb[118].mxu0 %vm275_vm0, %v7384_v0  ;;  %v1117_v42 = vld [vmem:[#allocation3 + $0x48] sm:$0xff] }
 0x11f   : > { %749 = vst.msk [vmem:[#allocation3 + $0xe8] sm:$0xff] %vm275_vm0, %v5284_v52  ;;  %v701_v44 = vpop.f32.mrb[13].mxu1  ;;  %5614 = vmatmul.mubr.msk.f32.gmra.mrb[118].mxu1 %vm275_vm0, %v6228_v57  ;;  %732 = vst.msk [vmem:[#allocation3 + $0x60] sm:$0xff] %vm275_vm0, %v621_v59  ;;  %5668 = vmatprep.mubr.msk.f32.mxu0 %vm275_vm0, %v7385_v2 }
 0x120   : > { %748 = vst.msk [vmem:[#allocation3 + $0xe0] sm:$0xff] %vm275_vm0, %v701_v44  ;;  %5616 = vmatprep.mubr.msk.f32.mxu1 %vm275_vm0, %v6232_v62  ;;  %v1116_v44 = vld [vmem:[#allocation3 + $0x40] sm:$0xff] }
 0x121   : > { %v5263_v55 = vpop.f32.mrb[14].mxu0 }
 0x122   : > { %v5287_v60 = vpop.f32.mrb[14].mxu1  ;;  %735 = vst.msk [vmem:[#allocation3 + $0x78] sm:$0xff] %vm275_vm0, %v5263_v55  ;;  %v631_v0 = vpop.f32.mrb[15].mxu0  ;;  %5669 = vmatmul.mubr.msk.f32.gmra.mrb[120].mxu0 %vm275_vm0, %v7386_v6  ;;  %v3939_v55 = vld [vmem:[#allocation2 + $0x12a] sm:$0xff] }
 0x123   : > { %751 = vst.msk [vmem:[#allocation3 + $0xf8] sm:$0xff] %vm275_vm0, %v5287_v60  ;;  %v711_v57 = vpop.f32.mrb[15].mxu1  ;;  %5617 = vmatmul.mubr.msk.f32.gmra.mrb[120].mxu1 %vm275_vm0, %v6244_v15  ;;  %734 = vst.msk [vmem:[#allocation3 + $0x70] sm:$0xff] %vm275_vm0, %v631_v0  ;;  %5671 = vmatprep.mubr.msk.f32.mxu0 %vm275_vm0, %v7387_v21  ;;  %v1108_v15 = vld [vmem:[#allocation3] sm:$0xff] }
 0x124   : > { %750 = vst.msk [vmem:[#allocation3 + $0xf0] sm:$0xff] %vm275_vm0, %v711_v57  ;;  %5619 = vmatprep.mubr.msk.f32.mxu1 %vm275_vm0, %v6248_v17  ;;  %v3932_v17 = vld [vmem:[#allocation2 + $0xda] sm:$0xff]  ;;  %v3487_v57 = vld [vmem:[#allocation2 + $0x129] sm:$0xff] }
 0x125   : > { %v5346_v62 = vpop.f32.mrb[16].mxu0 }
 0x126   : > { %v5294_v2 = vpop.f32.mrb[16].mxu1  ;;  %v1401_v6 = vpop.f32.mrb[17].mxu0  ;;  %5672 = vmatmul.mubr.msk.f32.gmra.mrb[122].mxu0 %vm275_vm0, %v7388_v8 }
 0x127   : > { %v1141_v53 = vadd.f32 %v5294_v2, %v1109_v51  ;;  %v949_v58 = vpop.f32.mrb[17].mxu1  ;;  %5620 = vmatmul.mubr.msk.f32.gmra.mrb[122].mxu1 %vm275_vm0, %v6260_v19  ;;  %5674 = vmatprep.mubr.msk.f32.mxu0 %vm275_vm0, %v7389_v10 }
 0x128   : > { %v1140_v21 = vadd.f32 %v1108_v15, %v949_v58  ;;  %5622 = vmatprep.mubr.msk.f32.mxu1 %vm275_vm0, %v6264_v22  ;;  %v3933_v22 = vld [vmem:[#allocation2 + $0xe2] sm:$0xff] }
 0x129   : > { %1173 = vst.msk [vmem:[#allocation3 + $0x8] sm:$0xff] %vm275_vm0, %v1141_v53  ;;  %v5349_v63 = vpop.f32.mrb[18].mxu0 }
 0x12a   : > { %1172 = vst.msk [vmem:[#allocation3] sm:$0xff] %vm275_vm0, %v1140_v21  ;;  %v5297_v8 = vpop.f32.mrb[18].mxu1  ;;  %v1411_v36 = vpop.f32.mrb[19].mxu0  ;;  %5675 = vmatmul.mubr.msk.f32.gmra.mrb[124].mxu0 %vm275_vm0, %v7390_v12  ;;  %v1119_v21 = vld [vmem:[#allocation3 + $0x58] sm:$0xff] }
 0x12b   : > { %v1143_v19 = vadd.f32 %v5297_v8, %v1111_v1  ;;  %v959_v3 = vpop.f32.mrb[19].mxu1  ;;  %5623 = vmatmul.mubr.msk.f32.gmra.mrb[124].mxu1 %vm275_vm0, %v6276_v29  ;;  %5677 = vmatprep.mubr.msk.f32.mxu0 %vm275_vm0, %v3932_v17  ;;  %v1118_v1 = vld [vmem:[#allocation3 + $0x50] sm:$0xff] }
 0x12c   : > { %v1142_v10 = vadd.f32 %v1110_v5, %v959_v3  ;;  %5625 = vmatprep.mubr.msk.f32.mxu1 %vm275_vm0, %v6280_v14  ;;  %v3935_v14 = vld [vmem:[#allocation2 + $0xfa] sm:$0xff] }
 0x12d   : > { %1175 = vst.msk [vmem:[#allocation3 + $0x18] sm:$0xff] %vm275_vm0, %v1143_v19  ;;  %v6775_v38 = vpop.f32.mrb[20].mxu0  ;;  %v3489_v5 = vld [vmem:[#allocation2 + $0x141] sm:$0xff] }
 0x12e   : > { %1174 = vst.msk [vmem:[#allocation3 + $0x10] sm:$0xff] %vm275_vm0, %v1142_v10  ;;  %v5300_v12 = vpop.f32.mrb[20].mxu1  ;;  %v6778_v9 = vpop.f32.mrb[21].mxu0  ;;  %5678 = vmatmul.mubr.msk.f32.gmra.mrb[126].mxu0 %vm275_vm0, %v3933_v22  ;;  %v3942_v22 = vld [vmem:[#allocation2 + $0x152] sm:$0xff] }
 0x12f   : > { %v1145_v29 = vadd.f32 %v5300_v12, %v1113_v54  ;;  %v969_v61 = vpop.f32.mrb[21].mxu1  ;;  %5626 = vmatmul.mubr.msk.f32.gmra.mrb[126].mxu1 %vm275_vm0, %v6292_v18  ;;  %5680 = vmatprep.mubr.msk.f32.mxu0 %vm275_vm0, %v3934_v7  ;;  %v1115_v18 = vld [vmem:[#allocation3 + $0x38] sm:$0xff] }
 0x130   : > { %v1144_v39 = vadd.f32 %v1112_v20, %v969_v61  ;;  %v1561_v46 = vld [vmem:[#allocation3 + $0x8] sm:$0xff]  ;;  %5628 = vmatprep.mubr.msk.f32.mxu1 %vm275_vm0, %v6296_v56 }
 0x131   : > { %1177 = vst.msk [vmem:[#allocation3 + $0x28] sm:$0xff] %vm275_vm0, %v1145_v29  ;;  %v1593_v11 = vadd.f32 %v5346_v62, %v1561_v46  ;;  %v1560_v24 = vld [vmem:[#allocation3] sm:$0xff]  ;;  %v6787_v30 = vpop.f32.mrb[22].mxu0  ;;  %v3940_v62 = vld [vmem:[#allocation2 + $0x13a] sm:$0xff] }
 0x132   : > { %1176 = vst.msk [vmem:[#allocation3 + $0x20] sm:$0xff] %vm275_vm0, %v1144_v39  ;;  %v1592_v26 = vadd.f32 %v1560_v24, %v1401_v6  ;;  %v5303_v4 = vpop.f32.mrb[22].mxu1  ;;  %v6790_v34 = vpop.f32.mrb[23].mxu0  ;;  %5681 = vmatmul.mubr.msk.f32.gmra.mrb[128].mxu0 %vm275_vm0, %v3935_v14  ;;  %v3488_v6 = vld [vmem:[#allocation2 + $0x139] sm:$0xff]  ;;  %v1120_v39 = vld [vmem:[#allocation3 + $0x60] sm:$0xff] }
 0x133   : > { %1625 = vst.msk [vmem:[#allocation3 + $0x8] sm:$0xff] %vm275_vm0, %v1593_v11  ;;  %v1147_v40 = vadd.f32 %v5303_v4, %v1115_v18  ;;  %v979_v56 = vpop.f32.mrb[23].mxu1  ;;  %5629 = vmatmul.mubr.msk.f32.gmra.mrb[128].mxu1 %vm275_vm0, %v6308_v28  ;;  %5683 = vmatprep.mubr.msk.f32.mxu0 %vm275_vm0, %v3936_v23  ;;  %v1121_v29 = vld [vmem:[#allocation3 + $0x68] sm:$0xff]  ;;  %v3492_v18 = vld [vmem:[#allocation2 + $0x169] sm:$0xff] }
 0x134   : > { %1624 = vst.msk [vmem:[#allocation3] sm:$0xff] %vm275_vm0, %v1592_v26  ;;  %v1146_v48 = vadd.f32 %v1114_v41, %v979_v56  ;;  %v1563_v32 = vld [vmem:[#allocation3 + $0x18] sm:$0xff]  ;;  %5631 = vmatprep.mubr.msk.f32.mxu1 %vm275_vm0, %v6312_v43  ;;  %v3943_v46 = vld [vmem:[#allocation2 + $0x15a] sm:$0xff] }
 0x135   : > { %1179 = vst.msk [vmem:[#allocation3 + $0x38] sm:$0xff] %vm275_vm0, %v1147_v40  ;;  %v1595_v33 = vadd.f32 %v5349_v63, %v1563_v32  ;;  %v1562_v35 = vld [vmem:[#allocation3 + $0x10] sm:$0xff]  ;;  %v6801_v13 = vpop.f32.mrb[24].mxu0  ;;  %v1123_v41 = vld [vmem:[#allocation3 + $0x78] sm:$0xff] }
 0x136   : > { %1178 = vst.msk [vmem:[#allocation3 + $0x30] sm:$0xff] %vm275_vm0, %v1146_v48  ;;  %v1594_v28 = vadd.f32 %v1562_v35, %v1411_v36  ;;  %v5306_v37 = vpop.f32.mrb[24].mxu1  ;;  %v6804_v52 = vpop.f32.mrb[25].mxu0  ;;  %5684 = vmatmul.mubr.msk.f32.gmra.mrb[130].mxu0 %vm275_vm0, %v3937_v45  ;;  %v3941_v36 = vld [vmem:[#allocation2 + $0x142] sm:$0xff]  ;;  %v3491_v24 = vld [vmem:[#allocation2 + $0x159] sm:$0xff] }
 0x137   : > { %1627 = vst.msk [vmem:[#allocation3 + $0x18] sm:$0xff] %vm275_vm0, %v1595_v33  ;;  %v1149_v43 = vadd.f32 %v5306_v37, %v1117_v42  ;;  %v989_v59 = vpop.f32.mrb[25].mxu1  ;;  %5632 = vmatmul.mubr.msk.f32.gmra.mrb[130].mxu1 %vm275_vm0, %v3485_v31  ;;  %5686 = vmatprep.mubr.msk.f32.mxu0 %vm275_vm0, %v3938_v49  ;;  %v1122_v31 = vld [vmem:[#allocation3 + $0x70] sm:$0xff]  ;;  %v3945_v49 = vld [vmem:[#allocation2 + $0x172] sm:$0xff] }
 0x138   : > { %1626 = vst.msk [vmem:[#allocation3 + $0x10] sm:$0xff] %vm275_vm0, %v1594_v28  ;;  %v1148_v60 = vadd.f32 %v1116_v44, %v989_v59  ;;  %v1565_v0 = vld [vmem:[#allocation3 + $0x28] sm:$0xff]  ;;  %5634 = vmatprep.mubr.msk.f32.mxu1 %vm275_vm0, %v3486_v50 }
 0x139   : > { %1181 = vst.msk [vmem:[#allocation3 + $0x48] sm:$0xff] %vm275_vm0, %v1149_v43  ;;  %v1597_v2 = vadd.f32 %v6775_v38, %v1565_v0  ;;  %v1564_v51 = vld [vmem:[#allocation3 + $0x20] sm:$0xff]  ;;  %v6814_v53 = vpop.f32.mrb[26].mxu0  ;;  %v1125_v43 = vld [vmem:[#allocation3 + $0x88] sm:$0xff] }
 0x13a   : > { %1180 = vst.msk [vmem:[#allocation3 + $0x40] sm:$0xff] %vm275_vm0, %v1148_v60  ;;  %v1596_v58 = vadd.f32 %v1564_v51, %v6778_v9  ;;  %v5309_v15 = vpop.f32.mrb[26].mxu1  ;;  %v6818_v17 = vpop.f32.mrb[27].mxu0  ;;  %5687 = vmatmul.mubr.msk.f32.gmra.mrb[132].mxu0 %vm275_vm0, %v3939_v55  ;;  %v3490_v38 = vld [vmem:[#allocation2 + $0x151] sm:$0xff] }
 0x13b   : > { %1629 = vst.msk [vmem:[#allocation3 + $0x28] sm:$0xff] %vm275_vm0, %v1597_v2  ;;  %v1151_v63 = vadd.f32 %v5309_v15, %v1119_v21  ;;  %v999_v8 = vpop.f32.mrb[27].mxu1  ;;  %5635 = vmatmul.mubr.msk.f32.gmra.mrb[132].mxu1 %vm275_vm0, %v3487_v57  ;;  %5689 = vmatprep.mubr.msk.f32.mxu0 %vm275_vm0, %v3940_v62  ;;  %v3493_v50 = vld [vmem:[#allocation2 + $0x171] sm:$0xff]  ;;  %v3948_v62 = vld [vmem:[#allocation2 + $0x19a] sm:$0xff]  ;;  %v1127_v15 = vld [vmem:[#allocation3 + $0x98] sm:$0xff] }
 0x13c   : > { %1628 = vst.msk [vmem:[#allocation3 + $0x20] sm:$0xff] %vm275_vm0, %v1596_v58  ;;  %v1150_v19 = vadd.f32 %v1118_v1, %v999_v8  ;;  %v1567_v3 = vld [vmem:[#allocation3 + $0x38] sm:$0xff]  ;;  %5637 = vmatprep.mubr.msk.f32.mxu1 %vm275_vm0, %v3488_v6  ;;  %v1124_v60 = vld [vmem:[#allocation3 + $0x80] sm:$0xff]  ;;  %v3496_v6 = vld [vmem:[#allocation2 + $0x199] sm:$0xff] }
 0x13d   : > { %1183 = vst.msk [vmem:[#allocation3 + $0x58] sm:$0xff] %vm275_vm0, %v1151_v63  ;;  %v1599_v10 = vadd.f32 %v6787_v30, %v1567_v3  ;;  %v1566_v7 = vld [vmem:[#allocation3 + $0x30] sm:$0xff]  ;;  %v6828_v12 = vpop.f32.mrb[28].mxu0  ;;  %v3944_v30 = vld [vmem:[#allocation2 + $0x16a] sm:$0xff] }
 0x13e   : > { %1182 = vst.msk [vmem:[#allocation3 + $0x50] sm:$0xff] %vm275_vm0, %v1150_v19  ;;  %v1598_v54 = vadd.f32 %v1566_v7, %v6790_v34  ;;  %v5312_v9 = vpop.f32.mrb[28].mxu1  ;;  %v6832_v61 = vpop.f32.mrb[29].mxu0  ;;  %5690 = vmatmul.mubr.msk.f32.gmra.mrb[134].mxu0 %vm275_vm0, %v3941_v36  ;;  %v1126_v63 = vld [vmem:[#allocation3 + $0x90] sm:$0xff] }
 0x13f   : > { %1631 = vst.msk [vmem:[#allocation3 + $0x38] sm:$0xff] %vm275_vm0, %v1599_v10  ;;  %v1153_v20 = vadd.f32 %v5312_v9, %v1121_v29  ;;  %v1009_v14 = vpop.f32.mrb[29].mxu1  ;;  %5638 = vmatmul.mubr.msk.f32.gmra.mrb[134].mxu1 %vm275_vm0, %v3489_v5  ;;  %5692 = vmatprep.mubr.msk.f32.mxu0 %vm275_vm0, %v3942_v22  ;;  %v3949_v8 = vld [vmem:[#allocation2 + $0x1a2] sm:$0xff]  ;;  %v1129_v10 = vld [vmem:[#allocation3 + $0xa8] sm:$0xff] }
 0x140   : > { %1630 = vst.msk [vmem:[#allocation3 + $0x30] sm:$0xff] %vm275_vm0, %v1598_v54  ;;  %v1152_v23 = vadd.f32 %v1120_v39, %v1009_v14  ;;  %v1569_v11 = vld [vmem:[#allocation3 + $0x48] sm:$0xff]  ;;  %5640 = vmatprep.mubr.msk.f32.mxu1 %vm275_vm0, %v3490_v38  ;;  %v3497_v19 = vld [vmem:[#allocation2 + $0x1a1] sm:$0xff]  ;;  %v1128_v54 = vld [vmem:[#allocation3 + $0xa0] sm:$0xff] }
 0x141   : > { %1185 = vst.msk [vmem:[#allocation3 + $0x68] sm:$0xff] %vm275_vm0, %v1153_v20  ;;  %v1601_v26 = vadd.f32 %v6801_v13, %v1569_v11  ;;  %v1568_v4 = vld [vmem:[#allocation3 + $0x40] sm:$0xff]  ;;  %v6842_v34 = vpop.f32.mrb[30].mxu0 }
 0x142   : > { %1184 = vst.msk [vmem:[#allocation3 + $0x60] sm:$0xff] %vm275_vm0, %v1152_v23  ;;  %v1600_v40 = vadd.f32 %v1568_v4, %v6804_v52  ;;  %v5315_v56 = vpop.f32.mrb[30].mxu1  ;;  %v6846_v45 = vpop.f32.mrb[31].mxu0  ;;  %5693 = vmatmul.mubr.msk.f32.gmra.mrb[136].mxu0 %vm275_vm0, %v3943_v46  ;;  %v1131_v23 = vld [vmem:[#allocation3 + $0xb8] sm:$0xff] }
 0x143   : > { %1633 = vst.msk [vmem:[#allocation3 + $0x48] sm:$0xff] %vm275_vm0, %v1601_v26  ;;  %v1155_v48 = vadd.f32 %v5315_v56, %v1123_v41  ;;  %v1019_v32 = vpop.f32.mrb[31].mxu1  ;;  %5641 = vmatmul.mubr.msk.f32.gmra.mrb[136].mxu1 %vm275_vm0, %v3491_v24  ;;  %5695 = vmatprep.mubr.msk.f32.mxu0 %vm275_vm0, %v3944_v30  ;;  %v1130_v26 = vld [vmem:[#allocation3 + $0xb0] sm:$0xff] }
 0x144   : > { %1632 = vst.msk [vmem:[#allocation3 + $0x40] sm:$0xff] %vm275_vm0, %v1600_v40  ;;  %v1154_v33 = vadd.f32 %v1122_v31, %v1019_v32  ;;  %v1571_v35 = vld [vmem:[#allocation3 + $0x58] sm:$0xff]  ;;  %5643 = vmatprep.mubr.msk.f32.mxu1 %vm275_vm0, %v3492_v18 }
 0x145   : > { %1187 = vst.msk [vmem:[#allocation3 + $0x78] sm:$0xff] %vm275_vm0, %v1155_v48  ;;  %v1603_v13 = vadd.f32 %v6814_v53, %v1571_v35  ;;  %v1570_v28 = vld [vmem:[#allocation3 + $0x50] sm:$0xff]  ;;  %v5370_v37 = vpop.f32.mrb[32].mxu0  ;;  %v1133_v48 = vld [vmem:[#allocation3 + $0xc8] sm:$0xff] }
 0x146   : > { %1186 = vst.msk [vmem:[#allocation3 + $0x70] sm:$0xff] %vm275_vm0, %v1154_v33  ;;  %v1602_v42 = vadd.f32 %v1570_v28, %v6818_v17  ;;  %v5318_v52 = vpop.f32.mrb[32].mxu1  ;;  %v1481_v59 = vpop.f32.mrb[33].mxu0  ;;  %5696 = vmatmul.mubr.msk.f32.gmra.mrb[138].mxu0 %vm275_vm0, %v3945_v49  ;;  %v1132_v33 = vld [vmem:[#allocation3 + $0xc0] sm:$0xff] }
 0x147   : > { %1635 = vst.msk [vmem:[#allocation3 + $0x58] sm:$0xff] %vm275_vm0, %v1603_v13  ;;  %v1157_v44 = vadd.f32 %v5318_v52, %v1125_v43  ;;  %v1029_v55 = vpop.f32.mrb[33].mxu1  ;;  %5644 = vmatmul.mubr.msk.f32.gmra.mrb[138].mxu1 %vm275_vm0, %v3493_v50  ;;  %5698 = vmatprep.mubr.msk.f32.mxu0 %vm275_vm0, %v6671_v16  ;;  %v1135_v43 = vld [vmem:[#allocation3 + $0xd8] sm:$0xff] }
 0x148   : > { %1634 = vst.msk [vmem:[#allocation3 + $0x50] sm:$0xff] %vm275_vm0, %v1602_v42  ;;  %v1156_v0 = vadd.f32 %v1124_v60, %v1029_v55  ;;  %v1573_v57 = vld [vmem:[#allocation3 + $0x68] sm:$0xff]  ;;  %5646 = vmatprep.mubr.msk.f32.mxu1 %vm275_vm0, %v6530_v47  ;;  %v1134_v60 = vld [vmem:[#allocation3 + $0xd0] sm:$0xff] }
 0x149   : > { %1189 = vst.msk [vmem:[#allocation3 + $0x88] sm:$0xff] %vm275_vm0, %v1157_v44  ;;  %v1605_v2 = vadd.f32 %v6828_v12, %v1573_v57  ;;  %v1572_v51 = vld [vmem:[#allocation3 + $0x60] sm:$0xff]  ;;  %v5373_v53 = vpop.f32.mrb[34].mxu0 }
 0x14a   : > { %1188 = vst.msk [vmem:[#allocation3 + $0x80] sm:$0xff] %vm275_vm0, %v1156_v0  ;;  %v1604_v58 = vadd.f32 %v1572_v51, %v6832_v61  ;;  %v5321_v16 = vpop.f32.mrb[34].mxu1  ;;  %v1491_v21 = vpop.f32.mrb[35].mxu0  ;;  %5699 = vmatmul.mubr.msk.f32.gmra.mrb[140].mxu0 %vm275_vm0, %v6684_v27 }
 0x14b   : > { %1637 = vst.msk [vmem:[#allocation3 + $0x68] sm:$0xff] %vm275_vm0, %v1605_v2  ;;  %v1159_v47 = vadd.f32 %v5321_v16, %v1127_v15  ;;  %v1039_v17 = vpop.f32.mrb[35].mxu1  ;;  %5647 = vmatmul.mubr.msk.f32.gmra.mrb[140].mxu1 %vm275_vm0, %v6540_v25  ;;  %5701 = vmatprep.mubr.msk.f32.mxu0 %vm275_vm0, %v3948_v62 }
 0x14c   : > { %1636 = vst.msk [vmem:[#allocation3 + $0x60] sm:$0xff] %vm275_vm0, %v1604_v58  ;;  %v1158_v1 = vadd.f32 %v1126_v63, %v1039_v17  ;;  %v1575_v36 = vld [vmem:[#allocation3 + $0x78] sm:$0xff]  ;;  %5649 = vmatprep.mubr.msk.f32.mxu1 %vm275_vm0, %v3496_v6  ;;  %v1137_v58 = vld [vmem:[#allocation3 + $0xe8] sm:$0xff] }
 0x14d   : > { %1191 = vst.msk [vmem:[#allocation3 + $0x98] sm:$0xff] %vm275_vm0, %v1159_v47  ;;  %v1607_v27 = vadd.f32 %v6842_v34, %v1575_v36  ;;  %v1574_v3 = vld [vmem:[#allocation3 + $0x70] sm:$0xff]  ;;  %v5376_v5 = vpop.f32.mrb[36].mxu0  ;;  %v1136_v47 = vld [vmem:[#allocation3 + $0xe0] sm:$0xff] }
 0x14e   : > { %1190 = vst.msk [vmem:[#allocation3 + $0x90] sm:$0xff] %vm275_vm0, %v1158_v1  ;;  %v1606_v25 = vadd.f32 %v1574_v3, %v6846_v45  ;;  %v5324_v22 = vpop.f32.mrb[36].mxu1  ;;  %v1501_v7 = vpop.f32.mrb[37].mxu0  ;;  %5702 = vmatmul.mubr.msk.f32.gmra.mrb[142].mxu0 %vm275_vm0, %v3949_v8  ;;  %v1139_v3 = vld [vmem:[#allocation3 + $0xf8] sm:$0xff] }
 0x14f   : > { %1639 = vst.msk [vmem:[#allocation3 + $0x78] sm:$0xff] %vm275_vm0, %v1607_v27  ;;  %v1161_v38 = vadd.f32 %v5324_v22, %v1129_v10  ;;  %v1049_v12 = vpop.f32.mrb[37].mxu1  ;;  %5650 = vmatmul.mubr.msk.f32.gmra.mrb[142].mxu1 %vm275_vm0, %v3497_v19  ;;  %v1138_v10 = vld [vmem:[#allocation3 + $0xf0] sm:$0xff] }
 0x150   : > { %1638 = vst.msk [vmem:[#allocation3 + $0x70] sm:$0xff] %vm275_vm0, %v1606_v25  ;;  %v1160_v9 = vadd.f32 %v1128_v54, %v1049_v12  ;;  %v1577_v29 = vld [vmem:[#allocation3 + $0x88] sm:$0xff] }
 0x151   : > { %1193 = vst.msk [vmem:[#allocation3 + $0xa8] sm:$0xff] %vm275_vm0, %v1161_v38  ;;  %v1609_v61 = vadd.f32 %v5370_v37, %v1577_v29  ;;  %v1576_v20 = vld [vmem:[#allocation3 + $0x80] sm:$0xff]  ;;  %v5379_v14 = vpop.f32.mrb[38].mxu0 }
 0x152   : > { %1192 = vst.msk [vmem:[#allocation3 + $0xa0] sm:$0xff] %vm275_vm0, %v1160_v9  ;;  %v1608_v39 = vadd.f32 %v1576_v20, %v1481_v59  ;;  %v5327_v46 = vpop.f32.mrb[38].mxu1  ;;  %v1511_v11 = vpop.f32.mrb[39].mxu0  ;;  %v2014_v20 = vld [vmem:[#allocation3 + $0x8] sm:$0xff] }
 0x153   : > { %1641 = vst.msk [vmem:[#allocation3 + $0x88] sm:$0xff] %vm275_vm0, %v1609_v61  ;;  %v1163_v24 = vadd.f32 %v5327_v46, %v1131_v23  ;;  %v1059_v30 = vpop.f32.mrb[39].mxu1  ;;  %v2013_v23 = vld [vmem:[#allocation3] sm:$0xff] }
 0x154   : > { %1640 = vst.msk [vmem:[#allocation3 + $0x80] sm:$0xff] %vm275_vm0, %v1608_v39  ;;  %v1162_v4 = vadd.f32 %v1130_v26, %v1059_v30  ;;  %v1579_v18 = vld [vmem:[#allocation3 + $0x98] sm:$0xff] }
 0x155   : > { %1195 = vst.msk [vmem:[#allocation3 + $0xb8] sm:$0xff] %vm275_vm0, %v1163_v24  ;;  %v1611_v34 = vadd.f32 %v5373_v53, %v1579_v18  ;;  %v1578_v40 = vld [vmem:[#allocation3 + $0x90] sm:$0xff]  ;;  %v5382_v56 = vpop.f32.mrb[40].mxu0 }
 0x156   : > { %1194 = vst.msk [vmem:[#allocation3 + $0xb0] sm:$0xff] %vm275_vm0, %v1162_v4  ;;  %v1610_v41 = vadd.f32 %v1578_v40, %v1491_v21  ;;  %v5330_v45 = vpop.f32.mrb[40].mxu1  ;;  %v1521_v32 = vpop.f32.mrb[41].mxu0  ;;  %v2016_v40 = vld [vmem:[#allocation3 + $0x18] sm:$0xff] }
 0x157   : > { %1643 = vst.msk [vmem:[#allocation3 + $0x98] sm:$0xff] %vm275_vm0, %v1611_v34  ;;  %v1165_v31 = vadd.f32 %v5330_v45, %v1133_v48  ;;  %v1069_v49 = vpop.f32.mrb[41].mxu1  ;;  %v2015_v48 = vld [vmem:[#allocation3 + $0x10] sm:$0xff] }
 0x158   : > { %1642 = vst.msk [vmem:[#allocation3 + $0x90] sm:$0xff] %vm275_vm0, %v1610_v41  ;;  %v1164_v35 = vadd.f32 %v1132_v33, %v1069_v49  ;;  %v1581_v50 = vld [vmem:[#allocation3 + $0xa8] sm:$0xff] }
 0x159   : > { %1197 = vst.msk [vmem:[#allocation3 + $0xc8] sm:$0xff] %vm275_vm0, %v1165_v31  ;;  %v1613_v13 = vadd.f32 %v5376_v5, %v1581_v50  ;;  %v1580_v28 = vld [vmem:[#allocation3 + $0xa0] sm:$0xff]  ;;  %v5385_v37 = vpop.f32.mrb[42].mxu0 }
 0x15a   : > { %1196 = vst.msk [vmem:[#allocation3 + $0xc0] sm:$0xff] %vm275_vm0, %v1164_v35  ;;  %v1612_v42 = vadd.f32 %v1580_v28, %v1501_v7  ;;  %v5333_v52 = vpop.f32.mrb[42].mxu1  ;;  %v1531_v59 = vpop.f32.mrb[43].mxu0  ;;  %v2018_v28 = vld [vmem:[#allocation3 + $0x28] sm:$0xff] }
 0x15b   : > { %1645 = vst.msk [vmem:[#allocation3 + $0xa8] sm:$0xff] %vm275_vm0, %v1613_v13  ;;  %v1167_v44 = vadd.f32 %v5333_v52, %v1135_v43  ;;  %v1079_v55 = vpop.f32.mrb[43].mxu1  ;;  %v2017_v43 = vld [vmem:[#allocation3 + $0x20] sm:$0xff] }
 0x15c   : > { %1644 = vst.msk [vmem:[#allocation3 + $0xa0] sm:$0xff] %vm275_vm0, %v1612_v42  ;;  %v1166_v0 = vadd.f32 %v1134_v60, %v1079_v55  ;;  %v1583_v57 = vld [vmem:[#allocation3 + $0xb8] sm:$0xff] }
 0x15d   : > { %1199 = vst.msk [vmem:[#allocation3 + $0xd8] sm:$0xff] %vm275_vm0, %v1167_v44  ;;  %v1615_v62 = vadd.f32 %v5379_v14, %v1583_v57  ;;  %v1582_v2 = vld [vmem:[#allocation3 + $0xb0] sm:$0xff]  ;;  %v5388_v51 = vpop.f32.mrb[44].mxu0 }
 0x15e   : > { %1198 = vst.msk [vmem:[#allocation3 + $0xd0] sm:$0xff] %vm275_vm0, %v1166_v0  ;;  %v1614_v6 = vadd.f32 %v1582_v2, %v1511_v11  ;;  %v5336_v53 = vpop.f32.mrb[44].mxu1  ;;  %v1541_v16 = vpop.f32.mrb[45].mxu0  ;;  %v2020_v2 = vld [vmem:[#allocation3 + $0x38] sm:$0xff] }
 0x15f   : > { %1647 = vst.msk [vmem:[#allocation3 + $0xb8] sm:$0xff] %vm275_vm0, %v1615_v62  ;;  %v1169_v15 = vadd.f32 %v5336_v53, %v1137_v58  ;;  %v1089_v21 = vpop.f32.mrb[45].mxu1  ;;  %v2019_v58 = vld [vmem:[#allocation3 + $0x30] sm:$0xff] }
 0x160   : > { %1646 = vst.msk [vmem:[#allocation3 + $0xb0] sm:$0xff] %vm275_vm0, %v1614_v6  ;;  %v1168_v17 = vadd.f32 %v1136_v47, %v1089_v21  ;;  %v1585_v63 = vld [vmem:[#allocation3 + $0xc8] sm:$0xff] }
 0x161   : > { %1201 = vst.msk [vmem:[#allocation3 + $0xe8] sm:$0xff] %vm275_vm0, %v1169_v15  ;;  %v1617_v8 = vadd.f32 %v5382_v56, %v1585_v63  ;;  %v1584_v1 = vld [vmem:[#allocation3 + $0xc0] sm:$0xff]  ;;  %v5391_v36 = vpop.f32.mrb[46].mxu0 }
 0x162   : > { %1200 = vst.msk [vmem:[#allocation3 + $0xe0] sm:$0xff] %vm275_vm0, %v1168_v17  ;;  %v1616_v19 = vadd.f32 %v1584_v1, %v1521_v32  ;;  %v5339_v27 = vpop.f32.mrb[46].mxu1  ;;  %v1551_v5 = vpop.f32.mrb[47].mxu0  ;;  %v2022_v1 = vld [vmem:[#allocation3 + $0x48] sm:$0xff] }
 0x163   : > { %1649 = vst.msk [vmem:[#allocation3 + $0xc8] sm:$0xff] %vm275_vm0, %v1617_v8  ;;  %v1171_v25 = vadd.f32 %v5339_v27, %v1139_v3  ;;  %v1099_v22 = vpop.f32.mrb[47].mxu1  ;;  %v2021_v3 = vld [vmem:[#allocation3 + $0x40] sm:$0xff] }
 0x164   : > { %1648 = vst.msk [vmem:[#allocation3 + $0xc0] sm:$0xff] %vm275_vm0, %v1616_v19  ;;  %v1170_v7 = vadd.f32 %v1138_v10, %v1099_v22  ;;  %v1587_v38 = vld [vmem:[#allocation3 + $0xd8] sm:$0xff] }
 0x165   : > { %1203 = vst.msk [vmem:[#allocation3 + $0xf8] sm:$0xff] %vm275_vm0, %v1171_v25  ;;  %v1619_v12 = vadd.f32 %v5385_v37, %v1587_v38  ;;  %v1586_v54 = vld [vmem:[#allocation3 + $0xd0] sm:$0xff]  ;;  %v5450_v9 = vpop.f32.mrb[48].mxu0 }
 0x166   : > { %1202 = vst.msk [vmem:[#allocation3 + $0xf0] sm:$0xff] %vm275_vm0, %v1170_v7  ;;  %v1618_v29 = vadd.f32 %v1586_v54, %v1531_v59  ;;  %v5398_v61 = vpop.f32.mrb[48].mxu1  ;;  %v2306_v14 = vpop.f32.mrb[49].mxu0  ;;  %v2024_v54 = vld [vmem:[#allocation3 + $0x58] sm:$0xff] }
 0x167   : > { %1651 = vst.msk [vmem:[#allocation3 + $0xd8] sm:$0xff] %vm275_vm0, %v1619_v12  ;;  %v2046_v39 = vadd.f32 %v5398_v61, %v2014_v20  ;;  %v1854_v46 = vpop.f32.mrb[49].mxu1  ;;  %v2023_v20 = vld [vmem:[#allocation3 + $0x50] sm:$0xff] }
 0x168   : > { %1650 = vst.msk [vmem:[#allocation3 + $0xd0] sm:$0xff] %vm275_vm0, %v1618_v29  ;;  %v1589_v11 = vld [vmem:[#allocation3 + $0xe8] sm:$0xff]  ;;  %v2045_v24 = vadd.f32 %v2013_v23, %v1854_v46 }
 0x169   : > { %2078 = vst.msk [vmem:[#allocation3 + $0x8] sm:$0xff] %vm275_vm0, %v2046_v39  ;;  %v1621_v30 = vadd.f32 %v5388_v51, %v1589_v11  ;;  %v1588_v26 = vld [vmem:[#allocation3 + $0xe0] sm:$0xff]  ;;  %v5453_v4 = vpop.f32.mrb[50].mxu0 }
 0x16a   : > { %2077 = vst.msk [vmem:[#allocation3] sm:$0xff] %vm275_vm0, %v2045_v24  ;;  %v1620_v18 = vadd.f32 %v1588_v26, %v1541_v16  ;;  %v5401_v34 = vpop.f32.mrb[50].mxu1  ;;  %v2316_v56 = vpop.f32.mrb[51].mxu0  ;;  %v2026_v26 = vld [vmem:[#allocation3 + $0x68] sm:$0xff] }
 0x16b   : > { %1653 = vst.msk [vmem:[#allocation3 + $0xe8] sm:$0xff] %vm275_vm0, %v1621_v30  ;;  %v2048_v41 = vadd.f32 %v5401_v34, %v2016_v40  ;;  %v1864_v45 = vpop.f32.mrb[51].mxu1  ;;  %v2025_v40 = vld [vmem:[#allocation3 + $0x60] sm:$0xff] }
 0x16c   : > { %1652 = vst.msk [vmem:[#allocation3 + $0xe0] sm:$0xff] %vm275_vm0, %v1620_v18  ;;  %v1591_v32 = vld [vmem:[#allocation3 + $0xf8] sm:$0xff]  ;;  %v2047_v31 = vadd.f32 %v2015_v48, %v1864_v45 }
 0x16d   : > { %2080 = vst.msk [vmem:[#allocation3 + $0x18] sm:$0xff] %vm275_vm0, %v2048_v41  ;;  %v1623_v49 = vadd.f32 %v5391_v36, %v1591_v32  ;;  %v1590_v33 = vld [vmem:[#allocation3 + $0xf0] sm:$0xff]  ;;  %v5456_v35 = vpop.f32.mrb[52].mxu0 }
 0x16e   : > { %2079 = vst.msk [vmem:[#allocation3 + $0x10] sm:$0xff] %vm275_vm0, %v2047_v31  ;;  %v1622_v50 = vadd.f32 %v1590_v33, %v1551_v5  ;;  %v5404_v13 = vpop.f32.mrb[52].mxu1  ;;  %v2326_v37 = vpop.f32.mrb[53].mxu0  ;;  %v2028_v33 = vld [vmem:[#allocation3 + $0x78] sm:$0xff] }
 0x16f   : > { %1655 = vst.msk [vmem:[#allocation3 + $0xf8] sm:$0xff] %vm275_vm0, %v1623_v49  ;;  %v2050_v42 = vadd.f32 %v5404_v13, %v2018_v28  ;;  %v1874_v52 = vpop.f32.mrb[53].mxu1  ;;  %v2027_v28 = vld [vmem:[#allocation3 + $0x70] sm:$0xff] }
 0x170   : > { %1654 = vst.msk [vmem:[#allocation3 + $0xf0] sm:$0xff] %vm275_vm0, %v1622_v50  ;;  %v2049_v59 = vadd.f32 %v2017_v43, %v1874_v52  ;;  %v2466_v44 = vld [vmem:[#allocation3 + $0x8] sm:$0xff] }
 0x171   : > { %2082 = vst.msk [vmem:[#allocation3 + $0x28] sm:$0xff] %vm275_vm0, %v2050_v42  ;;  %v2498_v55 = vadd.f32 %v5450_v9, %v2466_v44  ;;  %v2465_v60 = vld [vmem:[#allocation3] sm:$0xff]  ;;  %v5459_v0 = vpop.f32.mrb[54].mxu0 }
 0x172   : > { %2081 = vst.msk [vmem:[#allocation3 + $0x20] sm:$0xff] %vm275_vm0, %v2049_v59  ;;  %v2497_v57 = vadd.f32 %v2465_v60, %v2306_v14  ;;  %v5407_v62 = vpop.f32.mrb[54].mxu1  ;;  %v2336_v51 = vpop.f32.mrb[55].mxu0  ;;  %v2030_v60 = vld [vmem:[#allocation3 + $0x88] sm:$0xff] }
 0x173   : > { %2530 = vst.msk [vmem:[#allocation3 + $0x8] sm:$0xff] %vm275_vm0, %v2498_v55  ;;  %v2052_v6 = vadd.f32 %v5407_v62, %v2020_v2  ;;  %v1884_v53 = vpop.f32.mrb[55].mxu1  ;;  %v2029_v2 = vld [vmem:[#allocation3 + $0x80] sm:$0xff] }
 0x174   : > { %2529 = vst.msk [vmem:[#allocation3] sm:$0xff] %vm275_vm0, %v2497_v57  ;;  %v2051_v16 = vadd.f32 %v2019_v58, %v1884_v53  ;;  %v2468_v15 = vld [vmem:[#allocation3 + $0x18] sm:$0xff] }
 0x175   : > { %2084 = vst.msk [vmem:[#allocation3 + $0x38] sm:$0xff] %vm275_vm0, %v2052_v6  ;;  %v2500_v21 = vadd.f32 %v5453_v4, %v2468_v15  ;;  %v2467_v47 = vld [vmem:[#allocation3 + $0x10] sm:$0xff]  ;;  %v5462_v17 = vpop.f32.mrb[56].mxu0 }
 0x176   : > { %2083 = vst.msk [vmem:[#allocation3 + $0x30] sm:$0xff] %vm275_vm0, %v2051_v16  ;;  %v2499_v63 = vadd.f32 %v2467_v47, %v2316_v56  ;;  %v5410_v8 = vpop.f32.mrb[56].mxu1  ;;  %v2346_v36 = vpop.f32.mrb[57].mxu0  ;;  %v2032_v47 = vld [vmem:[#allocation3 + $0x98] sm:$0xff] }
 0x177   : > { %2532 = vst.msk [vmem:[#allocation3 + $0x18] sm:$0xff] %vm275_vm0, %v2500_v21  ;;  %v2054_v19 = vadd.f32 %v5410_v8, %v2022_v1  ;;  %v1894_v27 = vpop.f32.mrb[57].mxu1  ;;  %v2031_v1 = vld [vmem:[#allocation3 + $0x90] sm:$0xff] }
 0x178   : > { %2531 = vst.msk [vmem:[#allocation3 + $0x10] sm:$0xff] %vm275_vm0, %v2499_v63  ;;  %v2053_v5 = vadd.f32 %v2021_v3, %v1894_v27  ;;  %v2470_v25 = vld [vmem:[#allocation3 + $0x28] sm:$0xff] }
 0x179   : > { %2086 = vst.msk [vmem:[#allocation3 + $0x48] sm:$0xff] %vm275_vm0, %v2054_v19  ;;  %v2502_v22 = vadd.f32 %v5456_v35, %v2470_v25  ;;  %v2469_v10 = vld [vmem:[#allocation3 + $0x20] sm:$0xff]  ;;  %v5465_v7 = vpop.f32.mrb[58].mxu0 }
 0x17a   : > { %2085 = vst.msk [vmem:[#allocation3 + $0x40] sm:$0xff] %vm275_vm0, %v2053_v5  ;;  %v2501_v38 = vadd.f32 %v2469_v10, %v2326_v37  ;;  %v5413_v12 = vpop.f32.mrb[58].mxu1  ;;  %v2356_v9 = vpop.f32.mrb[59].mxu0  ;;  %v2034_v10 = vld [vmem:[#allocation3 + $0xa8] sm:$0xff] }
 0x17b   : > { %2534 = vst.msk [vmem:[#allocation3 + $0x28] sm:$0xff] %vm275_vm0, %v2502_v22  ;;  %v2056_v29 = vadd.f32 %v5413_v12, %v2024_v54  ;;  %v1904_v61 = vpop.f32.mrb[59].mxu1  ;;  %v2033_v54 = vld [vmem:[#allocation3 + $0xa0] sm:$0xff] }
 0x17c   : > { %2533 = vst.msk [vmem:[#allocation3 + $0x20] sm:$0xff] %vm275_vm0, %v2501_v38  ;;  %v2055_v14 = vadd.f32 %v2023_v20, %v1904_v61  ;;  %v2472_v39 = vld [vmem:[#allocation3 + $0x38] sm:$0xff] }
 0x17d   : > { %2088 = vst.msk [vmem:[#allocation3 + $0x58] sm:$0xff] %vm275_vm0, %v2056_v29  ;;  %v2504_v46 = vadd.f32 %v5459_v0, %v2472_v39  ;;  %v2471_v23 = vld [vmem:[#allocation3 + $0x30] sm:$0xff]  ;;  %v5468_v11 = vpop.f32.mrb[60].mxu0 }
 0x17e   : > { %2087 = vst.msk [vmem:[#allocation3 + $0x50] sm:$0xff] %vm275_vm0, %v2055_v14  ;;  %v2503_v24 = vadd.f32 %v2471_v23, %v2336_v51  ;;  %v5416_v30 = vpop.f32.mrb[60].mxu1  ;;  %v2366_v4 = vpop.f32.mrb[61].mxu0  ;;  %v2036_v23 = vld [vmem:[#allocation3 + $0xb8] sm:$0xff] }
 0x17f   : > { %2536 = vst.msk [vmem:[#allocation3 + $0x38] sm:$0xff] %vm275_vm0, %v2504_v46  ;;  %v2058_v18 = vadd.f32 %v5416_v30, %v2026_v26  ;;  %v1914_v34 = vpop.f32.mrb[61].mxu1  ;;  %v2035_v26 = vld [vmem:[#allocation3 + $0xb0] sm:$0xff] }
 0x180   : > { %2535 = vst.msk [vmem:[#allocation3 + $0x30] sm:$0xff] %vm275_vm0, %v2503_v24  ;;  %v2057_v56 = vadd.f32 %v2025_v40, %v1914_v34  ;;  %v2474_v41 = vld [vmem:[#allocation3 + $0x48] sm:$0xff] }
 0x181   : > { %2090 = vst.msk [vmem:[#allocation3 + $0x68] sm:$0xff] %vm275_vm0, %v2058_v18  ;;  %v2506_v45 = vadd.f32 %v5462_v17, %v2474_v41  ;;  %v2473_v48 = vld [vmem:[#allocation3 + $0x40] sm:$0xff]  ;;  %v5471_v32 = vpop.f32.mrb[62].mxu0 }
 0x182   : > { %2089 = vst.msk [vmem:[#allocation3 + $0x60] sm:$0xff] %vm275_vm0, %v2057_v56  ;;  %v2505_v31 = vadd.f32 %v2473_v48, %v2346_v36  ;;  %v5419_v49 = vpop.f32.mrb[62].mxu1  ;;  %v2376_v35 = vpop.f32.mrb[63].mxu0  ;;  %v2038_v48 = vld [vmem:[#allocation3 + $0xc8] sm:$0xff] }
 0x183   : > { %2538 = vst.msk [vmem:[#allocation3 + $0x48] sm:$0xff] %vm275_vm0, %v2506_v45  ;;  %v2060_v50 = vadd.f32 %v5419_v49, %v2028_v33  ;;  %v1924_v13 = vpop.f32.mrb[63].mxu1  ;;  %v2037_v33 = vld [vmem:[#allocation3 + $0xc0] sm:$0xff] }
 0x184   : > { %2537 = vst.msk [vmem:[#allocation3 + $0x40] sm:$0xff] %vm275_vm0, %v2505_v31  ;;  %v2059_v37 = vadd.f32 %v2027_v28, %v1924_v13  ;;  %v2476_v42 = vld [vmem:[#allocation3 + $0x58] sm:$0xff] }
 0x185   : > { %2092 = vst.msk [vmem:[#allocation3 + $0x78] sm:$0xff] %vm275_vm0, %v2060_v50  ;;  %v2508_v52 = vadd.f32 %v5465_v7, %v2476_v42  ;;  %v2475_v43 = vld [vmem:[#allocation3 + $0x50] sm:$0xff]  ;;  %v5474_v59 = vpop.f32.mrb[64].mxu0 }
 0x186   : > { %2091 = vst.msk [vmem:[#allocation3 + $0x70] sm:$0xff] %vm275_vm0, %v2059_v37  ;;  %v2507_v44 = vadd.f32 %v2475_v43, %v2356_v9  ;;  %v5422_v55 = vpop.f32.mrb[64].mxu1  ;;  %v2386_v0 = vpop.f32.mrb[65].mxu0  ;;  %v2040_v43 = vld [vmem:[#allocation3 + $0xd8] sm:$0xff] }
 0x187   : > { %2540 = vst.msk [vmem:[#allocation3 + $0x58] sm:$0xff] %vm275_vm0, %v2508_v52  ;;  %v2062_v57 = vadd.f32 %v5422_v55, %v2030_v60  ;;  %v1934_v62 = vpop.f32.mrb[65].mxu1  ;;  %v2039_v60 = vld [vmem:[#allocation3 + $0xd0] sm:$0xff] }
 0x188   : > { %2539 = vst.msk [vmem:[#allocation3 + $0x50] sm:$0xff] %vm275_vm0, %v2507_v44  ;;  %v2061_v51 = vadd.f32 %v2029_v2, %v1934_v62  ;;  %v2478_v6 = vld [vmem:[#allocation3 + $0x68] sm:$0xff] }
 0x189   : > { %2094 = vst.msk [vmem:[#allocation3 + $0x88] sm:$0xff] %vm275_vm0, %v2062_v57  ;;  %v2510_v53 = vadd.f32 %v5468_v11, %v2478_v6  ;;  %v2477_v58 = vld [vmem:[#allocation3 + $0x60] sm:$0xff]  ;;  %v5477_v16 = vpop.f32.mrb[66].mxu0 }
 0x18a   : > { %2093 = vst.msk [vmem:[#allocation3 + $0x80] sm:$0xff] %vm275_vm0, %v2061_v51  ;;  %v2509_v15 = vadd.f32 %v2477_v58, %v2366_v4  ;;  %v5425_v21 = vpop.f32.mrb[66].mxu1  ;;  %v2396_v17 = vpop.f32.mrb[67].mxu0  ;;  %v2042_v58 = vld [vmem:[#allocation3 + $0xe8] sm:$0xff] }
 0x18b   : > { %2542 = vst.msk [vmem:[#allocation3 + $0x68] sm:$0xff] %vm275_vm0, %v2510_v53  ;;  %v2064_v63 = vadd.f32 %v5425_v21, %v2032_v47  ;;  %v1944_v8 = vpop.f32.mrb[67].mxu1  ;;  %v2041_v47 = vld [vmem:[#allocation3 + $0xe0] sm:$0xff] }
 0x18c   : > { %2541 = vst.msk [vmem:[#allocation3 + $0x60] sm:$0xff] %vm275_vm0, %v2509_v15  ;;  %v2063_v36 = vadd.f32 %v2031_v1, %v1944_v8  ;;  %v2480_v19 = vld [vmem:[#allocation3 + $0x78] sm:$0xff] }
 0x18d   : > { %2096 = vst.msk [vmem:[#allocation3 + $0x98] sm:$0xff] %vm275_vm0, %v2064_v63  ;;  %v2512_v27 = vadd.f32 %v5471_v32, %v2480_v19  ;;  %v2479_v3 = vld [vmem:[#allocation3 + $0x70] sm:$0xff]  ;;  %v5480_v5 = vpop.f32.mrb[68].mxu0 }
 0x18e   : > { %2095 = vst.msk [vmem:[#allocation3 + $0x90] sm:$0xff] %vm275_vm0, %v2063_v36  ;;  %v2511_v25 = vadd.f32 %v2479_v3, %v2376_v35  ;;  %v5428_v22 = vpop.f32.mrb[68].mxu1  ;;  %v2406_v7 = vpop.f32.mrb[69].mxu0  ;;  %v2044_v3 = vld [vmem:[#allocation3 + $0xf8] sm:$0xff] }
 0x18f   : > { %2544 = vst.msk [vmem:[#allocation3 + $0x78] sm:$0xff] %vm275_vm0, %v2512_v27  ;;  %v2066_v38 = vadd.f32 %v5428_v22, %v2034_v10  ;;  %v1954_v12 = vpop.f32.mrb[69].mxu1  ;;  %v2043_v10 = vld [vmem:[#allocation3 + $0xf0] sm:$0xff] }
 0x190   : > { %2543 = vst.msk [vmem:[#allocation3 + $0x70] sm:$0xff] %vm275_vm0, %v2511_v25  ;;  %v2065_v9 = vadd.f32 %v2033_v54, %v1954_v12  ;;  %v2482_v29 = vld [vmem:[#allocation3 + $0x88] sm:$0xff] }
 0x191   : > { %2098 = vst.msk [vmem:[#allocation3 + $0xa8] sm:$0xff] %vm275_vm0, %v2066_v38  ;;  %v2514_v61 = vadd.f32 %v5474_v59, %v2482_v29  ;;  %v2481_v20 = vld [vmem:[#allocation3 + $0x80] sm:$0xff]  ;;  %v5483_v14 = vpop.f32.mrb[70].mxu0 }
 0x192   : > { %2097 = vst.msk [vmem:[#allocation3 + $0xa0] sm:$0xff] %vm275_vm0, %v2065_v9  ;;  %v2513_v39 = vadd.f32 %v2481_v20, %v2386_v0  ;;  %v5431_v46 = vpop.f32.mrb[70].mxu1  ;;  %v2416_v11 = vpop.f32.mrb[71].mxu0  ;;  %v2918_v20 = vld [vmem:[#allocation3 + $0x8] sm:$0xff] }
 0x193   : > { %2546 = vst.msk [vmem:[#allocation3 + $0x88] sm:$0xff] %vm275_vm0, %v2514_v61  ;;  %v2068_v24 = vadd.f32 %v5431_v46, %v2036_v23  ;;  %v1964_v30 = vpop.f32.mrb[71].mxu1  ;;  %v2917_v23 = vld [vmem:[#allocation3] sm:$0xff] }
 0x194   : > { %2545 = vst.msk [vmem:[#allocation3 + $0x80] sm:$0xff] %vm275_vm0, %v2513_v39  ;;  %v2067_v4 = vadd.f32 %v2035_v26, %v1964_v30  ;;  %v2484_v18 = vld [vmem:[#allocation3 + $0x98] sm:$0xff] }
 0x195   : > { %2100 = vst.msk [vmem:[#allocation3 + $0xb8] sm:$0xff] %vm275_vm0, %v2068_v24  ;;  %v2516_v34 = vadd.f32 %v5477_v16, %v2484_v18  ;;  %v2483_v40 = vld [vmem:[#allocation3 + $0x90] sm:$0xff]  ;;  %v5486_v56 = vpop.f32.mrb[72].mxu0 }
 0x196   : > { %2099 = vst.msk [vmem:[#allocation3 + $0xb0] sm:$0xff] %vm275_vm0, %v2067_v4  ;;  %v2515_v41 = vadd.f32 %v2483_v40, %v2396_v17  ;;  %v5434_v45 = vpop.f32.mrb[72].mxu1  ;;  %v2426_v32 = vpop.f32.mrb[73].mxu0  ;;  %v2920_v40 = vld [vmem:[#allocation3 + $0x18] sm:$0xff] }
 0x197   : > { %2548 = vst.msk [vmem:[#allocation3 + $0x98] sm:$0xff] %vm275_vm0, %v2516_v34  ;;  %v2070_v31 = vadd.f32 %v5434_v45, %v2038_v48  ;;  %v1974_v49 = vpop.f32.mrb[73].mxu1  ;;  %v2919_v48 = vld [vmem:[#allocation3 + $0x10] sm:$0xff] }
 0x198   : > { %2547 = vst.msk [vmem:[#allocation3 + $0x90] sm:$0xff] %vm275_vm0, %v2515_v41  ;;  %v2069_v35 = vadd.f32 %v2037_v33, %v1974_v49  ;;  %v2486_v50 = vld [vmem:[#allocation3 + $0xa8] sm:$0xff] }
 0x199   : > { %2102 = vst.msk [vmem:[#allocation3 + $0xc8] sm:$0xff] %vm275_vm0, %v2070_v31  ;;  %v2518_v13 = vadd.f32 %v5480_v5, %v2486_v50  ;;  %v2485_v28 = vld [vmem:[#allocation3 + $0xa0] sm:$0xff]  ;;  %v5489_v37 = vpop.f32.mrb[74].mxu0 }
 0x19a   : > { %2101 = vst.msk [vmem:[#allocation3 + $0xc0] sm:$0xff] %vm275_vm0, %v2069_v35  ;;  %v2517_v42 = vadd.f32 %v2485_v28, %v2406_v7  ;;  %v5437_v52 = vpop.f32.mrb[74].mxu1  ;;  %v2436_v59 = vpop.f32.mrb[75].mxu0  ;;  %v2922_v28 = vld [vmem:[#allocation3 + $0x28] sm:$0xff] }
 0x19b   : > { %2550 = vst.msk [vmem:[#allocation3 + $0xa8] sm:$0xff] %vm275_vm0, %v2518_v13  ;;  %v2072_v44 = vadd.f32 %v5437_v52, %v2040_v43  ;;  %v1984_v55 = vpop.f32.mrb[75].mxu1  ;;  %v2921_v43 = vld [vmem:[#allocation3 + $0x20] sm:$0xff] }
 0x19c   : > { %2549 = vst.msk [vmem:[#allocation3 + $0xa0] sm:$0xff] %vm275_vm0, %v2517_v42  ;;  %v2071_v0 = vadd.f32 %v2039_v60, %v1984_v55  ;;  %v2488_v57 = vld [vmem:[#allocation3 + $0xb8] sm:$0xff] }
 0x19d   : > { %2104 = vst.msk [vmem:[#allocation3 + $0xd8] sm:$0xff] %vm275_vm0, %v2072_v44  ;;  %v2520_v62 = vadd.f32 %v5483_v14, %v2488_v57  ;;  %v2487_v2 = vld [vmem:[#allocation3 + $0xb0] sm:$0xff]  ;;  %v5492_v51 = vpop.f32.mrb[76].mxu0 }
 0x19e   : > { %2103 = vst.msk [vmem:[#allocation3 + $0xd0] sm:$0xff] %vm275_vm0, %v2071_v0  ;;  %v2519_v6 = vadd.f32 %v2487_v2, %v2416_v11  ;;  %v5440_v53 = vpop.f32.mrb[76].mxu1  ;;  %v2446_v16 = vpop.f32.mrb[77].mxu0  ;;  %v2924_v2 = vld [vmem:[#allocation3 + $0x38] sm:$0xff] }
 0x19f   : > { %2552 = vst.msk [vmem:[#allocation3 + $0xb8] sm:$0xff] %vm275_vm0, %v2520_v62  ;;  %v2074_v15 = vadd.f32 %v5440_v53, %v2042_v58  ;;  %v1994_v21 = vpop.f32.mrb[77].mxu1  ;;  %v2923_v58 = vld [vmem:[#allocation3 + $0x30] sm:$0xff] }
 0x1a0   : > { %2551 = vst.msk [vmem:[#allocation3 + $0xb0] sm:$0xff] %vm275_vm0, %v2519_v6  ;;  %v2073_v17 = vadd.f32 %v2041_v47, %v1994_v21  ;;  %v2490_v63 = vld [vmem:[#allocation3 + $0xc8] sm:$0xff] }
 0x1a1   : > { %2106 = vst.msk [vmem:[#allocation3 + $0xe8] sm:$0xff] %vm275_vm0, %v2074_v15  ;;  %v2522_v8 = vadd.f32 %v5486_v56, %v2490_v63  ;;  %v2489_v1 = vld [vmem:[#allocation3 + $0xc0] sm:$0xff]  ;;  %v5495_v36 = vpop.f32.mrb[78].mxu0 }
 0x1a2   : > { %2105 = vst.msk [vmem:[#allocation3 + $0xe0] sm:$0xff] %vm275_vm0, %v2073_v17  ;;  %v2521_v19 = vadd.f32 %v2489_v1, %v2426_v32  ;;  %v5443_v27 = vpop.f32.mrb[78].mxu1  ;;  %v2456_v5 = vpop.f32.mrb[79].mxu0  ;;  %v2926_v1 = vld [vmem:[#allocation3 + $0x48] sm:$0xff] }
 0x1a3   : > { %2554 = vst.msk [vmem:[#allocation3 + $0xc8] sm:$0xff] %vm275_vm0, %v2522_v8  ;;  %v2076_v25 = vadd.f32 %v5443_v27, %v2044_v3  ;;  %v2004_v22 = vpop.f32.mrb[79].mxu1  ;;  %v2925_v3 = vld [vmem:[#allocation3 + $0x40] sm:$0xff] }
 0x1a4   : > { %2553 = vst.msk [vmem:[#allocation3 + $0xc0] sm:$0xff] %vm275_vm0, %v2521_v19  ;;  %v2075_v7 = vadd.f32 %v2043_v10, %v2004_v22  ;;  %v2492_v38 = vld [vmem:[#allocation3 + $0xd8] sm:$0xff] }
 0x1a5   : > { %2108 = vst.msk [vmem:[#allocation3 + $0xf8] sm:$0xff] %vm275_vm0, %v2076_v25  ;;  %v2524_v12 = vadd.f32 %v5489_v37, %v2492_v38  ;;  %v2491_v54 = vld [vmem:[#allocation3 + $0xd0] sm:$0xff]  ;;  %v5554_v9 = vpop.f32.mrb[80].mxu0 }
 0x1a6   : > { %2107 = vst.msk [vmem:[#allocation3 + $0xf0] sm:$0xff] %vm275_vm0, %v2075_v7  ;;  %v2523_v29 = vadd.f32 %v2491_v54, %v2436_v59  ;;  %v5502_v61 = vpop.f32.mrb[80].mxu1  ;;  %v3211_v14 = vpop.f32.mrb[81].mxu0  ;;  %v2928_v54 = vld [vmem:[#allocation3 + $0x58] sm:$0xff] }
 0x1a7   : > { %2556 = vst.msk [vmem:[#allocation3 + $0xd8] sm:$0xff] %vm275_vm0, %v2524_v12  ;;  %v2950_v39 = vadd.f32 %v5502_v61, %v2918_v20  ;;  %v2758_v46 = vpop.f32.mrb[81].mxu1  ;;  %v2927_v20 = vld [vmem:[#allocation3 + $0x50] sm:$0xff] }
 0x1a8   : > { %2555 = vst.msk [vmem:[#allocation3 + $0xd0] sm:$0xff] %vm275_vm0, %v2523_v29  ;;  %v2494_v11 = vld [vmem:[#allocation3 + $0xe8] sm:$0xff]  ;;  %v2949_v24 = vadd.f32 %v2917_v23, %v2758_v46 }
 0x1a9   : > { %2982 = vst.msk [vmem:[#allocation3 + $0x8] sm:$0xff] %vm275_vm0, %v2950_v39  ;;  %v2526_v30 = vadd.f32 %v5492_v51, %v2494_v11  ;;  %v2493_v26 = vld [vmem:[#allocation3 + $0xe0] sm:$0xff]  ;;  %v5557_v4 = vpop.f32.mrb[82].mxu0 }
 0x1aa   : > { %2981 = vst.msk [vmem:[#allocation3] sm:$0xff] %vm275_vm0, %v2949_v24  ;;  %v2525_v18 = vadd.f32 %v2493_v26, %v2446_v16  ;;  %v5505_v34 = vpop.f32.mrb[82].mxu1  ;;  %v3221_v56 = vpop.f32.mrb[83].mxu0  ;;  %v2930_v26 = vld [vmem:[#allocation3 + $0x68] sm:$0xff] }
 0x1ab   : > { %2558 = vst.msk [vmem:[#allocation3 + $0xe8] sm:$0xff] %vm275_vm0, %v2526_v30  ;;  %v2952_v41 = vadd.f32 %v5505_v34, %v2920_v40  ;;  %v2768_v45 = vpop.f32.mrb[83].mxu1  ;;  %v2929_v40 = vld [vmem:[#allocation3 + $0x60] sm:$0xff] }
 0x1ac   : > { %2557 = vst.msk [vmem:[#allocation3 + $0xe0] sm:$0xff] %vm275_vm0, %v2525_v18  ;;  %v2496_v32 = vld [vmem:[#allocation3 + $0xf8] sm:$0xff]  ;;  %v2951_v31 = vadd.f32 %v2919_v48, %v2768_v45 }
 0x1ad   : > { %2984 = vst.msk [vmem:[#allocation3 + $0x18] sm:$0xff] %vm275_vm0, %v2952_v41  ;;  %v2528_v49 = vadd.f32 %v5495_v36, %v2496_v32  ;;  %v2495_v33 = vld [vmem:[#allocation3 + $0xf0] sm:$0xff]  ;;  %v5560_v35 = vpop.f32.mrb[84].mxu0 }
 0x1ae   : > { %2983 = vst.msk [vmem:[#allocation3 + $0x10] sm:$0xff] %vm275_vm0, %v2951_v31  ;;  %v2527_v50 = vadd.f32 %v2495_v33, %v2456_v5  ;;  %v5508_v13 = vpop.f32.mrb[84].mxu1  ;;  %v3231_v37 = vpop.f32.mrb[85].mxu0  ;;  %v2932_v33 = vld [vmem:[#allocation3 + $0x78] sm:$0xff] }
 0x1af   : > { %2560 = vst.msk [vmem:[#allocation3 + $0xf8] sm:$0xff] %vm275_vm0, %v2528_v49  ;;  %v2954_v42 = vadd.f32 %v5508_v13, %v2922_v28  ;;  %v2778_v52 = vpop.f32.mrb[85].mxu1  ;;  %v2931_v28 = vld [vmem:[#allocation3 + $0x70] sm:$0xff] }
 0x1b0   : > { %2559 = vst.msk [vmem:[#allocation3 + $0xf0] sm:$0xff] %vm275_vm0, %v2527_v50  ;;  %v2953_v59 = vadd.f32 %v2921_v43, %v2778_v52  ;;  %v3371_v44 = vld [vmem:[#allocation3 + $0x8] sm:$0xff] }
 0x1b1   : > { %2986 = vst.msk [vmem:[#allocation3 + $0x28] sm:$0xff] %vm275_vm0, %v2954_v42  ;;  %v3403_v55 = vadd.f32 %v5554_v9, %v3371_v44  ;;  %v3370_v60 = vld [vmem:[#allocation3] sm:$0xff]  ;;  %v5563_v0 = vpop.f32.mrb[86].mxu0 }
 0x1b2   : > { %2985 = vst.msk [vmem:[#allocation3 + $0x20] sm:$0xff] %vm275_vm0, %v2953_v59  ;;  %v3402_v57 = vadd.f32 %v3370_v60, %v3211_v14  ;;  %v5511_v62 = vpop.f32.mrb[86].mxu1  ;;  %v3241_v51 = vpop.f32.mrb[87].mxu0  ;;  %v2934_v60 = vld [vmem:[#allocation3 + $0x88] sm:$0xff] }
 0x1b3   : > { %3435 = vst.msk [vmem:[#allocation3 + $0x8] sm:$0xff] %vm275_vm0, %v3403_v55  ;;  %v2956_v6 = vadd.f32 %v5511_v62, %v2924_v2  ;;  %v2788_v53 = vpop.f32.mrb[87].mxu1  ;;  %v2933_v2 = vld [vmem:[#allocation3 + $0x80] sm:$0xff] }
 0x1b4   : > { %3434 = vst.msk [vmem:[#allocation3] sm:$0xff] %vm275_vm0, %v3402_v57  ;;  %v2955_v16 = vadd.f32 %v2923_v58, %v2788_v53  ;;  %v3373_v15 = vld [vmem:[#allocation3 + $0x18] sm:$0xff] }
 0x1b5   : > { %2988 = vst.msk [vmem:[#allocation3 + $0x38] sm:$0xff] %vm275_vm0, %v2956_v6  ;;  %v3405_v21 = vadd.f32 %v5557_v4, %v3373_v15  ;;  %v3372_v47 = vld [vmem:[#allocation3 + $0x10] sm:$0xff]  ;;  %v5566_v17 = vpop.f32.mrb[88].mxu0 }
 0x1b6   : > { %2987 = vst.msk [vmem:[#allocation3 + $0x30] sm:$0xff] %vm275_vm0, %v2955_v16  ;;  %v3404_v63 = vadd.f32 %v3372_v47, %v3221_v56  ;;  %v5514_v8 = vpop.f32.mrb[88].mxu1  ;;  %v3251_v36 = vpop.f32.mrb[89].mxu0  ;;  %v2936_v47 = vld [vmem:[#allocation3 + $0x98] sm:$0xff] }
 0x1b7   : > { %3437 = vst.msk [vmem:[#allocation3 + $0x18] sm:$0xff] %vm275_vm0, %v3405_v21  ;;  %v2958_v19 = vadd.f32 %v5514_v8, %v2926_v1  ;;  %v2798_v27 = vpop.f32.mrb[89].mxu1  ;;  %v2935_v1 = vld [vmem:[#allocation3 + $0x90] sm:$0xff] }
 0x1b8   : > { %3436 = vst.msk [vmem:[#allocation3 + $0x10] sm:$0xff] %vm275_vm0, %v3404_v63  ;;  %v2957_v5 = vadd.f32 %v2925_v3, %v2798_v27  ;;  %v3375_v25 = vld [vmem:[#allocation3 + $0x28] sm:$0xff] }
 0x1b9   : > { %2990 = vst.msk [vmem:[#allocation3 + $0x48] sm:$0xff] %vm275_vm0, %v2958_v19  ;;  %v3407_v22 = vadd.f32 %v5560_v35, %v3375_v25  ;;  %v3374_v10 = vld [vmem:[#allocation3 + $0x20] sm:$0xff]  ;;  %v5569_v7 = vpop.f32.mrb[90].mxu0 }
 0x1ba   : > { %2989 = vst.msk [vmem:[#allocation3 + $0x40] sm:$0xff] %vm275_vm0, %v2957_v5  ;;  %v3406_v38 = vadd.f32 %v3374_v10, %v3231_v37  ;;  %v5517_v12 = vpop.f32.mrb[90].mxu1  ;;  %v3261_v9 = vpop.f32.mrb[91].mxu0  ;;  %v2938_v10 = vld [vmem:[#allocation3 + $0xa8] sm:$0xff] }
 0x1bb   : > { %3439 = vst.msk [vmem:[#allocation3 + $0x28] sm:$0xff] %vm275_vm0, %v3407_v22  ;;  %v2960_v29 = vadd.f32 %v5517_v12, %v2928_v54  ;;  %v2808_v61 = vpop.f32.mrb[91].mxu1  ;;  %v2937_v54 = vld [vmem:[#allocation3 + $0xa0] sm:$0xff] }
 0x1bc   : > { %3438 = vst.msk [vmem:[#allocation3 + $0x20] sm:$0xff] %vm275_vm0, %v3406_v38  ;;  %v2959_v14 = vadd.f32 %v2927_v20, %v2808_v61  ;;  %v3377_v39 = vld [vmem:[#allocation3 + $0x38] sm:$0xff] }
 0x1bd   : > { %2992 = vst.msk [vmem:[#allocation3 + $0x58] sm:$0xff] %vm275_vm0, %v2960_v29  ;;  %v3409_v46 = vadd.f32 %v5563_v0, %v3377_v39  ;;  %v3376_v23 = vld [vmem:[#allocation3 + $0x30] sm:$0xff]  ;;  %v5572_v11 = vpop.f32.mrb[92].mxu0 }
 0x1be   : > { %2991 = vst.msk [vmem:[#allocation3 + $0x50] sm:$0xff] %vm275_vm0, %v2959_v14  ;;  %v3408_v24 = vadd.f32 %v3376_v23, %v3241_v51  ;;  %v5520_v30 = vpop.f32.mrb[92].mxu1  ;;  %v3271_v4 = vpop.f32.mrb[93].mxu0  ;;  %v2940_v23 = vld [vmem:[#allocation3 + $0xb8] sm:$0xff] }
 0x1bf   : > { %3441 = vst.msk [vmem:[#allocation3 + $0x38] sm:$0xff] %vm275_vm0, %v3409_v46  ;;  %v2962_v18 = vadd.f32 %v5520_v30, %v2930_v26  ;;  %v2818_v34 = vpop.f32.mrb[93].mxu1  ;;  %v2939_v26 = vld [vmem:[#allocation3 + $0xb0] sm:$0xff] }
 0x1c0   : > { %3440 = vst.msk [vmem:[#allocation3 + $0x30] sm:$0xff] %vm275_vm0, %v3408_v24  ;;  %v2961_v56 = vadd.f32 %v2929_v40, %v2818_v34  ;;  %v3379_v41 = vld [vmem:[#allocation3 + $0x48] sm:$0xff] }
 0x1c1   : > { %2994 = vst.msk [vmem:[#allocation3 + $0x68] sm:$0xff] %vm275_vm0, %v2962_v18  ;;  %v3411_v45 = vadd.f32 %v5566_v17, %v3379_v41  ;;  %v3378_v48 = vld [vmem:[#allocation3 + $0x40] sm:$0xff]  ;;  %v5575_v32 = vpop.f32.mrb[94].mxu0 }
 0x1c2   : > { %2993 = vst.msk [vmem:[#allocation3 + $0x60] sm:$0xff] %vm275_vm0, %v2961_v56  ;;  %v3410_v31 = vadd.f32 %v3378_v48, %v3251_v36  ;;  %v5523_v49 = vpop.f32.mrb[94].mxu1  ;;  %v3281_v35 = vpop.f32.mrb[95].mxu0  ;;  %v2942_v48 = vld [vmem:[#allocation3 + $0xc8] sm:$0xff] }
 0x1c3   : > { %3443 = vst.msk [vmem:[#allocation3 + $0x48] sm:$0xff] %vm275_vm0, %v3411_v45  ;;  %v2964_v50 = vadd.f32 %v5523_v49, %v2932_v33  ;;  %v2828_v13 = vpop.f32.mrb[95].mxu1  ;;  %v2941_v33 = vld [vmem:[#allocation3 + $0xc0] sm:$0xff] }
 0x1c4   : > { %3442 = vst.msk [vmem:[#allocation3 + $0x40] sm:$0xff] %vm275_vm0, %v3410_v31  ;;  %v2963_v37 = vadd.f32 %v2931_v28, %v2828_v13  ;;  %v3381_v42 = vld [vmem:[#allocation3 + $0x58] sm:$0xff] }
 0x1c5   : > { %2996 = vst.msk [vmem:[#allocation3 + $0x78] sm:$0xff] %vm275_vm0, %v2964_v50  ;;  %v3413_v52 = vadd.f32 %v5569_v7, %v3381_v42  ;;  %v3380_v43 = vld [vmem:[#allocation3 + $0x50] sm:$0xff]  ;;  %v5578_v59 = vpop.f32.mrb[96].mxu0 }
 0x1c6   : > { %2995 = vst.msk [vmem:[#allocation3 + $0x70] sm:$0xff] %vm275_vm0, %v2963_v37  ;;  %v3412_v44 = vadd.f32 %v3380_v43, %v3261_v9  ;;  %v5526_v55 = vpop.f32.mrb[96].mxu1  ;;  %v3291_v0 = vpop.f32.mrb[97].mxu0  ;;  %v2944_v43 = vld [vmem:[#allocation3 + $0xd8] sm:$0xff] }
 0x1c7   : > { %3445 = vst.msk [vmem:[#allocation3 + $0x58] sm:$0xff] %vm275_vm0, %v3413_v52  ;;  %v2966_v57 = vadd.f32 %v5526_v55, %v2934_v60  ;;  %v2838_v62 = vpop.f32.mrb[97].mxu1  ;;  %v2943_v60 = vld [vmem:[#allocation3 + $0xd0] sm:$0xff] }
 0x1c8   : > { %3444 = vst.msk [vmem:[#allocation3 + $0x50] sm:$0xff] %vm275_vm0, %v3412_v44  ;;  %v2965_v51 = vadd.f32 %v2933_v2, %v2838_v62  ;;  %v3383_v6 = vld [vmem:[#allocation3 + $0x68] sm:$0xff] }
 0x1c9   : > { %2998 = vst.msk [vmem:[#allocation3 + $0x88] sm:$0xff] %vm275_vm0, %v2966_v57  ;;  %v3415_v53 = vadd.f32 %v5572_v11, %v3383_v6  ;;  %v3382_v58 = vld [vmem:[#allocation3 + $0x60] sm:$0xff]  ;;  %v5581_v16 = vpop.f32.mrb[98].mxu0 }
 0x1ca   : > { %2997 = vst.msk [vmem:[#allocation3 + $0x80] sm:$0xff] %vm275_vm0, %v2965_v51  ;;  %v3414_v15 = vadd.f32 %v3382_v58, %v3271_v4  ;;  %v5529_v21 = vpop.f32.mrb[98].mxu1  ;;  %v3301_v17 = vpop.f32.mrb[99].mxu0  ;;  %v2946_v58 = vld [vmem:[#allocation3 + $0xe8] sm:$0xff] }
 0x1cb   : > { %3447 = vst.msk [vmem:[#allocation3 + $0x68] sm:$0xff] %vm275_vm0, %v3415_v53  ;;  %v2968_v63 = vadd.f32 %v5529_v21, %v2936_v47  ;;  %v2848_v8 = vpop.f32.mrb[99].mxu1  ;;  %v2945_v47 = vld [vmem:[#allocation3 + $0xe0] sm:$0xff] }
 0x1cc   : > { %3446 = vst.msk [vmem:[#allocation3 + $0x60] sm:$0xff] %vm275_vm0, %v3414_v15  ;;  %v2967_v36 = vadd.f32 %v2935_v1, %v2848_v8  ;;  %v3385_v19 = vld [vmem:[#allocation3 + $0x78] sm:$0xff] }
 0x1cd   : > { %3000 = vst.msk [vmem:[#allocation3 + $0x98] sm:$0xff] %vm275_vm0, %v2968_v63  ;;  %v3417_v27 = vadd.f32 %v5575_v32, %v3385_v19  ;;  %v3384_v3 = vld [vmem:[#allocation3 + $0x70] sm:$0xff]  ;;  %v5584_v5 = vpop.f32.mrb[100].mxu0 }
 0x1ce   : > { %2999 = vst.msk [vmem:[#allocation3 + $0x90] sm:$0xff] %vm275_vm0, %v2967_v36  ;;  %v3416_v25 = vadd.f32 %v3384_v3, %v3281_v35  ;;  %v5532_v22 = vpop.f32.mrb[100].mxu1  ;;  %v3311_v7 = vpop.f32.mrb[101].mxu0  ;;  %v2948_v3 = vld [vmem:[#allocation3 + $0xf8] sm:$0xff] }
 0x1cf   : > { %3449 = vst.msk [vmem:[#allocation3 + $0x78] sm:$0xff] %vm275_vm0, %v3417_v27  ;;  %v2970_v38 = vadd.f32 %v5532_v22, %v2938_v10  ;;  %v2858_v12 = vpop.f32.mrb[101].mxu1  ;;  %v2947_v10 = vld [vmem:[#allocation3 + $0xf0] sm:$0xff] }
 0x1d0   : > { %3448 = vst.msk [vmem:[#allocation3 + $0x70] sm:$0xff] %vm275_vm0, %v3416_v25  ;;  %v2969_v9 = vadd.f32 %v2937_v54, %v2858_v12  ;;  %v3387_v29 = vld [vmem:[#allocation3 + $0x88] sm:$0xff] }
 0x1d1   : > { %3002 = vst.msk [vmem:[#allocation3 + $0xa8] sm:$0xff] %vm275_vm0, %v2970_v38  ;;  %v3419_v61 = vadd.f32 %v5578_v59, %v3387_v29  ;;  %v3386_v20 = vld [vmem:[#allocation3 + $0x80] sm:$0xff]  ;;  %v5587_v14 = vpop.f32.mrb[102].mxu0 }
 0x1d2   : > { %3001 = vst.msk [vmem:[#allocation3 + $0xa0] sm:$0xff] %vm275_vm0, %v2969_v9  ;;  %v3418_v39 = vadd.f32 %v3386_v20, %v3291_v0  ;;  %v5535_v46 = vpop.f32.mrb[102].mxu1  ;;  %v3321_v11 = vpop.f32.mrb[103].mxu0  ;;  %v3823_v20 = vld [vmem:[#allocation3 + $0x8] sm:$0xff] }
 0x1d3   : > { %3451 = vst.msk [vmem:[#allocation3 + $0x88] sm:$0xff] %vm275_vm0, %v3419_v61  ;;  %v2972_v24 = vadd.f32 %v5535_v46, %v2940_v23  ;;  %v2868_v30 = vpop.f32.mrb[103].mxu1  ;;  %v3822_v23 = vld [vmem:[#allocation3] sm:$0xff] }
 0x1d4   : > { %3450 = vst.msk [vmem:[#allocation3 + $0x80] sm:$0xff] %vm275_vm0, %v3418_v39  ;;  %v2971_v4 = vadd.f32 %v2939_v26, %v2868_v30  ;;  %v3389_v18 = vld [vmem:[#allocation3 + $0x98] sm:$0xff] }
 0x1d5   : > { %3004 = vst.msk [vmem:[#allocation3 + $0xb8] sm:$0xff] %vm275_vm0, %v2972_v24  ;;  %v3421_v34 = vadd.f32 %v5581_v16, %v3389_v18  ;;  %v3388_v40 = vld [vmem:[#allocation3 + $0x90] sm:$0xff]  ;;  %v5590_v56 = vpop.f32.mrb[104].mxu0 }
 0x1d6   : > { %3003 = vst.msk [vmem:[#allocation3 + $0xb0] sm:$0xff] %vm275_vm0, %v2971_v4  ;;  %v3420_v41 = vadd.f32 %v3388_v40, %v3301_v17  ;;  %v5538_v45 = vpop.f32.mrb[104].mxu1  ;;  %v3331_v32 = vpop.f32.mrb[105].mxu0  ;;  %v3825_v40 = vld [vmem:[#allocation3 + $0x18] sm:$0xff] }
 0x1d7   : > { %3453 = vst.msk [vmem:[#allocation3 + $0x98] sm:$0xff] %vm275_vm0, %v3421_v34  ;;  %v2974_v31 = vadd.f32 %v5538_v45, %v2942_v48  ;;  %v2878_v49 = vpop.f32.mrb[105].mxu1  ;;  %v3824_v48 = vld [vmem:[#allocation3 + $0x10] sm:$0xff] }
 0x1d8   : > { %3452 = vst.msk [vmem:[#allocation3 + $0x90] sm:$0xff] %vm275_vm0, %v3420_v41  ;;  %v2973_v35 = vadd.f32 %v2941_v33, %v2878_v49  ;;  %v3391_v50 = vld [vmem:[#allocation3 + $0xa8] sm:$0xff] }
 0x1d9   : > { %3006 = vst.msk [vmem:[#allocation3 + $0xc8] sm:$0xff] %vm275_vm0, %v2974_v31  ;;  %v3423_v13 = vadd.f32 %v5584_v5, %v3391_v50  ;;  %v3390_v28 = vld [vmem:[#allocation3 + $0xa0] sm:$0xff]  ;;  %v5593_v37 = vpop.f32.mrb[106].mxu0 }
 0x1da   : > { %3005 = vst.msk [vmem:[#allocation3 + $0xc0] sm:$0xff] %vm275_vm0, %v2973_v35  ;;  %v3422_v42 = vadd.f32 %v3390_v28, %v3311_v7  ;;  %v5541_v52 = vpop.f32.mrb[106].mxu1  ;;  %v3341_v59 = vpop.f32.mrb[107].mxu0  ;;  %v3827_v28 = vld [vmem:[#allocation3 + $0x28] sm:$0xff] }
 0x1db   : > { %3455 = vst.msk [vmem:[#allocation3 + $0xa8] sm:$0xff] %vm275_vm0, %v3423_v13  ;;  %v2976_v44 = vadd.f32 %v5541_v52, %v2944_v43  ;;  %v2888_v55 = vpop.f32.mrb[107].mxu1  ;;  %v3826_v43 = vld [vmem:[#allocation3 + $0x20] sm:$0xff] }
 0x1dc   : > { %3454 = vst.msk [vmem:[#allocation3 + $0xa0] sm:$0xff] %vm275_vm0, %v3422_v42  ;;  %v2975_v0 = vadd.f32 %v2943_v60, %v2888_v55  ;;  %v3393_v57 = vld [vmem:[#allocation3 + $0xb8] sm:$0xff] }
 0x1dd   : > { %3008 = vst.msk [vmem:[#allocation3 + $0xd8] sm:$0xff] %vm275_vm0, %v2976_v44  ;;  %v3425_v62 = vadd.f32 %v5587_v14, %v3393_v57  ;;  %v3392_v2 = vld [vmem:[#allocation3 + $0xb0] sm:$0xff]  ;;  %v5596_v51 = vpop.f32.mrb[108].mxu0 }
 0x1de   : > { %3007 = vst.msk [vmem:[#allocation3 + $0xd0] sm:$0xff] %vm275_vm0, %v2975_v0  ;;  %v3424_v6 = vadd.f32 %v3392_v2, %v3321_v11  ;;  %v5544_v53 = vpop.f32.mrb[108].mxu1  ;;  %v3351_v16 = vpop.f32.mrb[109].mxu0  ;;  %v3829_v2 = vld [vmem:[#allocation3 + $0x38] sm:$0xff] }
 0x1df   : > { %3457 = vst.msk [vmem:[#allocation3 + $0xb8] sm:$0xff] %vm275_vm0, %v3425_v62  ;;  %v2978_v15 = vadd.f32 %v5544_v53, %v2946_v58  ;;  %v2898_v21 = vpop.f32.mrb[109].mxu1  ;;  %v3828_v58 = vld [vmem:[#allocation3 + $0x30] sm:$0xff] }
 0x1e0   : > { %3456 = vst.msk [vmem:[#allocation3 + $0xb0] sm:$0xff] %vm275_vm0, %v3424_v6  ;;  %v2977_v17 = vadd.f32 %v2945_v47, %v2898_v21  ;;  %v3395_v63 = vld [vmem:[#allocation3 + $0xc8] sm:$0xff] }
 0x1e1   : > { %3010 = vst.msk [vmem:[#allocation3 + $0xe8] sm:$0xff] %vm275_vm0, %v2978_v15  ;;  %v3427_v8 = vadd.f32 %v5590_v56, %v3395_v63  ;;  %v3394_v1 = vld [vmem:[#allocation3 + $0xc0] sm:$0xff]  ;;  %v5599_v36 = vpop.f32.mrb[110].mxu0 }
 0x1e2   : > { %3009 = vst.msk [vmem:[#allocation3 + $0xe0] sm:$0xff] %vm275_vm0, %v2977_v17  ;;  %v3426_v19 = vadd.f32 %v3394_v1, %v3331_v32  ;;  %v5547_v27 = vpop.f32.mrb[110].mxu1  ;;  %v3361_v5 = vpop.f32.mrb[111].mxu0  ;;  %v3831_v1 = vld [vmem:[#allocation3 + $0x48] sm:$0xff] }
 0x1e3   : > { %3459 = vst.msk [vmem:[#allocation3 + $0xc8] sm:$0xff] %vm275_vm0, %v3427_v8  ;;  %v2980_v25 = vadd.f32 %v5547_v27, %v2948_v3  ;;  %v2908_v22 = vpop.f32.mrb[111].mxu1  ;;  %v3830_v3 = vld [vmem:[#allocation3 + $0x40] sm:$0xff] }
 0x1e4   : > { %3458 = vst.msk [vmem:[#allocation3 + $0xc0] sm:$0xff] %vm275_vm0, %v3426_v19  ;;  %v2979_v7 = vadd.f32 %v2947_v10, %v2908_v22  ;;  %v3397_v38 = vld [vmem:[#allocation3 + $0xd8] sm:$0xff]  ;;  %v4402_v10 = vld [vmem:[%s7054_s8] sm:$0xff] }
 0x1e5   : > { %3012 = vst.msk [vmem:[#allocation3 + $0xf8] sm:$0xff] %vm275_vm0, %v2980_v25  ;;  %v3429_v12 = vadd.f32 %v5593_v37, %v3397_v38  ;;  %v3396_v54 = vld [vmem:[#allocation3 + $0xd0] sm:$0xff]  ;;  %v5658_v9 = vpop.f32.mrb[112].mxu0 }
 0x1e6   : > { %3011 = vst.msk [vmem:[#allocation3 + $0xf0] sm:$0xff] %vm275_vm0, %v2979_v7  ;;  %v3428_v29 = vadd.f32 %v3396_v54, %v3341_v59  ;;  %v5606_v61 = vpop.f32.mrb[112].mxu1  ;;  %v4115_v14 = vpop.f32.mrb[113].mxu0 }
 0x1e7   : > { %3461 = vst.msk [vmem:[#allocation3 + $0xd8] sm:$0xff] %vm275_vm0, %v3429_v12  ;;  %v3855_v39 = vadd.f32 %v5606_v61, %v3823_v20  ;;  %v3663_v46 = vpop.f32.mrb[113].mxu1  ;;  %v3833_v61 = vld [vmem:[#allocation3 + $0x58] sm:$0xff] }
 0x1e8   : > { %3460 = vst.msk [vmem:[#allocation3 + $0xd0] sm:$0xff] %vm275_vm0, %v3428_v29  ;;  %v3399_v11 = vld [vmem:[#allocation3 + $0xe8] sm:$0xff]  ;;  %v3854_v24 = vadd.f32 %v3822_v23, %v3663_v46 }
 0x1e9   : > { %3887 = vst.msk [vmem:[#allocation3 + $0x8] sm:$0xff] %vm275_vm0, %v3855_v39  ;;  %v3431_v30 = vadd.f32 %v5596_v51, %v3399_v11  ;;  %v3398_v26 = vld [vmem:[#allocation3 + $0xe0] sm:$0xff]  ;;  %v5661_v4 = vpop.f32.mrb[114].mxu0  ;;  %v3832_v11 = vld [vmem:[#allocation3 + $0x50] sm:$0xff] }
 0x1ea   : > { %3886 = vst.msk [vmem:[#allocation3] sm:$0xff] %vm275_vm0, %v3854_v24  ;;  %v3430_v18 = vadd.f32 %v3398_v26, %v3351_v16  ;;  %v5609_v34 = vpop.f32.mrb[114].mxu1  ;;  %v4125_v56 = vpop.f32.mrb[115].mxu0 }
 0x1eb   : > { %3463 = vst.msk [vmem:[#allocation3 + $0xe8] sm:$0xff] %vm275_vm0, %v3431_v30  ;;  %v3857_v41 = vadd.f32 %v5609_v34, %v3825_v40  ;;  %v3673_v45 = vpop.f32.mrb[115].mxu1  ;;  %v4405_v30 = vld [vmem:[%s7054_s8 + $0x18] sm:$0xff] }
 0x1ec   : > { %3462 = vst.msk [vmem:[#allocation3 + $0xe0] sm:$0xff] %vm275_vm0, %v3430_v18  ;;  %v3401_v32 = vld [vmem:[#allocation3 + $0xf8] sm:$0xff]  ;;  %v3856_v31 = vadd.f32 %v3824_v48, %v3673_v45  ;;  %v4404_v18 = vld [vmem:[%s7054_s8 + $0x10] sm:$0xff] }
 0x1ed   : > { %3889 = vst.msk [vmem:[#allocation3 + $0x18] sm:$0xff] %vm275_vm0, %v3857_v41  ;;  %v3433_v49 = vadd.f32 %v5599_v36, %v3401_v32  ;;  %v3400_v33 = vld [vmem:[#allocation3 + $0xf0] sm:$0xff]  ;;  %v5664_v35 = vpop.f32.mrb[116].mxu0  ;;  %v3835_v32 = vld [vmem:[#allocation3 + $0x68] sm:$0xff] }
 0x1ee   : > { %3888 = vst.msk [vmem:[#allocation3 + $0x10] sm:$0xff] %vm275_vm0, %v3856_v31  ;;  %v3432_v50 = vadd.f32 %v3400_v33, %v3361_v5  ;;  %v5612_v13 = vpop.f32.mrb[116].mxu1  ;;  %v4135_v37 = vpop.f32.mrb[117].mxu0  ;;  %v4403_v5 = vld [vmem:[%s7054_s8 + $0x8] sm:$0xff] }
 0x1ef   : > { %3465 = vst.msk [vmem:[#allocation3 + $0xf8] sm:$0xff] %vm275_vm0, %v3433_v49  ;;  %v3859_v42 = vadd.f32 %v5612_v13, %v3827_v28  ;;  %v3683_v52 = vpop.f32.mrb[117].mxu1  ;;  %v3834_v13 = vld [vmem:[#allocation3 + $0x60] sm:$0xff] }
 0x1f0   : > { %3464 = vst.msk [vmem:[#allocation3 + $0xf0] sm:$0xff] %vm275_vm0, %v3432_v50  ;;  %v3858_v59 = vadd.f32 %v3826_v43, %v3683_v52  ;;  %v4275_v44 = vld [vmem:[#allocation3 + $0x8] sm:$0xff]  ;;  %v4406_v43 = vld [vmem:[%s7054_s8 + $0x20] sm:$0xff] }
 0x1f1   : > { %3891 = vst.msk [vmem:[#allocation3 + $0x28] sm:$0xff] %vm275_vm0, %v3859_v42  ;;  %v4307_v55 = vadd.f32 %v5658_v9, %v4275_v44  ;;  %v4274_v60 = vld [vmem:[#allocation3] sm:$0xff]  ;;  %v5667_v0 = vpop.f32.mrb[118].mxu0 }
 0x1f2   : > { %3890 = vst.msk [vmem:[#allocation3 + $0x20] sm:$0xff] %vm275_vm0, %v3858_v59  ;;  %v4306_v57 = vadd.f32 %v4274_v60, %v4115_v14  ;;  %v5615_v62 = vpop.f32.mrb[118].mxu1  ;;  %v4145_v51 = vpop.f32.mrb[119].mxu0 }
 0x1f3   : > { %4339 = vst.msk [vmem:[#allocation3 + $0x8] sm:$0xff] %vm275_vm0, %v4307_v55  ;;  %v3861_v6 = vadd.f32 %v5615_v62, %v3829_v2  ;;  %v3693_v53 = vpop.f32.mrb[119].mxu1  ;;  %v3837_v62 = vld [vmem:[#allocation3 + $0x78] sm:$0xff] }
 0x1f4   : > { %4338 = vst.msk [vmem:[#allocation3] sm:$0xff] %vm275_vm0, %v4306_v57  ;;  %v3860_v16 = vadd.f32 %v3828_v58, %v3693_v53  ;;  %v4277_v15 = vld [vmem:[#allocation3 + $0x18] sm:$0xff] }
 0x1f5   : > { %3893 = vst.msk [vmem:[#allocation3 + $0x38] sm:$0xff] %vm275_vm0, %v3861_v6  ;;  %v4309_v21 = vadd.f32 %v5661_v4, %v4277_v15  ;;  %v4276_v47 = vld [vmem:[#allocation3 + $0x10] sm:$0xff]  ;;  %v7057_v17 = vpop.f32.mrb[120].mxu0 }
 0x1f6   : > { %3892 = vst.msk [vmem:[#allocation3 + $0x30] sm:$0xff] %vm275_vm0, %v3860_v16  ;;  %v4308_v63 = vadd.f32 %v4276_v47, %v4125_v56  ;;  %v5618_v8 = vpop.f32.mrb[120].mxu1  ;;  %v7060_v36 = vpop.f32.mrb[121].mxu0  ;;  %v3836_v16 = vld [vmem:[#allocation3 + $0x70] sm:$0xff] }
 0x1f7   : > { %4341 = vst.msk [vmem:[#allocation3 + $0x18] sm:$0xff] %vm275_vm0, %v4309_v21  ;;  %v3863_v19 = vadd.f32 %v5618_v8, %v3831_v1  ;;  %v3703_v27 = vpop.f32.mrb[121].mxu1  ;;  %v4409_v21 = vld [vmem:[%s7054_s8 + $0x38] sm:$0xff] }
 0x1f8   : > { %4340 = vst.msk [vmem:[#allocation3 + $0x10] sm:$0xff] %vm275_vm0, %v4308_v63  ;;  %v3862_v25 = vadd.f32 %v3830_v3, %v3703_v27  ;;  %v4279_v22 = vld [vmem:[#allocation3 + $0x28] sm:$0xff]  ;;  %v4408_v63 = vld [vmem:[%s7054_s8 + $0x30] sm:$0xff] }
 0x1f9   : > { %3895 = vst.msk [vmem:[#allocation3 + $0x48] sm:$0xff] %vm275_vm0, %v3863_v19  ;;  %v4311_v7 = vadd.f32 %v5664_v35, %v4279_v22  ;;  %v4278_v38 = vld [vmem:[#allocation3 + $0x20] sm:$0xff]  ;;  %v7067_v12 = vpop.f32.mrb[122].mxu0 }
 0x1fa   : > { %v4371_v54 = vld [vmem:[#allocation3 + $0x8] sm:$0xff]  ;;  %3894 = vst.msk [vmem:[#allocation3 + $0x40] sm:$0xff] %vm275_vm0, %v3862_v25  ;;  %v4310_v9 = vadd.f32 %v4278_v38, %v4135_v37  ;;  %v5621_v29 = vpop.f32.mrb[122].mxu1  ;;  %v7076_v20 = vpop.f32.mrb[123].mxu0  ;;  %v4407_v37 = vld [vmem:[%s7054_s8 + $0x28] sm:$0xff] }
 0x1fb   : > { %v4435_v14 = vadd.f32 %v4403_v5, %v4371_v54  ;;  %v4370_v39 = vld [vmem:[#allocation3] sm:$0xff]  ;;  %4343 = vst.msk [vmem:[#allocation3 + $0x28] sm:$0xff] %vm275_vm0, %v4311_v7  ;;  %v3865_v46 = vadd.f32 %v5621_v29, %v3833_v61  ;;  %v3713_v23 = vpop.f32.mrb[123].mxu1  ;;  %v3839_v5 = vld [vmem:[#allocation3 + $0x88] sm:$0xff] }
 0x1fc   : > { %v4434_v24 = vadd.f32 %v4402_v10, %v4370_v39  ;;  %4342 = vst.msk [vmem:[#allocation3 + $0x20] sm:$0xff] %vm275_vm0, %v4310_v9  ;;  %v3864_v26 = vadd.f32 %v3832_v11, %v3713_v23  ;;  %v4281_v4 = vld [vmem:[#allocation3 + $0x38] sm:$0xff] }
 0x1fd   : > { %4467 = vst.msk [vmem:[%s7073_s11 + $0x8] sm:$0xff] %vm275_vm0, %v4435_v14  ;;  %3897 = vst.msk [vmem:[#allocation3 + $0x58] sm:$0xff] %vm275_vm0, %v3865_v46  ;;  %v4313_v34 = vadd.f32 %v5667_v0, %v4281_v4  ;;  %v4280_v40 = vld [vmem:[#allocation3 + $0x30] sm:$0xff]  ;;  %v7085_v56 = vpop.f32.mrb[124].mxu0  ;;  %v4411_v9 = vld [vmem:[%s7054_s8 + $0x48] sm:$0xff] }
 0x1fe   : > { %4466 = vst.msk [vmem:[%s7073_s11] sm:$0xff] %vm275_vm0, %v4434_v24  ;;  %v4373_v41 = vld [vmem:[#allocation3 + $0x18] sm:$0xff]  ;;  %3896 = vst.msk [vmem:[#allocation3 + $0x50] sm:$0xff] %vm275_vm0, %v3864_v26  ;;  %v4312_v45 = vadd.f32 %v4280_v40, %v4145_v51  ;;  %v5624_v48 = vpop.f32.mrb[124].mxu1  ;;  %v7090_v31 = vpop.f32.mrb[125].mxu0 }
 0x1ff   : > { %v4437_v49 = vadd.f32 %v4405_v30, %v4373_v41  ;;  %v4372_v33 = vld [vmem:[#allocation3 + $0x10] sm:$0xff]  ;;  %4345 = vst.msk [vmem:[#allocation3 + $0x38] sm:$0xff] %vm275_vm0, %v4313_v34  ;;  %v3867_v35 = vadd.f32 %v5624_v48, %v3835_v32  ;;  %v3723_v50 = vpop.f32.mrb[125].mxu1  ;;  %v3841_v30 = vld [vmem:[#allocation3 + $0x98] sm:$0xff] }
 0x200   : > { %v4436_v28 = vadd.f32 %v4404_v18, %v4372_v33  ;;  %4344 = vst.msk [vmem:[#allocation3 + $0x30] sm:$0xff] %vm275_vm0, %v4312_v45  ;;  %v3866_v42 = vadd.f32 %v3834_v13, %v3723_v50  ;;  %v4283_v52 = vld [vmem:[#allocation3 + $0x48] sm:$0xff] }
 0x201   : > { %4469 = vst.msk [vmem:[%s7073_s11 + $0x18] sm:$0xff] %vm275_vm0, %v4437_v49  ;;  %3899 = vst.msk [vmem:[#allocation3 + $0x68] sm:$0xff] %vm275_vm0, %v3867_v35  ;;  %v4315_v59 = vadd.f32 %v7057_v17, %v4283_v52  ;;  %v4282_v44 = vld [vmem:[#allocation3 + $0x40] sm:$0xff]  ;;  %v7100_v55 = vpop.f32.mrb[126].mxu0  ;;  %v4413_v45 = vld [vmem:[%s7054_s8 + $0x58] sm:$0xff] }
 0x202   : > { %4468 = vst.msk [vmem:[%s7073_s11 + $0x10] sm:$0xff] %vm275_vm0, %v4436_v28  ;;  %v4375_v60 = vld [vmem:[#allocation3 + $0x28] sm:$0xff]  ;;  %3898 = vst.msk [vmem:[#allocation3 + $0x60] sm:$0xff] %vm275_vm0, %v3866_v42  ;;  %v4314_v0 = vadd.f32 %v4282_v44, %v7060_v36  ;;  %v5627_v57 = vpop.f32.mrb[126].mxu1  ;;  %v7106_v2 = vpop.f32.mrb[127].mxu0 }
 0x203   : > { %v4439_v51 = vadd.f32 %v4407_v37, %v4375_v60  ;;  %v4374_v6 = vld [vmem:[#allocation3 + $0x20] sm:$0xff]  ;;  %4347 = vst.msk [vmem:[#allocation3 + $0x48] sm:$0xff] %vm275_vm0, %v4315_v59  ;;  %v3869_v53 = vadd.f32 %v5627_v57, %v3837_v62  ;;  %v3733_v58 = vpop.f32.mrb[127].mxu1  ;;  %v3843_v37 = vld [vmem:[#allocation3 + $0xa8] sm:$0xff] }
 0x204   : > { %v4438_v15 = vadd.f32 %v4406_v43, %v4374_v6  ;;  %4346 = vst.msk [vmem:[#allocation3 + $0x40] sm:$0xff] %vm275_vm0, %v4314_v0  ;;  %v3868_v47 = vadd.f32 %v3836_v16, %v3733_v58  ;;  %v4285_v17 = vld [vmem:[#allocation3 + $0x58] sm:$0xff] }
 0x205   : > { %4471 = vst.msk [vmem:[%s7073_s11 + $0x28] sm:$0xff] %vm275_vm0, %v4439_v51  ;;  %3901 = vst.msk [vmem:[#allocation3 + $0x78] sm:$0xff] %vm275_vm0, %v3869_v53  ;;  %v4317_v8 = vadd.f32 %v7067_v12, %v4285_v17  ;;  %v4284_v1 = vld [vmem:[#allocation3 + $0x50] sm:$0xff]  ;;  %v7116_v36 = vpop.f32.mrb[128].mxu0  ;;  %v3838_v12 = vld [vmem:[#allocation3 + $0x80] sm:$0xff] }
 0x206   : > { %4470 = vst.msk [vmem:[%s7073_s11 + $0x20] sm:$0xff] %vm275_vm0, %v4438_v15  ;;  %v4377_v19 = vld [vmem:[#allocation3 + $0x38] sm:$0xff]  ;;  %3900 = vst.msk [vmem:[#allocation3 + $0x70] sm:$0xff] %vm275_vm0, %v3868_v47  ;;  %v4316_v27 = vadd.f32 %v4284_v1, %v7076_v20  ;;  %v5630_v3 = vpop.f32.mrb[128].mxu1  ;;  %v7122_v25 = vpop.f32.mrb[129].mxu0  ;;  %v4410_v20 = vld [vmem:[%s7054_s8 + $0x40] sm:$0xff] }
 0x207   : > { %v4441_v22 = vadd.f32 %v4409_v21, %v4377_v19  ;;  %v4376_v10 = vld [vmem:[#allocation3 + $0x30] sm:$0xff]  ;;  %4349 = vst.msk [vmem:[#allocation3 + $0x58] sm:$0xff] %vm275_vm0, %v4317_v8  ;;  %v3871_v7 = vadd.f32 %v5630_v3, %v3839_v5  ;;  %v3743_v38 = vpop.f32.mrb[129].mxu1  ;;  %v4415_v0 = vld [vmem:[%s7054_s8 + $0x68] sm:$0xff] }
 0x208   : > { %v4440_v54 = vadd.f32 %v4408_v63, %v4376_v10  ;;  %4348 = vst.msk [vmem:[#allocation3 + $0x50] sm:$0xff] %vm275_vm0, %v4316_v27  ;;  %v3870_v29 = vadd.f32 %v3838_v12, %v3743_v38  ;;  %v4287_v61 = vld [vmem:[#allocation3 + $0x68] sm:$0xff]  ;;  %v3845_v21 = vld [vmem:[#allocation3 + $0xb8] sm:$0xff] }
 0x209   : > { %4473 = vst.msk [vmem:[%s7073_s11 + $0x38] sm:$0xff] %vm275_vm0, %v4441_v22  ;;  %3903 = vst.msk [vmem:[#allocation3 + $0x88] sm:$0xff] %vm275_vm0, %v3871_v7  ;;  %v4319_v14 = vadd.f32 %v7085_v56, %v4287_v61  ;;  %v4286_v39 = vld [vmem:[#allocation3 + $0x60] sm:$0xff]  ;;  %v7132_v46 = vpop.f32.mrb[130].mxu0  ;;  %v3840_v56 = vld [vmem:[#allocation3 + $0x90] sm:$0xff] }
 0x20a   : > { %4472 = vst.msk [vmem:[%s7073_s11 + $0x30] sm:$0xff] %vm275_vm0, %v4440_v54  ;;  %v4379_v23 = vld [vmem:[#allocation3 + $0x48] sm:$0xff]  ;;  %3902 = vst.msk [vmem:[#allocation3 + $0x80] sm:$0xff] %vm275_vm0, %v3870_v29  ;;  %v4318_v11 = vadd.f32 %v4286_v39, %v7090_v31  ;;  %v5633_v24 = vpop.f32.mrb[130].mxu1  ;;  %v7138_v26 = vpop.f32.mrb[131].mxu0  ;;  %v4412_v31 = vld [vmem:[%s7054_s8 + $0x50] sm:$0xff] }
 0x20b   : > { %v4443_v4 = vadd.f32 %v4411_v9, %v4379_v23  ;;  %v4378_v18 = vld [vmem:[#allocation3 + $0x40] sm:$0xff]  ;;  %4351 = vst.msk [vmem:[#allocation3 + $0x68] sm:$0xff] %vm275_vm0, %v4319_v14  ;;  %v3873_v34 = vadd.f32 %v5633_v24, %v3841_v30  ;;  %v3753_v40 = vpop.f32.mrb[131].mxu1  ;;  %v4417_v27 = vld [vmem:[%s7054_s8 + $0x78] sm:$0xff] }
 0x20c   : > { %v4442_v41 = vadd.f32 %v4410_v20, %v4378_v18  ;;  %4350 = vst.msk [vmem:[#allocation3 + $0x60] sm:$0xff] %vm275_vm0, %v4318_v11  ;;  %v3872_v48 = vadd.f32 %v3840_v56, %v3753_v40  ;;  %v4289_v32 = vld [vmem:[#allocation3 + $0x78] sm:$0xff]  ;;  %v3847_v9 = vld [vmem:[#allocation3 + $0xc8] sm:$0xff] }
 0x20d   : > { %4475 = vst.msk [vmem:[%s7073_s11 + $0x48] sm:$0xff] %vm275_vm0, %v4443_v4  ;;  %3905 = vst.msk [vmem:[#allocation3 + $0x98] sm:$0xff] %vm275_vm0, %v3873_v34  ;;  %v4321_v49 = vadd.f32 %v7100_v55, %v4289_v32  ;;  %v4288_v33 = vld [vmem:[#allocation3 + $0x70] sm:$0xff]  ;;  %v7148_v35 = vpop.f32.mrb[132].mxu0  ;;  %v3842_v55 = vld [vmem:[#allocation3 + $0xa0] sm:$0xff] }
 0x20e   : > { %4474 = vst.msk [vmem:[%s7073_s11 + $0x40] sm:$0xff] %vm275_vm0, %v4442_v41  ;;  %v4381_v50 = vld [vmem:[#allocation3 + $0x58] sm:$0xff]  ;;  %3904 = vst.msk [vmem:[#allocation3 + $0x90] sm:$0xff] %vm275_vm0, %v3872_v48  ;;  %v4320_v13 = vadd.f32 %v4288_v33, %v7106_v2  ;;  %v5636_v28 = vpop.f32.mrb[132].mxu1  ;;  %v7154_v42 = vpop.f32.mrb[133].mxu0  ;;  %v4414_v2 = vld [vmem:[%s7054_s8 + $0x60] sm:$0xff] }
 0x20f   : > { %v4445_v52 = vadd.f32 %v4413_v45, %v4381_v50  ;;  %v4380_v43 = vld [vmem:[#allocation3 + $0x50] sm:$0xff]  ;;  %4353 = vst.msk [vmem:[#allocation3 + $0x78] sm:$0xff] %vm275_vm0, %v4321_v49  ;;  %v3875_v59 = vadd.f32 %v5636_v28, %v3843_v37  ;;  %v3763_v44 = vpop.f32.mrb[133].mxu1  ;;  %v4419_v11 = vld [vmem:[%s7054_s8 + $0x88] sm:$0xff] }
 0x210   : > { %v4444_v60 = vadd.f32 %v4412_v31, %v4380_v43  ;;  %4352 = vst.msk [vmem:[#allocation3 + $0x70] sm:$0xff] %vm275_vm0, %v4320_v13  ;;  %v3874_v57 = vadd.f32 %v3842_v55, %v3763_v44  ;;  %v4291_v62 = vld [vmem:[#allocation3 + $0x88] sm:$0xff]  ;;  %v3849_v45 = vld [vmem:[#allocation3 + $0xd8] sm:$0xff] }
 0x211   : > { %4477 = vst.msk [vmem:[%s7073_s11 + $0x58] sm:$0xff] %vm275_vm0, %v4445_v52  ;;  %3907 = vst.msk [vmem:[#allocation3 + $0xa8] sm:$0xff] %vm275_vm0, %v3875_v59  ;;  %v4323_v51 = vadd.f32 %v7116_v36, %v4291_v62  ;;  %v4290_v6 = vld [vmem:[#allocation3 + $0x80] sm:$0xff]  ;;  %v7164_v53 = vpop.f32.mrb[134].mxu0  ;;  %v3844_v36 = vld [vmem:[#allocation3 + $0xb0] sm:$0xff] }
 0x212   : > { %4476 = vst.msk [vmem:[%s7073_s11 + $0x50] sm:$0xff] %vm275_vm0, %v4444_v60  ;;  %v4383_v58 = vld [vmem:[#allocation3 + $0x68] sm:$0xff]  ;;  %3906 = vst.msk [vmem:[#allocation3 + $0xa0] sm:$0xff] %vm275_vm0, %v3874_v57  ;;  %v4322_v16 = vadd.f32 %v4290_v6, %v7122_v25  ;;  %v5639_v15 = vpop.f32.mrb[134].mxu1  ;;  %v7170_v47 = vpop.f32.mrb[135].mxu0  ;;  %v4416_v25 = vld [vmem:[%s7054_s8 + $0x70] sm:$0xff] }
 0x213   : > { %v4447_v17 = vadd.f32 %v4415_v0, %v4383_v58  ;;  %v4382_v63 = vld [vmem:[#allocation3 + $0x60] sm:$0xff]  ;;  %4355 = vst.msk [vmem:[#allocation3 + $0x88] sm:$0xff] %vm275_vm0, %v4323_v51  ;;  %v3877_v8 = vadd.f32 %v5639_v15, %v3845_v21  ;;  %v3773_v1 = vpop.f32.mrb[135].mxu1  ;;  %v4421_v13 = vld [vmem:[%s7054_s8 + $0x98] sm:$0xff] }
 0x214   : > { %v4446_v19 = vadd.f32 %v4414_v2, %v4382_v63  ;;  %4354 = vst.msk [vmem:[#allocation3 + $0x80] sm:$0xff] %vm275_vm0, %v4322_v16  ;;  %v3876_v3 = vadd.f32 %v3844_v36, %v3773_v1  ;;  %v4293_v5 = vld [vmem:[#allocation3 + $0x98] sm:$0xff]  ;;  %v3851_v0 = vld [vmem:[#allocation3 + $0xe8] sm:$0xff] }
 0x215   : > { %4479 = vst.msk [vmem:[%s7073_s11 + $0x68] sm:$0xff] %vm275_vm0, %v4447_v17  ;;  %3909 = vst.msk [vmem:[#allocation3 + $0xb8] sm:$0xff] %vm275_vm0, %v3877_v8  ;;  %v4325_v22 = vadd.f32 %v7132_v46, %v4293_v5  ;;  %v4292_v10 = vld [vmem:[#allocation3 + $0x90] sm:$0xff]  ;;  %v7180_v7 = vpop.f32.mrb[136].mxu0  ;;  %v3846_v46 = vld [vmem:[#allocation3 + $0xc0] sm:$0xff] }
 0x216   : > { %4478 = vst.msk [vmem:[%s7073_s11 + $0x60] sm:$0xff] %vm275_vm0, %v4446_v19  ;;  %v4385_v38 = vld [vmem:[#allocation3 + $0x78] sm:$0xff]  ;;  %3908 = vst.msk [vmem:[#allocation3 + $0xb0] sm:$0xff] %vm275_vm0, %v3876_v3  ;;  %v4324_v12 = vadd.f32 %v4292_v10, %v7138_v26  ;;  %v5642_v54 = vpop.f32.mrb[136].mxu1  ;;  %v7186_v29 = vpop.f32.mrb[137].mxu0  ;;  %v4418_v26 = vld [vmem:[%s7054_s8 + $0x80] sm:$0xff] }
 0x217   : > { %v4449_v61 = vadd.f32 %v4417_v27, %v4385_v38  ;;  %v4384_v20 = vld [vmem:[#allocation3 + $0x70] sm:$0xff]  ;;  %4357 = vst.msk [vmem:[#allocation3 + $0x98] sm:$0xff] %vm275_vm0, %v4325_v22  ;;  %v3879_v14 = vadd.f32 %v5642_v54, %v3847_v9  ;;  %v3783_v39 = vpop.f32.mrb[137].mxu1  ;;  %v4423_v16 = vld [vmem:[%s7054_s8 + $0xa8] sm:$0xff] }
 0x218   : > { %v4448_v23 = vadd.f32 %v4416_v25, %v4384_v20  ;;  %4356 = vst.msk [vmem:[#allocation3 + $0x90] sm:$0xff] %vm275_vm0, %v4324_v12  ;;  %v3878_v24 = vadd.f32 %v3846_v46, %v3783_v39  ;;  %v4295_v30 = vld [vmem:[#allocation3 + $0xa8] sm:$0xff]  ;;  %v3853_v27 = vld [vmem:[#allocation3 + $0xf8] sm:$0xff] }
 0x219   : > { %4481 = vst.msk [vmem:[%s7073_s11 + $0x78] sm:$0xff] %vm275_vm0, %v4449_v61  ;;  %3911 = vst.msk [vmem:[#allocation3 + $0xc8] sm:$0xff] %vm275_vm0, %v3879_v14  ;;  %v4327_v4 = vadd.f32 %v7148_v35, %v4295_v30  ;;  %v4294_v18 = vld [vmem:[#allocation3 + $0xa0] sm:$0xff]  ;;  %v7196_v34 = vpop.f32.mrb[138].mxu0  ;;  %v3848_v35 = vld [vmem:[#allocation3 + $0xd0] sm:$0xff] }
 0x21a   : > { %4480 = vst.msk [vmem:[%s7073_s11 + $0x70] sm:$0xff] %vm275_vm0, %v4448_v23  ;;  %v4387_v40 = vld [vmem:[#allocation3 + $0x88] sm:$0xff]  ;;  %3910 = vst.msk [vmem:[#allocation3 + $0xc0] sm:$0xff] %vm275_vm0, %v3878_v24  ;;  %v4326_v56 = vadd.f32 %v4294_v18, %v7154_v42  ;;  %v5645_v41 = vpop.f32.mrb[138].mxu1  ;;  %v7202_v48 = vpop.f32.mrb[139].mxu0  ;;  %v4420_v42 = vld [vmem:[%s7054_s8 + $0x90] sm:$0xff] }
 0x21b   : > { %v4451_v32 = vadd.f32 %v4419_v11, %v4387_v40  ;;  %v4386_v31 = vld [vmem:[#allocation3 + $0x80] sm:$0xff]  ;;  %4359 = vst.msk [vmem:[#allocation3 + $0xa8] sm:$0xff] %vm275_vm0, %v4327_v4  ;;  %v3881_v49 = vadd.f32 %v5645_v41, %v3849_v45  ;;  %v3793_v33 = vpop.f32.mrb[139].mxu1  ;;  %v4425_v12 = vld [vmem:[%s7054_s8 + $0xb8] sm:$0xff]  ;;  %v4427_v24 = vld [vmem:[%s7054_s8 + $0xc8] sm:$0xff] }
 0x21c   : > { %v4450_v50 = vadd.f32 %v4418_v26, %v4386_v31  ;;  %4358 = vst.msk [vmem:[#allocation3 + $0xa0] sm:$0xff] %vm275_vm0, %v4326_v56  ;;  %v3880_v28 = vadd.f32 %v3848_v35, %v3793_v33  ;;  %v4297_v37 = vld [vmem:[#allocation3 + $0xb8] sm:$0xff]  ;;  %v4426_v26 = vld [vmem:[%s7054_s8 + $0xc0] sm:$0xff]  ;;  %v4428_v31 = vld [vmem:[%s7054_s8 + $0xd0] sm:$0xff] }
 0x21d   : > { %4483 = vst.msk [vmem:[%s7073_s11 + $0x88] sm:$0xff] %vm275_vm0, %v4451_v32  ;;  %3913 = vst.msk [vmem:[#allocation3 + $0xd8] sm:$0xff] %vm275_vm0, %v3881_v49  ;;  %v4329_v52 = vadd.f32 %v7164_v53, %v4297_v37  ;;  %v4296_v43 = vld [vmem:[#allocation3 + $0xb0] sm:$0xff]  ;;  %v5700_v59 = vpop.f32.mrb[140].mxu0  ;;  %v3850_v53 = vld [vmem:[#allocation3 + $0xe0] sm:$0xff] }
 0x21e   : > { %4482 = vst.msk [vmem:[%s7073_s11 + $0x80] sm:$0xff] %vm275_vm0, %v4450_v50  ;;  %v4389_v44 = vld [vmem:[#allocation3 + $0x98] sm:$0xff]  ;;  %3912 = vst.msk [vmem:[#allocation3 + $0xd0] sm:$0xff] %vm275_vm0, %v3880_v28  ;;  %v4328_v55 = vadd.f32 %v4296_v43, %v7170_v47  ;;  %v5648_v60 = vpop.f32.mrb[140].mxu1  ;;  %v4255_v57 = vpop.f32.mrb[141].mxu0  ;;  %v4422_v47 = vld [vmem:[%s7054_s8 + $0xa0] sm:$0xff] }
 0x21f   : > { %v4453_v62 = vadd.f32 %v4421_v13, %v4389_v44  ;;  %v4388_v2 = vld [vmem:[#allocation3 + $0x90] sm:$0xff]  ;;  %4361 = vst.msk [vmem:[#allocation3 + $0xb8] sm:$0xff] %vm275_vm0, %v4329_v52  ;;  %v3883_v51 = vadd.f32 %v5648_v60, %v3851_v0  ;;  %v3803_v6 = vpop.f32.mrb[141].mxu1  ;;  %v4433_v60 = vld [vmem:[%s7054_s8 + $0xf8] sm:$0xff]  ;;  %v4432_v0 = vld [vmem:[%s7054_s8 + $0xf0] sm:$0xff] }
 0x220   : > { %v4452_v58 = vadd.f32 %v4420_v42, %v4388_v2  ;;  %4360 = vst.msk [vmem:[#allocation3 + $0xb0] sm:$0xff] %vm275_vm0, %v4328_v55  ;;  %v3882_v15 = vadd.f32 %v3850_v53, %v3803_v6  ;;  %v4299_v21 = vld [vmem:[#allocation3 + $0xc8] sm:$0xff]  ;;  %v4431_v42 = vld [vmem:[%s7054_s8 + $0xe8] sm:$0xff]  ;;  %v4430_v52 = vld [vmem:[%s7054_s8 + $0xe0] sm:$0xff] }
 0x221   : > { %4485 = vst.msk [vmem:[%s7073_s11 + $0x98] sm:$0xff] %vm275_vm0, %v4453_v62  ;;  %3915 = vst.msk [vmem:[#allocation3 + $0xe8] sm:$0xff] %vm275_vm0, %v3883_v51  ;;  %v4331_v17 = vadd.f32 %v7180_v7, %v4299_v21  ;;  %v4298_v63 = vld [vmem:[#allocation3 + $0xc0] sm:$0xff]  ;;  %v5703_v8 = vpop.f32.mrb[142].mxu0  ;;  %v3852_v7 = vld [vmem:[#allocation3 + $0xf0] sm:$0xff] }
 0x222   : > { %4484 = vst.msk [vmem:[%s7073_s11 + $0x90] sm:$0xff] %vm275_vm0, %v4452_v58  ;;  %v4391_v1 = vld [vmem:[#allocation3 + $0xa8] sm:$0xff]  ;;  %3914 = vst.msk [vmem:[#allocation3 + $0xe0] sm:$0xff] %vm275_vm0, %v3882_v15  ;;  %v4330_v36 = vadd.f32 %v4298_v63, %v7186_v29  ;;  %v5651_v19 = vpop.f32.mrb[142].mxu1  ;;  %v4265_v3 = vpop.f32.mrb[143].mxu0  ;;  %v4424_v29 = vld [vmem:[%s7054_s8 + $0xb0] sm:$0xff] }
 0x223   : > { %v4455_v5 = vadd.f32 %v4423_v16, %v4391_v1  ;;  %v4390_v25 = vld [vmem:[#allocation3 + $0xa0] sm:$0xff]  ;;  %4363 = vst.msk [vmem:[#allocation3 + $0xc8] sm:$0xff] %vm275_vm0, %v4331_v17  ;;  %v3885_v22 = vadd.f32 %v5651_v19, %v3853_v27  ;;  %v3813_v10 = vpop.f32.mrb[143].mxu1 }
 0x224   : > { %v4454_v38 = vadd.f32 %v4422_v47, %v4390_v25  ;;  %4362 = vst.msk [vmem:[#allocation3 + $0xc0] sm:$0xff] %vm275_vm0, %v4330_v36  ;;  %v3884_v54 = vadd.f32 %v3852_v7, %v3813_v10  ;;  %v4301_v9 = vld [vmem:[#allocation3 + $0xd8] sm:$0xff] }
 0x225   : > { %4487 = vst.msk [vmem:[%s7073_s11 + $0xa8] sm:$0xff] %vm275_vm0, %v4455_v5  ;;  %3917 = vst.msk [vmem:[#allocation3 + $0xf8] sm:$0xff] %vm275_vm0, %v3885_v22  ;;  %v4333_v61 = vadd.f32 %v7196_v34, %v4301_v9  ;;  %v4300_v20 = vld [vmem:[#allocation3 + $0xd0] sm:$0xff] }
 0x226   : > { %4486 = vst.msk [vmem:[%s7073_s11 + $0xa0] sm:$0xff] %vm275_vm0, %v4454_v38  ;;  %v4393_v14 = vld [vmem:[#allocation3 + $0xb8] sm:$0xff]  ;;  %3916 = vst.msk [vmem:[#allocation3 + $0xf0] sm:$0xff] %vm275_vm0, %v3884_v54  ;;  %v4332_v39 = vadd.f32 %v4300_v20, %v7202_v48  ;;  %v4429_v48 = vld [vmem:[%s7054_s8 + $0xd8] sm:$0xff] }
 0x227   : > { %v4457_v46 = vadd.f32 %v4425_v12, %v4393_v14  ;;  %v4392_v23 = vld [vmem:[#allocation3 + $0xb0] sm:$0xff]  ;;  %4365 = vst.msk [vmem:[#allocation3 + $0xd8] sm:$0xff] %vm275_vm0, %v4333_v61 }
 0x228   : > { %v4456_v11 = vadd.f32 %v4424_v29, %v4392_v23  ;;  %4364 = vst.msk [vmem:[#allocation3 + $0xd0] sm:$0xff] %vm275_vm0, %v4332_v39  ;;  %v4303_v30 = vld [vmem:[#allocation3 + $0xe8] sm:$0xff] }
 0x229   : > { %4489 = vst.msk [vmem:[%s7073_s11 + $0xb8] sm:$0xff] %vm275_vm0, %v4457_v46  ;;  %v4335_v4 = vadd.f32 %v5700_v59, %v4303_v30  ;;  %v4302_v18 = vld [vmem:[#allocation3 + $0xe0] sm:$0xff] }
 0x22a   : > { %4488 = vst.msk [vmem:[%s7073_s11 + $0xb0] sm:$0xff] %vm275_vm0, %v4456_v11  ;;  %v4395_v34 = vld [vmem:[#allocation3 + $0xc8] sm:$0xff]  ;;  %v4334_v40 = vadd.f32 %v4302_v18, %v4255_v57 }
 0x22b   : > { %v4459_v56 = vadd.f32 %v4427_v24, %v4395_v34  ;;  %v4394_v41 = vld [vmem:[#allocation3 + $0xc0] sm:$0xff]  ;;  %4367 = vst.msk [vmem:[#allocation3 + $0xe8] sm:$0xff] %vm275_vm0, %v4335_v4 }
 0x22c   : > { %v4458_v45 = vadd.f32 %v4426_v26, %v4394_v41  ;;  %4366 = vst.msk [vmem:[#allocation3 + $0xe0] sm:$0xff] %vm275_vm0, %v4334_v40  ;;  %v4305_v32 = vld [vmem:[#allocation3 + $0xf8] sm:$0xff] }
 0x22d   : > { %4491 = vst.msk [vmem:[%s7073_s11 + $0xc8] sm:$0xff] %vm275_vm0, %v4459_v56  ;;  %v4337_v49 = vadd.f32 %v5703_v8, %v4305_v32  ;;  %v4304_v33 = vld [vmem:[#allocation3 + $0xf0] sm:$0xff] }
 0x22e   : > { %4490 = vst.msk [vmem:[%s7073_s11 + $0xc0] sm:$0xff] %vm275_vm0, %v4458_v45  ;;  %v4397_v35 = vld [vmem:[#allocation3 + $0xd8] sm:$0xff]  ;;  %v4336_v50 = vadd.f32 %v4304_v33, %v4265_v3 }
 0x22f   : > { %v4461_v13 = vadd.f32 %v4429_v48, %v4397_v35  ;;  %v4396_v28 = vld [vmem:[#allocation3 + $0xd0] sm:$0xff]  ;;  %4369 = vst.msk [vmem:[#allocation3 + $0xf8] sm:$0xff] %vm275_vm0, %v4337_v49 }
 0x230   : > { %v4460_v37 = vadd.f32 %v4428_v31, %v4396_v28  ;;  %4368 = vst.msk [vmem:[#allocation3 + $0xf0] sm:$0xff] %vm275_vm0, %v4336_v50 }
 0x231   : > { %4493 = vst.msk [vmem:[%s7073_s11 + $0xd8] sm:$0xff] %vm275_vm0, %v4461_v13 }
 0x232   : > { %4492 = vst.msk [vmem:[%s7073_s11 + $0xd0] sm:$0xff] %vm275_vm0, %v4460_v37  ;;  %v4399_v43 = vld [vmem:[#allocation3 + $0xe8] sm:$0xff] }
 0x233   : > { %v4463_v59 = vadd.f32 %v4431_v42, %v4399_v43  ;;  %v4398_v44 = vld [vmem:[#allocation3 + $0xe0] sm:$0xff] }
 0x234   : > { %v4462_v55 = vadd.f32 %v4430_v52, %v4398_v44 }
 0x235   : > { %4495 = vst.msk [vmem:[%s7073_s11 + $0xe8] sm:$0xff] %vm275_vm0, %v4463_v59 }
 0x236   : > { %4494 = vst.msk [vmem:[%s7073_s11 + $0xe0] sm:$0xff] %vm275_vm0, %v4462_v55  ;;  %v4401_v57 = vld [vmem:[#allocation3 + $0xf8] sm:$0xff] }
 0x237   : > { %v4465_v62 = vadd.f32 %v4433_v60, %v4401_v57  ;;  %v4400_v2 = vld [vmem:[#allocation3 + $0xf0] sm:$0xff] }
 0x238   : > { %v4464_v51 = vadd.f32 %v4432_v0, %v4400_v2 }
 0x239   : > { %4497 = vst.msk [vmem:[%s7073_s11 + $0xf8] sm:$0xff] %vm275_vm0, %v4465_v62 }
 0x23a   : > { %4496 = vst.msk [vmem:[%s7073_s11 + $0xf0] sm:$0xff] %vm275_vm0, %v4464_v51 }
 0x23b PF: > { %s13_s14 = sadd.s32 1, %s5789_s14   ;;  %s7405_s12 = smov %s5785_s13 }
 0x23c   : > { %p10_p5 = scmp.ge.s32.totalorder %s13_s14, 4   ;;  %s7406_s13 = smov %s7408_s15 }
 0x23e   :  { %12 = sbr.rel (!%p10_p5) target bundleno = 2 (0x2), region = 83 }

</bundles_post_ra>
